<compile_context>
chip_gen: v7x
topology: tpu7x:2x2x1
jax: 0.10.0
libtpu: 0.0.40
codegen_flags: <defaults>
</compile_context>

<pallas_src>
import functools

import jax
import jax.numpy as jnp
import numpy as np
from jax.experimental import pallas as pl
from jax.experimental.pallas import tpu as pltpu

BN_EPS = 1e-5
LANE = 128
MXU_DTYPE = jnp.bfloat16   # MXU inputs & inter-pass activations; math in f32.
FOLD_W_TAPS = True         # 3 matmuls, K=3*Cp (v6e/v7x 256-wide MXU).
                           # Set False on v5e to keep 9 matmuls with K=Cp.


def _round_up(x, m):
    return (x + m - 1) // m * m


# ----------------------------- Pallas kernels ------------------------------ #

def _conv3x3_stats_kernel(*refs, pre_bn_relu):
    """3x3 conv (padding=1) of one image as accumulated MXU matmuls, plus
    per-channel sum / sum-of-squares partials for cross-batch BatchNorm.

    pre_bn_relu=False (conv1): input block is the spatially pre-padded image
      (H+2, Wp, Cp) bf16 -> taps are read straight from it (no scratch).
    pre_bn_relu=True  (conv2): input block is the raw conv1 output (H, W, Cp)
      bf16; BN1-apply + ReLU is fused here, written into a bf16 halo scratch
      that is fully re-zeroed every step (safe with a "parallel" grid axis).
    """
    if pre_bn_relu:
        (x_ref, scale_ref, shift_ref, w_ref,
         y_ref, sum_ref, sq_ref, acc_ref, pad_ref) = refs
    else:
        x_ref, w_ref, y_ref, sum_ref, sq_ref, acc_ref = refs
        scale_ref = shift_ref = pad_ref = None

    h, w, cp = y_ref.shape
    hw = h * w

    if pre_bn_relu:
        # Re-zero the whole halo scratch each step (the grid is "parallel", so
        # there is no step-0-only init), then write the BN1+ReLU'd interior.
        pad_ref[...] = jnp.zeros_like(pad_ref)
        x2 = x_ref[...].reshape(hw, cp).astype(jnp.float32)
        x2 = jnp.maximum(x2 * scale_ref[...] + shift_ref[...], 0.0)
        pad_ref[1:h + 1, 1:w + 1, :] = x2.reshape(h, w, cp).astype(pad_ref.dtype)
        src = pad_ref
    else:
        src = x_ref

    # Accumulate the conv into an explicit f32 VMEM ref (no spilled carry).
    step = 0
    for dy in range(3):
        if FOLD_W_TAPS:
            band = src[dy:dy + h]                                 # (h, Wp, cp)
            slab = jnp.concatenate(
                [band[:, dx:dx + w, :] for dx in range(3)], axis=-1)
            contrib = jnp.dot(slab.reshape(hw, 3 * cp), w_ref[dy],
                              preferred_element_type=jnp.float32)
            if step == 0:
                acc_ref[...] = contrib
            else:
                acc_ref[...] += contrib
            step += 1
        else:
            for dx in range(3):
                tap = src[dy:dy + h, dx:dx + w, :].reshape(hw, cp)
                contrib = jnp.dot(tap, w_ref[dy, dx * cp:(dx + 1) * cp, :],
                                  preferred_element_type=jnp.float32)
                if step == 0:
                    acc_ref[...] = contrib
                else:
                    acc_ref[...] += contrib
                step += 1

    a = acc_ref[...]
    y_ref[...] = a.reshape(h, w, cp).astype(y_ref.dtype)
    # Per-step BatchNorm partials; reduced across the grid in JAX glue.
    sum_ref[...] = jnp.sum(a, axis=0, keepdims=True)
    sq_ref[...] = jnp.sum(a * a, axis=0, keepdims=True)


def _bn_apply_add_relu_kernel(y_ref, r_ref, scale_ref, shift_ref, o_ref):
    """out = ReLU(y * scale + shift + residual) on a (TM, Cp) row tile."""
    o_ref[...] = jnp.maximum(
        y_ref[...].astype(jnp.float32) * scale_ref[...] + shift_ref[...]
        + r_ref[...].astype(jnp.float32), 0.0)


# ----------------------------- pallas_call wrappers ------------------------- #

def _conv3x3_with_stats(x_in, w_slabs, out_hw, scale=None, shift=None):
    """Returns (y_raw_bf16, per-step chan sums, per-step chan sumsqs).
    Grid over batch, "parallel" (megacore-shardable); each step does the
    (optional fused BN1+ReLU) + 3x3 conv via folded-K MXU matmuls."""
    n = x_in.shape[0]
    h, w = out_hw
    cp = w_slabs.shape[-1]
    pre = scale is not None
    wp = _round_up(w + 2, 8)
    kernel = functools.partial(_conv3x3_stats_kernel, pre_bn_relu=pre)

    in_arrays = [x_in]
    in_specs = [pl.BlockSpec((None,) + x_in.shape[1:],
                             lambda i: (i, 0, 0, 0))]
    if pre:
        in_arrays += [scale, shift]
        in_specs += [pl.BlockSpec((1, cp), lambda i: (0, 0)),
                     pl.BlockSpec((1, cp), lambda i: (0, 0))]
    in_arrays.append(w_slabs)
    in_specs.append(pl.BlockSpec((3, 3 * cp, cp), lambda i: (0, 0, 0)))
    # TODO(synk): pipeline_mode=pl.Buffered(1) on the constant weight / scale /
    # shift blocks would drop their redundant second VMEM buffer (v7x headroom).

    out_shape = (jax.ShapeDtypeStruct((n, h, w, cp), MXU_DTYPE),
                 jax.ShapeDtypeStruct((n, 1, cp), jnp.float32),
                 jax.ShapeDtypeStruct((n, 1, cp), jnp.float32))
    out_specs = (pl.BlockSpec((None, h, w, cp), lambda i: (i, 0, 0, 0)),
                 pl.BlockSpec((None, 1, cp), lambda i: (i, 0, 0)),
                 pl.BlockSpec((None, 1, cp), lambda i: (i, 0, 0)))

    scratch = [pltpu.VMEM((h * w, cp), jnp.float32)]        # f32 conv accumulator
    if pre:
        scratch.append(pltpu.VMEM((h + 2, wp, cp), MXU_DTYPE))  # bf16 halo pad

    flops = 2 * n * h * w * 9 * cp * cp
    bytes_accessed = (x_in.size * x_in.dtype.itemsize + w_slabs.size * 2
                      + n * h * w * cp * 2 + 2 * n * cp * 4
                      + (2 * cp * 4 if pre else 0))

    return pl.pallas_call(
        kernel,
        grid=(n,),
        in_specs=in_specs,
        out_specs=out_specs,
        out_shape=out_shape,
        scratch_shapes=scratch,
        compiler_params=pltpu.CompilerParams(
            # No cross-step state -> megacore-shardable on v7x.
            dimension_semantics=("parallel",)),
        cost_estimate=pl.CostEstimate(flops=flops, transcendentals=0,
                                      bytes_accessed=bytes_accessed),
    )(*in_arrays)
    # TODO(synk): for large spatial sizes, additionally tile over row blocks
    # with a 2-row halo (pl.Element offsets into the padded H axis) to cap the
    # per-step VMEM footprint and deepen the software pipeline.


def _bn_apply_add_relu(y2, resid, scale, shift):
    """Elementwise BN-apply + residual + ReLU over lane-dense flat row tiles."""
    n, h, w, cp = y2.shape
    m = n * h * w
    tm = min(512, m)
    out = pl.pallas_call(
        _bn_apply_add_relu_kernel,
        grid=(pl.cdiv(m, tm),),
        in_specs=[pl.BlockSpec((tm, cp), lambda i: (i, 0)),
                  pl.BlockSpec((tm, cp), lambda i: (i, 0)),
                  pl.BlockSpec((1, cp), lambda i: (0, 0)),
                  pl.BlockSpec((1, cp), lambda i: (0, 0))],
        out_specs=pl.BlockSpec((tm, cp), lambda i: (i, 0)),
        out_shape=jax.ShapeDtypeStruct((m, cp), jnp.float32),
        compiler_params=pltpu.CompilerParams(
            dimension_semantics=("parallel",)),
        cost_estimate=pl.CostEstimate(
            flops=4 * m * cp, transcendentals=0,
            bytes_accessed=2 * m * cp * 2 + (m * cp + 2 * cp) * 4),
    )(y2.reshape(m, cp), resid.reshape(m, cp), scale, shift)
    return out.reshape(n, h, w, cp)


# ------------------------------- glue (JAX) -------------------------------- #

def _weight_to_slabs(w_oihw, cp):
    """(Cout, Cin, 3, 3) -> (3, 3*Cp, Cp): row dy holds the dx = 0|1|2 tap
    matrices stacked along the contraction axis (matches the in-kernel
    horizontal-tap concat), channel-padded and cast for the MXU."""
    cout, cin = w_oihw.shape[0], w_oihw.shape[1]
    wt = jnp.transpose(w_oihw, (2, 3, 1, 0))               # (3, 3, Cin, Cout)
    wt = jnp.pad(wt, ((0, 0), (0, 0), (0, cp - cin), (0, cp - cout)))
    return wt.reshape(3, 3 * cp, cp).astype(MXU_DTYPE)


def _bn_scale_shift(sum_steps, sq_steps, gamma_p, beta_p, count):
    """Per-channel scale/shift from per-grid-step sum/sumsq partials
    (biased variance -> PyTorch training-mode batch statistics)."""
    s = jnp.sum(sum_steps, axis=0)                          # (1, Cp)
    q = jnp.sum(sq_steps, axis=0)                           # (1, Cp)
    mean = s / count
    var = jnp.maximum(q / count - mean * mean, 0.0)
    scale = gamma_p * jax.lax.rsqrt(var + BN_EPS)
    shift = beta_p - mean * scale
    return scale, shift                                     # both (1, Cp) f32


@jax.jit
def resnet_block_forward(x_nchw, w1, g1, b1, w2, g2, b2):
    """Pallas implementation of ResnetBlock.forward (stride=1, inplanes==planes)."""
    n, cin, h, w = x_nchw.shape
    planes = w1.shape[0]
    assert cin == planes, "residual add requires inplanes == planes (stride=1)"
    cp = _round_up(max(cin, planes), LANE)
    wp = _round_up(w + 2, 8)
    m = n * h * w

    # NCHW -> NHWC, channel axis zero-padded to a lane-dense multiple of 128,
    # stored bf16 (the MXU consumes bf16; every inter-pass HBM stream halves).
    # TODO(synk): accept/produce NHWC channel-padded activations so these
    # transposes/pads (pure HBM bandwidth) leave the hot path entirely.
    x_nhwc = jnp.transpose(x_nchw, (0, 2, 3, 1))
    x_res = jnp.pad(x_nhwc, ((0, 0), (0, 0), (0, 0),
                             (0, cp - cin))).astype(MXU_DTYPE)   # residual
    x_pad = jnp.pad(x_res, ((0, 0), (1, 1), (1, wp - w - 1), (0, 0)))  # conv1 in

    w1s = _weight_to_slabs(w1, cp)
    w2s = _weight_to_slabs(w2, cp)
    g1p = jnp.pad(g1, (0, cp - planes)).reshape(1, cp)
    b1p = jnp.pad(b1, (0, cp - planes)).reshape(1, cp)
    g2p = jnp.pad(g2, (0, cp - planes)).reshape(1, cp)
    b2p = jnp.pad(b2, (0, cp - planes)).reshape(1, cp)

    # Pass 1: conv1 + per-step BN1 sum/sumsq partials ("parallel" batch grid).
    y1, s1, q1 = _conv3x3_with_stats(x_pad, w1s, (h, w))
    scale1, shift1 = _bn_scale_shift(s1, q1, g1p, b1p, m)

    # Pass 2: fused BN1-apply + ReLU + conv2 + BN2 partials (y1 stays bf16).
    y2, s2, q2 = _conv3x3_with_stats(y1, w2s, (h, w), scale1, shift1)
    scale2, shift2 = _bn_scale_shift(s2, q2, g2p, b2p, m)

    # Pass 3: BN2-apply + residual + ReLU over flat row tiles ("parallel").
    out = _bn_apply_add_relu(y2, x_res, scale2, shift2)

    out = out[..., :planes]
    return jnp.transpose(out, (0, 3, 1, 2))   # back to NCHW, f32
    # TODO(synk): BatchNorm running_mean/running_var buffer updates are not
    # replicated (they do not affect this forward's output).


# --------------------------- pure-JAX reference ----------------------------- #

def _ref_forward(x, w1, g1, b1, w2, g2, b2):
    def conv(x, w):
        return jax.lax.conv_general_dilated(
            x, w, (1, 1), ((1, 1), (1, 1)),
            dimension_numbers=("NCHW", "OIHW", "NCHW"))

    def bn(y, g, b):
        mean = jnp.mean(y, axis=(0, 2, 3), keepdims=True)
        var = jnp.mean((y - mean) ** 2, axis=(0, 2, 3), keepdims=True)
        return ((y - mean) * jax.lax.rsqrt(var + BN_EPS)
                * g.reshape(1, -1, 1, 1) + b.reshape(1, -1, 1, 1))

    out = jnp.maximum(bn(conv(x, w1), g1, b1), 0.0)
    out = bn(conv(out, w2), g2, b2) + x
    return jnp.maximum(out, 0.0)


# ----------------------------------- main ----------------------------------- #

if __name__ == "__main__":
    # ResnetBlock(inplanes=4, planes=4, stride=1); NCHW input (2, 4, 16, 16).
    N, C, H, W = 2, 4, 16, 16
    planes = C

    key = jax.random.PRNGKey(0)
    k_x, k_w1, k_w2 = jax.random.split(key, 3)
    x = jax.random.normal(k_x, (N, C, H, W), jnp.float32)
    w1 = 0.1 * jax.random.normal(k_w1, (planes, C, 3, 3), jnp.float32)
    w2 = 0.1 * jax.random.normal(k_w2, (planes, planes, 3, 3), jnp.float32)
    # BatchNorm2d defaults: weight=1, bias=0 (training-mode batch stats used).
    g1 = jnp.ones((planes,), jnp.float32)
    b1 = jnp.zeros((planes,), jnp.float32)
    g2 = jnp.ones((planes,), jnp.float32)
    b2 = jnp.zeros((planes,), jnp.float32)

    out = resnet_block_forward(x, w1, g1, b1, w2, g2, b2)
    out = jax.block_until_ready(out)

    ref = jax.block_until_ready(_ref_forward(x, w1, g1, b1, w2, g2, b2))
    # Tolerance accounts for bf16 MXU inputs AND bf16 inter-pass activation
    # storage (y1/y2/residual) vs. the all-f32 reference.
    if not np.allclose(np.asarray(out), np.asarray(ref), atol=5e-2, rtol=5e-2):
        raise AssertionError(
            f"mismatch vs reference, max abs diff = "
            f"{float(np.max(np.abs(np.asarray(out) - np.asarray(ref))))}")

    print("KERNEL_OK")
</pallas_src>

<mosaic_0001>
module attributes {stable_mosaic.version = 11 : i64} {
  func.func @_conv3x3_stats_kernel(%arg0: i32, %arg1: memref<1x18x24x128xbf16, #tpu.memory_space<vmem>>, %arg2: memref<3x384x128xbf16, #tpu.memory_space<vmem>>, %arg3: memref<1x16x16x128xbf16, #tpu.memory_space<vmem>>, %arg4: memref<1x1x128xf32, #tpu.memory_space<vmem>>, %arg5: memref<1x1x128xf32, #tpu.memory_space<vmem>>, %arg6: memref<256x128xf32, #tpu.memory_space<vmem>>) attributes {dimension_semantics = [#tpu.dimension_semantics<parallel>], iteration_bounds = array<i64: 2>, scalar_prefetch = 0 : i64, scratch_operands = 1 : i64, tpu.core_type = #tpu.core_type<tc>, window_params = [{transform_indices = @transform_0, window_bounds = array<i64: 1, 18, 24, 128>}, {pipeline_mode = #tpu.pipeline_mode<synchronous>, transform_indices = @transform_1, window_bounds = array<i64: 3, 384, 128>}, {transform_indices = @transform_2, window_bounds = array<i64: 1, 16, 16, 128>}, {transform_indices = @transform_3, window_bounds = array<i64: 1, 1, 128>}, {transform_indices = @transform_4, window_bounds = array<i64: 1, 1, 128>}]} {
    %c0 = arith.constant 0 : index
    %c0_0 = arith.constant 0 : index
    %c0_1 = arith.constant 0 : index
    %c0_2 = arith.constant 0 : index
    %0 = vector.load %arg1[%c0, %c0_0, %c0_1, %c0_2] : memref<1x18x24x128xbf16, #tpu.memory_space<vmem>>, vector<1x16x24x128xbf16>
    %1 = vector.shape_cast %0 : vector<1x16x24x128xbf16> to vector<16x24x128xbf16>
    %2 = vector.extract_strided_slice %1 {offsets = [0, 0, 0], sizes = [16, 16, 128], strides = [1, 1, 1]} : vector<16x24x128xbf16> to vector<16x16x128xbf16>
    %3 = vector.extract_strided_slice %1 {offsets = [0, 1, 0], sizes = [16, 16, 128], strides = [1, 1, 1]} : vector<16x24x128xbf16> to vector<16x16x128xbf16>
    %4 = vector.extract_strided_slice %1 {offsets = [0, 2, 0], sizes = [16, 16, 128], strides = [1, 1, 1]} : vector<16x24x128xbf16> to vector<16x16x128xbf16>
    %5 = tpu.concatenate %2, %3, %4 in 2 : vector<16x16x128xbf16>, vector<16x16x128xbf16>, vector<16x16x128xbf16> -> vector<16x16x384xbf16>
    %6 = vector.shape_cast %5 : vector<16x16x384xbf16> to vector<256x384xbf16>
    %c0_3 = arith.constant 0 : index
    %c0_4 = arith.constant 0 : index
    %c0_5 = arith.constant 0 : index
    %7 = vector.load %arg2[%c0_3, %c0_4, %c0_5] : memref<3x384x128xbf16, #tpu.memory_space<vmem>>, vector<1x384x128xbf16>
    %8 = vector.shape_cast %7 : vector<1x384x128xbf16> to vector<384x128xbf16>
    %cst = arith.constant dense<0.000000e+00> : vector<256x128xf32>
    %9 = tpu.matmul %6, %8, %cst {dimension_numbers = #tpu.dot_dimension_numbers<[1], [0], [0], [1], [0, 0, 1, 1], [], []>} : vector<256x384xbf16>, vector<384x128xbf16>, vector<256x128xf32> -> vector<256x128xf32>
    %c0_6 = arith.constant 0 : index
    %c0_7 = arith.constant 0 : index
    %10 = vector.load %arg6[%c0_6, %c0_7] : memref<256x128xf32, #tpu.memory_space<vmem>>, vector<256x128xf32>
    tpu.vector_store %arg6[%c0_6, %c0_7], %9 {strides = array<i32>} : memref<256x128xf32, #tpu.memory_space<vmem>>, vector<256x128xf32>,
    %c0_8 = arith.constant 0 : index
    %c1 = arith.constant 1 : index
    %c0_9 = arith.constant 0 : index
    %c0_10 = arith.constant 0 : index
    %11 = vector.load %arg1[%c0_8, %c1, %c0_9, %c0_10] : memref<1x18x24x128xbf16, #tpu.memory_space<vmem>>, vector<1x16x24x128xbf16>
    %12 = vector.shape_cast %11 : vector<1x16x24x128xbf16> to vector<16x24x128xbf16>
    %13 = vector.extract_strided_slice %12 {offsets = [0, 0, 0], sizes = [16, 16, 128], strides = [1, 1, 1]} : vector<16x24x128xbf16> to vector<16x16x128xbf16>
    %14 = vector.extract_strided_slice %12 {offsets = [0, 1, 0], sizes = [16, 16, 128], strides = [1, 1, 1]} : vector<16x24x128xbf16> to vector<16x16x128xbf16>
    %15 = vector.extract_strided_slice %12 {offsets = [0, 2, 0], sizes = [16, 16, 128], strides = [1, 1, 1]} : vector<16x24x128xbf16> to vector<16x16x128xbf16>
    %16 = tpu.concatenate %13, %14, %15 in 2 : vector<16x16x128xbf16>, vector<16x16x128xbf16>, vector<16x16x128xbf16> -> vector<16x16x384xbf16>
    %17 = vector.shape_cast %16 : vector<16x16x384xbf16> to vector<256x384xbf16>
    %c1_11 = arith.constant 1 : index
    %c0_12 = arith.constant 0 : index
    %c0_13 = arith.constant 0 : index
    %18 = vector.load %arg2[%c1_11, %c0_12, %c0_13] : memref<3x384x128xbf16, #tpu.memory_space<vmem>>, vector<1x384x128xbf16>
    %19 = vector.shape_cast %18 : vector<1x384x128xbf16> to vector<384x128xbf16>
    %cst_14 = arith.constant dense<0.000000e+00> : vector<256x128xf32>
    %20 = tpu.matmul %17, %19, %cst_14 {dimension_numbers = #tpu.dot_dimension_numbers<[1], [0], [0], [1], [0, 0, 1, 1], [], []>} : vector<256x384xbf16>, vector<384x128xbf16>, vector<256x128xf32> -> vector<256x128xf32>
    %c0_15 = arith.constant 0 : index
    %c0_16 = arith.constant 0 : index
    %21 = vector.load %arg6[%c0_15, %c0_16] : memref<256x128xf32, #tpu.memory_space<vmem>>, vector<256x128xf32>
    %22 = arith.addf %21, %20 : vector<256x128xf32>
    %c0_17 = arith.constant 0 : index
    %c0_18 = arith.constant 0 : index
    %23 = vector.load %arg6[%c0_17, %c0_18] : memref<256x128xf32, #tpu.memory_space<vmem>>, vector<256x128xf32>
    tpu.vector_store %arg6[%c0_17, %c0_18], %22 {strides = array<i32>} : memref<256x128xf32, #tpu.memory_space<vmem>>, vector<256x128xf32>,
    %c0_19 = arith.constant 0 : index
    %c2 = arith.constant 2 : index
    %c0_20 = arith.constant 0 : index
    %c0_21 = arith.constant 0 : index
    %24 = vector.load %arg1[%c0_19, %c2, %c0_20, %c0_21] : memref<1x18x24x128xbf16, #tpu.memory_space<vmem>>, vector<1x16x24x128xbf16>
    %25 = vector.shape_cast %24 : vector<1x16x24x128xbf16> to vector<16x24x128xbf16>
    %26 = vector.extract_strided_slice %25 {offsets = [0, 0, 0], sizes = [16, 16, 128], strides = [1, 1, 1]} : vector<16x24x128xbf16> to vector<16x16x128xbf16>
    %27 = vector.extract_strided_slice %25 {offsets = [0, 1, 0], sizes = [16, 16, 128], strides = [1, 1, 1]} : vector<16x24x128xbf16> to vector<16x16x128xbf16>
    %28 = vector.extract_strided_slice %25 {offsets = [0, 2, 0], sizes = [16, 16, 128], strides = [1, 1, 1]} : vector<16x24x128xbf16> to vector<16x16x128xbf16>
    %29 = tpu.concatenate %26, %27, %28 in 2 : vector<16x16x128xbf16>, vector<16x16x128xbf16>, vector<16x16x128xbf16> -> vector<16x16x384xbf16>
    %30 = vector.shape_cast %29 : vector<16x16x384xbf16> to vector<256x384xbf16>
    %c2_22 = arith.constant 2 : index
    %c0_23 = arith.constant 0 : index
    %c0_24 = arith.constant 0 : index
    %31 = vector.load %arg2[%c2_22, %c0_23, %c0_24] : memref<3x384x128xbf16, #tpu.memory_space<vmem>>, vector<1x384x128xbf16>
    %32 = vector.shape_cast %31 : vector<1x384x128xbf16> to vector<384x128xbf16>
    %cst_25 = arith.constant dense<0.000000e+00> : vector<256x128xf32>
    %33 = tpu.matmul %30, %32, %cst_25 {dimension_numbers = #tpu.dot_dimension_numbers<[1], [0], [0], [1], [0, 0, 1, 1], [], []>} : vector<256x384xbf16>, vector<384x128xbf16>, vector<256x128xf32> -> vector<256x128xf32>
    %c0_26 = arith.constant 0 : index
    %c0_27 = arith.constant 0 : index
    %34 = vector.load %arg6[%c0_26, %c0_27] : memref<256x128xf32, #tpu.memory_space<vmem>>, vector<256x128xf32>
    %35 = arith.addf %34, %33 : vector<256x128xf32>
    %c0_28 = arith.constant 0 : index
    %c0_29 = arith.constant 0 : index
    %36 = vector.load %arg6[%c0_28, %c0_29] : memref<256x128xf32, #tpu.memory_space<vmem>>, vector<256x128xf32>
    tpu.vector_store %arg6[%c0_28, %c0_29], %35 {strides = array<i32>} : memref<256x128xf32, #tpu.memory_space<vmem>>, vector<256x128xf32>,
    %c0_30 = arith.constant 0 : index
    %c0_31 = arith.constant 0 : index
    %37 = vector.load %arg6[%c0_30, %c0_31] : memref<256x128xf32, #tpu.memory_space<vmem>>, vector<256x128xf32>
    %38 = vector.shape_cast %37 : vector<256x128xf32> to vector<16x16x128xf32>
    %39 = arith.truncf %38 : vector<16x16x128xf32> to vector<16x16x128xbf16>
    %c0_32 = arith.constant 0 : index
    %c0_33 = arith.constant 0 : index
    %c0_34 = arith.constant 0 : index
    %c0_35 = arith.constant 0 : index
    %40 = vector.load %arg3[%c0_32, %c0_33, %c0_34, %c0_35] : memref<1x16x16x128xbf16, #tpu.memory_space<vmem>>, vector<1x16x16x128xbf16>
    %41 = vector.shape_cast %40 : vector<1x16x16x128xbf16> to vector<16x16x128xbf16>
    %42 = vector.shape_cast %39 : vector<16x16x128xbf16> to vector<1x16x16x128xbf16>
    tpu.vector_store %arg3[%c0_32, %c0_33, %c0_34, %c0_35], %42 {strides = array<i32>} : memref<1x16x16x128xbf16, #tpu.memory_space<vmem>>, vector<1x16x16x128xbf16>,
    %cst_36 = arith.constant dense<0.000000e+00> : vector<128xf32>
    %43 = vector.multi_reduction <add>, %37, %cst_36 [0] : vector<256x128xf32> to vector<128xf32>
    %44 = vector.shape_cast %43 : vector<128xf32> to vector<1x128xf32>
    %c0_37 = arith.constant 0 : index
    %c0_38 = arith.constant 0 : index
    %c0_39 = arith.constant 0 : index
    %45 = vector.load %arg4[%c0_37, %c0_38, %c0_39] : memref<1x1x128xf32, #tpu.memory_space<vmem>>, vector<1x1x128xf32>
    %46 = vector.shape_cast %45 : vector<1x1x128xf32> to vector<1x128xf32>
    %47 = vector.shape_cast %44 : vector<1x128xf32> to vector<1x1x128xf32>
    tpu.vector_store %arg4[%c0_37, %c0_38, %c0_39], %47 {strides = array<i32>} : memref<1x1x128xf32, #tpu.memory_space<vmem>>, vector<1x1x128xf32>,
    %48 = arith.mulf %37, %37 : vector<256x128xf32>
    %cst_40 = arith.constant dense<0.000000e+00> : vector<128xf32>
    %49 = vector.multi_reduction <add>, %48, %cst_40 [0] : vector<256x128xf32> to vector<128xf32>
    %50 = vector.shape_cast %49 : vector<128xf32> to vector<1x128xf32>
    %c0_41 = arith.constant 0 : index
    %c0_42 = arith.constant 0 : index
    %c0_43 = arith.constant 0 : index
    %51 = vector.load %arg5[%c0_41, %c0_42, %c0_43] : memref<1x1x128xf32, #tpu.memory_space<vmem>>, vector<1x1x128xf32>
    %52 = vector.shape_cast %51 : vector<1x1x128xf32> to vector<1x128xf32>
    %53 = vector.shape_cast %50 : vector<1x128xf32> to vector<1x1x128xf32>
    tpu.vector_store %arg5[%c0_41, %c0_42, %c0_43], %53 {strides = array<i32>} : memref<1x1x128xf32, #tpu.memory_space<vmem>>, vector<1x1x128xf32>,
    return
  }
  func.func @transform_0(%arg0: i32) -> (i32, i32, i32, i32) {
    %c0_i32 = arith.constant 0 : i32
    %c0_i32_0 = arith.constant 0 : i32
    %c0_i32_1 = arith.constant 0 : i32
    %c0_i32_2 = arith.constant 0 : i32
    return %arg0, %c0_i32, %c0_i32_0, %c0_i32_1 : i32, i32, i32, i32
  }
  func.func @transform_1(%arg0: i32) -> (i32, i32, i32) {
    %c0_i32 = arith.constant 0 : i32
    %c0_i32_0 = arith.constant 0 : i32
    %c0_i32_1 = arith.constant 0 : i32
    %c0_i32_2 = arith.constant 0 : i32
    return %c0_i32, %c0_i32_0, %c0_i32_1 : i32, i32, i32
  }
  func.func @transform_2(%arg0: i32) -> (i32, i32, i32, i32) {
    %c0_i32 = arith.constant 0 : i32
    %c0_i32_0 = arith.constant 0 : i32
    %c0_i32_1 = arith.constant 0 : i32
    %c0_i32_2 = arith.constant 0 : i32
    return %arg0, %c0_i32, %c0_i32_0, %c0_i32_1 : i32, i32, i32, i32
  }
  func.func @transform_3(%arg0: i32) -> (i32, i32, i32) {
    %c0_i32 = arith.constant 0 : i32
    %c0_i32_0 = arith.constant 0 : i32
    %c0_i32_1 = arith.constant 0 : i32
    return %arg0, %c0_i32, %c0_i32_0 : i32, i32, i32
  }
  func.func @transform_4(%arg0: i32) -> (i32, i32, i32) {
    %c0_i32 = arith.constant 0 : i32
    %c0_i32_0 = arith.constant 0 : i32
    %c0_i32_1 = arith.constant 0 : i32
    return %arg0, %c0_i32, %c0_i32_0 : i32, i32, i32
  }
}

module attributes {stable_mosaic.version = 11 : i64} {
  func.func @_conv3x3_stats_kernel(%arg0: i32, %arg1: memref<1x16x16x128xbf16, #tpu.memory_space<vmem>>, %arg2: memref<1x128xf32, #tpu.memory_space<vmem>>, %arg3: memref<1x128xf32, #tpu.memory_space<vmem>>, %arg4: memref<3x384x128xbf16, #tpu.memory_space<vmem>>, %arg5: memref<1x16x16x128xbf16, #tpu.memory_space<vmem>>, %arg6: memref<1x1x128xf32, #tpu.memory_space<vmem>>, %arg7: memref<1x1x128xf32, #tpu.memory_space<vmem>>, %arg8: memref<256x128xf32, #tpu.memory_space<vmem>>, %arg9: memref<18x24x128xbf16, #tpu.memory_space<vmem>>) attributes {dimension_semantics = [#tpu.dimension_semantics<parallel>], iteration_bounds = array<i64: 2>, scalar_prefetch = 0 : i64, scratch_operands = 2 : i64, tpu.core_type = #tpu.core_type<tc>, window_params = [{transform_indices = @transform_0, window_bounds = array<i64: 1, 16, 16, 128>}, {pipeline_mode = #tpu.pipeline_mode<synchronous>, transform_indices = @transform_1, window_bounds = array<i64: 1, 128>}, {pipeline_mode = #tpu.pipeline_mode<synchronous>, transform_indices = @transform_2, window_bounds = array<i64: 1, 128>}, {pipeline_mode = #tpu.pipeline_mode<synchronous>, transform_indices = @transform_3, window_bounds = array<i64: 3, 384, 128>}, {transform_indices = @transform_4, window_bounds = array<i64: 1, 16, 16, 128>}, {transform_indices = @transform_5, window_bounds = array<i64: 1, 1, 128>}, {transform_indices = @transform_6, window_bounds = array<i64: 1, 1, 128>}]} {
    %cst = arith.constant 0.000000e+00 : bf16
    %0 = vector.broadcast %cst : bf16 to vector<18x24x128xbf16>
    %c0 = arith.constant 0 : index
    %c0_0 = arith.constant 0 : index
    %c0_1 = arith.constant 0 : index
    %1 = vector.load %arg9[%c0, %c0_0, %c0_1] : memref<18x24x128xbf16, #tpu.memory_space<vmem>>, vector<18x24x128xbf16>
    tpu.vector_store %arg9[%c0, %c0_0, %c0_1], %0 {strides = array<i32>} : memref<18x24x128xbf16, #tpu.memory_space<vmem>>, vector<18x24x128xbf16>,
    %c0_2 = arith.constant 0 : index
    %c0_3 = arith.constant 0 : index
    %c0_4 = arith.constant 0 : index
    %c0_5 = arith.constant 0 : index
    %2 = vector.load %arg1[%c0_2, %c0_3, %c0_4, %c0_5] : memref<1x16x16x128xbf16, #tpu.memory_space<vmem>>, vector<1x16x16x128xbf16>
    %3 = vector.shape_cast %2 : vector<1x16x16x128xbf16> to vector<16x16x128xbf16>
    %4 = vector.shape_cast %3 : vector<16x16x128xbf16> to vector<256x128xbf16>
    %5 = arith.extf %4 : vector<256x128xbf16> to vector<256x128xf32>
    %c0_6 = arith.constant 0 : index
    %c0_7 = arith.constant 0 : index
    %6 = vector.load %arg2[%c0_6, %c0_7] : memref<1x128xf32, #tpu.memory_space<vmem>>, vector<1x128xf32>
    %7 = vector.broadcast %6 : vector<1x128xf32> to vector<256x128xf32>
    %8 = arith.mulf %5, %7 : vector<256x128xf32>
    %c0_8 = arith.constant 0 : index
    %c0_9 = arith.constant 0 : index
    %9 = vector.load %arg3[%c0_8, %c0_9] : memref<1x128xf32, #tpu.memory_space<vmem>>, vector<1x128xf32>
    %10 = vector.broadcast %9 : vector<1x128xf32> to vector<256x128xf32>
    %11 = arith.addf %8, %10 : vector<256x128xf32>
    %cst_10 = arith.constant 0.000000e+00 : f32
    %12 = vector.broadcast %cst_10 : f32 to vector<256x128xf32>
    %13 = arith.maximumf %11, %12 : vector<256x128xf32>
    %14 = vector.shape_cast %13 : vector<256x128xf32> to vector<16x16x128xf32>
    %15 = arith.truncf %14 : vector<16x16x128xf32> to vector<16x16x128xbf16>
    %c1 = arith.constant 1 : index
    %c1_11 = arith.constant 1 : index
    %c0_12 = arith.constant 0 : index
    %16 = vector.load %arg9[%c1, %c1_11, %c0_12] : memref<18x24x128xbf16, #tpu.memory_space<vmem>>, vector<16x16x128xbf16>
    tpu.vector_store %arg9[%c1, %c1_11, %c0_12], %15 {strides = array<i32>} : memref<18x24x128xbf16, #tpu.memory_space<vmem>>, vector<16x16x128xbf16>,
    %c0_13 = arith.constant 0 : index
    %c0_14 = arith.constant 0 : index
    %c0_15 = arith.constant 0 : index
    %17 = vector.load %arg9[%c0_13, %c0_14, %c0_15] : memref<18x24x128xbf16, #tpu.memory_space<vmem>>, vector<16x24x128xbf16>
    %18 = vector.extract_strided_slice %17 {offsets = [0, 0, 0], sizes = [16, 16, 128], strides = [1, 1, 1]} : vector<16x24x128xbf16> to vector<16x16x128xbf16>
    %19 = vector.extract_strided_slice %17 {offsets = [0, 1, 0], sizes = [16, 16, 128], strides = [1, 1, 1]} : vector<16x24x128xbf16> to vector<16x16x128xbf16>
    %20 = vector.extract_strided_slice %17 {offsets = [0, 2, 0], sizes = [16, 16, 128], strides = [1, 1, 1]} : vector<16x24x128xbf16> to vector<16x16x128xbf16>
    %21 = tpu.concatenate %18, %19, %20 in 2 : vector<16x16x128xbf16>, vector<16x16x128xbf16>, vector<16x16x128xbf16> -> vector<16x16x384xbf16>
    %22 = vector.shape_cast %21 : vector<16x16x384xbf16> to vector<256x384xbf16>
    %c0_16 = arith.constant 0 : index
    %c0_17 = arith.constant 0 : index
    %c0_18 = arith.constant 0 : index
    %23 = vector.load %arg4[%c0_16, %c0_17, %c0_18] : memref<3x384x128xbf16, #tpu.memory_space<vmem>>, vector<1x384x128xbf16>
    %24 = vector.shape_cast %23 : vector<1x384x128xbf16> to vector<384x128xbf16>
    %cst_19 = arith.constant dense<0.000000e+00> : vector<256x128xf32>
    %25 = tpu.matmul %22, %24, %cst_19 {dimension_numbers = #tpu.dot_dimension_numbers<[1], [0], [0], [1], [0, 0, 1, 1], [], []>} : vector<256x384xbf16>, vector<384x128xbf16>, vector<256x128xf32> -> vector<256x128xf32>
    %c0_20 = arith.constant 0 : index
    %c0_21 = arith.constant 0 : index
    %26 = vector.load %arg8[%c0_20, %c0_21] : memref<256x128xf32, #tpu.memory_space<vmem>>, vector<256x128xf32>
    tpu.vector_store %arg8[%c0_20, %c0_21], %25 {strides = array<i32>} : memref<256x128xf32, #tpu.memory_space<vmem>>, vector<256x128xf32>,
    %c1_22 = arith.constant 1 : index
    %c0_23 = arith.constant 0 : index
    %c0_24 = arith.constant 0 : index
    %27 = vector.load %arg9[%c1_22, %c0_23, %c0_24] : memref<18x24x128xbf16, #tpu.memory_space<vmem>>, vector<16x24x128xbf16>
    %28 = vector.extract_strided_slice %27 {offsets = [0, 0, 0], sizes = [16, 16, 128], strides = [1, 1, 1]} : vector<16x24x128xbf16> to vector<16x16x128xbf16>
    %29 = vector.extract_strided_slice %27 {offsets = [0, 1, 0], sizes = [16, 16, 128], strides = [1, 1, 1]} : vector<16x24x128xbf16> to vector<16x16x128xbf16>
    %30 = vector.extract_strided_slice %27 {offsets = [0, 2, 0], sizes = [16, 16, 128], strides = [1, 1, 1]} : vector<16x24x128xbf16> to vector<16x16x128xbf16>
    %31 = tpu.concatenate %28, %29, %30 in 2 : vector<16x16x128xbf16>, vector<16x16x128xbf16>, vector<16x16x128xbf16> -> vector<16x16x384xbf16>
    %32 = vector.shape_cast %31 : vector<16x16x384xbf16> to vector<256x384xbf16>
    %c1_25 = arith.constant 1 : index
    %c0_26 = arith.constant 0 : index
    %c0_27 = arith.constant 0 : index
    %33 = vector.load %arg4[%c1_25, %c0_26, %c0_27] : memref<3x384x128xbf16, #tpu.memory_space<vmem>>, vector<1x384x128xbf16>
    %34 = vector.shape_cast %33 : vector<1x384x128xbf16> to vector<384x128xbf16>
    %cst_28 = arith.constant dense<0.000000e+00> : vector<256x128xf32>
    %35 = tpu.matmul %32, %34, %cst_28 {dimension_numbers = #tpu.dot_dimension_numbers<[1], [0], [0], [1], [0, 0, 1, 1], [], []>} : vector<256x384xbf16>, vector<384x128xbf16>, vector<256x128xf32> -> vector<256x128xf32>
    %c0_29 = arith.constant 0 : index
    %c0_30 = arith.constant 0 : index
    %36 = vector.load %arg8[%c0_29, %c0_30] : memref<256x128xf32, #tpu.memory_space<vmem>>, vector<256x128xf32>
    %37 = arith.addf %36, %35 : vector<256x128xf32>
    %c0_31 = arith.constant 0 : index
    %c0_32 = arith.constant 0 : index
    %38 = vector.load %arg8[%c0_31, %c0_32] : memref<256x128xf32, #tpu.memory_space<vmem>>, vector<256x128xf32>
    tpu.vector_store %arg8[%c0_31, %c0_32], %37 {strides = array<i32>} : memref<256x128xf32, #tpu.memory_space<vmem>>, vector<256x128xf32>,
    %c2 = arith.constant 2 : index
    %c0_33 = arith.constant 0 : index
    %c0_34 = arith.constant 0 : index
    %39 = vector.load %arg9[%c2, %c0_33, %c0_34] : memref<18x24x128xbf16, #tpu.memory_space<vmem>>, vector<16x24x128xbf16>
    %40 = vector.extract_strided_slice %39 {offsets = [0, 0, 0], sizes = [16, 16, 128], strides = [1, 1, 1]} : vector<16x24x128xbf16> to vector<16x16x128xbf16>
    %41 = vector.extract_strided_slice %39 {offsets = [0, 1, 0], sizes = [16, 16, 128], strides = [1, 1, 1]} : vector<16x24x128xbf16> to vector<16x16x128xbf16>
    %42 = vector.extract_strided_slice %39 {offsets = [0, 2, 0], sizes = [16, 16, 128], strides = [1, 1, 1]} : vector<16x24x128xbf16> to vector<16x16x128xbf16>
    %43 = tpu.concatenate %40, %41, %42 in 2 : vector<16x16x128xbf16>, vector<16x16x128xbf16>, vector<16x16x128xbf16> -> vector<16x16x384xbf16>
    %44 = vector.shape_cast %43 : vector<16x16x384xbf16> to vector<256x384xbf16>
    %c2_35 = arith.constant 2 : index
    %c0_36 = arith.constant 0 : index
    %c0_37 = arith.constant 0 : index
    %45 = vector.load %arg4[%c2_35, %c0_36, %c0_37] : memref<3x384x128xbf16, #tpu.memory_space<vmem>>, vector<1x384x128xbf16>
    %46 = vector.shape_cast %45 : vector<1x384x128xbf16> to vector<384x128xbf16>
    %cst_38 = arith.constant dense<0.000000e+00> : vector<256x128xf32>
    %47 = tpu.matmul %44, %46, %cst_38 {dimension_numbers = #tpu.dot_dimension_numbers<[1], [0], [0], [1], [0, 0, 1, 1], [], []>} : vector<256x384xbf16>, vector<384x128xbf16>, vector<256x128xf32> -> vector<256x128xf32>
    %c0_39 = arith.constant 0 : index
    %c0_40 = arith.constant 0 : index
    %48 = vector.load %arg8[%c0_39, %c0_40] : memref<256x128xf32, #tpu.memory_space<vmem>>, vector<256x128xf32>
    %49 = arith.addf %48, %47 : vector<256x128xf32>
    %c0_41 = arith.constant 0 : index
    %c0_42 = arith.constant 0 : index
    %50 = vector.load %arg8[%c0_41, %c0_42] : memref<256x128xf32, #tpu.memory_space<vmem>>, vector<256x128xf32>
    tpu.vector_store %arg8[%c0_41, %c0_42], %49 {strides = array<i32>} : memref<256x128xf32, #tpu.memory_space<vmem>>, vector<256x128xf32>,
    %c0_43 = arith.constant 0 : index
    %c0_44 = arith.constant 0 : index
    %51 = vector.load %arg8[%c0_43, %c0_44] : memref<256x128xf32, #tpu.memory_space<vmem>>, vector<256x128xf32>
    %52 = vector.shape_cast %51 : vector<256x128xf32> to vector<16x16x128xf32>
    %53 = arith.truncf %52 : vector<16x16x128xf32> to vector<16x16x128xbf16>
    %c0_45 = arith.constant 0 : index
    %c0_46 = arith.constant 0 : index
    %c0_47 = arith.constant 0 : index
    %c0_48 = arith.constant 0 : index
    %54 = vector.load %arg5[%c0_45, %c0_46, %c0_47, %c0_48] : memref<1x16x16x128xbf16, #tpu.memory_space<vmem>>, vector<1x16x16x128xbf16>
    %55 = vector.shape_cast %54 : vector<1x16x16x128xbf16> to vector<16x16x128xbf16>
    %56 = vector.shape_cast %53 : vector<16x16x128xbf16> to vector<1x16x16x128xbf16>
    tpu.vector_store %arg5[%c0_45, %c0_46, %c0_47, %c0_48], %56 {strides = array<i32>} : memref<1x16x16x128xbf16, #tpu.memory_space<vmem>>, vector<1x16x16x128xbf16>,
    %cst_49 = arith.constant dense<0.000000e+00> : vector<128xf32>
    %57 = vector.multi_reduction <add>, %51, %cst_49 [0] : vector<256x128xf32> to vector<128xf32>
    %58 = vector.shape_cast %57 : vector<128xf32> to vector<1x128xf32>
    %c0_50 = arith.constant 0 : index
    %c0_51 = arith.constant 0 : index
    %c0_52 = arith.constant 0 : index
    %59 = vector.load %arg6[%c0_50, %c0_51, %c0_52] : memref<1x1x128xf32, #tpu.memory_space<vmem>>, vector<1x1x128xf32>
    %60 = vector.shape_cast %59 : vector<1x1x128xf32> to vector<1x128xf32>
    %61 = vector.shape_cast %58 : vector<1x128xf32> to vector<1x1x128xf32>
    tpu.vector_store %arg6[%c0_50, %c0_51, %c0_52], %61 {strides = array<i32>} : memref<1x1x128xf32, #tpu.memory_space<vmem>>, vector<1x1x128xf32>,
    %62 = arith.mulf %51, %51 : vector<256x128xf32>
    %cst_53 = arith.constant dense<0.000000e+00> : vector<128xf32>
    %63 = vector.multi_reduction <add>, %62, %cst_53 [0] : vector<256x128xf32> to vector<128xf32>
    %64 = vector.shape_cast %63 : vector<128xf32> to vector<1x128xf32>
    %c0_54 = arith.constant 0 : index
    %c0_55 = arith.constant 0 : index
    %c0_56 = arith.constant 0 : index
    %65 = vector.load %arg7[%c0_54, %c0_55, %c0_56] : memref<1x1x128xf32, #tpu.memory_space<vmem>>, vector<1x1x128xf32>
    %66 = vector.shape_cast %65 : vector<1x1x128xf32> to vector<1x128xf32>
    %67 = vector.shape_cast %64 : vector<1x128xf32> to vector<1x1x128xf32>
    tpu.vector_store %arg7[%c0_54, %c0_55, %c0_56], %67 {strides = array<i32>} : memref<1x1x128xf32, #tpu.memory_space<vmem>>, vector<1x1x128xf32>,
    return
  }
  func.func @transform_0(%arg0: i32) -> (i32, i32, i32, i32) {
    %c0_i32 = arith.constant 0 : i32
    %c0_i32_0 = arith.constant 0 : i32
    %c0_i32_1 = arith.constant 0 : i32
    %c0_i32_2 = arith.constant 0 : i32
    return %arg0, %c0_i32, %c0_i32_0, %c0_i32_1 : i32, i32, i32, i32
  }
  func.func @transform_1(%arg0: i32) -> (i32, i32) {
    %c0_i32 = arith.constant 0 : i32
    %c0_i32_0 = arith.constant 0 : i32
    %c0_i32_1 = arith.constant 0 : i32
    return %c0_i32, %c0_i32_0 : i32, i32
  }
  func.func @transform_2(%arg0: i32) -> (i32, i32) {
    %c0_i32 = arith.constant 0 : i32
    %c0_i32_0 = arith.constant 0 : i32
    %c0_i32_1 = arith.constant 0 : i32
    return %c0_i32, %c0_i32_0 : i32, i32
  }
  func.func @transform_3(%arg0: i32) -> (i32, i32, i32) {
    %c0_i32 = arith.constant 0 : i32
    %c0_i32_0 = arith.constant 0 : i32
    %c0_i32_1 = arith.constant 0 : i32
    %c0_i32_2 = arith.constant 0 : i32
    return %c0_i32, %c0_i32_0, %c0_i32_1 : i32, i32, i32
  }
  func.func @transform_4(%arg0: i32) -> (i32, i32, i32, i32) {
    %c0_i32 = arith.constant 0 : i32
    %c0_i32_0 = arith.constant 0 : i32
    %c0_i32_1 = arith.constant 0 : i32
    %c0_i32_2 = arith.constant 0 : i32
    return %arg0, %c0_i32, %c0_i32_0, %c0_i32_1 : i32, i32, i32, i32
  }
  func.func @transform_5(%arg0: i32) -> (i32, i32, i32) {
    %c0_i32 = arith.constant 0 : i32
    %c0_i32_0 = arith.constant 0 : i32
    %c0_i32_1 = arith.constant 0 : i32
    return %arg0, %c0_i32, %c0_i32_0 : i32, i32, i32
  }
  func.func @transform_6(%arg0: i32) -> (i32, i32, i32) {
    %c0_i32 = arith.constant 0 : i32
    %c0_i32_0 = arith.constant 0 : i32
    %c0_i32_1 = arith.constant 0 : i32
    return %arg0, %c0_i32, %c0_i32_0 : i32, i32, i32
  }
}

module attributes {stable_mosaic.version = 11 : i64} {
  func.func @_bn_apply_add_relu_kernel(%arg0: i32, %arg1: memref<512x128xbf16, #tpu.memory_space<vmem>>, %arg2: memref<512x128xbf16, #tpu.memory_space<vmem>>, %arg3: memref<1x128xf32, #tpu.memory_space<vmem>>, %arg4: memref<1x128xf32, #tpu.memory_space<vmem>>, %arg5: memref<512x128xf32, #tpu.memory_space<vmem>>) attributes {dimension_semantics = [#tpu.dimension_semantics<parallel>], iteration_bounds = array<i64: 1>, scalar_prefetch = 0 : i64, scratch_operands = 0 : i64, tpu.core_type = #tpu.core_type<tc>, window_params = [{transform_indices = @transform_0, window_bounds = array<i64: 512, 128>}, {transform_indices = @transform_1, window_bounds = array<i64: 512, 128>}, {pipeline_mode = #tpu.pipeline_mode<synchronous>, transform_indices = @transform_2, window_bounds = array<i64: 1, 128>}, {pipeline_mode = #tpu.pipeline_mode<synchronous>, transform_indices = @transform_3, window_bounds = array<i64: 1, 128>}, {transform_indices = @transform_4, window_bounds = array<i64: 512, 128>}]} {
    %c0 = arith.constant 0 : index
    %c0_0 = arith.constant 0 : index
    %0 = vector.load %arg1[%c0, %c0_0] : memref<512x128xbf16, #tpu.memory_space<vmem>>, vector<512x128xbf16>
    %1 = arith.extf %0 : vector<512x128xbf16> to vector<512x128xf32>
    %c0_1 = arith.constant 0 : index
    %c0_2 = arith.constant 0 : index
    %2 = vector.load %arg3[%c0_1, %c0_2] : memref<1x128xf32, #tpu.memory_space<vmem>>, vector<1x128xf32>
    %3 = vector.broadcast %2 : vector<1x128xf32> to vector<512x128xf32>
    %4 = arith.mulf %1, %3 : vector<512x128xf32>
    %c0_3 = arith.constant 0 : index
    %c0_4 = arith.constant 0 : index
    %5 = vector.load %arg4[%c0_3, %c0_4] : memref<1x128xf32, #tpu.memory_space<vmem>>, vector<1x128xf32>
    %6 = vector.broadcast %5 : vector<1x128xf32> to vector<512x128xf32>
    %7 = arith.addf %4, %6 : vector<512x128xf32>
    %c0_5 = arith.constant 0 : index
    %c0_6 = arith.constant 0 : index
    %8 = vector.load %arg2[%c0_5, %c0_6] : memref<512x128xbf16, #tpu.memory_space<vmem>>, vector<512x128xbf16>
    %9 = arith.extf %8 : vector<512x128xbf16> to vector<512x128xf32>
    %10 = arith.addf %7, %9 : vector<512x128xf32>
    %cst = arith.constant 0.000000e+00 : f32
    %11 = vector.broadcast %cst : f32 to vector<512x128xf32>
    %12 = arith.maximumf %10, %11 : vector<512x128xf32>
    %c0_7 = arith.constant 0 : index
    %c0_8 = arith.constant 0 : index
    %13 = vector.load %arg5[%c0_7, %c0_8] : memref<512x128xf32, #tpu.memory_space<vmem>>, vector<512x128xf32>
    tpu.vector_store %arg5[%c0_7, %c0_8], %12 {strides = array<i32>} : memref<512x128xf32, #tpu.memory_space<vmem>>, vector<512x128xf32>,
    return
  }
  func.func @transform_0(%arg0: i32) -> (i32, i32) {
    %c0_i32 = arith.constant 0 : i32
    %c0_i32_0 = arith.constant 0 : i32
    return %arg0, %c0_i32 : i32, i32
  }
  func.func @transform_1(%arg0: i32) -> (i32, i32) {
    %c0_i32 = arith.constant 0 : i32
    %c0_i32_0 = arith.constant 0 : i32
    return %arg0, %c0_i32 : i32, i32
  }
  func.func @transform_2(%arg0: i32) -> (i32, i32) {
    %c0_i32 = arith.constant 0 : i32
    %c0_i32_0 = arith.constant 0 : i32
    %c0_i32_1 = arith.constant 0 : i32
    return %c0_i32, %c0_i32_0 : i32, i32
  }
  func.func @transform_3(%arg0: i32) -> (i32, i32) {
    %c0_i32 = arith.constant 0 : i32
    %c0_i32_0 = arith.constant 0 : i32
    %c0_i32_1 = arith.constant 0 : i32
    return %c0_i32, %c0_i32_0 : i32, i32
  }
  func.func @transform_4(%arg0: i32) -> (i32, i32) {
    %c0_i32 = arith.constant 0 : i32
    %c0_i32_0 = arith.constant 0 : i32
    return %arg0, %c0_i32 : i32, i32
  }
}

</mosaic_0001>

<bundles_post_ra>
// kernel: resnet_block_forward.5
= control target key start
LH: loop header
LB: loop body
LE: loop exit
PB: predicated region body
PF: predicated region fallthrough
CT: control target
= control target key end

     0   :  { %s1478_s0 = inlined_call_operand.vmem [shape: bf16[512,128], index: 0, kind: input, shape index: {}]   ;;  %s1479_s1 = inlined_call_operand.vmem [shape: bf16[512,128], index: 1, kind: input, shape index: {}]   ;;  %s1480_s2 = inlined_call_operand.vmem [shape: f32[1,128], index: 2, kind: input, shape index: {}]   ;;  %s1481_s3 = inlined_call_operand.vmem [shape: f32[1,128], index: 3, kind: input, shape index: {}]   ;;  %s1482_s4 = inlined_call_operand.vmem [shape: f32[512,128], index: 4, kind: output, shape index: {}]  }
   0x1   :  { %v614_v0 = vld [vmem:[%s1478_s0] sm:$0xff]   ;;  %v869_v5 = vld [vmem:[%s1478_s0 + $0x8] sm:$0xff]   ;;  %v870_v12 = vld [vmem:[%s1478_s0 + $0x10] sm:$0xff]  }
   0x2   :  { %v962_v1 = vld [vmem:[%s1480_s2] ss:$0 sm:$0xff]  ;;  %v615_v2 = vunpack.c.l.bf16 %v614_v0  ;;  %v616_v4 = vunpack.c.h.bf16 %v614_v0  ;;  %v900_v6 = vld [vmem:[%s1479_s1 + $0x8] sm:$0xff]   ;;  %v619_v10 = vunpack.c.l.bf16 %v869_v5  ;;  %v901_v13 = vld [vmem:[%s1479_s1 + $0x10] sm:$0xff]   ;;  %v620_v16 = vunpack.c.h.bf16 %v869_v5 }
   0x3   :  { %v742_v3 = vld [vmem:[%s1479_s1] sm:$0xff]   ;;  %v747_v11 = vunpack.c.l.bf16 %v900_v6  ;;  %v748_v17 = vunpack.c.h.bf16 %v900_v6  ;;  %v871_v18 = vld [vmem:[%s1478_s0 + $0x18] sm:$0xff]   ;;  %v623_v20 = vunpack.c.l.bf16 %v870_v12  ;;  %v751_v21 = vunpack.c.l.bf16 %v901_v13  ;;  %v873_v54 = vld [vmem:[%s1478_s0 + $0x28] sm:$0xff]  }
   0x4   :  { %v976_v7 = vld [vmem:[%s1481_s3] ss:$0 sm:$0xff]  ;;  %v743_v8 = vunpack.c.l.bf16 %v742_v3  ;;  %v744_v9 = vunpack.c.h.bf16 %v742_v3  ;;  %v152_v14 = vmul.f32 %v615_v2, %v962_v1  ;;  %v153_v15 = vmul.f32 %v616_v4, %v962_v1  ;;  %v902_v23 = vld [vmem:[%s1479_s1 + $0x18] sm:$0xff]   ;;  %v904_v55 = vld [vmem:[%s1479_s1 + $0x28] sm:$0xff]  }
   0x5   :  { %v154_v19 = vmul.f32 %v619_v10, %v962_v1  ;;  %v624_v22 = vunpack.c.h.bf16 %v870_v12  ;;  %v155_v26 = vmul.f32 %v620_v16, %v962_v1  ;;  %v752_v27 = vunpack.c.h.bf16 %v901_v13  ;;  %v872_v40 = vld [vmem:[%s1478_s0 + $0x20] sm:$0xff]   ;;  %v874_v0 = vld [vmem:[%s1478_s0 + $0x30] sm:$0xff]   ;;  %v875_v16 = vld [vmem:[%s1478_s0 + $0x38] sm:$0xff]  }
   0x6   :  { %v223_v24 = vadd.f32 %v976_v7, %v152_v14  ;;  %v224_v25 = vadd.f32 %v976_v7, %v153_v15  ;;  %v156_v29 = vmul.f32 %v623_v20, %v962_v1  ;;  %v627_v31 = vunpack.c.l.bf16 %v871_v18  ;;  %v903_v45 = vld [vmem:[%s1479_s1 + $0x20] sm:$0xff]   ;;  %v905_v2 = vld [vmem:[%s1479_s1 + $0x30] sm:$0xff]  }
   0x7   :  { %v225_v28 = vadd.f32 %v976_v7, %v154_v19  ;;  %v157_v30 = vmul.f32 %v624_v22, %v962_v1  ;;  %v226_v34 = vadd.f32 %v976_v7, %v155_v26  ;;  %v755_v35 = vunpack.c.l.bf16 %v902_v23 }
   0x8   :  { %v415_v32 = vadd.f32 %v743_v8, %v223_v24  ;;  %v416_v33 = vadd.f32 %v744_v9, %v224_v25  ;;  %v227_v37 = vadd.f32 %v976_v7, %v156_v29  ;;  %v158_v39 = vmul.f32 %v627_v31, %v962_v1 }
   0x9   :  { %v417_v36 = vadd.f32 %v747_v11, %v225_v28  ;;  %v228_v38 = vadd.f32 %v976_v7, %v157_v30  ;;  %v418_v43 = vadd.f32 %v748_v17, %v226_v34  ;;  %v628_v44 = vunpack.c.h.bf16 %v871_v18  ;;  %v876_v34 = vld [vmem:[%s1478_s0 + $0x40] sm:$0xff]  }
   0xa   :  { %v479_v41 = vmax.f32 %v415_v32, 0.0  ;;  %v480_v42 = vmax.f32 %v416_v33, 0.0  ;;  %v419_v47 = vadd.f32 %v751_v21, %v227_v37  ;;  %v229_v49 = vadd.f32 %v976_v7, %v158_v39  ;;  %v906_v21 = vld [vmem:[%s1479_s1 + $0x38] sm:$0xff]   ;;  %v907_v39 = vld [vmem:[%s1479_s1 + $0x40] sm:$0xff]  }
   0xb   :  { %v481_v46 = vmax.f32 %v417_v36, 0.0  ;;  %v420_v48 = vadd.f32 %v752_v27, %v228_v38  ;;  %v482_v50 = vmax.f32 %v418_v43, 0.0  ;;  %v159_v51 = vmul.f32 %v628_v44, %v962_v1 }
   0xc   :  { %543 = vst [vmem:[%s1482_s4] sm:$0xff] %v479_v41  ;;  %544 = vst [vmem:[%s1482_s4 + $0x8] sm:$0xff] %v480_v42  ;;  %v756_v52 = vunpack.c.h.bf16 %v902_v23  ;;  %v631_v53 = vunpack.c.l.bf16 %v872_v40  ;;  %v483_v56 = vmax.f32 %v419_v47, 0.0  ;;  %v421_v58 = vadd.f32 %v755_v35, %v229_v49  ;;  %v908_v49 = vld [vmem:[%s1479_s1 + $0x48] sm:$0xff]  }
   0xd   :  { %545 = vst [vmem:[%s1482_s4 + $0x10] sm:$0xff] %v481_v46  ;;  %v484_v57 = vmax.f32 %v420_v48, 0.0  ;;  %v759_v59 = vunpack.c.l.bf16 %v903_v45  ;;  %546 = vst [vmem:[%s1482_s4 + $0x18] sm:$0xff] %v482_v50  ;;  %v230_v60 = vadd.f32 %v976_v7, %v159_v51  ;;  %v632_v62 = vunpack.c.h.bf16 %v872_v40  ;;  %v877_v48 = vld [vmem:[%s1478_s0 + $0x48] sm:$0xff]  }
   0xe   :  { %v160_v61 = vmul.f32 %v631_v53, %v962_v1  ;;  %v760_v63 = vunpack.c.h.bf16 %v903_v45  ;;  %547 = vst [vmem:[%s1482_s4 + $0x20] sm:$0xff] %v483_v56  ;;  %v485_v3 = vmax.f32 %v421_v58, 0.0  ;;  %v635_v4 = vunpack.c.l.bf16 %v873_v54  ;;  %v878_v58 = vld [vmem:[%s1478_s0 + $0x50] sm:$0xff]  }
   0xf   :  { %548 = vst [vmem:[%s1482_s4 + $0x28] sm:$0xff] %v484_v57  ;;  %v763_v5 = vunpack.c.l.bf16 %v904_v55  ;;  %v636_v6 = vunpack.c.h.bf16 %v873_v54  ;;  %v422_v8 = vadd.f32 %v756_v52, %v230_v60  ;;  %v161_v10 = vmul.f32 %v632_v62, %v962_v1 }
  0x10   :  { %v231_v9 = vadd.f32 %v976_v7, %v160_v61  ;;  %v764_v11 = vunpack.c.h.bf16 %v904_v55  ;;  %549 = vst [vmem:[%s1482_s4 + $0x30] sm:$0xff] %v485_v3  ;;  %v162_v12 = vmul.f32 %v635_v4, %v962_v1  ;;  %v639_v14 = vunpack.c.l.bf16 %v874_v0 }
  0x11   :  { %v163_v13 = vmul.f32 %v636_v6, %v962_v1  ;;  %v767_v15 = vunpack.c.l.bf16 %v905_v2  ;;  %v486_v17 = vmax.f32 %v422_v8, 0.0  ;;  %v232_v19 = vadd.f32 %v976_v7, %v161_v10  ;;  %v879_v10 = vld [vmem:[%s1478_s0 + $0x58] sm:$0xff]  }
  0x12   :  { %v423_v18 = vadd.f32 %v759_v59, %v231_v9  ;;  %v640_v20 = vunpack.c.h.bf16 %v874_v0  ;;  %v233_v22 = vadd.f32 %v976_v7, %v162_v12  ;;  %v164_v24 = vmul.f32 %v639_v14, %v962_v1 }
  0x13   :  { %v234_v23 = vadd.f32 %v976_v7, %v163_v13  ;;  %v768_v25 = vunpack.c.h.bf16 %v905_v2  ;;  %550 = vst [vmem:[%s1482_s4 + $0x38] sm:$0xff] %v486_v17  ;;  %v424_v27 = vadd.f32 %v760_v63, %v232_v19  ;;  %v643_v29 = vunpack.c.l.bf16 %v875_v16  ;;  %v909_v63 = vld [vmem:[%s1479_s1 + $0x50] sm:$0xff]   ;;  %v910_v19 = vld [vmem:[%s1479_s1 + $0x58] sm:$0xff]  }
  0x14   :  { %v487_v26 = vmax.f32 %v423_v18, 0.0  ;;  %v165_v28 = vmul.f32 %v640_v20, %v962_v1  ;;  %v425_v30 = vadd.f32 %v763_v5, %v233_v22  ;;  %v235_v32 = vadd.f32 %v976_v7, %v164_v24 }
  0x15   :  { %v426_v31 = vadd.f32 %v764_v11, %v234_v23  ;;  %v771_v33 = vunpack.c.l.bf16 %v906_v21  ;;  %v488_v35 = vmax.f32 %v424_v27, 0.0  ;;  %v166_v37 = vmul.f32 %v643_v29, %v962_v1 }
  0x16   :  { %551 = vst [vmem:[%s1482_s4 + $0x40] sm:$0xff] %v487_v26  ;;  %v236_v36 = vadd.f32 %v976_v7, %v165_v28  ;;  %v644_v38 = vunpack.c.h.bf16 %v875_v16  ;;  %v489_v40 = vmax.f32 %v425_v30, 0.0  ;;  %v427_v42 = vadd.f32 %v767_v15, %v235_v32  ;;  %v880_v28 = vld [vmem:[%s1478_s0 + $0x60] sm:$0xff]  }
  0x17   :  { %v490_v41 = vmax.f32 %v426_v31, 0.0  ;;  %v772_v43 = vunpack.c.h.bf16 %v906_v21  ;;  %552 = vst [vmem:[%s1482_s4 + $0x48] sm:$0xff] %v488_v35  ;;  %v237_v45 = vadd.f32 %v976_v7, %v166_v37  ;;  %v647_v47 = vunpack.c.l.bf16 %v876_v34 }
  0x18   :  { %v428_v44 = vadd.f32 %v768_v25, %v236_v36  ;;  %v167_v46 = vmul.f32 %v644_v38, %v962_v1  ;;  %553 = vst [vmem:[%s1482_s4 + $0x50] sm:$0xff] %v489_v40  ;;  %v491_v50 = vmax.f32 %v427_v42, 0.0  ;;  %v775_v51 = vunpack.c.l.bf16 %v907_v39  ;;  %v881_v42 = vld [vmem:[%s1478_s0 + $0x68] sm:$0xff]  }
  0x19   :  { %554 = vst [vmem:[%s1482_s4 + $0x58] sm:$0xff] %v490_v41  ;;  %v648_v52 = vunpack.c.h.bf16 %v876_v34  ;;  %v776_v53 = vunpack.c.h.bf16 %v907_v39  ;;  %v429_v55 = vadd.f32 %v771_v33, %v237_v45  ;;  %v168_v57 = vmul.f32 %v647_v47, %v962_v1  ;;  %v911_v33 = vld [vmem:[%s1479_s1 + $0x60] sm:$0xff]  }
  0x1a   :  { %v492_v54 = vmax.f32 %v428_v44, 0.0  ;;  %v238_v56 = vadd.f32 %v976_v7, %v167_v46  ;;  %555 = vst [vmem:[%s1482_s4 + $0x60] sm:$0xff] %v491_v50  ;;  %v651_v60 = vunpack.c.l.bf16 %v877_v48  ;;  %v779_v61 = vunpack.c.l.bf16 %v908_v49 }
  0x1b   :  { %v169_v59 = vmul.f32 %v648_v52, %v962_v1  ;;  %v652_v62 = vunpack.c.h.bf16 %v877_v48  ;;  %v493_v0 = vmax.f32 %v429_v55, 0.0  ;;  %v239_v3 = vadd.f32 %v976_v7, %v168_v57  ;;  %v882_v52 = vld [vmem:[%s1478_s0 + $0x70] sm:$0xff]  }
  0x1c   :  { %556 = vst [vmem:[%s1482_s4 + $0x68] sm:$0xff] %v492_v54  ;;  %v430_v2 = vadd.f32 %v772_v43, %v238_v56  ;;  %v780_v4 = vunpack.c.h.bf16 %v908_v49  ;;  %v170_v6 = vmul.f32 %v651_v60, %v962_v1  ;;  %v655_v9 = vunpack.c.l.bf16 %v878_v58  ;;  %v912_v43 = vld [vmem:[%s1479_s1 + $0x68] sm:$0xff]   ;;  %v913_v57 = vld [vmem:[%s1479_s1 + $0x70] sm:$0xff]  }
  0x1d   :  { %v240_v5 = vadd.f32 %v976_v7, %v169_v59  ;;  %v171_v8 = vmul.f32 %v652_v62, %v962_v1  ;;  %557 = vst [vmem:[%s1482_s4 + $0x70] sm:$0xff] %v493_v0  ;;  %v431_v12 = vadd.f32 %v775_v51, %v239_v3  ;;  %v783_v13 = vunpack.c.l.bf16 %v909_v63  ;;  %v883_v3 = vld [vmem:[%s1478_s0 + $0x78] sm:$0xff]  }
  0x1e   :  { %v494_v11 = vmax.f32 %v430_v2, 0.0  ;;  %v656_v14 = vunpack.c.h.bf16 %v878_v58  ;;  %v241_v16 = vadd.f32 %v976_v7, %v170_v6  ;;  %v172_v18 = vmul.f32 %v655_v9, %v962_v1 }
  0x1f   :  { %v432_v15 = vadd.f32 %v776_v53, %v240_v5  ;;  %v242_v17 = vadd.f32 %v976_v7, %v171_v8  ;;  %v495_v20 = vmax.f32 %v431_v12, 0.0  ;;  %v784_v22 = vunpack.c.h.bf16 %v909_v63 }
  0x20   :  { %558 = vst [vmem:[%s1482_s4 + $0x78] sm:$0xff] %v494_v11  ;;  %v173_v21 = vmul.f32 %v656_v14, %v962_v1  ;;  %v659_v23 = vunpack.c.l.bf16 %v879_v10  ;;  %v433_v25 = vadd.f32 %v779_v61, %v241_v16  ;;  %v243_v27 = vadd.f32 %v976_v7, %v172_v18 }
  0x21   :  { %v496_v24 = vmax.f32 %v432_v15, 0.0  ;;  %v434_v26 = vadd.f32 %v780_v4, %v242_v17  ;;  %559 = vst [vmem:[%s1482_s4 + $0x80] sm:$0xff] %v495_v20  ;;  %v787_v31 = vunpack.c.l.bf16 %v910_v19  ;;  %v660_v32 = vunpack.c.h.bf16 %v879_v10 }
  0x22   :  { %v244_v29 = vadd.f32 %v976_v7, %v173_v21  ;;  %v174_v30 = vmul.f32 %v659_v23, %v962_v1  ;;  %v497_v34 = vmax.f32 %v433_v25, 0.0  ;;  %v435_v36 = vadd.f32 %v783_v13, %v243_v27  ;;  %v914_v13 = vld [vmem:[%s1479_s1 + $0x78] sm:$0xff]   ;;  %v915_v27 = vld [vmem:[%s1479_s1 + $0x80] sm:$0xff]  }
  0x23   :  { %560 = vst [vmem:[%s1482_s4 + $0x88] sm:$0xff] %v496_v24  ;;  %v498_v35 = vmax.f32 %v434_v26, 0.0  ;;  %v788_v37 = vunpack.c.h.bf16 %v910_v19  ;;  %v175_v40 = vmul.f32 %v660_v32, %v962_v1  ;;  %v663_v41 = vunpack.c.l.bf16 %v880_v28 }
  0x24   :  { %v436_v38 = vadd.f32 %v784_v22, %v244_v29  ;;  %v245_v39 = vadd.f32 %v976_v7, %v174_v30  ;;  %561 = vst [vmem:[%s1482_s4 + $0x90] sm:$0xff] %v497_v34  ;;  %v499_v44 = vmax.f32 %v435_v36, 0.0  ;;  %v791_v45 = vunpack.c.l.bf16 %v911_v33  ;;  %v884_v22 = vld [vmem:[%s1478_s0 + $0x80] sm:$0xff]   ;;  %v885_v36 = vld [vmem:[%s1478_s0 + $0x88] sm:$0xff]  }
  0x25   :  { %562 = vst [vmem:[%s1482_s4 + $0x98] sm:$0xff] %v498_v35  ;;  %v664_v46 = vunpack.c.h.bf16 %v880_v28  ;;  %v792_v47 = vunpack.c.h.bf16 %v911_v33  ;;  %v246_v50 = vadd.f32 %v976_v7, %v175_v40  ;;  %v176_v51 = vmul.f32 %v663_v41, %v962_v1 }
  0x26   :  { %v500_v48 = vmax.f32 %v436_v38, 0.0  ;;  %v437_v49 = vadd.f32 %v787_v31, %v245_v39  ;;  %563 = vst [vmem:[%s1482_s4 + $0xa0] sm:$0xff] %v499_v44  ;;  %v667_v54 = vunpack.c.l.bf16 %v881_v42  ;;  %v795_v55 = vunpack.c.l.bf16 %v912_v43 }
  0x27   :  { %v177_v53 = vmul.f32 %v664_v46, %v962_v1  ;;  %v668_v56 = vunpack.c.h.bf16 %v881_v42  ;;  %v438_v59 = vadd.f32 %v788_v37, %v246_v50  ;;  %v247_v60 = vadd.f32 %v976_v7, %v176_v51  ;;  %v916_v37 = vld [vmem:[%s1479_s1 + $0x88] sm:$0xff]   ;;  %v886_v46 = vld [vmem:[%s1478_s0 + $0x90] sm:$0xff]  }
  0x28   :  { %564 = vst [vmem:[%s1482_s4 + $0xa8] sm:$0xff] %v500_v48  ;;  %v501_v58 = vmax.f32 %v437_v49, 0.0  ;;  %v796_v61 = vunpack.c.h.bf16 %v912_v43  ;;  %v178_v63 = vmul.f32 %v667_v54, %v962_v1  ;;  %v671_v2 = vunpack.c.l.bf16 %v882_v52  ;;  %v917_v51 = vld [vmem:[%s1479_s1 + $0x90] sm:$0xff]  }
  0x29   :  { %v248_v62 = vadd.f32 %v976_v7, %v177_v53  ;;  %v179_v0 = vmul.f32 %v668_v56, %v962_v1  ;;  %v502_v4 = vmax.f32 %v438_v59, 0.0  ;;  %v439_v5 = vadd.f32 %v791_v45, %v247_v60  ;;  %v887_v60 = vld [vmem:[%s1478_s0 + $0x98] sm:$0xff]  }
  0x2a   :  { %565 = vst [vmem:[%s1482_s4 + $0xb0] sm:$0xff] %v501_v58  ;;  %v799_v6 = vunpack.c.l.bf16 %v913_v57  ;;  %v672_v8 = vunpack.c.h.bf16 %v882_v52  ;;  %v249_v10 = vadd.f32 %v976_v7, %v178_v63  ;;  %v180_v12 = vmul.f32 %v671_v2, %v962_v1 }
  0x2b   :  { %v440_v9 = vadd.f32 %v792_v47, %v248_v62  ;;  %v250_v11 = vadd.f32 %v976_v7, %v179_v0  ;;  %566 = vst [vmem:[%s1482_s4 + $0xb8] sm:$0xff] %v502_v4  ;;  %v503_v14 = vmax.f32 %v439_v5, 0.0  ;;  %v800_v16 = vunpack.c.h.bf16 %v913_v57 }
  0x2c   :  { %v181_v15 = vmul.f32 %v672_v8, %v962_v1  ;;  %v675_v17 = vunpack.c.l.bf16 %v883_v3  ;;  %v441_v19 = vadd.f32 %v795_v55, %v249_v10  ;;  %v251_v21 = vadd.f32 %v976_v7, %v180_v12 }
  0x2d   :  { %v504_v18 = vmax.f32 %v440_v9, 0.0  ;;  %v442_v20 = vadd.f32 %v796_v61, %v250_v11  ;;  %567 = vst [vmem:[%s1482_s4 + $0xc0] sm:$0xff] %v503_v14  ;;  %v803_v25 = vunpack.c.l.bf16 %v914_v13  ;;  %v676_v26 = vunpack.c.h.bf16 %v883_v3 }
  0x2e   :  { %v252_v23 = vadd.f32 %v976_v7, %v181_v15  ;;  %v182_v24 = vmul.f32 %v675_v17, %v962_v1  ;;  %v505_v28 = vmax.f32 %v441_v19, 0.0  ;;  %v443_v30 = vadd.f32 %v799_v6, %v251_v21  ;;  %v918_v6 = vld [vmem:[%s1479_s1 + $0x98] sm:$0xff]   ;;  %v919_v21 = vld [vmem:[%s1479_s1 + $0xa0] sm:$0xff]  }
  0x2f   :  { %568 = vst [vmem:[%s1482_s4 + $0xc8] sm:$0xff] %v504_v18  ;;  %v506_v29 = vmax.f32 %v442_v20, 0.0  ;;  %v804_v31 = vunpack.c.h.bf16 %v914_v13  ;;  %v183_v34 = vmul.f32 %v676_v26, %v962_v1  ;;  %v679_v35 = vunpack.c.l.bf16 %v884_v22 }
  0x30   :  { %v444_v32 = vadd.f32 %v800_v16, %v252_v23  ;;  %v253_v33 = vadd.f32 %v976_v7, %v182_v24  ;;  %569 = vst [vmem:[%s1482_s4 + $0xd0] sm:$0xff] %v505_v28  ;;  %v507_v38 = vmax.f32 %v443_v30, 0.0  ;;  %v807_v39 = vunpack.c.l.bf16 %v915_v27  ;;  %v888_v16 = vld [vmem:[%s1478_s0 + $0xa0] sm:$0xff]   ;;  %v889_v30 = vld [vmem:[%s1478_s0 + $0xa8] sm:$0xff]  }
  0x31   :  { %570 = vst [vmem:[%s1482_s4 + $0xd8] sm:$0xff] %v506_v29  ;;  %v680_v40 = vunpack.c.h.bf16 %v884_v22  ;;  %v808_v41 = vunpack.c.h.bf16 %v915_v27  ;;  %v254_v44 = vadd.f32 %v976_v7, %v183_v34  ;;  %v184_v45 = vmul.f32 %v679_v35, %v962_v1 }
  0x32   :  { %v508_v42 = vmax.f32 %v444_v32, 0.0  ;;  %v445_v43 = vadd.f32 %v803_v25, %v253_v33  ;;  %571 = vst [vmem:[%s1482_s4 + $0xe0] sm:$0xff] %v507_v38  ;;  %v683_v48 = vunpack.c.l.bf16 %v885_v36  ;;  %v811_v49 = vunpack.c.l.bf16 %v916_v37 }
  0x33   :  { %v185_v47 = vmul.f32 %v680_v40, %v962_v1  ;;  %v684_v50 = vunpack.c.h.bf16 %v885_v36  ;;  %v446_v53 = vadd.f32 %v804_v31, %v254_v44  ;;  %v255_v54 = vadd.f32 %v976_v7, %v184_v45  ;;  %v920_v31 = vld [vmem:[%s1479_s1 + $0xa8] sm:$0xff]   ;;  %v890_v40 = vld [vmem:[%s1478_s0 + $0xb0] sm:$0xff]  }
  0x34   :  { %572 = vst [vmem:[%s1482_s4 + $0xe8] sm:$0xff] %v508_v42  ;;  %v509_v52 = vmax.f32 %v445_v43, 0.0  ;;  %v812_v55 = vunpack.c.h.bf16 %v916_v37  ;;  %v186_v57 = vmul.f32 %v683_v48, %v962_v1  ;;  %v687_v59 = vunpack.c.l.bf16 %v886_v46  ;;  %v921_v45 = vld [vmem:[%s1479_s1 + $0xb0] sm:$0xff]  }
  0x35   :  { %v256_v56 = vadd.f32 %v976_v7, %v185_v47  ;;  %v187_v58 = vmul.f32 %v684_v50, %v962_v1  ;;  %v510_v61 = vmax.f32 %v446_v53, 0.0  ;;  %v447_v62 = vadd.f32 %v807_v39, %v255_v54  ;;  %v891_v54 = vld [vmem:[%s1478_s0 + $0xb8] sm:$0xff]  }
  0x36   :  { %573 = vst [vmem:[%s1482_s4 + $0xf0] sm:$0xff] %v509_v52  ;;  %v815_v63 = vunpack.c.l.bf16 %v917_v51  ;;  %v688_v0 = vunpack.c.h.bf16 %v886_v46  ;;  %v257_v3 = vadd.f32 %v976_v7, %v186_v57  ;;  %v188_v5 = vmul.f32 %v687_v59, %v962_v1 }
  0x37   :  { %v448_v2 = vadd.f32 %v808_v41, %v256_v56  ;;  %v258_v4 = vadd.f32 %v976_v7, %v187_v58  ;;  %574 = vst [vmem:[%s1482_s4 + $0xf8] sm:$0xff] %v510_v61  ;;  %v511_v8 = vmax.f32 %v447_v62, 0.0  ;;  %v816_v10 = vunpack.c.h.bf16 %v917_v51 }
  0x38   :  { %v189_v9 = vmul.f32 %v688_v0, %v962_v1  ;;  %v691_v11 = vunpack.c.l.bf16 %v887_v60  ;;  %v449_v13 = vadd.f32 %v811_v49, %v257_v3  ;;  %v259_v15 = vadd.f32 %v976_v7, %v188_v5 }
  0x39   :  { %v512_v12 = vmax.f32 %v448_v2, 0.0  ;;  %v450_v14 = vadd.f32 %v812_v55, %v258_v4  ;;  %575 = vst [vmem:[%s1482_s4 + $0x100] sm:$0xff] %v511_v8  ;;  %v819_v19 = vunpack.c.l.bf16 %v918_v6  ;;  %v692_v20 = vunpack.c.h.bf16 %v887_v60 }
  0x3a   :  { %v260_v17 = vadd.f32 %v976_v7, %v189_v9  ;;  %v190_v18 = vmul.f32 %v691_v11, %v962_v1  ;;  %v513_v22 = vmax.f32 %v449_v13, 0.0  ;;  %v451_v24 = vadd.f32 %v815_v63, %v259_v15  ;;  %v922_v63 = vld [vmem:[%s1479_s1 + $0xb8] sm:$0xff]   ;;  %v923_v15 = vld [vmem:[%s1479_s1 + $0xc0] sm:$0xff]  }
  0x3b   :  { %576 = vst [vmem:[%s1482_s4 + $0x108] sm:$0xff] %v512_v12  ;;  %v514_v23 = vmax.f32 %v450_v14, 0.0  ;;  %v820_v25 = vunpack.c.h.bf16 %v918_v6  ;;  %v191_v28 = vmul.f32 %v692_v20, %v962_v1  ;;  %v695_v29 = vunpack.c.l.bf16 %v888_v16 }
  0x3c   :  { %v452_v26 = vadd.f32 %v816_v10, %v260_v17  ;;  %v261_v27 = vadd.f32 %v976_v7, %v190_v18  ;;  %577 = vst [vmem:[%s1482_s4 + $0x110] sm:$0xff] %v513_v22  ;;  %v515_v32 = vmax.f32 %v451_v24, 0.0  ;;  %v823_v33 = vunpack.c.l.bf16 %v919_v21  ;;  %v892_v10 = vld [vmem:[%s1478_s0 + $0xc0] sm:$0xff]   ;;  %v893_v24 = vld [vmem:[%s1478_s0 + $0xc8] sm:$0xff]  }
  0x3d   :  { %578 = vst [vmem:[%s1482_s4 + $0x118] sm:$0xff] %v514_v23  ;;  %v696_v34 = vunpack.c.h.bf16 %v888_v16  ;;  %v824_v35 = vunpack.c.h.bf16 %v919_v21  ;;  %v262_v38 = vadd.f32 %v976_v7, %v191_v28  ;;  %v192_v39 = vmul.f32 %v695_v29, %v962_v1 }
  0x3e   :  { %v516_v36 = vmax.f32 %v452_v26, 0.0  ;;  %v453_v37 = vadd.f32 %v819_v19, %v261_v27  ;;  %579 = vst [vmem:[%s1482_s4 + $0x120] sm:$0xff] %v515_v32  ;;  %v699_v42 = vunpack.c.l.bf16 %v889_v30  ;;  %v827_v43 = vunpack.c.l.bf16 %v920_v31 }
  0x3f   :  { %v193_v41 = vmul.f32 %v696_v34, %v962_v1  ;;  %v700_v44 = vunpack.c.h.bf16 %v889_v30  ;;  %v454_v47 = vadd.f32 %v820_v25, %v262_v38  ;;  %v263_v48 = vadd.f32 %v976_v7, %v192_v39  ;;  %v924_v25 = vld [vmem:[%s1479_s1 + $0xc8] sm:$0xff]   ;;  %v894_v34 = vld [vmem:[%s1478_s0 + $0xd0] sm:$0xff]  }
  0x40   :  { %580 = vst [vmem:[%s1482_s4 + $0x128] sm:$0xff] %v516_v36  ;;  %v517_v46 = vmax.f32 %v453_v37, 0.0  ;;  %v828_v49 = vunpack.c.h.bf16 %v920_v31  ;;  %v194_v51 = vmul.f32 %v699_v42, %v962_v1  ;;  %v703_v53 = vunpack.c.l.bf16 %v890_v40  ;;  %v925_v39 = vld [vmem:[%s1479_s1 + $0xd0] sm:$0xff]  }
  0x41   :  { %v264_v50 = vadd.f32 %v976_v7, %v193_v41  ;;  %v195_v52 = vmul.f32 %v700_v44, %v962_v1  ;;  %v518_v55 = vmax.f32 %v454_v47, 0.0  ;;  %v455_v56 = vadd.f32 %v823_v33, %v263_v48  ;;  %v895_v48 = vld [vmem:[%s1478_s0 + $0xd8] sm:$0xff]  }
  0x42   :  { %581 = vst [vmem:[%s1482_s4 + $0x130] sm:$0xff] %v517_v46  ;;  %v831_v57 = vunpack.c.l.bf16 %v921_v45  ;;  %v704_v58 = vunpack.c.h.bf16 %v890_v40  ;;  %v265_v60 = vadd.f32 %v976_v7, %v194_v51  ;;  %v196_v62 = vmul.f32 %v703_v53, %v962_v1 }
  0x43   :  { %v456_v59 = vadd.f32 %v824_v35, %v264_v50  ;;  %v266_v61 = vadd.f32 %v976_v7, %v195_v52  ;;  %582 = vst [vmem:[%s1482_s4 + $0x138] sm:$0xff] %v518_v55  ;;  %v519_v0 = vmax.f32 %v455_v56, 0.0  ;;  %v832_v3 = vunpack.c.h.bf16 %v921_v45 }
  0x44   :  { %v197_v2 = vmul.f32 %v704_v58, %v962_v1  ;;  %v707_v4 = vunpack.c.l.bf16 %v891_v54  ;;  %v457_v6 = vadd.f32 %v827_v43, %v265_v60  ;;  %v267_v9 = vadd.f32 %v976_v7, %v196_v62 }
  0x45   :  { %v520_v5 = vmax.f32 %v456_v59, 0.0  ;;  %v458_v8 = vadd.f32 %v828_v49, %v266_v61  ;;  %583 = vst [vmem:[%s1482_s4 + $0x140] sm:$0xff] %v519_v0  ;;  %v835_v13 = vunpack.c.l.bf16 %v922_v63  ;;  %v708_v14 = vunpack.c.h.bf16 %v891_v54 }
  0x46   :  { %v268_v11 = vadd.f32 %v976_v7, %v197_v2  ;;  %v198_v12 = vmul.f32 %v707_v4, %v962_v1  ;;  %v521_v16 = vmax.f32 %v457_v6, 0.0  ;;  %v459_v18 = vadd.f32 %v831_v57, %v267_v9  ;;  %v926_v57 = vld [vmem:[%s1479_s1 + $0xd8] sm:$0xff]   ;;  %v927_v9 = vld [vmem:[%s1479_s1 + $0xe0] sm:$0xff]  }
  0x47   :  { %584 = vst [vmem:[%s1482_s4 + $0x148] sm:$0xff] %v520_v5  ;;  %v522_v17 = vmax.f32 %v458_v8, 0.0  ;;  %v836_v19 = vunpack.c.h.bf16 %v922_v63  ;;  %v199_v22 = vmul.f32 %v708_v14, %v962_v1  ;;  %v711_v23 = vunpack.c.l.bf16 %v892_v10 }
  0x48   :  { %v460_v20 = vadd.f32 %v832_v3, %v268_v11  ;;  %v269_v21 = vadd.f32 %v976_v7, %v198_v12  ;;  %585 = vst [vmem:[%s1482_s4 + $0x150] sm:$0xff] %v521_v16  ;;  %v523_v26 = vmax.f32 %v459_v18, 0.0  ;;  %v839_v27 = vunpack.c.l.bf16 %v923_v15  ;;  %v896_v3 = vld [vmem:[%s1478_s0 + $0xe0] sm:$0xff]   ;;  %v897_v18 = vld [vmem:[%s1478_s0 + $0xe8] sm:$0xff]  }
  0x49   :  { %586 = vst [vmem:[%s1482_s4 + $0x158] sm:$0xff] %v522_v17  ;;  %v712_v28 = vunpack.c.h.bf16 %v892_v10  ;;  %v840_v29 = vunpack.c.h.bf16 %v923_v15  ;;  %v270_v32 = vadd.f32 %v976_v7, %v199_v22  ;;  %v200_v33 = vmul.f32 %v711_v23, %v962_v1 }
  0x4a   :  { %v524_v30 = vmax.f32 %v460_v20, 0.0  ;;  %v461_v31 = vadd.f32 %v835_v13, %v269_v21  ;;  %587 = vst [vmem:[%s1482_s4 + $0x160] sm:$0xff] %v523_v26  ;;  %v715_v36 = vunpack.c.l.bf16 %v893_v24  ;;  %v843_v37 = vunpack.c.l.bf16 %v924_v25 }
  0x4b   :  { %v201_v35 = vmul.f32 %v712_v28, %v962_v1  ;;  %v716_v38 = vunpack.c.h.bf16 %v893_v24  ;;  %v462_v41 = vadd.f32 %v836_v19, %v270_v32  ;;  %v271_v42 = vadd.f32 %v976_v7, %v200_v33  ;;  %v928_v19 = vld [vmem:[%s1479_s1 + $0xe8] sm:$0xff]   ;;  %v898_v28 = vld [vmem:[%s1478_s0 + $0xf0] sm:$0xff]  }
  0x4c   :  { %588 = vst [vmem:[%s1482_s4 + $0x168] sm:$0xff] %v524_v30  ;;  %v525_v40 = vmax.f32 %v461_v31, 0.0  ;;  %v844_v43 = vunpack.c.h.bf16 %v924_v25  ;;  %v202_v45 = vmul.f32 %v715_v36, %v962_v1  ;;  %v719_v47 = vunpack.c.l.bf16 %v894_v34  ;;  %v929_v33 = vld [vmem:[%s1479_s1 + $0xf0] sm:$0xff]  }
  0x4d   :  { %v272_v44 = vadd.f32 %v976_v7, %v201_v35  ;;  %v203_v46 = vmul.f32 %v716_v38, %v962_v1  ;;  %v526_v49 = vmax.f32 %v462_v41, 0.0  ;;  %v463_v50 = vadd.f32 %v839_v27, %v271_v42  ;;  %v899_v42 = vld [vmem:[%s1478_s0 + $0xf8] sm:$0xff]  }
  0x4e   :  { %589 = vst [vmem:[%s1482_s4 + $0x170] sm:$0xff] %v525_v40  ;;  %v847_v51 = vunpack.c.l.bf16 %v925_v39  ;;  %v720_v52 = vunpack.c.h.bf16 %v894_v34  ;;  %v273_v54 = vadd.f32 %v976_v7, %v202_v45  ;;  %v204_v56 = vmul.f32 %v719_v47, %v962_v1 }
  0x4f   :  { %v464_v53 = vadd.f32 %v840_v29, %v272_v44  ;;  %v274_v55 = vadd.f32 %v976_v7, %v203_v46  ;;  %590 = vst [vmem:[%s1482_s4 + $0x178] sm:$0xff] %v526_v49  ;;  %v527_v58 = vmax.f32 %v463_v50, 0.0  ;;  %v848_v60 = vunpack.c.h.bf16 %v925_v39 }
  0x50   :  { %v205_v59 = vmul.f32 %v720_v52, %v962_v1  ;;  %v723_v61 = vunpack.c.l.bf16 %v895_v48  ;;  %v465_v63 = vadd.f32 %v843_v37, %v273_v54  ;;  %v275_v2 = vadd.f32 %v976_v7, %v204_v56 }
  0x51   :  { %v528_v62 = vmax.f32 %v464_v53, 0.0  ;;  %v466_v0 = vadd.f32 %v844_v43, %v274_v55  ;;  %591 = vst [vmem:[%s1482_s4 + $0x180] sm:$0xff] %v527_v58  ;;  %v851_v6 = vunpack.c.l.bf16 %v926_v57  ;;  %v724_v8 = vunpack.c.h.bf16 %v895_v48 }
  0x52   :  { %v276_v4 = vadd.f32 %v976_v7, %v205_v59  ;;  %v206_v5 = vmul.f32 %v723_v61, %v962_v1  ;;  %v529_v10 = vmax.f32 %v465_v63, 0.0  ;;  %v467_v12 = vadd.f32 %v847_v51, %v275_v2  ;;  %v930_v51 = vld [vmem:[%s1479_s1 + $0xf8] sm:$0xff]  }
  0x53   :  { %592 = vst [vmem:[%s1482_s4 + $0x188] sm:$0xff] %v528_v62  ;;  %v530_v11 = vmax.f32 %v466_v0, 0.0  ;;  %v852_v13 = vunpack.c.h.bf16 %v926_v57  ;;  %v207_v16 = vmul.f32 %v724_v8, %v962_v1  ;;  %v727_v17 = vunpack.c.l.bf16 %v896_v3 }
  0x54   :  { %v468_v14 = vadd.f32 %v848_v60, %v276_v4  ;;  %v277_v15 = vadd.f32 %v976_v7, %v206_v5  ;;  %593 = vst [vmem:[%s1482_s4 + $0x190] sm:$0xff] %v529_v10  ;;  %v531_v20 = vmax.f32 %v467_v12, 0.0  ;;  %v855_v21 = vunpack.c.l.bf16 %v927_v9 }
  0x55   :  { %594 = vst [vmem:[%s1482_s4 + $0x198] sm:$0xff] %v530_v11  ;;  %v728_v22 = vunpack.c.h.bf16 %v896_v3  ;;  %v856_v23 = vunpack.c.h.bf16 %v927_v9  ;;  %v278_v26 = vadd.f32 %v976_v7, %v207_v16  ;;  %v208_v27 = vmul.f32 %v727_v17, %v962_v1 }
  0x56   :  { %v532_v24 = vmax.f32 %v468_v14, 0.0  ;;  %v469_v25 = vadd.f32 %v851_v6, %v277_v15  ;;  %595 = vst [vmem:[%s1482_s4 + $0x1a0] sm:$0xff] %v531_v20  ;;  %v731_v30 = vunpack.c.l.bf16 %v897_v18  ;;  %v859_v31 = vunpack.c.l.bf16 %v928_v19 }
  0x57   :  { %v209_v29 = vmul.f32 %v728_v22, %v962_v1  ;;  %v732_v32 = vunpack.c.h.bf16 %v897_v18  ;;  %v470_v35 = vadd.f32 %v852_v13, %v278_v26  ;;  %v279_v36 = vadd.f32 %v976_v7, %v208_v27 }
  0x58   :  { %596 = vst [vmem:[%s1482_s4 + $0x1a8] sm:$0xff] %v532_v24  ;;  %v533_v34 = vmax.f32 %v469_v25, 0.0  ;;  %v860_v37 = vunpack.c.h.bf16 %v928_v19  ;;  %v210_v39 = vmul.f32 %v731_v30, %v962_v1  ;;  %v735_v41 = vunpack.c.l.bf16 %v898_v28 }
  0x59   :  { %v280_v38 = vadd.f32 %v976_v7, %v209_v29  ;;  %v211_v40 = vmul.f32 %v732_v32, %v962_v1  ;;  %v534_v43 = vmax.f32 %v470_v35, 0.0  ;;  %v471_v44 = vadd.f32 %v855_v21, %v279_v36 }
  0x5a   :  { %597 = vst [vmem:[%s1482_s4 + $0x1b0] sm:$0xff] %v533_v34  ;;  %v863_v45 = vunpack.c.l.bf16 %v929_v33  ;;  %v736_v46 = vunpack.c.h.bf16 %v898_v28  ;;  %v281_v48 = vadd.f32 %v976_v7, %v210_v39  ;;  %v212_v50 = vmul.f32 %v735_v41, %v962_v1 }
  0x5b   :  { %v472_v47 = vadd.f32 %v856_v23, %v280_v38  ;;  %v282_v49 = vadd.f32 %v976_v7, %v211_v40  ;;  %598 = vst [vmem:[%s1482_s4 + $0x1b8] sm:$0xff] %v534_v43  ;;  %v535_v52 = vmax.f32 %v471_v44, 0.0  ;;  %v864_v54 = vunpack.c.h.bf16 %v929_v33 }
  0x5c   :  { %v213_v53 = vmul.f32 %v736_v46, %v962_v1  ;;  %v739_v55 = vunpack.c.l.bf16 %v899_v42  ;;  %v473_v57 = vadd.f32 %v859_v31, %v281_v48  ;;  %v283_v59 = vadd.f32 %v976_v7, %v212_v50 }
  0x5d   :  { %v536_v56 = vmax.f32 %v472_v47, 0.0  ;;  %v474_v58 = vadd.f32 %v860_v37, %v282_v49  ;;  %599 = vst [vmem:[%s1482_s4 + $0x1c0] sm:$0xff] %v535_v52  ;;  %v867_v62 = vunpack.c.l.bf16 %v930_v51  ;;  %v740_v63 = vunpack.c.h.bf16 %v899_v42 }
  0x5e   :  { %v284_v60 = vadd.f32 %v976_v7, %v213_v53  ;;  %v214_v61 = vmul.f32 %v739_v55, %v962_v1  ;;  %v537_v0 = vmax.f32 %v473_v57, 0.0  ;;  %v475_v3 = vadd.f32 %v863_v45, %v283_v59 }
  0x5f   :  { %600 = vst [vmem:[%s1482_s4 + $0x1c8] sm:$0xff] %v536_v56  ;;  %v538_v2 = vmax.f32 %v474_v58, 0.0  ;;  %v215_v6 = vmul.f32 %v740_v63, %v962_v1  ;;  %v868_v8 = vunpack.c.h.bf16 %v930_v51 }
  0x60   :  { %v476_v4 = vadd.f32 %v864_v54, %v284_v60  ;;  %v285_v5 = vadd.f32 %v976_v7, %v214_v61  ;;  %601 = vst [vmem:[%s1482_s4 + $0x1d0] sm:$0xff] %v537_v0  ;;  %v539_v9 = vmax.f32 %v475_v3, 0.0 }
  0x61   :  { %602 = vst [vmem:[%s1482_s4 + $0x1d8] sm:$0xff] %v538_v2  ;;  %v286_v12 = vadd.f32 %v976_v7, %v215_v6 }
  0x62   :  { %v540_v10 = vmax.f32 %v476_v4, 0.0  ;;  %v477_v11 = vadd.f32 %v867_v62, %v285_v5  ;;  %603 = vst [vmem:[%s1482_s4 + $0x1e0] sm:$0xff] %v539_v9 }
  0x63   :  { %v478_v13 = vadd.f32 %v868_v8, %v286_v12 }
  0x64   :  { %604 = vst [vmem:[%s1482_s4 + $0x1e8] sm:$0xff] %v540_v10  ;;  %v541_v1 = vmax.f32 %v477_v11, 0.0 }
  0x65   :  { %v542_v14 = vmax.f32 %v478_v13, 0.0 }
  0x66   :  { %605 = vst [vmem:[%s1482_s4 + $0x1f0] sm:$0xff] %v541_v1 }
  0x67   :  { %606 = vst [vmem:[%s1482_s4 + $0x1f8] sm:$0xff] %v542_v14 }

// kernel: resnet_block_forward.3
= control target key start
LH: loop header
LB: loop body
LE: loop exit
PB: predicated region body
PF: predicated region fallthrough
CT: control target
= control target key end

     0   :  { %s5264_s15 = smov 0   ;;  %s6528_s0 = inlined_call_operand.vmem [shape: bf16[2,18,24,128], index: 0, kind: input, shape index: {}]   ;;  %s6529_s1 = inlined_call_operand.vmem [shape: bf16[3,384,128], index: 1, kind: input, shape index: {}]   ;;  %s6530_s2 = inlined_call_operand.vmem [shape: bf16[2,16,16,128], index: 2, kind: output, shape index: {0}]   ;;  %s6531_s3 = inlined_call_operand.vmem [shape: f32[2,1,128], index: 3, kind: output, shape index: {1}]   ;;  %s6532_s4 = inlined_call_operand.vmem [shape: f32[2,1,128], index: 4, kind: output, shape index: {2}]  }
   0x1 LB: > { %s3785_s16 = sadd.s32 4294967295, %s5237_s15   ;;  %p3789_p0 = scmp.ge.s32.totalorder %s5237_s15, 1  ;;  %s5237_s15 = sphi %s5264_s15, %s15_s15  }
   0x2   : > { %p167_p1 = scmp.lt.s32.totalorder %s5237_s15, 3 }
   0x4   : > { %p168_p2 = pnand %p3789_p0, %p167_p1 }
   0x6   : > { %171 = sbr.rel (%p168_p2) target bundleno = 566 (0x236), region = 28 }
   0xd   : > { %v5052_v0 = vld [vmem:[%s6529_s1 + $0x40] sm:$0xff]   ;;  %v5055_v3 = vld [vmem:[%s6529_s1 + $0x48] sm:$0xff]   ;;  %v5058_v6 = vld [vmem:[%s6529_s1 + $0x50] sm:$0xff]   ;;  %p199_p3 = scmp.lt.s32.totalorder %s3785_s16, 1  ;;  %vm617_vm0 = vcmask 1046528  }
   0xe   : > { %v5278_v1 = vld [vmem:[%s6529_s1 + $0x80] sm:$0xff]   ;;  %4315 = vmatprep.subr.bf16.mxu0 %v5052_v0  ;;  %v5291_v4 = vld [vmem:[%s6529_s1 + $0x88] sm:$0xff]   ;;  %v5303_v7 = vld [vmem:[%s6529_s1 + $0x90] sm:$0xff]   ;;  %vm408_vm1 = vsmask.f32 7424 }
   0xf   : > { %v5054_v2 = vld [vmem:[%s6529_s1] sm:$0xff]   ;;  %4867 = vmatprep.subr.bf16.mxu1 %v5278_v1  ;;  %v5057_v5 = vld [vmem:[%s6529_s1 + $0x8] sm:$0xff]   ;;  %v5060_v8 = vld [vmem:[%s6529_s1 + $0x10] sm:$0xff]   ;;  %s6536_s16 = smov (!%p199_p3, %s3785_s16), 1 }
  0x10   : > { %4316 = vmatpush3.bf16.msra.mxu0 %v5054_v2  ;;  %4875 = vmatpush3.bf16.msra.mxu1 %v5278_v1  ;;  %v5061_v9 = vld [vmem:[%s6529_s1 + $0x58] sm:$0xff]   ;;  %v5064_v12 = vld [vmem:[%s6529_s1 + $0x60] sm:$0xff]   ;;  %v5067_v15 = vld [vmem:[%s6529_s1 + $0x68] sm:$0xff]   ;;  %s5043_s27 = smul.u32 216, %s6536_s16  ;;  %s211_s30 = scalar_lea.vmem %s6531_s3, %s6536_s16 }
  0x11   : > { %4317 = vmatprep.subr.bf16.mxu0 %v5055_v3  ;;  %4868 = vmatprep.subr.bf16.mxu1 %v5291_v4  ;;  %v5316_v10 = vld [vmem:[%s6529_s1 + $0x98] sm:$0xff]   ;;  %v5331_v13 = vld [vmem:[%s6529_s1 + $0xa0] sm:$0xff]   ;;  %v5348_v16 = vld [vmem:[%s6529_s1 + $0xa8] sm:$0xff]   ;;  %s214_s7 = scalar_lea.vmem %s6532_s4, %s6536_s16 }
  0x12   : > { %v5063_v11 = vld [vmem:[%s6529_s1 + $0x18] sm:$0xff]   ;;  %v5066_v14 = vld [vmem:[%s6529_s1 + $0x20] sm:$0xff]   ;;  %v5069_v17 = vld [vmem:[%s6529_s1 + $0x28] sm:$0xff]   ;;  %s5370_s12 = scalar_lea.vmem %s6528_s0, %s5043_s27 }
  0x13   : > { %v5070_v18 = vld [vmem:[%s6529_s1 + $0x70] sm:$0xff]   ;;  %v5073_v21 = vld [vmem:[%s6529_s1 + $0x78] sm:$0xff]   ;;  %v5076_v23 = vld [vmem:[%s5370_s12] sm:$0xff]  }
  0x14   : > { %4318 = vmatpush3.bf16.msra.mxu0 %v5057_v5  ;;  %4876 = vmatpush3.bf16.msra.mxu1 %v5291_v4  ;;  %v5362_v19 = vld [vmem:[%s6529_s1 + $0xb0] sm:$0xff]   ;;  %v5378_v22 = vld [vmem:[%s6529_s1 + $0xb8] sm:$0xff]   ;;  %v5077_v24 = vld [vmem:[%s5370_s12 + $0x8] ss:$0 sps:$4 sm:$0xff]   ;;  %v410_v27 = vshrl.u32 %v5076_v23, 16  ;;  %v412_v28 = vshll.u32 %v5076_v23, 16 }
  0x15   : > { %4319 = vmatprep.subr.bf16.mxu0 %v5058_v6  ;;  %4869 = vmatprep.subr.bf16.mxu1 %v5303_v7  ;;  %v5072_v20 = vld [vmem:[%s6529_s1 + $0x30] sm:$0xff]   ;;  %v5385_v25 = vld [vmem:[%s5370_s12 + $0x60] sm:$0xff]   ;;  %v5075_v26 = vld [vmem:[%s6529_s1 + $0x38] sm:$0xff]   ;;  %v417_v29 = vshll.u32 %v5077_v24, 16 }
  0x16   : > { %v5391_v30 = vld [vmem:[%s5370_s12 + $0x68] ss:$0 sps:$4 sm:$0xff]   ;;  %v642_v31 = vrot.slane %v5385_v25, 1  ;;  %v414_v32 = vrot.slane %v412_v28, 1  ;;  %v5398_v35 = vld [vmem:[%s5370_s12 + $0x6c] sm:$0xff]   ;;  %v5082_v37 = vld [vmem:[%s6529_s1 + $0x100] sm:$0xff]  }
  0x17   : > { %v419_v33 = vrot.slane %v417_v29, 1  ;;  %v643_v34 = vrot.slane %v5391_v30, 1  ;;  %v5401_v36 = vld [vmem:[%s5370_s12 + $0x74] ss:$0 sps:$4 sm:$0xff]   ;;  %v645_v40 = vrot.slane %v5398_v35, 1  ;;  %v5083_v42 = vld [vmem:[%s6529_s1 + $0xc0] sm:$0xff]  }
  0x18   : > { %4320 = vmatpush3.bf16.msra.mxu0 %v5060_v8  ;;  %4877 = vmatpush3.bf16.msra.mxu1 %v5303_v7  ;;  %v415_v38 = vor.u32 %v414_v32, %v410_v27  ;;  %v646_v41 = vrot.slane %v5401_v36, 1  ;;  %v5084_v45 = vld [vmem:[%s6529_s1 + $0x108] sm:$0xff]   ;;  %v5087_v48 = vld [vmem:[%s5370_s12 + $0x14] ss:$0 sps:$4 sm:$0xff]   ;;  %v5426_v52 = vld [vmem:[%s5370_s12 + $0x78] sm:$0xff]  }
  0x19   : > { %4321 = vmatprep.subr.bf16.mxu0 %v5061_v9  ;;  %4870 = vmatprep.subr.bf16.mxu1 %v5316_v10  ;;  %v644_v39 = vsel %vm617_vm0, %v642_v31, %v643_v34  ;;  %v5085_v46 = vld [vmem:[%s6529_s1 + $0xc8] sm:$0xff]   ;;  %v429_v51 = vshll.u32 %v5087_v48, 16  ;;  %v5429_v53 = vld [vmem:[%s5370_s12 + $0x80] ss:$0 sps:$4 sm:$0xff]   ;;  %v648_v56 = vrot.slane %v5426_v52, 1  ;;  %v5092_v59 = vld [vmem:[%s6529_s1 + $0x110] sm:$0xff]  }
  0x1a   : > { %v420_v43 = vsel %vm408_vm1, %v415_v38, %v419_v33  ;;  %4755 = vmatprep.mubr.bf16.mxu1 %v644_v39  ;;  %v647_v44 = vsel %vm617_vm0, %v645_v40, %v646_v41  ;;  %v5086_v47 = vld [vmem:[%s5370_s12 + $0xc] sm:$0xff]   ;;  %v649_v57 = vrot.slane %v5429_v53, 1  ;;  %v5435_v58 = vld [vmem:[%s5370_s12 + $0x84] sm:$0xff]   ;;  %v5094_v2 = vld [vmem:[%s6529_s1 + $0x118] sm:$0xff]  }
  0x1b   : > { %906 = vmatprep.mubr.bf16.mxu0 %v420_v43  ;;  %v422_v49 = vshrl.u32 %v5086_v47, 16  ;;  %v424_v50 = vshll.u32 %v5086_v47, 16  ;;  %v431_v55 = vrot.slane %v429_v51, 1  ;;  %v5441_v60 = vld [vmem:[%s5370_s12 + $0x8c] ss:$0 sps:$4 sm:$0xff]   ;;  %v651_v63 = vrot.slane %v5435_v58, 1 }
  0x1c   : > { %4322 = vmatpush3.bf16.msra.mxu0 %v5063_v11  ;;  %4878 = vmatpush3.bf16.msra.mxu1 %v5316_v10  ;;  %v650_v62 = vsel %vm617_vm0, %v648_v56, %v649_v57  ;;  %v5093_v0 = vld [vmem:[%s6529_s1 + $0xd0] sm:$0xff]   ;;  %v5096_v6 = vld [vmem:[%s5370_s12 + $0x18] sm:$0xff]   ;;  %v5097_v8 = vld [vmem:[%s5370_s12 + $0x20] ss:$0 sps:$4 sm:$0xff]  }
  0x1d   : > { %4323 = vmatprep.subr.bf16.mxu0 %v5064_v12  ;;  %4871 = vmatprep.subr.bf16.mxu1 %v5331_v13  ;;  %v426_v54 = vrot.slane %v424_v50, 1  ;;  %v5462_v9 = vld [vmem:[%s5370_s12 + $0x90] sm:$0xff]   ;;  %v434_v11 = vshrl.u32 %v5096_v6, 16  ;;  %v436_v12 = vshll.u32 %v5096_v6, 16  ;;  %v5103_v29 = vld [vmem:[%s6529_s1 + $0xe0] sm:$0xff]   ;;  %v5104_v32 = vld [vmem:[%s6529_s1 + $0x128] sm:$0xff]  }
  0x1e   : > { %v5105_v33 = vld [vmem:[%s6529_s1 + $0xe8] sm:$0xff]   ;;  %v5510_v43 = vld [vmem:[%s5370_s12 + $0xb0] ss:$0 sps:$4 sm:$0xff]   ;;  %v5523_v50 = vld [vmem:[%s5370_s12 + $0xbc] ss:$0 sps:$4 sm:$0xff]  }
  0x1f   : > { %v427_v61 = vor.u32 %v426_v54, %v422_v49  ;;  %v5500_v38 = vld [vmem:[%s5370_s12 + $0x2c] ss:$0 sps:$4 sm:$0xff]   ;;  %v661_v48 = vrot.slane %v5510_v43, 1  ;;  %v664_v56 = vrot.slane %v5523_v50, 1  ;;  %v5114_v57 = vld [vmem:[%s6529_s1 + $0x138] sm:$0xff]  }
  0x20   : > { %4324 = vmatpush3.bf16.msra.mxu0 %v5066_v14  ;;  %4879 = vmatpush3.bf16.msra.mxu1 %v5331_v13  ;;  %v441_v14 = vshll.u32 %v5097_v8, 16  ;;  %v5503_v39 = vld [vmem:[%s5370_s12 + $0xa8] sm:$0xff]  }
  0x21   : > { %4325 = vmatprep.subr.bf16.mxu0 %v5067_v15  ;;  %4872 = vmatprep.subr.bf16.mxu1 %v5348_v16  ;;  %v432_v3 = vsel %vm408_vm1, %v427_v61, %v431_v55  ;;  %v5466_v15 = vld [vmem:[%s5370_s12 + $0x98] ss:$0 sps:$4 sm:$0xff]   ;;  %v5113_v55 = vld [vmem:[%s6529_s1 + $0xf0] sm:$0xff]  }
  0x24   : > { %4326 = vmatpush3.bf16.msra.mxu0 %v5069_v17  ;;  %4880 = vmatpush3.bf16.msra.mxu1 %v5348_v16  ;;  %v5469_v17 = vld [vmem:[%s5370_s12 + $0x9c] sm:$0xff]  }
  0x25   : > { %4327 = vmatprep.subr.bf16.mxu0 %v5070_v18  ;;  %4873 = vmatprep.subr.bf16.mxu1 %v5362_v19  ;;  %v654_v18 = vrot.slane %v5462_v9, 1  ;;  %v657_v24 = vrot.slane %v5469_v17, 1 }
  0x28   : > { %4328 = vmatpush3.bf16.msra.mxu0 %v5072_v20  ;;  %4881 = vmatpush3.bf16.msra.mxu1 %v5362_v19  ;;  %v5102_v20 = vld [vmem:[%s6529_s1 + $0x120] sm:$0xff]  }
  0x29   : > { %4329 = vmatprep.subr.bf16.mxu0 %v5073_v21  ;;  %4874 = vmatprep.subr.bf16.mxu1 %v5378_v22  ;;  %v438_v21 = vrot.slane %v436_v12, 1 }
  0x2b   : > { %v439_v27 = vor.u32 %v438_v21, %v434_v11 }
  0x2c   : > { %4330 = vmatpush3.bf16.msra.mxu0 %v5075_v26  ;;  %4882 = vmatpush3.bf16.msra.mxu1 %v5378_v22  ;;  %v5479_v26 = vld [vmem:[%s5370_s12 + $0xa4] ss:$0 sps:$4 sm:$0xff]  }
  0x2d   : > { %4723 = vmatprep.subr.bf16.mxu0 %v5278_v1  ;;  %4451 = vmatprep.subr.bf16.mxu1 %v5082_v37  ;;  %v658_v31 = vrot.slane %v5479_v26, 1  ;;  %v5497_v37 = vld [vmem:[%s5370_s12 + $0x24] sm:$0xff]  }
  0x2e   : > { %v446_v40 = vshrl.u32 %v5497_v37, 16  ;;  %v448_v41 = vshll.u32 %v5497_v37, 16 }
  0x2f   : > { %907 = vmatmul.mubr.bf16.vlgmr.msra.gmra.mrb[0].mxu0 %v5076_v23  ;;  %4756 = vmatmul.mubr.bf16.vlgmr.msra.gmra.mrb[0].mxu1 %v647_v44  ;;  %v443_v23 = vrot.slane %v441_v14, 1  ;;  %v659_v34 = vsel %vm617_vm0, %v657_v24, %v658_v31  ;;  %v5513_v44 = vld [vmem:[%s5370_s12 + $0xb4] sm:$0xff]   ;;  %v5558_v14 = vld [vmem:[%s5370_s12 + $0x3c] sm:$0xff]  }
  0x30   : > { %4724 = vmatpush3.bf16.msra.mxu0 %v5278_v1  ;;  %4452 = vmatpush3.bf16.msra.mxu1 %v5083_v42  ;;  %v652_v1 = vrot.slane %v5441_v60, 1  ;;  %v453_v42 = vshll.u32 %v5500_v38, 16  ;;  %v663_v49 = vrot.slane %v5513_v44, 1  ;;  %v470_v24 = vshrl.u32 %v5558_v14, 16 }
  0x31   : > { %4453 = vmatprep.subr.bf16.mxu1 %v5084_v45  ;;  %4725 = vmatprep.subr.bf16.mxu0 %v5291_v4  ;;  %v660_v45 = vrot.slane %v5503_v39, 1 }
  0x32   : > { %4759 = vmatprep.mubr.bf16.mxu1 %v650_v62  ;;  %914 = vmatprep.mubr.bf16.mxu0 %v432_v3  ;;  %v653_v5 = vsel %vm617_vm0, %v651_v63, %v652_v1  ;;  %v665_v61 = vsel %vm617_vm0, %v663_v49, %v664_v56  ;;  %v5542_v62 = vld [vmem:[%s5370_s12 + $0x30] sm:$0xff]   ;;  %v5545_v63 = vld [vmem:[%s5370_s12 + $0x38] ss:$0 sps:$4 sm:$0xff]   ;;  %v5586_v56 = vld [vmem:[%s5370_s12 + $0x2c] ss:$0 sps:$4 sm:$0xff]  }
  0x33   : > { %v662_v54 = vsel %vm617_vm0, %v660_v45, %v661_v48  ;;  %v458_v1 = vshrl.u32 %v5542_v62, 16  ;;  %v465_v3 = vshll.u32 %v5545_v63, 16 }
  0x34   : > { %4454 = vmatpush3.bf16.msra.mxu1 %v5085_v46  ;;  %4726 = vmatpush3.bf16.msra.mxu0 %v5291_v4  ;;  %v5095_v4 = vld [vmem:[%s6529_s1 + $0xd8] sm:$0xff]   ;;  %v5112_v46 = vld [vmem:[%s6529_s1 + $0x130] sm:$0xff]  }
  0x35   : > { %4455 = vmatprep.subr.bf16.mxu1 %v5092_v59  ;;  %4727 = vmatprep.subr.bf16.mxu0 %v5303_v7  ;;  %v5115_v59 = vld [vmem:[%s6529_s1 + $0xf8] sm:$0xff]   ;;  %v467_v11 = vrot.slane %v465_v3, 1 }
  0x37   : > { %915 = vmatmul.mubr.bf16.gmra.mrb[4].mxu0 %v5086_v47  ;;  %4760 = vmatmul.mubr.bf16.gmra.mrb[4].mxu1 %v653_v5  ;;  %v455_v47 = vrot.slane %v453_v42, 1  ;;  %v5120_v5 = vld [vmem:[%s6529_s1 + $0x140] sm:$0xff]  }
  0x38   : > { %4456 = vmatpush3.bf16.msra.mxu1 %v5093_v0  ;;  %4728 = vmatpush3.bf16.msra.mxu0 %v5303_v7  ;;  %v655_v7 = vrot.slane %v5466_v15, 1  ;;  %v5118_v0 = vld [vmem:[%s5370_s12 + $0xc] sm:$0xff]  }
  0x39   : > { %4457 = vmatprep.subr.bf16.mxu1 %v5094_v2  ;;  %4729 = vmatprep.subr.bf16.mxu0 %v5316_v10  ;;  %v460_v2 = vshll.u32 %v5542_v62, 16  ;;  %v1424_v8 = vshll.u32 %v5118_v0, 16 }
  0x3a   : > { %v656_v28 = vsel %vm617_vm0, %v654_v18, %v655_v7  ;;  %v5563_v7 = vld [vmem:[%s5370_s12 + $0x44] ss:$0 sps:$4 sm:$0xff]  }
  0x3b   : > { %4763 = vmatprep.mubr.bf16.mxu1 %v656_v28  ;;  %v1426_v18 = vrot.slane %v1424_v8, 1  ;;  %v5568_v28 = vld [vmem:[%s5370_s12 + $0x48] sm:$0xff]  }
  0x3c   : > { %4458 = vmatpush3.bf16.msra.mxu1 %v5095_v4  ;;  %4730 = vmatpush3.bf16.msra.mxu0 %v5316_v10  ;;  %v444_v10 = vsel %vm408_vm1, %v439_v27, %v443_v23  ;;  %v5119_v4 = vld [vmem:[%s5370_s12 + $0x14] ss:$0 sps:$4 sm:$0xff]   ;;  %v472_v27 = vshll.u32 %v5558_v14, 16  ;;  %v482_v42 = vshrl.u32 %v5568_v28, 16  ;;  %v484_v49 = vshll.u32 %v5568_v28, 16 }
  0x3d   : > { %4459 = vmatprep.subr.bf16.mxu1 %v5102_v20  ;;  %4731 = vmatprep.subr.bf16.mxu0 %v5331_v13  ;;  %v1429_v12 = vshll.u32 %v5119_v4, 16  ;;  %v5123_v20 = vld [vmem:[%s5370_s12 + $0x18] sm:$0xff]  }
  0x3e   : > { %922 = vmatprep.mubr.bf16.mxu0 %v444_v10  ;;  %v477_v10 = vshll.u32 %v5563_v7, 16 }
  0x3f   : > { %923 = vmatmul.mubr.bf16.gmra.mrb[8].mxu0 %v5096_v6  ;;  %4764 = vmatmul.mubr.bf16.gmra.mrb[8].mxu1 %v659_v34  ;;  %v1422_v6 = vshrl.u32 %v5118_v0, 16  ;;  %v1431_v23 = vrot.slane %v1429_v12, 1  ;;  %v1434_v34 = vshrl.u32 %v5123_v20, 16 }
  0x40   : > { %4460 = vmatpush3.bf16.msra.mxu1 %v5103_v29  ;;  %4732 = vmatpush3.bf16.msra.mxu0 %v5331_v13  ;;  %v450_v13 = vrot.slane %v448_v41, 1  ;;  %v1436_v41 = vshll.u32 %v5123_v20, 16 }
  0x41   : > { %4461 = vmatprep.subr.bf16.mxu1 %v5104_v32  ;;  %4733 = vmatprep.subr.bf16.mxu0 %v5348_v16  ;;  %v1427_v29 = vor.u32 %v1426_v18, %v1422_v6  ;;  %v474_v32 = vrot.slane %v472_v27, 1  ;;  %v5596_v6 = vld [vmem:[%s5370_s12 + $0x54] sm:$0xff]  }
  0x42   : > { %v451_v51 = vor.u32 %v450_v13, %v446_v40  ;;  %4767 = vmatprep.mubr.bf16.mxu1 %v662_v54  ;;  %v1438_v48 = vrot.slane %v1436_v41, 1  ;;  %v5610_v27 = vld [vmem:[%s5370_s12 + $0x38] ss:$0 sps:$4 sm:$0xff]  }
  0x43   : > { %v1432_v40 = vsel %vm408_vm1, %v1427_v29, %v1431_v23  ;;  %v475_v45 = vor.u32 %v474_v32, %v470_v24  ;;  %v496_v23 = vshll.u32 %v5596_v6, 16  ;;  %v5615_v32 = vld [vmem:[%s5370_s12 + $0x3c] sm:$0xff]  }
  0x44   : > { %4462 = vmatpush3.bf16.msra.mxu1 %v5105_v33  ;;  %4734 = vmatpush3.bf16.msra.mxu0 %v5348_v16  ;;  %v456_v16 = vsel %vm408_vm1, %v451_v51, %v455_v47  ;;  %v5124_v33 = vld [vmem:[%s5370_s12 + $0x20] ss:$0 sps:$4 sm:$0xff]   ;;  %v5580_v47 = vld [vmem:[%s5370_s12 + $0x50] ss:$0 sps:$4 sm:$0xff]  }
  0x45   : > { %4463 = vmatprep.subr.bf16.mxu1 %v5112_v46  ;;  %4735 = vmatprep.subr.bf16.mxu0 %v5362_v19  ;;  %v479_v46 = vrot.slane %v477_v10, 1  ;;  %v1441_v13 = vshll.u32 %v5124_v33, 16  ;;  %v498_v33 = vrot.slane %v496_v23, 1 }
  0x46   : > { %930 = vmatprep.mubr.bf16.mxu0 %v456_v16  ;;  %v486_v16 = vrot.slane %v484_v49, 1 }
  0x47   : > { %931 = vmatmul.mubr.bf16.gmra.mrb[12].mxu0 %v5497_v37  ;;  %4768 = vmatmul.mubr.bf16.gmra.mrb[12].mxu1 %v665_v61  ;;  %v480_v51 = vsel %vm408_vm1, %v475_v45, %v479_v46  ;;  %v1443_v54 = vrot.slane %v1441_v13, 1  ;;  %v508_v45 = vshll.u32 %v5385_v25, 16  ;;  %v5624_v13 = vld [vmem:[%s5370_s12 + $0x44] ss:$0 sps:$4 sm:$0xff]  }
  0x48   : > { %4464 = vmatpush3.bf16.msra.mxu1 %v5113_v55  ;;  %4736 = vmatpush3.bf16.msra.mxu0 %v5362_v19  ;;  %v462_v19 = vrot.slane %v460_v2, 1  ;;  %v489_v55 = vshll.u32 %v5580_v47, 16  ;;  %v1453_v2 = vshll.u32 %v5586_v56, 16  ;;  %v487_v4 = vor.u32 %v486_v16, %v482_v42 }
  0x49   : > { %4465 = vmatprep.subr.bf16.mxu1 %v5114_v57  ;;  %4737 = vmatprep.subr.bf16.mxu0 %v5378_v22  ;;  %v1439_v57 = vor.u32 %v1438_v48, %v1434_v34  ;;  %v5136_v34 = vld [vmem:[%s6529_s1 + $0x150] sm:$0xff]   ;;  %v1465_v42 = vshll.u32 %v5610_v27, 16  ;;  %v1470_v16 = vshrl.u32 %v5615_v32, 16 }
  0x4a   : > { %v463_v21 = vor.u32 %v462_v19, %v458_v1  ;;  %1918 = vmatprep.mubr.bf16.mxu1 %v1432_v40  ;;  %v491_v1 = vrot.slane %v489_v55, 1  ;;  %v1455_v8 = vrot.slane %v1453_v2, 1  ;;  %v5599_v19 = vld [vmem:[%s5370_s12 + $0x5c] ss:$0 sps:$4 sm:$0xff]   ;;  %v510_v55 = vrot.slane %v508_v45, 1 }
  0x4b   : > { %v1444_v3 = vsel %vm408_vm1, %v1439_v57, %v1443_v54  ;;  %v501_v24 = vshll.u32 %v5599_v19, 16  ;;  %v1467_v49 = vrot.slane %v1465_v42, 1  ;;  %v513_v57 = vshll.u32 %v5391_v30, 16  ;;  %v5141_v2 = vld [vmem:[%s6529_s1 + $0x158] sm:$0xff]  }
  0x4c   : > { %4466 = vmatpush3.bf16.msra.mxu1 %v5115_v59  ;;  %4738 = vmatpush3.bf16.msra.mxu0 %v5378_v22  ;;  %v468_v31 = vsel %vm408_vm1, %v463_v21, %v467_v11  ;;  %v5574_v22 = vld [vmem:[%s5370_s12 + $0x24] sm:$0xff]   ;;  %v5602_v11 = vld [vmem:[%s5370_s12 + $0x30] sm:$0xff]   ;;  %v492_v12 = vsel %vm408_vm1, %v487_v4, %v491_v1  ;;  %v494_v21 = vshrl.u32 %v5596_v6, 16  ;;  %v1477_v1 = vshll.u32 %v5624_v13, 16 }
  0x4d   : > { %4771 = vmatprep.subr.bf16.mxu1 %v5120_v5  ;;  %938 = vmatprep.mubr.bf16.mxu0 %v468_v31  ;;  %v1446_v59 = vshrl.u32 %v5574_v22, 16  ;;  %v1448_v61 = vshll.u32 %v5574_v22, 16  ;;  %v1458_v29 = vshrl.u32 %v5602_v11, 16  ;;  %v1460_v31 = vshll.u32 %v5602_v11, 16 }
  0x4e   : > { %v503_v40 = vrot.slane %v501_v24, 1  ;;  %v499_v46 = vor.u32 %v498_v33, %v494_v21  ;;  %v520_v30 = vshll.u32 %v5398_v35, 16  ;;  %v515_v4 = vrot.slane %v513_v57, 1 }
  0x4f   : > { %939 = vmatmul.mubr.bf16.gmra.mrb[16].mxu0 %v5542_v62  ;;  %1919 = vmatmul.mubr.bf16.vlgmr.msra.gmra.mrb[16].mxu1 %v5118_v0  ;;  %v5129_v0 = vld [vmem:[%s6529_s1 + $0x148] sm:$0xff]   ;;  %v1462_v41 = vrot.slane %v1460_v31, 1  ;;  %v518_v21 = vshrl.u32 %v5398_v35, 16  ;;  %v525_v24 = vshll.u32 %v5401_v36, 16  ;;  %v5650_v31 = vld [vmem:[%s5370_s12 + $0x54] sm:$0xff]   ;;  %v532_v45 = vshll.u32 %v5426_v52, 16 }
  0x50   : > { %4772 = vmatpush3.bf16.msra.mxu1 %v5120_v5  ;;  %946 = vmatprep.mubr.bf16.mxu0 %v480_v51  ;;  %v1450_v5 = vrot.slane %v1448_v61, 1  ;;  %v506_v51 = vshrl.u32 %v5385_v25, 16  ;;  %v504_v54 = vsel %vm408_vm1, %v499_v46, %v503_v40  ;;  %v522_v23 = vrot.slane %v520_v30, 1  ;;  %v5662_v46 = vld [vmem:[%s5370_s12 + $0x5c] ss:$0 sps:$4 sm:$0xff]   ;;  %v5675_v30 = vld [vmem:[%s5370_s12 + $0x60] sm:$0xff]  }
  0x51   : > { %4773 = vmatprep.subr.bf16.mxu1 %v5129_v0  ;;  %1926 = vmatprep.mubr.bf16.mxu1 %v1444_v3  ;;  %v1463_v48 = vor.u32 %v1462_v41, %v1458_v29  ;;  %v5146_v41 = vld [vmem:[%s6529_s1 + $0x160] sm:$0xff]   ;;  %v527_v42 = vrot.slane %v525_v24, 1  ;;  %v534_v57 = vrot.slane %v532_v45, 1  ;;  %v549_v24 = vshll.u32 %v5441_v60, 16 }
  0x52   : > { %v1451_v18 = vor.u32 %v1450_v5, %v1446_v59  ;;  %v5632_v59 = vld [vmem:[%s5370_s12 + $0x48] sm:$0xff]   ;;  %v511_v3 = vor.u32 %v510_v55, %v506_v51  ;;  %v5643_v5 = vld [vmem:[%s5370_s12 + $0x50] ss:$0 sps:$4 sm:$0xff]   ;;  %v523_v36 = vor.u32 %v522_v23, %v518_v21  ;;  %v530_v55 = vshrl.u32 %v5426_v52, 16  ;;  %v5157_v23 = vld [vmem:[%s6529_s1 + $0x1c0] sm:$0xff]  }
  0x53   : > { %v1468_v61 = vsel %vm408_vm1, %v1463_v48, %v1467_v49  ;;  %v1482_v33 = vshrl.u32 %v5632_v59, 16  ;;  %v1489_v40 = vshll.u32 %v5643_v5, 16  ;;  %v1496_v49 = vshll.u32 %v5650_v31, 16  ;;  %v5684_v21 = vld [vmem:[%s5370_s12 + $0x68] ss:$0 sps:$4 sm:$0xff]   ;;  %4587 = vmatprep.subr.bf16.mxu0 %v5157_v23 }
  0x54   : > { %4774 = vmatpush3.bf16.msra.mxu1 %v5129_v0  ;;  %v1456_v10 = vsel %vm408_vm1, %v1451_v18, %v1455_v8  ;;  %v1484_v18 = vshll.u32 %v5632_v59, 16  ;;  %v516_v29 = vsel %vm408_vm1, %v511_v3, %v515_v4  ;;  %v528_v51 = vsel %vm408_vm1, %v523_v36, %v527_v42  ;;  %v5156_v3 = vld [vmem:[%s6529_s1 + $0x170] sm:$0xff]   ;;  %v5727_v23 = vld [vmem:[%s5370_s12 + $0x80] ss:$0 sps:$4 sm:$0xff]  }
  0x55   : > { %4775 = vmatprep.subr.bf16.mxu1 %v5136_v34  ;;  %v1491_v48 = vrot.slane %v1489_v40, 1  ;;  %v5695_v40 = vld [vmem:[%s5370_s12 + $0x6c] sm:$0xff]   ;;  %v1513_v42 = vshll.u32 %v5684_v21, 16  ;;  %v551_v60 = vrot.slane %v549_v24, 1  ;;  %v556_v45 = vshll.u32 %v5462_v9, 16 }
  0x57   : > { %947 = vmatmul.mubr.bf16.gmra.mrb[20].mxu0 %v5558_v14  ;;  %1927 = vmatmul.mubr.bf16.gmra.mrb[20].mxu1 %v5123_v20  ;;  %v1472_v20 = vshll.u32 %v5615_v32, 16 }
  0x58   : > { %954 = vmatprep.mubr.bf16.mxu0 %v492_v12  ;;  %1934 = vmatprep.mubr.bf16.mxu1 %v1456_v10  ;;  %v1479_v12 = vrot.slane %v1477_v1, 1  ;;  %v1494_v1 = vshrl.u32 %v5650_v31, 16 }
  0x59   : > { %4776 = vmatpush3.bf16.msra.mxu1 %v5136_v34  ;;  %v1474_v0 = vrot.slane %v1472_v20, 1  ;;  %v1486_v34 = vrot.slane %v1484_v18, 1 }
  0x5a   : > { %4777 = vmatprep.subr.bf16.mxu1 %v5141_v2 }
  0x5b   : > { %v1475_v8 = vor.u32 %v1474_v0, %v1470_v16  ;;  %v1487_v20 = vor.u32 %v1486_v34, %v1482_v33  ;;  %v537_v16 = vshll.u32 %v5429_v53, 16  ;;  %v535_v53 = vor.u32 %v534_v57, %v530_v55 }
  0x5c   : > { %v1506_v34 = vshrl.u32 %v5675_v30, 16  ;;  %v561_v55 = vshll.u32 %v5466_v15, 16  ;;  %v627_v57 = vrot.slane %v5497_v37, 1 }
  0x5d   : > { %4778 = vmatpush3.bf16.msra.mxu1 %v5141_v2  ;;  %v1480_v10 = vsel %vm408_vm1, %v1475_v8, %v1479_v12  ;;  %v1492_v0 = vsel %vm408_vm1, %v1487_v20, %v1491_v48  ;;  %v1498_v2 = vrot.slane %v1496_v49, 1  ;;  %v539_v4 = vrot.slane %v537_v16, 1  ;;  %v5703_v20 = vld [vmem:[%s5370_s12 + $0x74] ss:$0 sps:$4 sm:$0xff]  }
  0x5e   : > { %4779 = vmatprep.subr.bf16.mxu1 %v5146_v41  ;;  %v544_v12 = vshll.u32 %v5435_v58, 16  ;;  %v554_v16 = vshrl.u32 %v5462_v9, 16  ;;  %v563_v37 = vrot.slane %v561_v55, 1  ;;  %v639_v55 = vrot.slane %v5596_v6, 1 }
  0x5f   : > { %955 = vmatmul.mubr.bf16.gmra.mrb[24].mxu0 %v5568_v28  ;;  %1935 = vmatmul.mubr.bf16.gmra.mrb[24].mxu1 %v5574_v22  ;;  %v1499_v18 = vor.u32 %v1498_v2, %v1494_v1  ;;  %v1518_v1 = vshrl.u32 %v5695_v40, 16  ;;  %v1525_v2 = vshll.u32 %v5703_v20, 16 }
  0x60   : > { %962 = vmatprep.mubr.bf16.mxu0 %v504_v54  ;;  %1942 = vmatprep.mubr.bf16.mxu1 %v1468_v61  ;;  %v5151_v54 = vld [vmem:[%s6529_s1 + $0x168] sm:$0xff]   ;;  %v1501_v61 = vshll.u32 %v5662_v46, 16  ;;  %v546_v33 = vrot.slane %v544_v12, 1  ;;  %v630_v12 = vrot.slane %v5542_v62, 1  ;;  %v634_v62 = vrot.slane %v5563_v7, 1 }
  0x61   : > { %4780 = vmatpush3.bf16.msra.mxu1 %v5146_v41 }
  0x62   : > { %4781 = vmatprep.subr.bf16.mxu1 %v5151_v54  ;;  %v1503_v8 = vrot.slane %v1501_v61, 1  ;;  %v558_v61 = vrot.slane %v556_v45, 1  ;;  %v5743_v45 = vld [vmem:[%s5370_s12 + $0x84] sm:$0xff]  }
  0x64   : > { %v1504_v41 = vsel %vm408_vm1, %v1499_v18, %v1503_v8  ;;  %v568_v8 = vshll.u32 %v5469_v17, 16  ;;  %v631_v18 = vrot.slane %v5545_v63, 1  ;;  %v5169_v63 = vld [vmem:[%s6529_s1 + $0x178] sm:$0xff]  }
  0x65   : > { %4782 = vmatpush3.bf16.msra.mxu1 %v5151_v54  ;;  %v1520_v54 = vshll.u32 %v5695_v40, 16 }
  0x66   : > { %4783 = vmatprep.subr.bf16.mxu1 %v5156_v3 }
  0x67   : > { %963 = vmatmul.mubr.bf16.gmra.mrb[28].mxu0 %v5596_v6  ;;  %1943 = vmatmul.mubr.bf16.gmra.mrb[28].mxu1 %v5602_v11  ;;  %v1522_v15 = vrot.slane %v1520_v54, 1  ;;  %v580_v54 = vshll.u32 %v5503_v39, 16  ;;  %v578_v6 = vshrl.u32 %v5503_v39, 16 }
  0x68   : > { %970 = vmatprep.mubr.bf16.mxu0 %v516_v29  ;;  %1950 = vmatprep.mubr.bf16.mxu1 %v1480_v10  ;;  %v540_v29 = vsel %vm408_vm1, %v535_v53, %v539_v4  ;;  %v542_v10 = vshrl.u32 %v5435_v58, 16  ;;  %v5718_v4 = vld [vmem:[%s5370_s12 + $0x78] sm:$0xff]  }
  0x69   : > { %4784 = vmatpush3.bf16.msra.mxu1 %v5156_v3  ;;  %v1523_v24 = vor.u32 %v1522_v15, %v1518_v1  ;;  %v1542_v15 = vshrl.u32 %v5743_v45, 16 }
  0x6a   : > { %v547_v48 = vor.u32 %v546_v33, %v542_v10  ;;  %v5731_v10 = vsel %vm617_vm0, %v630_v12, %v631_v18  ;;  %v573_v33 = vshll.u32 %v5479_v26, 16  ;;  %4785 = vmatprep.subr.bf16.mxu1 %v5169_v63  ;;  %v5779_v12 = vld [vmem:[%s6529_s1 + $0x200] sm:$0xff]  }
  0x6d   : > { %4786 = vmatpush3.bf16.msra.mxu1 %v5169_v63  ;;  %v590_v63 = vshrl.u32 %v5513_v44, 16 }
  0x6e   : > { %4819 = vmatprep.subr.bf16.mxu1 %v5779_v12 }
  0x6f   : > { %971 = vmatmul.mubr.bf16.gmra.mrb[32].mxu0 %v5385_v25  ;;  %1951 = vmatmul.mubr.bf16.gmra.mrb[32].mxu1 %v5615_v32  ;;  %v1508_v25 = vshll.u32 %v5675_v30, 16 }
  0x70   : > { %978 = vmatprep.mubr.bf16.mxu0 %v528_v51  ;;  %1958 = vmatprep.mubr.bf16.mxu1 %v1492_v0  ;;  %v1515_v51 = vrot.slane %v1513_v42, 1  ;;  %v552_v0 = vsel %vm408_vm1, %v547_v48, %v551_v60  ;;  %v1537_v60 = vshll.u32 %v5727_v23, 16  ;;  %v636_v48 = vrot.slane %v5568_v28, 1 }
  0x71   : > { %v1510_v36 = vrot.slane %v1508_v25, 1  ;;  %v559_v25 = vor.u32 %v558_v61, %v554_v16  ;;  %v1544_v16 = vshll.u32 %v5743_v45, 16 }
  0x72   : > { %v1539_v61 = vrot.slane %v1537_v60, 1  ;;  %v1639_v60 = vrot.slane %v5610_v27, 1 }
  0x73   : > { %v1511_v49 = vor.u32 %v1510_v36, %v1506_v34  ;;  %v633_v34 = vrot.slane %v5558_v14, 1  ;;  %v1530_v36 = vshrl.u32 %v5718_v4, 16  ;;  %v564_v42 = vsel %vm408_vm1, %v559_v25, %v563_v37 }
  0x74   : > { %v1546_v37 = vrot.slane %v1544_v16, 1  ;;  %v1635_v25 = vrot.slane %v5574_v22, 1  ;;  %v597_v22 = vshll.u32 %v5523_v50, 16 }
  0x75   : > { %v1516_v53 = vsel %vm408_vm1, %v1511_v49, %v1515_v51  ;;  %v5746_v26 = vsel %vm617_vm0, %v633_v34, %v634_v62  ;;  %v575_v49 = vrot.slane %v573_v33, 1  ;;  %v637_v51 = vrot.slane %v5580_v47, 1 }
  0x77   : > { %979 = vmatmul.mubr.bf16.gmra.mrb[36].mxu0 %v5398_v35  ;;  %1959 = vmatmul.mubr.bf16.gmra.mrb[36].mxu1 %v5632_v59  ;;  %v628_v35 = vrot.slane %v5500_v38, 1  ;;  %v566_v38 = vshrl.u32 %v5469_v17, 16  ;;  %v5760_v28 = vsel %vm617_vm0, %v636_v48, %v637_v51  ;;  %v1641_v48 = vrot.slane %v5615_v32, 1 }
  0x78   : > { %986 = vmatprep.mubr.bf16.mxu0 %v540_v29  ;;  %1966 = vmatprep.mubr.bf16.mxu1 %v1504_v41  ;;  %v1527_v29 = vrot.slane %v1525_v2, 1  ;;  %v570_v41 = vrot.slane %v568_v8, 1  ;;  %v582_v2 = vrot.slane %v580_v54, 1  ;;  %v5772_v8 = vld [vmem:[%s5370_s12 + $0x90] sm:$0xff]   ;;  %v1644_v54 = vrot.slane %v5632_v59, 1 }
  0x79   : > { %v5714_v3 = vsel %vm617_vm0, %v627_v57, %v628_v35  ;;  %v5756_v35 = vld [vmem:[%s5370_s12 + $0x8c] ss:$0 sps:$4 sm:$0xff]   ;;  %v1556_v34 = vshll.u32 %v5772_v8, 16  ;;  %v599_v32 = vrot.slane %v597_v22, 1 }
  0x7a   : > { %v1528_v14 = vsel %vm408_vm1, %v1523_v24, %v1527_v29  ;;  %v571_v57 = vor.u32 %v570_v41, %v566_v38  ;;  %v1549_v38 = vshll.u32 %v5756_v35, 16  ;;  %v583_v18 = vor.u32 %v582_v2, %v578_v6  ;;  %v5222_v22 = vld [vmem:[%s5370_s12 + $0xc] sm:$0xff]  }
  0x7b   : > { %v1636_v24 = vrot.slane %v5586_v56, 1  ;;  %v592_v29 = vshll.u32 %v5513_v44, 16  ;;  %v1554_v41 = vshrl.u32 %v5772_v8, 16  ;;  %v1642_v44 = vrot.slane %v5624_v13, 1 }
  0x7c   : > { %v1551_v33 = vrot.slane %v1549_v38, 1  ;;  %v1558_v50 = vrot.slane %v1556_v34, 1  ;;  %v1645_v13 = vrot.slane %v5643_v5, 1  ;;  %v1651_v5 = vrot.slane %v5684_v21, 1 }
  0x7d   : > { %v5791_v62 = vsel %vm617_vm0, %v1635_v25, %v1636_v24  ;;  %v5813_v27 = vsel %vm617_vm0, %v1641_v48, %v1642_v44  ;;  %v1654_v6 = vrot.slane %v5703_v20, 1  ;;  %v1656_v21 = vrot.slane %v5718_v4, 1 }
  0x7e   : > { %v1657_v20 = vrot.slane %v5727_v23, 1  ;;  %v1659_v24 = vrot.slane %v5743_v45, 1  ;;  %v1662_v23 = vrot.slane %v5772_v8, 1 }
  0x7f   : > { %987 = vmatmul.mubr.bf16.gmra.mrb[40].mxu0 %v5426_v52  ;;  %1967 = vmatmul.mubr.bf16.gmra.mrb[40].mxu1 %v5650_v31  ;;  %v1532_v52 = vshll.u32 %v5718_v4, 16 }
  0x80   : > { %994 = vmatprep.mubr.bf16.mxu0 %v552_v0  ;;  %1974 = vmatprep.mubr.bf16.mxu1 %v1516_v53  ;;  %v585_v0 = vshll.u32 %v5510_v43, 16  ;;  %v576_v53 = vsel %vm408_vm1, %v571_v57, %v575_v49  ;;  %v1648_v57 = vrot.slane %v5662_v46, 1  ;;  %v1653_v46 = vrot.slane %v5695_v40, 1 }
  0x81   : > { %v1534_v7 = vrot.slane %v1532_v52, 1  ;;  %v5786_v52 = vld [vmem:[%s5370_s12 + $0x98] ss:$0 sps:$4 sm:$0xff]  }
  0x82   : > { %v587_v43 = vrot.slane %v585_v0, 1  ;;  %v1650_v0 = vrot.slane %v5675_v30, 1 }
  0x83   : > { %v1535_v47 = vor.u32 %v1534_v7, %v1530_v36  ;;  %v5798_v36 = vld [vmem:[%s5370_s12 + $0x9c] sm:$0xff]   ;;  %v1561_v7 = vshll.u32 %v5786_v52, 16 }
  0x84   : > { %v588_v56 = vsel %vm408_vm1, %v583_v18, %v587_v43  ;;  %v1568_v59 = vshll.u32 %v5798_v36, 16  ;;  %v5221_v18 = vld [vmem:[%s5370_s12 + $0x8] ss:$0 sps:$4 sm:$0xff]  }
  0x85   : > { %v619_v25 = vrot.slane %v5221_v18, 1  ;;  %v5159_v18 = vld [vmem:[%s6529_s1 + $0x1c8] sm:$0xff]  }
  0x87   : > { %995 = vmatmul.mubr.bf16.gmra.mrb[44].mxu0 %v5435_v58  ;;  %1975 = vmatmul.mubr.bf16.gmra.mrb[44].mxu1 %v5675_v30  ;;  %v640_v58 = vrot.slane %v5599_v19, 1  ;;  %v1540_v19 = vsel %vm408_vm1, %v1535_v47, %v1539_v61  ;;  %v5821_v47 = vsel %vm617_vm0, %v1644_v54, %v1645_v13  ;;  %v5837_v30 = vsel %vm617_vm0, %v1653_v46, %v1654_v6  ;;  %v5224_v13 = vld [vmem:[%s5370_s12 + $0xb4] sm:$0xff]   ;;  %v5158_v46 = vld [vmem:[%s6529_s1 + $0x180] sm:$0xff]  }
  0x88   : > { %1002 = vmatprep.mubr.bf16.mxu0 %v564_v42  ;;  %1982 = vmatprep.mubr.bf16.mxu1 %v1528_v14  ;;  %v1638_v42 = vrot.slane %v5602_v11, 1  ;;  %v594_v14 = vrot.slane %v592_v29, 1  ;;  %v5155_v11 = vld [vmem:[%s5370_s12 + $0xa4] ss:$0 sps:$4 sm:$0xff]   ;;  %v1660_v29 = vrot.slane %v5756_v35, 1 }
  0x89   : > { %v5765_v1 = vsel %vm617_vm0, %v639_v55, %v640_v58  ;;  %v1647_v55 = vrot.slane %v5650_v31, 1  ;;  %v1563_v58 = vrot.slane %v1561_v7, 1  ;;  %v1566_v31 = vshrl.u32 %v5798_v36, 16 }
  0x8a   : > { %v5807_v51 = vsel %vm617_vm0, %v1638_v42, %v1639_v60  ;;  %v595_v16 = vor.u32 %v594_v14, %v590_v63  ;;  %v5856_v34 = vsel %vm617_vm0, %v1659_v24, %v1660_v29  ;;  %v1666_v42 = vrot.slane %v5155_v11, 1  ;;  %v5223_v14 = vld [vmem:[%s5370_s12 + $0x14] ss:$0 sps:$4 sm:$0xff]  }
  0x8b   : > { %v5824_v61 = vsel %vm617_vm0, %v1647_v55, %v1648_v57  ;;  %v622_v7 = vrot.slane %v5223_v14, 1  ;;  %v5879_v57 = vld [vmem:[%s5370_s12 + $0xc0] sm:$0xff]  }
  0x8c   : > { %v600_v2 = vsel %vm408_vm1, %v595_v16, %v599_v32  ;;  %v5175_v16 = vld [vmem:[%s5370_s12 + $0xc8] ss:$0 sps:$4 sm:$0xff]  }
  0x8f   : > { %1003 = vmatmul.mubr.bf16.gmra.mrb[48].mxu0 %v5462_v9  ;;  %1983 = vmatmul.mubr.bf16.gmra.mrb[48].mxu1 %v5695_v40  ;;  %v1547_v9 = vor.u32 %v1546_v37, %v1542_v15  ;;  %v1573_v15 = vshll.u32 %v5155_v11, 16  ;;  %v5833_v37 = vsel %vm617_vm0, %v1650_v0, %v1651_v5  ;;  %v5842_v40 = vld [vmem:[%s5370_s12 + $0xa8] sm:$0xff]   ;;  %v5225_v0 = vld [vmem:[%s5370_s12 + $0x18] sm:$0xff]  }
  0x90   : > { %1010 = vmatprep.mubr.bf16.mxu0 %v576_v53  ;;  %1990 = vmatprep.mubr.bf16.mxu1 %v1540_v19  ;;  %v1570_v53 = vrot.slane %v1568_v59, 1  ;;  %v5220_v19 = vld [vmem:[%s5370_s12] sm:$0xff]   ;;  %v1580_v63 = vshll.u32 %v5842_v40, 16  ;;  %v1578_v48 = vshrl.u32 %v5842_v40, 16  ;;  %v1668_v11 = vrot.slane %v5842_v40, 1 }
  0x91   : > { %v1552_v49 = vsel %vm408_vm1, %v1547_v9, %v1551_v33  ;;  %v618_v43 = vrot.slane %v5220_v19, 1  ;;  %v5851_v9 = vsel %vm617_vm0, %v1656_v21, %v1657_v20  ;;  %v5162_v33 = vld [vmem:[%s5370_s12 + $0xb0] ss:$0 sps:$4 sm:$0xff]   ;;  %v624_v5 = vrot.slane %v5225_v0, 1  ;;  %v5898_v21 = vld [vmem:[%s5370_s12 + $0x18] sm:$0xff]  }
  0x92   : > { %v1669_v32 = vrot.slane %v5162_v33, 1  ;;  %v1582_v55 = vrot.slane %v1580_v63, 1  ;;  %v1675_v20 = vrot.slane %v5175_v16, 1  ;;  %v2705_v29 = vrot.slane %v5898_v21, 1 }
  0x93   : > { %v620_v35 = vsel %vm617_vm0, %v618_v43, %v619_v25  ;;  %v5902_v43 = vld [vmem:[%s5370_s12 + $0x20] ss:$0 sps:$4 sm:$0xff]  }
  0x94   : > { %v2505_v0 = vshll.u32 %v5902_v43, 16 }
  0x97   : > { %1011 = vmatmul.mubr.bf16.gmra.mrb[52].mxu0 %v5469_v17  ;;  %1991 = vmatmul.mubr.bf16.gmra.mrb[52].mxu1 %v5718_v4  ;;  %v1559_v17 = vor.u32 %v1558_v50, %v1554_v41  ;;  %v1575_v4 = vrot.slane %v1573_v15, 1  ;;  %v1665_v41 = vrot.slane %v5798_v36, 1  ;;  %v5168_v50 = vld [vmem:[%s5370_s12 + $0xbc] ss:$0 sps:$4 sm:$0xff]  }
  0x98   : > { %1018 = vmatprep.mubr.bf16.mxu0 %v588_v56  ;;  %1998 = vmatprep.mubr.bf16.mxu1 %v1552_v49  ;;  %v621_v56 = vrot.slane %v5222_v22, 1  ;;  %v5870_v49 = vld [vmem:[%s5370_s12 + $0xb4] sm:$0xff]   ;;  %v1597_v63 = vshll.u32 %v5168_v50, 16 }
  0x99   : > { %v1564_v38 = vsel %vm408_vm1, %v1559_v17, %v1563_v58  ;;  %v5874_v54 = vsel %vm617_vm0, %v1665_v41, %v1666_v42  ;;  %v5884_v58 = vsel %vm617_vm0, %v1668_v11, %v1669_v32  ;;  %v1671_v59 = vrot.slane %v5870_v49, 1  ;;  %v5163_v22 = vld [vmem:[%s6529_s1 + $0x1d0] sm:$0xff]  }
  0x9a   : > { %v1672_v17 = vrot.slane %v5168_v50, 1  ;;  %v623_v19 = vsel %vm617_vm0, %v621_v56, %v622_v7  ;;  %v1599_v41 = vrot.slane %v1597_v63, 1  ;;  %v1604_v42 = vshll.u32 %v5879_v57, 16  ;;  %v5166_v50 = vld [vmem:[%s6529_s1 + $0x198] sm:$0xff]   ;;  %v5230_v63 = vld [vmem:[%s5370_s12 + $0x20] ss:$0 sps:$4 sm:$0xff]  }
  0x9b   : > { %v1602_v7 = vshrl.u32 %v5879_v57, 16 }
  0x9c   : > { %v5895_v15 = vsel %vm617_vm0, %v1671_v59, %v1672_v17  ;;  %v2498_v59 = vshrl.u32 %v5898_v21, 16 }
  0x9f   : > { %1019 = vmatmul.mubr.bf16.gmra.mrb[56].mxu0 %v5503_v39  ;;  %1999 = vmatmul.mubr.bf16.gmra.mrb[56].mxu1 %v5743_v45  ;;  %v1571_v39 = vor.u32 %v1570_v53, %v1566_v31  ;;  %v1663_v45 = vrot.slane %v5786_v52, 1  ;;  %v1585_v52 = vshll.u32 %v5162_v33, 16  ;;  %v1674_v31 = vrot.slane %v5879_v57, 1 }
  0xa0   : > { %1026 = vmatprep.mubr.bf16.mxu0 %v600_v2  ;;  %2006 = vmatprep.mubr.bf16.mxu1 %v1564_v38  ;;  %v1592_v53 = vshll.u32 %v5870_v49, 16  ;;  %v1583_v38 = vor.u32 %v1582_v55, %v1578_v48  ;;  %v1606_v48 = vrot.slane %v1604_v42, 1  ;;  %v5951_v55 = vld [vmem:[%s5370_s12 + $0x24] sm:$0xff]  }
  0xa1   : > { %v1576_v60 = vsel %vm408_vm1, %v1571_v39, %v1575_v4  ;;  %v5867_v44 = vsel %vm617_vm0, %v1662_v23, %v1663_v45  ;;  %v1587_v2 = vrot.slane %v1585_v52, 1  ;;  %v5908_v25 = vsel %vm617_vm0, %v1674_v31, %v1675_v20  ;;  %v5160_v45 = vld [vmem:[%s6529_s1 + $0x188] sm:$0xff]   ;;  %v5178_v20 = vld [vmem:[%s6529_s1 + $0x1f8] sm:$0xff]  }
  0xa2   : > { %v2706_v39 = vrot.slane %v5902_v43, 1  ;;  %v1590_v23 = vshrl.u32 %v5870_v49, 16  ;;  %v1594_v33 = vrot.slane %v1592_v53, 1  ;;  %v1609_v52 = vshll.u32 %v5175_v16, 16  ;;  %v5962_v31 = vld [vmem:[%s5370_s12 + $0x2c] ss:$0 sps:$4 sm:$0xff]  }
  0xa3   : > { %v1588_v4 = vsel %vm408_vm1, %v1583_v38, %v1587_v2  ;;  %v1607_v11 = vor.u32 %v1606_v48, %v1602_v7  ;;  %v2507_v38 = vrot.slane %v2505_v0, 1  ;;  %v6000_v7 = vld [vmem:[%s5370_s12 + $0x3c] sm:$0xff]   ;;  %v5185_v48 = vld [vmem:[%s6529_s1 + $0x208] sm:$0xff]  }
  0xa4   : > { %v1595_v56 = vor.u32 %v1594_v33, %v1590_v23  ;;  %v1611_v32 = vrot.slane %v1609_v52, 1  ;;  %v5229_v23 = vld [vmem:[%s5370_s12 + $0x18] sm:$0xff]  }
  0xa5   : > { %v1632_v33 = vrot.slane %v5229_v23, 1 }
  0xa6   : > { %v1600_v14 = vsel %vm408_vm1, %v1595_v56, %v1599_v41  ;;  %v1612_v16 = vsel %vm408_vm1, %v1607_v11, %v1611_v32  ;;  %v5992_v41 = vld [vmem:[%s5370_s12 + $0x38] ss:$0 sps:$4 sm:$0xff]   ;;  %v2536_v11 = vshll.u32 %v6000_v7, 16  ;;  %v5188_v32 = vld [vmem:[%s6529_s1 + $0x210] sm:$0xff]  }
  0xa7   : > { %1027 = vmatmul.mubr.bf16.gmra.mrb[60].mxu0 %v5224_v13  ;;  %2007 = vmatmul.mubr.bf16.gmra.mrb[60].mxu1 %v5772_v8  ;;  %v5226_v8 = vld [vmem:[%s5370_s12 + $0x20] ss:$0 sps:$4 sm:$0xff]   ;;  %v2500_v13 = vshll.u32 %v5898_v21, 16 }
  0xa8   : > { %4739 = vmatprep.mubr.bf16.mxu0 %v620_v35  ;;  %2014 = vmatprep.mubr.bf16.mxu1 %v1576_v60  ;;  %v625_v6 = vrot.slane %v5226_v8, 1  ;;  %v5920_v35 = vsel %vm617_vm0, %v2705_v29, %v2706_v39  ;;  %v5165_v60 = vld [vmem:[%s6529_s1 + $0x1d8] sm:$0xff]   ;;  %v5227_v8 = vld [vmem:[%s5370_s12 + $0xc] sm:$0xff]  }
  0xa9   : > { %v2502_v17 = vrot.slane %v2500_v13, 1  ;;  %v2534_v13 = vshrl.u32 %v6000_v7, 16 }
  0xaa   : > { %v626_v24 = vsel %vm617_vm0, %v624_v5, %v625_v6  ;;  %v5173_v5 = vld [vmem:[%s6529_s1 + $0x1a8] sm:$0xff]   ;;  %v5228_v6 = vld [vmem:[%s5370_s12 + $0x14] ss:$0 sps:$4 sm:$0xff]  }
  0xab   : > { %v1630_v2 = vrot.slane %v5228_v6, 1  ;;  %v2503_v53 = vor.u32 %v2502_v17, %v2498_v59  ;;  %v6028_v17 = vld [vmem:[%s5370_s12 + $0x50] ss:$0 sps:$4 sm:$0xff]  }
  0xad   : > { %v2508_v39 = vsel %vm408_vm1, %v2503_v53, %v2507_v38  ;;  %v6047_v53 = vld [vmem:[%s5370_s12 + $0x5c] ss:$0 sps:$4 sm:$0xff]  }
  0xaf   : > { %4740 = vmatmul.mubr.bf16.vlgmr.msra.gmra.mrb[64].mxu0 %v623_v19  ;;  %2015 = vmatmul.mubr.bf16.gmra.mrb[64].mxu1 %v5798_v36  ;;  %v5164_v36 = vld [vmem:[%s6529_s1 + $0x190] sm:$0xff]   ;;  %v2510_v19 = vshrl.u32 %v5951_v55, 16 }
  0xb0   : > { %4588 = vmatpush3.bf16.msra.mxu0 %v5158_v46  ;;  %4743 = vmatprep.mubr.bf16.mxu0 %v626_v24  ;;  %v2512_v46 = vshll.u32 %v5951_v55, 16  ;;  %v5980_v24 = vld [vmem:[%s5370_s12 + $0x30] sm:$0xff]  }
  0xb1   : > { %4589 = vmatprep.subr.bf16.mxu0 %v5159_v18  ;;  %2022 = vmatprep.mubr.bf16.mxu1 %v1588_v4  ;;  %v2517_v18 = vshll.u32 %v5962_v31, 16  ;;  %v5179_v4 = vld [vmem:[%s6529_s1 + $0x1b8] sm:$0xff]  }
  0xb2   : > { %v2514_v43 = vrot.slane %v2512_v46, 1 }
  0xb3   : > { %v2519_v56 = vrot.slane %v2517_v18, 1  ;;  %v5203_v18 = vld [vmem:[%s6529_s1 + $0x238] sm:$0xff]  }
  0xb4   : > { %4590 = vmatpush3.bf16.msra.mxu0 %v5160_v45  ;;  %v1633_v45 = vrot.slane %v5230_v63, 1 }
  0xb5   : > { %4591 = vmatprep.subr.bf16.mxu0 %v5163_v22  ;;  %v2515_v22 = vor.u32 %v2514_v43, %v2510_v19  ;;  %v6057_v43 = vld [vmem:[%s5370_s12 + $0x60] sm:$0xff]  }
  0xb6   : > { %v2572_v23 = vshll.u32 %v6057_v43, 16  ;;  %v2570_v63 = vshrl.u32 %v6057_v43, 16 }
  0xb7   : > { %4744 = vmatmul.mubr.bf16.gmra.mrb[68].mxu0 %v5714_v3  ;;  %2023 = vmatmul.mubr.bf16.gmra.mrb[68].mxu1 %v5842_v40  ;;  %v5170_v3 = vld [vmem:[%s6529_s1 + $0x1e0] sm:$0xff]   ;;  %v2520_v42 = vsel %vm408_vm1, %v2515_v22, %v2519_v56  ;;  %v6073_v22 = vld [vmem:[%s5370_s12 + $0x6c] sm:$0xff]  }
  0xb8   : > { %4592 = vmatpush3.bf16.msra.mxu0 %v5164_v36  ;;  %4747 = vmatprep.mubr.bf16.mxu0 %v5731_v10  ;;  %v5171_v40 = vld [vmem:[%s6529_s1 + $0x1a0] sm:$0xff]   ;;  %v5172_v10 = vld [vmem:[%s6529_s1 + $0x1e8] sm:$0xff]   ;;  %v2522_v36 = vshrl.u32 %v5980_v24, 16 }
  0xb9   : > { %4593 = vmatprep.subr.bf16.mxu0 %v5165_v60  ;;  %2030 = vmatprep.mubr.bf16.mxu1 %v1600_v14  ;;  %v2529_v14 = vshll.u32 %v5992_v41, 16 }
  0xbc   : > { %4594 = vmatpush3.bf16.msra.mxu0 %v5166_v50  ;;  %v2531_v50 = vrot.slane %v2529_v14, 1 }
  0xbd   : > { %4595 = vmatprep.subr.bf16.mxu0 %v5170_v3  ;;  %v6009_v3 = vld [vmem:[%s5370_s12 + $0x44] ss:$0 sps:$4 sm:$0xff]  }
  0xbf   : > { %4748 = vmatmul.mubr.bf16.gmra.mrb[72].mxu0 %v5746_v26  ;;  %2031 = vmatmul.mubr.bf16.gmra.mrb[72].mxu1 %v5870_v49  ;;  %v5176_v26 = vld [vmem:[%s6529_s1 + $0x1f0] sm:$0xff]   ;;  %v1629_v49 = vrot.slane %v5227_v8, 1 }
  0xc0   : > { %4596 = vmatpush3.bf16.msra.mxu0 %v5171_v40  ;;  %4751 = vmatprep.mubr.bf16.mxu0 %v5760_v28  ;;  %v5177_v28 = vld [vmem:[%s6529_s1 + $0x1b0] sm:$0xff]   ;;  %v6019_v40 = vld [vmem:[%s5370_s12 + $0x48] sm:$0xff]  }
  0xc1   : > { %4597 = vmatprep.subr.bf16.mxu0 %v5172_v10  ;;  %2038 = vmatprep.mubr.bf16.mxu1 %v1612_v16  ;;  %v1631_v29 = vsel %vm617_vm0, %v1629_v49, %v1630_v2  ;;  %v5191_v10 = vld [vmem:[%s6529_s1 + $0x218] sm:$0xff]   ;;  %v2548_v0 = vshll.u32 %v6019_v40, 16  ;;  %v5197_v49 = vld [vmem:[%s6529_s1 + $0x228] sm:$0xff]  }
  0xc2   : > { %v6038_v8 = vld [vmem:[%s5370_s12 + $0x54] sm:$0xff]  }
  0xc3   : > { %v2550_v46 = vrot.slane %v2548_v0, 1  ;;  %v2560_v38 = vshll.u32 %v6038_v8, 16 }
  0xc4   : > { %4598 = vmatpush3.bf16.msra.mxu0 %v5173_v5  ;;  %v5194_v5 = vld [vmem:[%s6529_s1 + $0x220] sm:$0xff]  }
  0xc5   : > { %4599 = vmatprep.subr.bf16.mxu0 %v5176_v26  ;;  %v2562_v19 = vrot.slane %v2560_v38, 1 }
  0xc7   : > { %4752 = vmatmul.mubr.bf16.gmra.mrb[76].mxu0 %v5765_v1  ;;  %2039 = vmatmul.mubr.bf16.gmra.mrb[76].mxu1 %v5879_v57  ;;  %v2524_v1 = vshll.u32 %v5980_v24, 16  ;;  %v1634_v57 = vsel %vm617_vm0, %v1632_v33, %v1633_v45  ;;  %v2574_v45 = vrot.slane %v2572_v23, 1 }
  0xc8   : > { %4600 = vmatpush3.bf16.msra.mxu0 %v5177_v28  ;;  %4787 = vmatprep.mubr.bf16.mxu1 %v1631_v29  ;;  %v5200_v28 = vld [vmem:[%s6529_s1 + $0x230] sm:$0xff]  }
  0xc9   : > { %4601 = vmatprep.subr.bf16.mxu0 %v5178_v20  ;;  %2994 = vmatprep.mubr.bf16.mxu0 %v2508_v39  ;;  %v2526_v60 = vrot.slane %v2524_v1, 1  ;;  %v6079_v1 = vld [vmem:[%s5370_s12 + $0x74] ss:$0 sps:$4 sm:$0xff]  }
  0xca   : > { %v2589_v14 = vshll.u32 %v6079_v1, 16 }
  0xcb   : > { %v2527_v52 = vor.u32 %v2526_v60, %v2522_v36  ;;  %v2582_v36 = vshrl.u32 %v6073_v22, 16 }
  0xcc   : > { %4602 = vmatpush3.bf16.msra.mxu0 %v5179_v4  ;;  %v6066_v4 = vld [vmem:[%s5370_s12 + $0x68] ss:$0 sps:$4 sm:$0xff]  }
  0xcf   : > { %2995 = vmatmul.mubr.bf16.vlgmr.msra.gmra.mrb[80].mxu0 %v5898_v21  ;;  %4788 = vmatmul.mubr.bf16.vlgmr.msra.gmra.mrb[80].mxu1 %v1634_v57  ;;  %v2532_v21 = vsel %vm408_vm1, %v2527_v52, %v2531_v50  ;;  %v2584_v57 = vshll.u32 %v6073_v22, 16  ;;  %v6092_v52 = vld [vmem:[%s5370_s12 + $0x80] ss:$0 sps:$4 sm:$0xff]  }
  0xd0   : > { %3002 = vmatprep.mubr.bf16.mxu0 %v2520_v42  ;;  %4820 = vmatpush3.bf16.msra.mxu1 %v5779_v12  ;;  %v2538_v12 = vrot.slane %v2536_v11, 1 }
  0xd1   : > { %4791 = vmatprep.mubr.bf16.mxu1 %v5791_v62  ;;  %4821 = vmatprep.subr.bf16.mxu1 %v5185_v48  ;;  %v2541_v62 = vshll.u32 %v6009_v3, 16  ;;  %v2586_v60 = vrot.slane %v2584_v57, 1 }
  0xd2   : > { %v2539_v16 = vor.u32 %v2538_v12, %v2534_v13 }
  0xd3   : > { %v2543_v59 = vrot.slane %v2541_v62, 1 }
  0xd4   : > { %4822 = vmatpush3.bf16.msra.mxu1 %v5185_v48  ;;  %v6086_v48 = vld [vmem:[%s5370_s12 + $0x78] sm:$0xff]  }
  0xd5   : > { %4823 = vmatprep.subr.bf16.mxu1 %v5188_v32  ;;  %v2544_v26 = vsel %vm408_vm1, %v2539_v16, %v2543_v59  ;;  %v2596_v50 = vshll.u32 %v6086_v48, 16  ;;  %v6101_v16 = vld [vmem:[%s5370_s12 + $0x84] sm:$0xff]  }
  0xd7   : > { %3003 = vmatmul.mubr.bf16.gmra.mrb[84].mxu0 %v5951_v55  ;;  %4792 = vmatmul.mubr.bf16.gmra.mrb[84].mxu1 %v5807_v51  ;;  %v2546_v51 = vshrl.u32 %v6019_v40, 16 }
  0xd8   : > { %3010 = vmatprep.mubr.bf16.mxu0 %v2532_v21  ;;  %4795 = vmatprep.mubr.bf16.mxu1 %v5813_v27  ;;  %v2553_v27 = vshll.u32 %v6028_v17, 16 }
  0xd9   : > { %4824 = vmatpush3.bf16.msra.mxu1 %v5188_v32  ;;  %v2551_v6 = vor.u32 %v2550_v46, %v2546_v51  ;;  %v2608_v51 = vshll.u32 %v6101_v16, 16 }
  0xda   : > { %4825 = vmatprep.subr.bf16.mxu1 %v5191_v10  ;;  %v2555_v2 = vrot.slane %v2553_v27, 1 }
  0xdc   : > { %v2556_v20 = vsel %vm408_vm1, %v2551_v6, %v2555_v2  ;;  %v2606_v6 = vshrl.u32 %v6101_v16, 16  ;;  %v2610_v2 = vrot.slane %v2608_v51, 1 }
  0xdd   : > { %4826 = vmatpush3.bf16.msra.mxu1 %v5191_v10  ;;  %v2598_v10 = vrot.slane %v2596_v50, 1 }
  0xde   : > { %4827 = vmatprep.subr.bf16.mxu1 %v5194_v5 }
  0xdf   : > { %3011 = vmatmul.mubr.bf16.gmra.mrb[88].mxu0 %v5980_v24  ;;  %4796 = vmatmul.mubr.bf16.gmra.mrb[88].mxu1 %v5821_v47  ;;  %v2558_v47 = vshrl.u32 %v6038_v8, 16 }
  0xe0   : > { %3018 = vmatprep.mubr.bf16.mxu0 %v2544_v26  ;;  %4799 = vmatprep.mubr.bf16.mxu1 %v5824_v61  ;;  %v2565_v61 = vshll.u32 %v6047_v53, 16  ;;  %v6109_v26 = vld [vmem:[%s5370_s12 + $0x8c] ss:$0 sps:$4 sm:$0xff]  }
  0xe1   : > { %4828 = vmatpush3.bf16.msra.mxu1 %v5194_v5  ;;  %v2563_v29 = vor.u32 %v2562_v19, %v2558_v47  ;;  %v2613_v38 = vshll.u32 %v6109_v26, 16  ;;  %v2708_v19 = vrot.slane %v5951_v55, 1 }
  0xe2   : > { %4829 = vmatprep.subr.bf16.mxu1 %v5197_v49  ;;  %v2567_v39 = vrot.slane %v2565_v61, 1  ;;  %v2709_v61 = vrot.slane %v5962_v31, 1 }
  0xe4   : > { %v2568_v33 = vsel %vm408_vm1, %v2563_v29, %v2567_v39  ;;  %v2615_v29 = vrot.slane %v2613_v38, 1  ;;  %v6128_v39 = vld [vmem:[%s5370_s12 + $0x98] ss:$0 sps:$4 sm:$0xff]   ;;  %v2723_v38 = vrot.slane %v6057_v43, 1 }
  0xe5   : > { %4830 = vmatpush3.bf16.msra.mxu1 %v5197_v49  ;;  %v2625_v31 = vshll.u32 %v6128_v39, 16 }
  0xe6   : > { %4831 = vmatprep.subr.bf16.mxu1 %v5200_v28 }
  0xe7   : > { %3019 = vmatmul.mubr.bf16.gmra.mrb[92].mxu0 %v6000_v7  ;;  %4800 = vmatmul.mubr.bf16.gmra.mrb[92].mxu1 %v5833_v37  ;;  %v2577_v37 = vshll.u32 %v6066_v4, 16 }
  0xe8   : > { %3026 = vmatprep.mubr.bf16.mxu0 %v2556_v20  ;;  %4803 = vmatprep.mubr.bf16.mxu1 %v5837_v30  ;;  %v2575_v30 = vor.u32 %v2574_v45, %v2570_v63  ;;  %v2710_v63 = vsel %vm617_vm0, %v2708_v19, %v2709_v61 }
  0xe9   : > { %4832 = vmatpush3.bf16.msra.mxu1 %v5200_v28  ;;  %v2579_v56 = vrot.slane %v2577_v37, 1 }
  0xea   : > { %4833 = vmatprep.subr.bf16.mxu1 %v5203_v18 }
  0xeb   : > { %v2580_v42 = vsel %vm408_vm1, %v2575_v30, %v2579_v56 }
  0xed   : > { %4834 = vmatpush3.bf16.msra.mxu1 %v5203_v18  ;;  %v2611_v18 = vor.u32 %v2610_v2, %v2606_v6 }
  0xef   : > { %3027 = vmatmul.mubr.bf16.gmra.mrb[96].mxu0 %v6019_v40  ;;  %4804 = vmatmul.mubr.bf16.gmra.mrb[0].mxu1 %v5851_v9  ;;  %v2587_v9 = vor.u32 %v2586_v60, %v2582_v36  ;;  %v2616_v45 = vsel %vm408_vm1, %v2611_v18, %v2615_v29  ;;  %v2715_v36 = vrot.slane %v6009_v3, 1 }
  0xf0   : > { %3034 = vmatprep.mubr.bf16.mxu0 %v2568_v33  ;;  %4807 = vmatprep.mubr.bf16.mxu1 %v5856_v34  ;;  %v2591_v34 = vrot.slane %v2589_v14, 1  ;;  %v2711_v33 = vrot.slane %v5980_v24, 1 }
  0xf2   : > { %v2592_v62 = vsel %vm408_vm1, %v2587_v9, %v2591_v34  ;;  %v2627_v9 = vrot.slane %v2625_v31, 1  ;;  %v6147_v34 = vld [vmem:[%s5370_s12 + $0xa4] ss:$0 sps:$4 sm:$0xff]   ;;  %v2729_v31 = vrot.slane %v6086_v48, 1 }
  0xf7   : > { %3035 = vmatmul.mubr.bf16.gmra.mrb[100].mxu0 %v6038_v8  ;;  %4808 = vmatmul.mubr.bf16.gmra.mrb[4].mxu1 %v5867_v44  ;;  %v2594_v44 = vshrl.u32 %v6086_v48, 16 }
  0xf8   : > { %3042 = vmatprep.mubr.bf16.mxu0 %v2580_v42  ;;  %4811 = vmatprep.mubr.bf16.mxu1 %v5874_v54  ;;  %v2601_v54 = vshll.u32 %v6092_v52, 16  ;;  %v2714_v42 = vrot.slane %v6000_v7, 1 }
  0xf9   : > { %v2599_v0 = vor.u32 %v2598_v10, %v2594_v44  ;;  %v2637_v44 = vshll.u32 %v6147_v34, 16  ;;  %v6159_v10 = vld [vmem:[%s5370_s12 + $0xa8] sm:$0xff]  }
  0xfa   : > { %v2603_v5 = vrot.slane %v2601_v54, 1  ;;  %v2642_v61 = vshrl.u32 %v6159_v10, 16 }
  0xfc   : > { %v2604_v49 = vsel %vm408_vm1, %v2599_v0, %v2603_v5  ;;  %v2721_v0 = vrot.slane %v6047_v53, 1 }
  0xff   : > { %3043 = vmatmul.mubr.bf16.gmra.mrb[104].mxu0 %v6057_v43  ;;  %4812 = vmatmul.mubr.bf16.gmra.mrb[8].mxu1 %v5884_v58  ;;  %v6116_v58 = vld [vmem:[%s5370_s12 + $0x90] sm:$0xff]   ;;  %v2726_v43 = vrot.slane %v6073_v22, 1 }
 0x100   : > { %3050 = vmatprep.mubr.bf16.mxu0 %v2592_v62  ;;  %4815 = vmatprep.mubr.bf16.mxu1 %v5895_v15  ;;  %v2620_v23 = vshll.u32 %v6116_v58, 16  ;;  %v2618_v55 = vshrl.u32 %v6116_v58, 16 }
 0x102   : > { %v4331_v11 = vpop.f32.mrb[0].mxu0  ;;  %v2622_v37 = vrot.slane %v2620_v23, 1  ;;  %v6180_v23 = vld [vmem:[%s5370_s12 + $0xb4] sm:$0xff]  }
 0x103   : > { %v4332_v32 = vpop.f32.mrb[1].mxu0 }
 0x104   : > { %v6095_v21 = vadd.f32 %v4332_v32, %v4331_v11  ;;  %v4334_v13 = vpop.f32.mrb[2].mxu0  ;;  %v2623_v14 = vor.u32 %v2622_v37, %v2618_v55  ;;  %v2717_v32 = vrot.slane %v6019_v40, 1  ;;  %v2656_v55 = vshll.u32 %v6180_v23, 16 }
 0x105   : > { %v4335_v12 = vpop.f32.mrb[3].mxu0 }
 0x106   : > { %v6103_v59 = vadd.f32 %v4335_v12, %v4334_v13  ;;  %v2718_v13 = vrot.slane %v6028_v17, 1  ;;  %v2716_v12 = vsel %vm617_vm0, %v2714_v42, %v2715_v36  ;;  %v2628_v7 = vsel %vm408_vm1, %v2623_v14, %v2627_v9 }
 0x107   : > { %3051 = vmatmul.mubr.bf16.gmra.mrb[108].mxu0 %v6073_v22  ;;  %4816 = vmatmul.mubr.bf16.gmra.mrb[12].mxu1 %v5908_v25  ;;  %v2712_v25 = vrot.slane %v5992_v41, 1  ;;  %v2720_v17 = vrot.slane %v6038_v8, 1  ;;  %v2654_v36 = vshrl.u32 %v6180_v23, 16 }
 0x108   : > { %3058 = vmatprep.mubr.bf16.mxu0 %v2604_v49  ;;  %4835 = vmatprep.mubr.bf16.mxu1 %v5920_v35  ;;  %v6138_v35 = vld [vmem:[%s5370_s12 + $0x9c] sm:$0xff]   ;;  %v2719_v54 = vsel %vm617_vm0, %v2717_v32, %v2718_v13  ;;  %v2644_v49 = vshll.u32 %v6159_v10, 16 }
 0x109   : > { %v2713_v56 = vsel %vm617_vm0, %v2711_v33, %v2712_v25  ;;  %v2632_v50 = vshll.u32 %v6138_v35, 16  ;;  %v2630_v3 = vshrl.u32 %v6138_v35, 16  ;;  %v2722_v53 = vsel %vm617_vm0, %v2720_v17, %v2721_v0  ;;  %v6201_v32 = vld [vmem:[%s5370_s12 + $0xc0] sm:$0xff]   ;;  %v6212_v17 = vld [vmem:[%s5370_s12 + $0xc8] ss:$0 sps:$4 sm:$0xff]  }
 0x10a   : > { %v4337_v46 = vpop.f32.mrb[4].mxu0  ;;  %v2646_v18 = vrot.slane %v2644_v49, 1  ;;  %v2668_v0 = vshll.u32 %v6201_v32, 16 }
 0x10b   : > { %v4338_v27 = vpop.f32.mrb[5].mxu0  ;;  %v2634_v62 = vrot.slane %v2632_v50, 1 }
 0x10c   : > { %v6118_v28 = vadd.f32 %v4338_v27, %v4337_v46  ;;  %v4340_v15 = vpop.f32.mrb[6].mxu0  ;;  %v2639_v46 = vrot.slane %v2637_v44, 1  ;;  %v6166_v27 = vld [vmem:[%s5370_s12 + $0xb0] ss:$0 sps:$4 sm:$0xff]   ;;  %v2647_v25 = vor.u32 %v2646_v18, %v2642_v61  ;;  %v2733_v44 = vrot.slane %v6109_v26, 1 }
 0x10d   : > { %v4341_v20 = vpop.f32.mrb[7].mxu0  ;;  %v2635_v51 = vor.u32 %v2634_v62, %v2630_v3  ;;  %v2649_v29 = vshll.u32 %v6166_v27, 16  ;;  %v2732_v62 = vrot.slane %v6101_v16, 1 }
 0x10e   : > { %v6122_v47 = vadd.f32 %v4341_v20, %v4340_v15  ;;  %v2724_v15 = vrot.slane %v6066_v4, 1  ;;  %v2727_v4 = vrot.slane %v6079_v1, 1 }
 0x10f   : > { %3059 = vmatmul.mubr.bf16.gmra.mrb[112].mxu0 %v6086_v48  ;;  %4836 = vmatmul.mubr.bf16.vlgmr.msra.gmra.mrb[80].mxu1 %v2710_v63  ;;  %v2640_v19 = vsel %vm408_vm1, %v2635_v51, %v2639_v46  ;;  %v2651_v63 = vrot.slane %v2649_v29, 1  ;;  %v2658_v48 = vrot.slane %v2656_v55, 1  ;;  %v2735_v51 = vrot.slane %v6116_v58, 1  ;;  %v6226_v29 = vld [vmem:[%s5370_s12 + $0xcc] sm:$0xff]  }
 0x110   : > { %3066 = vmatprep.mubr.bf16.mxu0 %v2616_v45  ;;  %4839 = vmatprep.mubr.bf16.mxu1 %v2713_v56  ;;  %v2725_v33 = vsel %vm617_vm0, %v2723_v38, %v2724_v15  ;;  %v6187_v45 = vld [vmem:[%s5370_s12 + $0xbc] ss:$0 sps:$4 sm:$0xff]   ;;  %v2728_v1 = vsel %vm617_vm0, %v2726_v43, %v2727_v4  ;;  %v2736_v46 = vrot.slane %v6128_v39, 1  ;;  %v2734_v26 = vsel %vm617_vm0, %v2732_v62, %v2733_v44 }
 0x111   : > { %v2652_v50 = vsel %vm408_vm1, %v2647_v25, %v2651_v63  ;;  %v2673_v39 = vshll.u32 %v6212_v17, 16  ;;  %v2738_v63 = vrot.slane %v6138_v35, 1  ;;  %v2739_v55 = vrot.slane %v6147_v34, 1 }
 0x112   : > { %v4343_v30 = vpop.f32.mrb[8].mxu0  ;;  %v2737_v4 = vsel %vm617_vm0, %v2735_v51, %v2736_v46 }
 0x113   : > { %v4344_v24 = vpop.f32.mrb[9].mxu0  ;;  %v2740_v34 = vsel %vm617_vm0, %v2738_v63, %v2739_v55  ;;  %v2750_v55 = vrot.slane %v6226_v29, 1 }
 0x114   : > { %v6142_v41 = vadd.f32 %v4344_v24, %v4343_v30  ;;  %v4346_v57 = vpop.f32.mrb[10].mxu0  ;;  %v2730_v30 = vrot.slane %v6092_v52, 1  ;;  %v2661_v52 = vshll.u32 %v6187_v45, 16 }
 0x115   : > { %v4347_v60 = vpop.f32.mrb[11].mxu0 }
 0x116   : > { %v6150_v11 = vadd.f32 %v4347_v60, %v4346_v57 }
 0x117   : > { %3067 = vmatmul.mubr.bf16.gmra.mrb[116].mxu0 %v6101_v16  ;;  %4840 = vmatmul.mubr.bf16.gmra.mrb[84].mxu1 %v2716_v12 }
 0x118   : > { %3074 = vmatprep.mubr.bf16.mxu0 %v2628_v7  ;;  %4843 = vmatprep.mubr.bf16.mxu1 %v2719_v54  ;;  %v2731_v7 = vsel %vm617_vm0, %v2729_v31, %v2730_v30  ;;  %v2659_v54 = vor.u32 %v2658_v48, %v2654_v36  ;;  %v2675_v31 = vrot.slane %v2673_v39, 1  ;;  %v6237_v30 = vld [vmem:[%s5370_s12 + $0xd4] ss:$0 sps:$4 sm:$0xff]   ;;  %s4187_s12 = sshll.u32 %s6536_s16, 7 }
 0x119   : > { %s6455_s27 = scalar_lea.vmem %s6530_s2, %s4187_s12 }
 0x11a   : > { %v4349_v40 = vpop.f32.mrb[12].mxu0 }
 0x11b   : > { %v4350_v5 = vpop.f32.mrb[13].mxu0 }
 0x11c   : > { %v6169_v6 = vadd.f32 %v4350_v5, %v4349_v40  ;;  %v4352_v2 = vpop.f32.mrb[14].mxu0  ;;  %v2663_v40 = vrot.slane %v2661_v52, 1 }
 0x11d   : > { %v4353_v20 = vpop.f32.mrb[15].mxu0 }
 0x11e   : > { %v6173_v8 = vadd.f32 %v4353_v20, %v4352_v2  ;;  %v2666_v20 = vshrl.u32 %v6201_v32, 16  ;;  %v2664_v18 = vsel %vm408_vm1, %v2659_v54, %v2663_v40 }
 0x11f   : > { %3075 = vmatmul.mubr.bf16.gmra.mrb[120].mxu0 %v6116_v58  ;;  %4844 = vmatmul.mubr.bf16.gmra.mrb[88].mxu1 %v2722_v53  ;;  %v2670_v58 = vrot.slane %v2668_v0, 1  ;;  %v2744_v0 = vrot.slane %v6180_v23, 1 }
 0x120   : > { %3082 = vmatprep.mubr.bf16.mxu0 %v2640_v19  ;;  %4847 = vmatprep.mubr.bf16.mxu1 %v2725_v33 }
 0x122   : > { %v4355_v37 = vpop.f32.mrb[16].mxu0  ;;  %v4467_v56 = vpop.f32.mrb[16].mxu1 }
 0x123   : > { %v4356_v24 = vpop.f32.mrb[17].mxu0  ;;  %v4468_v22 = vpop.f32.mrb[17].mxu1 }
 0x124   : > { %v6192_v57 = vadd.f32 %v4356_v24, %v4355_v37  ;;  %v4358_v42 = vpop.f32.mrb[18].mxu0  ;;  %v6196_v60 = vadd.f32 %v4468_v22, %v4467_v56  ;;  %v4470_v14 = vpop.f32.mrb[18].mxu1  ;;  %v2671_v37 = vor.u32 %v2670_v58, %v2666_v20  ;;  %v2680_v56 = vshll.u32 %v6226_v29, 16 }
 0x125   : > { %v4359_v9 = vpop.f32.mrb[19].mxu0  ;;  %v4471_v12 = vpop.f32.mrb[19].mxu1  ;;  %v2741_v22 = vrot.slane %v6159_v10, 1 }
 0x126   : > { %v6203_v13 = vadd.f32 %v4359_v9, %v4358_v42  ;;  %v6206_v3 = vadd.f32 %v4471_v12, %v4470_v14  ;;  %v2742_v42 = vrot.slane %v6166_v27, 1  ;;  %v2682_v62 = vrot.slane %v2680_v56, 1 }
 0x127   : > { %3083 = vmatmul.mubr.bf16.gmra.mrb[124].mxu0 %v6138_v35  ;;  %4848 = vmatmul.mubr.bf16.gmra.mrb[92].mxu1 %v2728_v1 }
 0x128   : > { %3090 = vmatprep.mubr.bf16.mxu0 %v2652_v50  ;;  %4851 = vmatprep.mubr.bf16.mxu1 %v2731_v7  ;;  %v2678_v50 = vshrl.u32 %v6226_v29, 16  ;;  %v2676_v7 = vsel %vm408_vm1, %v2671_v37, %v2675_v31  ;;  %v2743_v54 = vsel %vm617_vm0, %v2741_v22, %v2742_v42  ;;  %v2751_v37 = vrot.slane %v6237_v30, 1 }
 0x12a   : > { %v4361_v5 = vpop.f32.mrb[20].mxu0  ;;  %v4473_v49 = vpop.f32.mrb[20].mxu1  ;;  %v2683_v51 = vor.u32 %v2682_v62, %v2678_v50 }
 0x12b   : > { %v4362_v2 = vpop.f32.mrb[21].mxu0  ;;  %v4474_v16 = vpop.f32.mrb[21].mxu1 }
 0x12c   : > { %v6217_v38 = vadd.f32 %v4362_v2, %v4361_v5  ;;  %v4364_v15 = vpop.f32.mrb[22].mxu0  ;;  %v6221_v53 = vadd.f32 %v4474_v16, %v4473_v49  ;;  %v4476_v19 = vpop.f32.mrb[22].mxu1  ;;  %v2745_v5 = vrot.slane %v6187_v45, 1  ;;  %v2747_v2 = vrot.slane %v6201_v32, 1 }
 0x12d   : > { %v4365_v61 = vpop.f32.mrb[23].mxu0  ;;  %v4477_v43 = vpop.f32.mrb[23].mxu1  ;;  %v2748_v16 = vrot.slane %v6212_v17, 1 }
 0x12e   : > { %v6228_v33 = vadd.f32 %v4365_v61, %v4364_v15  ;;  %v6231_v25 = vadd.f32 %v4477_v43, %v4476_v19 }
 0x12f   : > { %3091 = vmatmul.mubr.bf16.gmra.mrb[128].mxu0 %v6159_v10  ;;  %4852 = vmatmul.mubr.bf16.gmra.mrb[0].mxu1 %v2734_v26  ;;  %v2685_v10 = vshll.u32 %v6237_v30, 16  ;;  %v2749_v63 = vsel %vm617_vm0, %v2747_v2, %v2748_v16 }
 0x130   : > { %3098 = vmatprep.mubr.bf16.mxu0 %v2664_v18  ;;  %4855 = vmatprep.mubr.bf16.mxu1 %v2737_v4 }
 0x131   : > { %v2687_v46 = vrot.slane %v2685_v10, 1 }
 0x132   : > { %v4367_v24 = vpop.f32.mrb[24].mxu0  ;;  %v4479_v1 = vpop.f32.mrb[24].mxu1 }
 0x133   : > { %v4368_v36 = vpop.f32.mrb[25].mxu0  ;;  %v4480_v9 = vpop.f32.mrb[25].mxu1  ;;  %v2688_v45 = vsel %vm408_vm1, %v2683_v51, %v2687_v46 }
 0x134   : > { %v6242_v14 = vadd.f32 %v4368_v36, %v4367_v24  ;;  %v4370_v35 = vpop.f32.mrb[26].mxu0  ;;  %v6246_v48 = vadd.f32 %v4480_v9, %v4479_v1  ;;  %v4482_v52 = vpop.f32.mrb[26].mxu1 }
 0x135   : > { %v4371_v12 = vpop.f32.mrb[27].mxu0  ;;  %v4483_v44 = vpop.f32.mrb[27].mxu1 }
 0x136   : > { %v6250_v27 = vadd.f32 %v4371_v12, %v4370_v35  ;;  %v6253_v40 = vadd.f32 %v4483_v44, %v4482_v52 }
 0x137   : > { %3099 = vmatmul.mubr.bf16.gmra.mrb[132].mxu0 %v6180_v23  ;;  %4856 = vmatmul.mubr.bf16.gmra.mrb[4].mxu1 %v2740_v34  ;;  %v2746_v23 = vsel %vm617_vm0, %v2744_v0, %v2745_v5  ;;  %v2752_v34 = vsel %vm617_vm0, %v2750_v55, %v2751_v37 }
 0x138   : > { %3106 = vmatprep.mubr.bf16.mxu0 %v2676_v7  ;;  %4859 = vmatprep.mubr.bf16.mxu1 %v2743_v54 }
 0x13a   : > { %v4373_v49 = vpop.f32.mrb[28].mxu0  ;;  %v4485_v15 = vpop.f32.mrb[28].mxu1 }
 0x13b   : > { %v4374_v26 = vpop.f32.mrb[29].mxu0  ;;  %v4486_v19 = vpop.f32.mrb[29].mxu1 }
 0x13c   : > { %v6260_v20 = vadd.f32 %v4374_v26, %v4373_v49  ;;  %v4376_v61 = vpop.f32.mrb[30].mxu0  ;;  %v6262_v18 = vadd.f32 %v4486_v19, %v4485_v15  ;;  %v4488_v58 = vpop.f32.mrb[30].mxu1 }
 0x13d   : > { %v4377_v39 = vpop.f32.mrb[31].mxu0  ;;  %v4489_v4 = vpop.f32.mrb[31].mxu1 }
 0x13e   : > { %v6266_v43 = vadd.f32 %v4377_v39, %v4376_v61  ;;  %v6269_v17 = vadd.f32 %v4489_v4, %v4488_v58 }
 0x13f   : > { %3107 = vmatmul.mubr.bf16.gmra.mrb[136].mxu0 %v6201_v32  ;;  %4860 = vmatmul.mubr.bf16.gmra.mrb[8].mxu1 %v2746_v23 }
 0x140   : > { %3114 = vmatprep.mubr.bf16.mxu0 %v2688_v45  ;;  %4863 = vmatprep.mubr.bf16.mxu1 %v2749_v63 }
 0x142   : > { %v4379_v31 = vpop.f32.mrb[32].mxu0  ;;  %v4491_v56 = vpop.f32.mrb[32].mxu1 }
 0x143   : > { %v4380_v24 = vpop.f32.mrb[33].mxu0  ;;  %v4492_v42 = vpop.f32.mrb[33].mxu1 }
 0x144   : > { %v4381_v22 = vadd.f32 %v4380_v24, %v4379_v31  ;;  %v4382_v1 = vpop.f32.mrb[34].mxu0  ;;  %v6274_v36 = vadd.f32 %v4492_v42, %v4491_v56  ;;  %v4494_v9 = vpop.f32.mrb[34].mxu1 }
 0x145   : > { %v4383_v35 = vpop.f32.mrb[35].mxu0  ;;  %v4495_v50 = vpop.f32.mrb[35].mxu1 }
 0x146   : > { %v4384_v32 = vadd.f32 %v4383_v35, %v4382_v1  ;;  %v6277_v52 = vadd.f32 %v4495_v50, %v4494_v9 }
 0x147   : > { %3115 = vmatmul.mubr.bf16.gmra.mrb[140].mxu0 %v6226_v29  ;;  %4864 = vmatmul.mubr.bf16.gmra.mrb[12].mxu1 %v2752_v34 }
 0x14a   : > { %v4385_v30 = vpop.f32.mrb[36].mxu0  ;;  %v4497_v12 = vpop.f32.mrb[36].mxu1 }
 0x14b   : > { %v4386_v7 = vpop.f32.mrb[37].mxu0  ;;  %v4498_v10 = vpop.f32.mrb[37].mxu1 }
 0x14c   : > { %v4387_v62 = vadd.f32 %v4386_v7, %v4385_v30  ;;  %v4388_v44 = vpop.f32.mrb[38].mxu0  ;;  %v6280_v54 = vadd.f32 %v4498_v10, %v4497_v12  ;;  %v4500_v0 = vpop.f32.mrb[38].mxu1 }
 0x14d   : > { %v4389_v5 = vpop.f32.mrb[39].mxu0  ;;  %v4501_v46 = vpop.f32.mrb[39].mxu1 }
 0x14e   : > { %v4390_v51 = vadd.f32 %v4389_v5, %v4388_v44  ;;  %v6282_v49 = vadd.f32 %v4501_v46, %v4500_v0 }
 0x152   : > { %v4391_v2 = vpop.f32.mrb[40].mxu0  ;;  %v4503_v16 = vpop.f32.mrb[40].mxu1 }
 0x153   : > { %v4392_v15 = vpop.f32.mrb[41].mxu0  ;;  %v4504_v29 = vpop.f32.mrb[41].mxu1 }
 0x154   : > { %v4393_v26 = vadd.f32 %v4392_v15, %v4391_v2  ;;  %v4394_v19 = vpop.f32.mrb[42].mxu0  ;;  %v6284_v61 = vadd.f32 %v4504_v29, %v4503_v16  ;;  %v4506_v58 = vpop.f32.mrb[42].mxu1 }
 0x155   : > { %v4395_v39 = vpop.f32.mrb[43].mxu0  ;;  %v4507_v45 = vpop.f32.mrb[43].mxu1 }
 0x156   : > { %v4396_v23 = vadd.f32 %v4395_v39, %v4394_v19  ;;  %v6286_v4 = vadd.f32 %v4507_v45, %v4506_v58 }
 0x15a   : > { %v4397_v63 = vpop.f32.mrb[44].mxu0  ;;  %v4509_v55 = vpop.f32.mrb[44].mxu1 }
 0x15b   : > { %v4398_v37 = vpop.f32.mrb[45].mxu0  ;;  %v4510_v56 = vpop.f32.mrb[45].mxu1 }
 0x15c   : > { %v4399_v31 = vadd.f32 %v4398_v37, %v4397_v63  ;;  %v4400_v24 = vpop.f32.mrb[46].mxu0  ;;  %v6288_v42 = vadd.f32 %v4510_v56, %v4509_v55  ;;  %v4512_v1 = vpop.f32.mrb[46].mxu1 }
 0x15d   : > { %v4401_v9 = vpop.f32.mrb[47].mxu0  ;;  %v4513_v34 = vpop.f32.mrb[47].mxu1 }
 0x15e   : > { %v4402_v35 = vadd.f32 %v4401_v9, %v4400_v24  ;;  %v6290_v50 = vadd.f32 %v4513_v34, %v4512_v1 }
 0x162   : > { %v4403_v30 = vpop.f32.mrb[48].mxu0  ;;  %v4515_v12 = vpop.f32.mrb[48].mxu1 }
 0x163   : > { %v4404_v7 = vpop.f32.mrb[49].mxu0  ;;  %v4516_v44 = vpop.f32.mrb[49].mxu1 }
 0x164   : > { %v6292_v10 = vadd.f32 %v4404_v7, %v4403_v30  ;;  %v4406_v0 = vpop.f32.mrb[50].mxu0  ;;  %v4517_v5 = vadd.f32 %v4516_v44, %v4515_v12  ;;  %v4518_v46 = vpop.f32.mrb[50].mxu1 }
 0x165   : > { %v4407_v2 = vpop.f32.mrb[51].mxu0  ;;  %v4519_v15 = vpop.f32.mrb[51].mxu1 }
 0x166   : > { %v6294_v16 = vadd.f32 %v4407_v2, %v4406_v0  ;;  %v6296_v29 = vadd.f32 %v4517_v5, %v4381_v22  ;;  %v4520_v19 = vadd.f32 %v4519_v15, %v4518_v46 }
 0x168   : > { %v6298_v58 = vadd.f32 %v4520_v19, %v4384_v32 }
 0x16a   : > { %v4409_v39 = vpop.f32.mrb[52].mxu0  ;;  %v4521_v45 = vpop.f32.mrb[52].mxu1 }
 0x16b   : > { %v4410_v63 = vpop.f32.mrb[53].mxu0  ;;  %v4522_v37 = vpop.f32.mrb[53].mxu1 }
 0x16c   : > { %v6300_v55 = vadd.f32 %v4410_v63, %v4409_v39  ;;  %v4412_v56 = vpop.f32.mrb[54].mxu0  ;;  %v4523_v24 = vadd.f32 %v4522_v37, %v4521_v45  ;;  %v4524_v1 = vpop.f32.mrb[54].mxu1 }
 0x16d   : > { %v4413_v9 = vpop.f32.mrb[55].mxu0  ;;  %v4525_v30 = vpop.f32.mrb[55].mxu1 }
 0x16e   : > { %v6302_v34 = vadd.f32 %v4413_v9, %v4412_v56  ;;  %v6304_v12 = vadd.f32 %v4523_v24, %v4387_v62  ;;  %v4526_v22 = vadd.f32 %v4525_v30, %v4524_v1 }
 0x170   : > { %v6306_v7 = vadd.f32 %v4526_v22, %v4390_v51 }
 0x172   : > { %v4415_v32 = vpop.f32.mrb[56].mxu0  ;;  %v4527_v44 = vpop.f32.mrb[56].mxu1 }
 0x173   : > { %v4416_v0 = vpop.f32.mrb[57].mxu0  ;;  %v4528_v46 = vpop.f32.mrb[57].mxu1 }
 0x174   : > { %v6308_v5 = vadd.f32 %v4416_v0, %v4415_v32  ;;  %v4418_v2 = vpop.f32.mrb[58].mxu0  ;;  %v4529_v15 = vadd.f32 %v4528_v46, %v4527_v44  ;;  %v4530_v19 = vpop.f32.mrb[58].mxu1 }
 0x175   : > { %v4419_v39 = vpop.f32.mrb[59].mxu0  ;;  %v4531_v63 = vpop.f32.mrb[59].mxu1 }
 0x176   : > { %v6310_v45 = vadd.f32 %v4419_v39, %v4418_v2  ;;  %v6312_v37 = vadd.f32 %v4529_v15, %v4393_v26  ;;  %v4532_v62 = vadd.f32 %v4531_v63, %v4530_v19 }
 0x178   : > { %v6314_v56 = vadd.f32 %v4532_v62, %v4396_v23 }
 0x17a   : > { %6533 = vst [vmem:[#allocation3_spill] sm:$0xff] %v6314_v56  ;;  %v4421_v51 = vpop.f32.mrb[60].mxu0  ;;  %v4533_v24 = vpop.f32.mrb[60].mxu1 }
 0x17b   : > { %v4422_v1 = vpop.f32.mrb[61].mxu0  ;;  %v4534_v30 = vpop.f32.mrb[61].mxu1 }
 0x17c   : > { %v6316_v9 = vadd.f32 %v4422_v1, %v4421_v51  ;;  %v4424_v22 = vpop.f32.mrb[62].mxu0  ;;  %v4535_v32 = vadd.f32 %v4534_v30, %v4533_v24  ;;  %v4536_v0 = vpop.f32.mrb[62].mxu1 }
 0x17d   : > { %v4425_v44 = vpop.f32.mrb[63].mxu0  ;;  %v4537_v2 = vpop.f32.mrb[63].mxu1 }
 0x17e   : > { %v6318_v46 = vadd.f32 %v4425_v44, %v4424_v22  ;;  %v6320_v39 = vadd.f32 %v4535_v32, %v4399_v31  ;;  %v4538_v26 = vadd.f32 %v4537_v2, %v4536_v0 }
 0x180   : > { %v6322_v15 = vadd.f32 %v4538_v26, %v4402_v35 }
 0x182   : > { %v4741_v23 = vpop.f32.mrb[64].mxu0  ;;  %v4539_v63 = vpop.f32.mrb[64].mxu1 }
 0x183   : > { %v1078_v19 = vadd.f32 %v4741_v23, %v6118_v28  ;;  %v1069_v62 = vpop.f32.mrb[65].mxu0  ;;  %v4540_v1 = vpop.f32.mrb[65].mxu1 }
 0x184   : > { %v1070_v51 = vadd.f32 %v6095_v21, %v1069_v62  ;;  %v4742_v56 = vpop.f32.mrb[66].mxu0  ;;  %v4541_v30 = vadd.f32 %v4540_v1, %v4539_v63  ;;  %v4542_v31 = vpop.f32.mrb[66].mxu1 }
 0x185   : > { %v6327_v24 = vadd.f32 %v6221_v53, %v1078_v19  ;;  %v1081_v22 = vadd.f32 %v4742_v56, %v6122_v47  ;;  %v1072_v32 = vpop.f32.mrb[67].mxu0  ;;  %v4543_v28 = vpop.f32.mrb[67].mxu1 }
 0x186   : > { %v6331_v35 = vadd.f32 %v6196_v60, %v1070_v51  ;;  %v1073_v0 = vadd.f32 %v6103_v59, %v1072_v32  ;;  %v6335_v44 = vadd.f32 %v4541_v30, %v6292_v10  ;;  %v4544_v2 = vadd.f32 %v4543_v28, %v4542_v31 }
 0x187   : > { %v6338_v21 = vadd.f32 %v6231_v25, %v1081_v22 }
 0x188   : > { %v6341_v53 = vadd.f32 %v6206_v3, %v1073_v0  ;;  %v6344_v47 = vadd.f32 %v4544_v2, %v6294_v16 }
 0x18a   : > { %v4745_v56 = vpop.f32.mrb[68].mxu0  ;;  %v4545_v26 = vpop.f32.mrb[68].mxu1 }
 0x18b   : > { %v1094_v60 = vadd.f32 %v4745_v56, %v6169_v6  ;;  %v1085_v23 = vpop.f32.mrb[69].mxu0  ;;  %v4546_v19 = vpop.f32.mrb[69].mxu1 }
 0x18c   : > { %v1086_v59 = vadd.f32 %v6142_v41, %v1085_v23  ;;  %v4746_v10 = vpop.f32.mrb[70].mxu0  ;;  %v4547_v25 = vadd.f32 %v4546_v19, %v4545_v26  ;;  %v4548_v3 = vpop.f32.mrb[70].mxu1 }
 0x18d   : > { %v6349_v63 = vadd.f32 %v6262_v18, %v1094_v60  ;;  %v1097_v62 = vadd.f32 %v4746_v10, %v6173_v8  ;;  %v1088_v51 = vpop.f32.mrb[71].mxu0  ;;  %v4549_v6 = vpop.f32.mrb[71].mxu1 }
 0x18e   : > { %v6353_v16 = vadd.f32 %v6246_v48, %v1086_v59  ;;  %v1089_v1 = vadd.f32 %v6150_v11, %v1088_v51  ;;  %v6357_v30 = vadd.f32 %v4547_v25, %v6300_v55  ;;  %v4550_v22 = vadd.f32 %v4549_v6, %v4548_v3 }
 0x18f   : > { %v6360_v41 = vadd.f32 %v6269_v17, %v1097_v62 }
 0x190   : > { %v6363_v18 = vadd.f32 %v6253_v40, %v1089_v1  ;;  %v6366_v8 = vadd.f32 %v4550_v22, %v6302_v34 }
 0x192   : > { %v4749_v31 = vpop.f32.mrb[72].mxu0  ;;  %v4551_v32 = vpop.f32.mrb[72].mxu1 }
 0x193   : > { %v1110_v48 = vadd.f32 %v4749_v31, %v6217_v38  ;;  %v1101_v0 = vpop.f32.mrb[73].mxu0  ;;  %v4552_v28 = vpop.f32.mrb[73].mxu1 }
 0x194   : > { %v1102_v11 = vadd.f32 %v6192_v57, %v1101_v0  ;;  %v4750_v55 = vpop.f32.mrb[74].mxu0  ;;  %v4553_v17 = vadd.f32 %v4552_v28, %v4551_v32  ;;  %v4554_v40 = vpop.f32.mrb[74].mxu1 }
 0x195   : > { %v6371_v2 = vadd.f32 %v6280_v54, %v1110_v48  ;;  %v1113_v56 = vadd.f32 %v4750_v55, %v6228_v33  ;;  %v1104_v60 = vpop.f32.mrb[75].mxu0  ;;  %v4555_v38 = vpop.f32.mrb[75].mxu1 }
 0x196   : > { %v6375_v34 = vadd.f32 %v6274_v36, %v1102_v11  ;;  %v1105_v26 = vadd.f32 %v6203_v13, %v1104_v60  ;;  %v6379_v23 = vadd.f32 %v4553_v17, %v6308_v5  ;;  %v4556_v59 = vadd.f32 %v4555_v38, %v4554_v40 }
 0x197   : > { %v6382_v57 = vadd.f32 %v6282_v49, %v1113_v56 }
 0x198   : > { %v4928_v54 = vadd.f32 %v6277_v52, %v1105_v26  ;;  %v6386_v19 = vadd.f32 %v4556_v59, %v6310_v45 }
 0x19a   : > { %v4753_v33 = vpop.f32.mrb[76].mxu0  ;;  %v4557_v36 = vpop.f32.mrb[76].mxu1 }
 0x19b   : > { %v1126_v10 = vadd.f32 %v4753_v33, %v6260_v20  ;;  %v1117_v25 = vpop.f32.mrb[77].mxu0  ;;  %v4558_v62 = vpop.f32.mrb[77].mxu1 }
 0x19c   : > { %v1118_v13 = vadd.f32 %v6242_v14, %v1117_v25  ;;  %v4754_v3 = vpop.f32.mrb[78].mxu0  ;;  %v4559_v49 = vadd.f32 %v4558_v62, %v4557_v36  ;;  %v4560_v1 = vpop.f32.mrb[78].mxu1 }
 0x19d   : > { %v6391_v5 = vadd.f32 %v6288_v42, %v1126_v10  ;;  %v1129_v51 = vadd.f32 %v4754_v3, %v6266_v43  ;;  %v1120_v52 = vpop.f32.mrb[79].mxu0  ;;  %v4561_v22 = vpop.f32.mrb[79].mxu1 }
 0x19e   : > { %v4936_v45 = vadd.f32 %v6284_v61, %v1118_v13  ;;  %v1121_v6 = vadd.f32 %v6250_v27, %v1120_v52  ;;  %v6397_v20 = vadd.f32 %v4559_v49, %v6316_v9  ;;  %v4562_v31 = vadd.f32 %v4561_v22, %v4560_v1 }
 0x19f   : > { %v6400_v14 = vadd.f32 %v6290_v50, %v1129_v51 }
 0x1a0   : > { %v4944_v42 = vadd.f32 %v6286_v4, %v1121_v6  ;;  %v6404_v48 = vadd.f32 %v4562_v31, %v6318_v46 }
 0x1a2   : > { %v4603_v43 = vpop.f32.mrb[80].mxu0 }
 0x1a3   : > { %v4604_v32 = vpop.f32.mrb[81].mxu0 }
 0x1a4   : > { %v4605_v0 = vadd.f32 %v4604_v32, %v4603_v43  ;;  %v4606_v11 = vpop.f32.mrb[82].mxu0 }
 0x1a5   : > { %v4607_v61 = vpop.f32.mrb[83].mxu0 }
 0x1a6   : > { %v4608_v28 = vadd.f32 %v4607_v61, %v4606_v11  ;;  %v6407_v27 = vadd.f32 %v6331_v35, %v4605_v0 }
 0x1a8   : > { %v6410_v9 = vadd.f32 %v6341_v53, %v4608_v28 }
 0x1aa   : > { %v4609_v50 = vpop.f32.mrb[84].mxu0 }
 0x1ab   : > { %v4610_v55 = vpop.f32.mrb[85].mxu0 }
 0x1ac   : > { %v4611_v17 = vadd.f32 %v4610_v55, %v4609_v50  ;;  %v4612_v56 = vpop.f32.mrb[86].mxu0 }
 0x1ad   : > { %v4613_v4 = vpop.f32.mrb[87].mxu0 }
 0x1ae   : > { %v4614_v40 = vadd.f32 %v4613_v4, %v4612_v56  ;;  %v4885_v46 = vadd.f32 %v6327_v24, %v4611_v17 }
 0x1b0   : > { %v4893_v60 = vadd.f32 %v6338_v21, %v4614_v40 }
 0x1b2   : > { %v4615_v26 = vpop.f32.mrb[88].mxu0 }
 0x1b3   : > { %v4616_v38 = vpop.f32.mrb[89].mxu0 }
 0x1b4   : > { %v4617_v59 = vadd.f32 %v4616_v38, %v4615_v26  ;;  %v4618_v33 = vpop.f32.mrb[90].mxu0 }
 0x1b5   : > { %v4619_v10 = vpop.f32.mrb[91].mxu0 }
 0x1b6   : > { %v4620_v35 = vadd.f32 %v4619_v10, %v4618_v33  ;;  %v6415_v36 = vadd.f32 %v6353_v16, %v4617_v59 }
 0x1b8   : > { %v6418_v53 = vadd.f32 %v6363_v18, %v4620_v35 }
 0x1ba   : > { %v4621_v25 = vpop.f32.mrb[92].mxu0 }
 0x1bb   : > { %v4622_v13 = vpop.f32.mrb[93].mxu0 }
 0x1bc   : > { %v4623_v62 = vadd.f32 %v4622_v13, %v4621_v25  ;;  %v4624_v3 = vpop.f32.mrb[94].mxu0 }
 0x1bd   : > { %v4625_v49 = vpop.f32.mrb[95].mxu0 }
 0x1be   : > { %v4626_v24 = vadd.f32 %v4625_v49, %v4624_v3  ;;  %v6421_v21 = vadd.f32 %v6349_v63, %v4623_v62 }
 0x1c0   : > { %v6424_v51 = vadd.f32 %v6360_v41, %v4626_v24 }
 0x1c2   : > { %v4627_v1 = vpop.f32.mrb[96].mxu0 }
 0x1c3   : > { %v4628_v52 = vpop.f32.mrb[97].mxu0 }
 0x1c4   : > { %v4629_v6 = vadd.f32 %v4628_v52, %v4627_v1  ;;  %v4630_v16 = vpop.f32.mrb[98].mxu0 }
 0x1c5   : > { %v4631_v22 = vpop.f32.mrb[99].mxu0 }
 0x1c6   : > { %v4632_v31 = vadd.f32 %v4631_v22, %v4630_v16  ;;  %v6427_v18 = vadd.f32 %v6375_v34, %v4629_v6 }
 0x1c8   : > { %v6429_v43 = vadd.f32 %v4928_v54, %v4632_v31 }
 0x1ca   : > { %v4633_v32 = vpop.f32.mrb[100].mxu0 }
 0x1cb   : > { %v4634_v0 = vpop.f32.mrb[101].mxu0 }
 0x1cc   : > { %v4635_v11 = vadd.f32 %v4634_v0, %v4633_v32  ;;  %v4636_v61 = vpop.f32.mrb[102].mxu0 }
 0x1cd   : > { %v4637_v63 = vpop.f32.mrb[103].mxu0 }
 0x1ce   : > { %v4638_v28 = vadd.f32 %v4637_v63, %v4636_v61  ;;  %v6432_v41 = vadd.f32 %v6371_v2, %v4635_v11 }
 0x1d0   : > { %v6435_v50 = vadd.f32 %v6382_v57, %v4638_v28 }
 0x1d2   : > { %v4639_v55 = vpop.f32.mrb[104].mxu0 }
 0x1d3   : > { %v4640_v17 = vpop.f32.mrb[105].mxu0 }
 0x1d4   : > { %v4641_v56 = vadd.f32 %v4640_v17, %v4639_v55  ;;  %v4642_v4 = vpop.f32.mrb[106].mxu0 }
 0x1d5   : > { %v4643_v34 = vpop.f32.mrb[107].mxu0 }
 0x1d6   : > { %v4644_v40 = vadd.f32 %v4643_v34, %v4642_v4  ;;  %v6437_v54 = vadd.f32 %v4936_v45, %v4641_v56 }
 0x1d8   : > { %v6439_v26 = vadd.f32 %v4944_v42, %v4644_v40 }
 0x1da   : > { %v4645_v38 = vpop.f32.mrb[108].mxu0 }
 0x1db   : > { %v4646_v59 = vpop.f32.mrb[109].mxu0 }
 0x1dc   : > { %v4647_v33 = vadd.f32 %v4646_v59, %v4645_v38  ;;  %v4648_v10 = vpop.f32.mrb[110].mxu0 }
 0x1dd   : > { %v4649_v2 = vpop.f32.mrb[111].mxu0 }
 0x1de   : > { %v4650_v35 = vadd.f32 %v4649_v2, %v4648_v10  ;;  %v6442_v57 = vadd.f32 %v6391_v5, %v4647_v33 }
 0x1e0   : > { %v6445_v25 = vadd.f32 %v6400_v14, %v4650_v35 }
 0x1e2   : > { %v4651_v13 = vpop.f32.mrb[112].mxu0  ;;  %v4837_v62 = vpop.f32.mrb[80].mxu1 }
 0x1e3   : > { %v4652_v3 = vpop.f32.mrb[113].mxu0  ;;  %v4886_v45 = vadd.f32 %v4885_v46, %v4837_v62  ;;  %v3157_v42 = vpop.f32.mrb[81].mxu1 }
 0x1e4   : > { %v4653_v49 = vadd.f32 %v4652_v3, %v4651_v13  ;;  %v4654_v24 = vpop.f32.mrb[114].mxu0  ;;  %v4890_v1 = vadd.f32 %v6407_v27, %v3157_v42  ;;  %v4838_v52 = vpop.f32.mrb[82].mxu1 }
 0x1e5   : > { %v4655_v6 = vpop.f32.mrb[115].mxu0  ;;  %v4894_v16 = vadd.f32 %v4893_v60, %v4838_v52  ;;  %v3160_v31 = vpop.f32.mrb[83].mxu1  ;;  %v3612_v61 = vmul.f32 %v4886_v45, %v4886_v45 }
 0x1e6   : > { %v4656_v22 = vadd.f32 %v4655_v6, %v4654_v24  ;;  %v6450_v5 = vadd.f32 %v6296_v29, %v4653_v49  ;;  %v4898_v14 = vadd.f32 %v6410_v9, %v3160_v31  ;;  %v3610_v32 = vmul.f32 %v4890_v1, %v4890_v1 }
 0x1e7   : > { %v4228_v46 = vpack.c.bf16 %v4894_v16, %v4886_v45  ;;  %v3613_v40 = vmul.f32 %v4894_v16, %v4894_v16 }
 0x1e8   : > { %v6459_v27 = vadd.f32 %v6298_v58, %v4656_v22  ;;  %v4223_v60 = vpack.c.bf16 %v4898_v14, %v4890_v1  ;;  %v3572_v0 = vadd.f32 %v4898_v14, %v4890_v1  ;;  %v3611_v11 = vmul.f32 %v4898_v14, %v4898_v14 }
 0x1e9   : > { %4300 = vst [vmem:[%s6455_s27 + $0x8] sm:$0xff] %v4228_v46  }
 0x1ea   : > { %v4657_v29 = vpop.f32.mrb[116].mxu0  ;;  %4224 = vst [vmem:[%s6455_s27] sm:$0xff] %v4223_v60   ;;  %v3573_v63 = vadd.f32 %v4886_v45, %v3572_v0  ;;  %v3642_v28 = vadd.f32 %v3611_v11, %v3610_v32  ;;  %v4841_v55 = vpop.f32.mrb[84].mxu1 }
 0x1eb   : > { %v4658_v17 = vpop.f32.mrb[117].mxu0  ;;  %v4902_v56 = vadd.f32 %v6421_v21, %v4841_v55  ;;  %v3173_v9 = vpop.f32.mrb[85].mxu1 }
 0x1ec   : > { %v4659_v4 = vadd.f32 %v4658_v17, %v4657_v29  ;;  %v4660_v34 = vpop.f32.mrb[118].mxu0  ;;  %v3643_v58 = vadd.f32 %v3642_v28, %v3612_v61  ;;  %v4906_v38 = vadd.f32 %v6415_v36, %v3173_v9  ;;  %v3574_v59 = vadd.f32 %v4894_v16, %v3573_v63  ;;  %v4842_v33 = vpop.f32.mrb[86].mxu1 }
 0x1ed   : > { %v4661_v10 = vpop.f32.mrb[119].mxu0  ;;  %v4910_v2 = vadd.f32 %v6424_v51, %v4842_v33  ;;  %v3176_v13 = vpop.f32.mrb[87].mxu1  ;;  %v3616_v16 = vmul.f32 %v4902_v56, %v4902_v56 }
 0x1ee   : > { %v4662_v35 = vadd.f32 %v4661_v10, %v4660_v34  ;;  %v6467_v62 = vadd.f32 %v6304_v12, %v4659_v4  ;;  %v3575_v21 = vadd.f32 %v4906_v38, %v3574_v59  ;;  %v3614_v3 = vmul.f32 %v4906_v38, %v4906_v38 }
 0x1ef   : > { %v3644_v45 = vadd.f32 %v3643_v58, %v3613_v40  ;;  %v4914_v49 = vadd.f32 %v6418_v53, %v3176_v13  ;;  %v4238_v42 = vpack.c.bf16 %v4910_v2, %v4902_v56  ;;  %v3617_v0 = vmul.f32 %v4910_v2, %v4910_v2  ;;  %v6534_v58 = vld [vmem:[#allocation3_spill] sm:$0xff] }
 0x1f0   : > { %v6471_v36 = vadd.f32 %v6306_v7, %v4662_v35 }
 0x1f1   : > { %v3645_v24 = vadd.f32 %v3644_v45, %v3614_v3  ;;  %v4233_v1 = vpack.c.bf16 %v4914_v49, %v4906_v38  ;;  %v3576_v52 = vadd.f32 %v4914_v49, %v3575_v21  ;;  %v3615_v6 = vmul.f32 %v4914_v49, %v4914_v49  ;;  %4302 = vst [vmem:[%s6455_s27 + $0x18] sm:$0xff] %v4238_v42  }
 0x1f2   : > { %v4663_v51 = vpop.f32.mrb[120].mxu0  ;;  %v4845_v31 = vpop.f32.mrb[88].mxu1 }
 0x1f3   : > { %4301 = vst [vmem:[%s6455_s27 + $0x10] sm:$0xff] %v4233_v1   ;;  %v3577_v22 = vadd.f32 %v4902_v56, %v3576_v52  ;;  %v3646_v12 = vadd.f32 %v3645_v24, %v3615_v6  ;;  %v4664_v14 = vpop.f32.mrb[121].mxu0  ;;  %v4918_v46 = vadd.f32 %v6432_v41, %v4845_v31  ;;  %v3189_v53 = vpop.f32.mrb[89].mxu1 }
 0x1f4   : > { %v4665_v32 = vadd.f32 %v4664_v14, %v4663_v51  ;;  %v4666_v60 = vpop.f32.mrb[122].mxu0  ;;  %v4922_v11 = vadd.f32 %v6427_v18, %v3189_v53  ;;  %v4846_v61 = vpop.f32.mrb[90].mxu1 }
 0x1f5   : > { %v3647_v7 = vadd.f32 %v3646_v12, %v3616_v16  ;;  %v3578_v29 = vadd.f32 %v4910_v2, %v3577_v22  ;;  %v4667_v63 = vpop.f32.mrb[123].mxu0  ;;  %v4926_v28 = vadd.f32 %v6435_v50, %v4846_v61  ;;  %v3192_v17 = vpop.f32.mrb[91].mxu1  ;;  %v3620_v2 = vmul.f32 %v4918_v46, %v4918_v46 }
 0x1f6   : > { %v4668_v55 = vadd.f32 %v4667_v63, %v4666_v60  ;;  %v6479_v56 = vadd.f32 %v6312_v37, %v4665_v32  ;;  %v3618_v4 = vmul.f32 %v4922_v11, %v4922_v11  ;;  %v4930_v34 = vadd.f32 %v6429_v43, %v3192_v17 }
 0x1f7   : > { %v3579_v41 = vadd.f32 %v4922_v11, %v3578_v29  ;;  %v3648_v9 = vadd.f32 %v3647_v7, %v3617_v0  ;;  %v4248_v40 = vpack.c.bf16 %v4926_v28, %v4918_v46  ;;  %v3621_v42 = vmul.f32 %v4926_v28, %v4926_v28 }
 0x1f8   : > { %v6483_v18 = vadd.f32 %v6534_v58, %v4668_v55  ;;  %v4243_v59 = vpack.c.bf16 %v4930_v34, %v4922_v11  ;;  %v3619_v10 = vmul.f32 %v4930_v34, %v4930_v34 }
 0x1f9   : > { %v3649_v38 = vadd.f32 %v3648_v9, %v3618_v4  ;;  %v3580_v33 = vadd.f32 %v4930_v34, %v3579_v41  ;;  %4304 = vst [vmem:[%s6455_s27 + $0x28] sm:$0xff] %v4248_v40  }
 0x1fa   : > { %v4669_v50 = vpop.f32.mrb[124].mxu0  ;;  %4303 = vst [vmem:[%s6455_s27 + $0x20] sm:$0xff] %v4243_v59   ;;  %v4849_v13 = vpop.f32.mrb[92].mxu1 }
 0x1fb   : > { %v3581_v35 = vadd.f32 %v4918_v46, %v3580_v33  ;;  %v3650_v37 = vadd.f32 %v3649_v38, %v3619_v10  ;;  %v4670_v21 = vpop.f32.mrb[125].mxu0  ;;  %v4934_v3 = vadd.f32 %v6442_v57, %v4849_v13  ;;  %v3205_v43 = vpop.f32.mrb[93].mxu1 }
 0x1fc   : > { %v4671_v45 = vadd.f32 %v4670_v21, %v4669_v50  ;;  %v4672_v49 = vpop.f32.mrb[126].mxu0  ;;  %v4938_v1 = vadd.f32 %v6437_v54, %v3205_v43  ;;  %v4850_v6 = vpop.f32.mrb[94].mxu1 }
 0x1fd   : > { %v3651_v24 = vadd.f32 %v3650_v37, %v3620_v2  ;;  %v3582_v52 = vadd.f32 %v4926_v28, %v3581_v35  ;;  %v4673_v51 = vpop.f32.mrb[127].mxu0  ;;  %v4942_v16 = vadd.f32 %v6445_v25, %v4850_v6  ;;  %v3208_v12 = vpop.f32.mrb[95].mxu1  ;;  %v3624_v25 = vmul.f32 %v4934_v3, %v4934_v3 }
 0x1fe   : > { %v4674_v22 = vadd.f32 %v4673_v51, %v4672_v49  ;;  %v4960_v31 = vadd.f32 %v6320_v39, %v4671_v45  ;;  %v3622_v57 = vmul.f32 %v4938_v1, %v4938_v1  ;;  %v4946_v32 = vadd.f32 %v6439_v26, %v3208_v12 }
 0x1ff   : > { %v3583_v14 = vadd.f32 %v4938_v1, %v3582_v52  ;;  %v3652_v46 = vadd.f32 %v3651_v24, %v3621_v42  ;;  %v4258_v53 = vpack.c.bf16 %v4942_v16, %v4934_v3  ;;  %v3625_v4 = vmul.f32 %v4942_v16, %v4942_v16 }
 0x200   : > { %v4966_v60 = vadd.f32 %v6322_v15, %v4674_v22  ;;  %v4253_v0 = vpack.c.bf16 %v4946_v32, %v4938_v1  ;;  %v3623_v11 = vmul.f32 %v4946_v32, %v4946_v32 }
 0x201   : > { %v3653_v54 = vadd.f32 %v3652_v46, %v3622_v57  ;;  %v3584_v7 = vadd.f32 %v4946_v32, %v3583_v14  ;;  %4306 = vst [vmem:[%s6455_s27 + $0x38] sm:$0xff] %v4258_v53  }
 0x202   : > { %v4675_v29 = vpop.f32.mrb[128].mxu0  ;;  %4305 = vst [vmem:[%s6455_s27 + $0x30] sm:$0xff] %v4253_v0   ;;  %v4853_v28 = vpop.f32.mrb[0].mxu1 }
 0x203   : > { %v3585_v61 = vadd.f32 %v4934_v3, %v3584_v7  ;;  %v3654_v63 = vadd.f32 %v3653_v54, %v3623_v11  ;;  %v4676_v39 = vpop.f32.mrb[129].mxu0  ;;  %v4949_v55 = vadd.f32 %v6467_v62, %v4853_v28  ;;  %v3221_v41 = vpop.f32.mrb[1].mxu1 }
 0x204   : > { %v4677_v17 = vadd.f32 %v4676_v39, %v4675_v29  ;;  %v4678_v26 = vpop.f32.mrb[130].mxu0  ;;  %v4952_v15 = vadd.f32 %v6450_v5, %v3221_v41  ;;  %v4854_v40 = vpop.f32.mrb[2].mxu1 }
 0x205   : > { %v3655_v9 = vadd.f32 %v3654_v63, %v3624_v25  ;;  %v3586_v34 = vadd.f32 %v4942_v16, %v3585_v61  ;;  %v4679_v58 = vpop.f32.mrb[131].mxu0  ;;  %v4955_v38 = vadd.f32 %v6471_v36, %v4854_v40  ;;  %v3224_v33 = vpop.f32.mrb[3].mxu1  ;;  %v3628_v36 = vmul.f32 %v4949_v55, %v4949_v55 }
 0x206   : > { %v4680_v59 = vadd.f32 %v4679_v58, %v4678_v26  ;;  %v4975_v10 = vadd.f32 %v6335_v44, %v4677_v17  ;;  %v3626_v62 = vmul.f32 %v4952_v15, %v4952_v15  ;;  %v4958_v35 = vadd.f32 %v6459_v27, %v3224_v33 }
 0x207   : > { %v3587_v50 = vadd.f32 %v4952_v15, %v3586_v34  ;;  %v3656_v2 = vadd.f32 %v3655_v9, %v3625_v4  ;;  %v4268_v37 = vpack.c.bf16 %v4955_v38, %v4949_v55  ;;  %v3629_v27 = vmul.f32 %v4955_v38, %v4955_v38 }
 0x208   : > { %v4981_v13 = vadd.f32 %v6344_v47, %v4680_v59  ;;  %v4263_v21 = vpack.c.bf16 %v4958_v35, %v4952_v15  ;;  %v3627_v45 = vmul.f32 %v4958_v35, %v4958_v35 }
 0x209   : > { %v3657_v5 = vadd.f32 %v3656_v2, %v3626_v62  ;;  %v3588_v3 = vadd.f32 %v4958_v35, %v3587_v50  ;;  %4308 = vst [vmem:[%s6455_s27 + $0x48] sm:$0xff] %v4268_v37  }
 0x20a   : > { %v4681_v43 = vpop.f32.mrb[132].mxu0  ;;  %4307 = vst [vmem:[%s6455_s27 + $0x40] sm:$0xff] %v4263_v21   ;;  %v4857_v24 = vpop.f32.mrb[4].mxu1 }
 0x20b   : > { %v3589_v49 = vadd.f32 %v4949_v55, %v3588_v3  ;;  %v3658_v42 = vadd.f32 %v3657_v5, %v3627_v45  ;;  %v4682_v44 = vpop.f32.mrb[133].mxu0  ;;  %v4961_v1 = vadd.f32 %v4960_v31, %v4857_v24  ;;  %v3237_v6 = vpop.f32.mrb[5].mxu1 }
 0x20c   : > { %v4683_v52 = vadd.f32 %v4682_v44, %v4681_v43  ;;  %v4684_v51 = vpop.f32.mrb[134].mxu0  ;;  %v4964_v47 = vadd.f32 %v6479_v56, %v3237_v6  ;;  %v4858_v12 = vpop.f32.mrb[6].mxu1 }
 0x20d   : > { %v3659_v16 = vadd.f32 %v3658_v42, %v3628_v36  ;;  %v3590_v22 = vadd.f32 %v4955_v38, %v3589_v49  ;;  %v4685_v14 = vpop.f32.mrb[135].mxu0  ;;  %v4967_v57 = vadd.f32 %v4966_v60, %v4858_v12  ;;  %v3240_v32 = vpop.f32.mrb[7].mxu1  ;;  %v3632_v60 = vmul.f32 %v4961_v1, %v4961_v1 }
 0x20e   : > { %v4686_v46 = vadd.f32 %v4685_v14, %v4684_v51  ;;  %v4972_v53 = vadd.f32 %v6357_v30, %v4683_v52  ;;  %v3630_v0 = vmul.f32 %v4964_v47, %v4964_v47  ;;  %v4970_v7 = vadd.f32 %v6483_v18, %v3240_v32 }
 0x20f   : > { %v3591_v54 = vadd.f32 %v4964_v47, %v3590_v22  ;;  %v3660_v31 = vadd.f32 %v3659_v16, %v3629_v27  ;;  %v4278_v11 = vpack.c.bf16 %v4967_v57, %v4961_v1  ;;  %v3633_v18 = vmul.f32 %v4967_v57, %v4967_v57 }
 0x210   : > { %v4978_v29 = vadd.f32 %v6366_v8, %v4686_v46  ;;  %v4273_v56 = vpack.c.bf16 %v4970_v7, %v4964_v47  ;;  %v3631_v63 = vmul.f32 %v4970_v7, %v4970_v7 }
 0x211   : > { %v3661_v25 = vadd.f32 %v3660_v31, %v3630_v0  ;;  %v3592_v61 = vadd.f32 %v4970_v7, %v3591_v54  ;;  %4310 = vst [vmem:[%s6455_s27 + $0x58] sm:$0xff] %v4278_v11  }
 0x212   : > { %v4687_v28 = vpop.f32.mrb[136].mxu0  ;;  %4309 = vst [vmem:[%s6455_s27 + $0x50] sm:$0xff] %v4273_v56   ;;  %v4861_v17 = vpop.f32.mrb[8].mxu1 }
 0x213   : > { %v3593_v39 = vadd.f32 %v4961_v1, %v3592_v61  ;;  %v3662_v55 = vadd.f32 %v3661_v25, %v3631_v63  ;;  %v4688_v30 = vpop.f32.mrb[137].mxu0  ;;  %v4973_v41 = vadd.f32 %v4972_v53, %v4861_v17  ;;  %v3253_v4 = vpop.f32.mrb[9].mxu1 }
 0x214   : > { %v4689_v26 = vadd.f32 %v4688_v30, %v4687_v28  ;;  %v4690_v9 = vpop.f32.mrb[138].mxu0  ;;  %v4976_v34 = vadd.f32 %v4975_v10, %v3253_v4  ;;  %v4862_v40 = vpop.f32.mrb[10].mxu1 }
 0x215   : > { %v3663_v15 = vadd.f32 %v3662_v55, %v3632_v60  ;;  %v3594_v8 = vadd.f32 %v4967_v57, %v3593_v39  ;;  %v4691_v58 = vpop.f32.mrb[139].mxu0  ;;  %v4979_v38 = vadd.f32 %v4978_v29, %v4862_v40  ;;  %v3256_v33 = vpop.f32.mrb[11].mxu1  ;;  %v3636_v49 = vmul.f32 %v4973_v41, %v4973_v41 }
 0x216   : > { %v4692_v59 = vadd.f32 %v4691_v58, %v4690_v9  ;;  %v4987_v50 = vadd.f32 %v6379_v23, %v4689_v26  ;;  %v3634_v2 = vmul.f32 %v4976_v34, %v4976_v34  ;;  %v4982_v37 = vadd.f32 %v4981_v13, %v3256_v33 }
 0x217   : > { %v3595_v62 = vadd.f32 %v4976_v34, %v3594_v8  ;;  %v3664_v35 = vadd.f32 %v3663_v15, %v3633_v18  ;;  %v4288_v5 = vpack.c.bf16 %v4979_v38, %v4973_v41  ;;  %v3637_v51 = vmul.f32 %v4979_v38, %v4979_v38 }
 0x218   : > { %v4993_v21 = vadd.f32 %v6386_v19, %v4692_v59  ;;  %v4283_v45 = vpack.c.bf16 %v4982_v37, %v4976_v34  ;;  %v3635_v43 = vmul.f32 %v4982_v37, %v4982_v37 }
 0x219   : > { %v3665_v3 = vadd.f32 %v3664_v35, %v3634_v2  ;;  %v3596_v10 = vadd.f32 %v4982_v37, %v3595_v62  ;;  %4312 = vst [vmem:[%s6455_s27 + $0x68] sm:$0xff] %v4288_v5  }
 0x21a   : > { %v4693_v36 = vpop.f32.mrb[140].mxu0  ;;  %4311 = vst [vmem:[%s6455_s27 + $0x60] sm:$0xff] %v4283_v45   ;;  %v4865_v44 = vpop.f32.mrb[12].mxu1 }
 0x21b   : > { %v3597_v42 = vadd.f32 %v4973_v41, %v3596_v10  ;;  %v3666_v24 = vadd.f32 %v3665_v3, %v3635_v43  ;;  %v4694_v1 = vpop.f32.mrb[141].mxu0  ;;  %v3269_v52 = vpop.f32.mrb[13].mxu1 }
 0x21c   : > { %v4695_v23 = vadd.f32 %v4694_v1, %v4693_v36  ;;  %v4696_v6 = vpop.f32.mrb[142].mxu0  ;;  %v4988_v27 = vadd.f32 %v4987_v50, %v3269_v52  ;;  %v4866_v19 = vpop.f32.mrb[14].mxu1 }
 0x21d   : > { %v3667_v13 = vadd.f32 %v3666_v24, %v3636_v49  ;;  %v3598_v16 = vadd.f32 %v4979_v38, %v3597_v42  ;;  %v4697_v47 = vpop.f32.mrb[143].mxu0  ;;  %v3272_v14 = vpop.f32.mrb[15].mxu1 }
 0x21e   : > { %v4984_v22 = vadd.f32 %v6397_v20, %v4695_v23  ;;  %v4698_v12 = vadd.f32 %v4697_v47, %v4696_v6  ;;  %v3638_v46 = vmul.f32 %v4988_v27, %v4988_v27  ;;  %v4994_v53 = vadd.f32 %v4993_v21, %v3272_v14 }
 0x21f   : > { %v3599_v57 = vadd.f32 %v4988_v27, %v3598_v16  ;;  %v3668_v32 = vadd.f32 %v3667_v13, %v3637_v51 }
 0x220   : > { %v4985_v54 = vadd.f32 %v4984_v22, %v4865_v44  ;;  %v4990_v0 = vadd.f32 %v6404_v48, %v4698_v12  ;;  %v4293_v7 = vpack.c.bf16 %v4994_v53, %v4988_v27  ;;  %v3639_v29 = vmul.f32 %v4994_v53, %v4994_v53 }
 0x221   : > { %v3669_v31 = vadd.f32 %v3668_v32, %v3638_v46  ;;  %v3600_v11 = vadd.f32 %v4994_v53, %v3599_v57 }
 0x222   : > { %v3640_v25 = vmul.f32 %v4985_v54, %v4985_v54  ;;  %v4991_v56 = vadd.f32 %v4990_v0, %v4866_v19  ;;  %4313 = vst [vmem:[%s6455_s27 + $0x70] sm:$0xff] %v4293_v7  }
 0x223   : > { %v3601_v61 = vadd.f32 %v4985_v54, %v3600_v11  ;;  %v3670_v63 = vadd.f32 %v3669_v31, %v3639_v29 }
 0x224   : > { %v4298_v20 = vpack.c.bf16 %v4991_v56, %v4985_v54  ;;  %v3641_v28 = vmul.f32 %v4991_v56, %v4991_v56 }
 0x225   : > { %v3602_v60 = vadd.f32 %v4991_v56, %v3601_v61  ;;  %v3671_v39 = vadd.f32 %v3670_v63, %v3640_v25 }
 0x226   : > { %4314 = vst [vmem:[%s6455_s27 + $0x78] sm:$0xff] %v4298_v20  }
 0x227   : > { %v3603_v55 = vrot.slane %v3602_v60, 4  ;;  %v3672_v17 = vadd.f32 %v3671_v39, %v3641_v28 }
 0x229   : > { %v3604_v30 = vadd.f32 %v3603_v55, %v3602_v60  ;;  %v3673_v48 = vrot.slane %v3672_v17, 4 }
 0x22b   : > { %v3605_v41 = vrot.slane %v3604_v30, 2  ;;  %v3674_v26 = vadd.f32 %v3673_v48, %v3672_v17 }
 0x22d   : > { %v3606_v4 = vadd.f32 %v3605_v41, %v3604_v30  ;;  %v3675_v9 = vrot.slane %v3674_v26, 2 }
 0x22f   : > { %v3607_v18 = vrot.slane %v3606_v4, 1  ;;  %v3676_v15 = vadd.f32 %v3675_v9, %v3674_v26 }
 0x231   : > { %v3608_v34 = vadd.f32 %v3607_v18, %v3606_v4  ;;  %v3677_v8 = vrot.slane %v3676_v15, 1 }
 0x233   : > { %3609 = vst [vmem:[%s211_s30] sm:$0x1] %v3608_v34  ;;  %v3678_v40 = vadd.f32 %v3677_v8, %v3676_v15 }
 0x235   : > { %3679 = vst [vmem:[%s214_s7] sm:$0x1] %v3678_v40 }
 0x236 PF: > { %s15_s15 = sadd.s32 1, %s5237_s15  }
 0x237   : > { %p12_p4 = scmp.ge.s32.totalorder %s15_s15, 4  }
 0x239   :  { %14 = sbr.rel (!%p12_p4) target bundleno = 1 (0x1), region = 86 }

// kernel: resnet_block_forward.4
= control target key start
LH: loop header
LB: loop body
LE: loop exit
PB: predicated region body
PF: predicated region fallthrough
CT: control target
= control target key end

     0   :  { %s6163_s21 = smov 0   ;;  %s7497_s0 = inlined_call_operand.vmem [shape: bf16[2,16,16,128], index: 0, kind: input, shape index: {}]   ;;  %s7498_s1 = inlined_call_operand.vmem [shape: f32[1,128], index: 1, kind: input, shape index: {}]   ;;  %s7499_s2 = inlined_call_operand.vmem [shape: f32[1,128], index: 2, kind: input, shape index: {}]   ;;  %s7500_s3 = inlined_call_operand.vmem [shape: bf16[3,384,128], index: 3, kind: input, shape index: {}]   ;;  %s7501_s4 = inlined_call_operand.vmem [shape: bf16[2,16,16,128], index: 4, kind: output, shape index: {0}]   ;;  %s7502_s5 = inlined_call_operand.vmem [shape: f32[2,1,128], index: 5, kind: output, shape index: {1}]   ;;  %s7503_s6 = inlined_call_operand.vmem [shape: f32[2,1,128], index: 6, kind: output, shape index: {2}]  }
   0x1 LB: > { %s4603_s22 = sadd.s32 4294967295, %s6125_s21   ;;  %p4607_p0 = scmp.ge.s32.totalorder %s6125_s21, 1  ;;  %s6125_s21 = sphi %s6163_s21, %s17_s21  }
   0x2   : > { %p217_p1 = scmp.lt.s32.totalorder %s6125_s21, 3 }
   0x4   : > { %p218_p2 = pnand %p4607_p0, %p217_p1 }
   0x6   : > { %221 = sbr.rel (%p218_p2) target bundleno = 625 (0x271), region = 36 }
   0xd   : > { %v5921_v0 = vld [vmem:[%s7500_s3 + $0x40] sm:$0xff]   ;;  %v6127_v2 = vmov 0   ;;  %v5924_v4 = vld [vmem:[%s7500_s3 + $0x48] sm:$0xff]   ;;  %v5927_v7 = vld [vmem:[%s7500_s3 + $0x50] sm:$0xff]   ;;  %p253_p3 = scmp.lt.s32.totalorder %s4603_s22, 1  ;;  %vm918_vm1 = vcmask 1043456  }
   0xe   : > { %v5922_v1 = vld [vmem:[%s7500_s3] sm:$0xff]   ;;  %270 = vst [vmem:[#allocation3] sm:$0xf] %v6127_v2  ;;  %271 = vst [vmem:[#allocation3 + $0x4] sm:$0xf] %v6127_v2  ;;  %5184 = vmatprep.subr.bf16.mxu0 %v5921_v0  ;;  %v5925_v5 = vld [vmem:[%s7500_s3 + $0x8] sm:$0xff]  }
   0xf   : > { %272 = vst [vmem:[#allocation3 + $0x8] sm:$0xf] %v6127_v2  ;;  %273 = vst [vmem:[#allocation3 + $0xc] sm:$0xf] %v6127_v2  ;;  %v6180_v3 = vld [vmem:[%s7500_s3 + $0x80] sm:$0xff]   ;;  %5185 = vmatpush3.bf16.msra.mxu0 %v5922_v1  ;;  %v6193_v6 = vld [vmem:[%s7500_s3 + $0x88] sm:$0xff]  }
  0x10   : > { %274 = vst [vmem:[#allocation3 + $0x10] sm:$0xf] %v6127_v2  ;;  %275 = vst [vmem:[#allocation3 + $0x14] sm:$0xf] %v6127_v2  ;;  %5736 = vmatprep.subr.bf16.mxu1 %v6180_v3  ;;  %5186 = vmatprep.subr.bf16.mxu0 %v5924_v4  ;;  %v5928_v8 = vld [vmem:[%s7500_s3 + $0x10] sm:$0xff]   ;;  %v5930_v10 = vld [vmem:[%s7500_s3 + $0x58] sm:$0xff]  }
  0x11   : > { %276 = vst [vmem:[#allocation3 + $0x18] sm:$0xf] %v6127_v2  ;;  %277 = vst [vmem:[#allocation3 + $0x1c] sm:$0xf] %v6127_v2  ;;  %5744 = vmatpush3.bf16.msra.mxu1 %v6180_v3  ;;  %v6205_v9 = vld [vmem:[%s7500_s3 + $0x90] sm:$0xff]   ;;  %v5931_v11 = vld [vmem:[%s7500_s3 + $0x18] sm:$0xff]  }
  0x12   : > { %278 = vst [vmem:[#allocation3 + $0x20] sm:$0xf] %v6127_v2  ;;  %279 = vst [vmem:[#allocation3 + $0x24] sm:$0xf] %v6127_v2  ;;  %5737 = vmatprep.subr.bf16.mxu1 %v6193_v6  ;;  %v6218_v12 = vld [vmem:[%s7500_s3 + $0x98] sm:$0xff]   ;;  %v5933_v13 = vld [vmem:[%s7500_s3 + $0x60] sm:$0xff]  }
  0x13   : > { %280 = vst [vmem:[#allocation3 + $0x28] sm:$0xf] %v6127_v2  ;;  %281 = vst [vmem:[#allocation3 + $0x2c] sm:$0xf] %v6127_v2  ;;  %5187 = vmatpush3.bf16.msra.mxu0 %v5925_v5  ;;  %v6230_v14 = vld [vmem:[%s7500_s3 + $0xa0] sm:$0xff]   ;;  %s7515_s22 = smov (!%p253_p3, %s4603_s22), 1 }
  0x14   : > { %282 = vst [vmem:[#allocation3 + $0x30] sm:$0xf] %v6127_v2  ;;  %283 = vst [vmem:[#allocation3 + $0x34] sm:$0xf] %v6127_v2  ;;  %5188 = vmatprep.subr.bf16.mxu0 %v5927_v7  ;;  %v5934_v15 = vld [vmem:[%s7500_s3 + $0x20] sm:$0xff]   ;;  %v5936_v16 = vld [vmem:[%s7500_s3 + $0x68] sm:$0xff]   ;;  %s265_s12 = scalar_lea.vmem %s7502_s5, %s7515_s22  ;;  %s268_s16 = scalar_lea.vmem %s7503_s6, %s7515_s22 }
  0x15   : > { %284 = vst [vmem:[#allocation3 + $0x38] sm:$0xf] %v6127_v2  ;;  %285 = vst [vmem:[#allocation3 + $0x3c] sm:$0xf] %v6127_v2  ;;  %5745 = vmatpush3.bf16.msra.mxu1 %v6193_v6  ;;  %v6247_v17 = vld [vmem:[%s7500_s3 + $0xa8] sm:$0xff]   ;;  %s4944_s13 = sshll.u32 %s7515_s22, 7 }
  0x16   : > { %286 = vst [vmem:[#allocation3 + $0x40] sm:$0xf] %v6127_v2  ;;  %287 = vst [vmem:[#allocation3 + $0x44] sm:$0xf] %v6127_v2  ;;  %5738 = vmatprep.subr.bf16.mxu1 %v6205_v9  ;;  %v5937_v18 = vld [vmem:[%s7500_s3 + $0x28] sm:$0xff]   ;;  %v5939_v19 = vld [vmem:[%s7500_s3 + $0x70] sm:$0xff]   ;;  %s6271_s24 = scalar_lea.vmem %s7497_s0, %s4944_s13  ;;  %s7431_s10 = scalar_lea.vmem %s7501_s4, %s4944_s13 }
  0x17   : > { %288 = vst [vmem:[#allocation3 + $0x48] sm:$0xf] %v6127_v2  ;;  %289 = vst [vmem:[#allocation3 + $0x4c] sm:$0xf] %v6127_v2  ;;  %5189 = vmatpush3.bf16.msra.mxu0 %v5928_v8  ;;  %v5940_v20 = vld [vmem:[%s7500_s3 + $0x30] sm:$0xff]   ;;  %v5942_v22 = vld [vmem:[%s7500_s3 + $0x78] sm:$0xff]  }
  0x18   : > { %290 = vst [vmem:[#allocation3 + $0x50] sm:$0xf] %v6127_v2  ;;  %291 = vst [vmem:[#allocation3 + $0x54] sm:$0xf] %v6127_v2  ;;  %5190 = vmatprep.subr.bf16.mxu0 %v5930_v10  ;;  %v6264_v21 = vld [vmem:[%s7500_s3 + $0xb0] sm:$0xff]   ;;  %v5945_v23 = vld [vmem:[#allocation3] sm:$0xff]  }
  0x19   : > { %292 = vst [vmem:[#allocation3 + $0x58] sm:$0xf] %v6127_v2  ;;  %293 = vst [vmem:[#allocation3 + $0x5c] sm:$0xf] %v6127_v2  ;;  %5746 = vmatpush3.bf16.msra.mxu1 %v6205_v9  ;;  %v5946_v24 = vld [vmem:[#allocation3 + $0x8] ss:$0 sps:$4 sm:$0xff]  }
  0x1a   : > { %294 = vst [vmem:[#allocation3 + $0x60] sm:$0xf] %v6127_v2  ;;  %295 = vst [vmem:[#allocation3 + $0x64] sm:$0xf] %v6127_v2  ;;  %5739 = vmatprep.subr.bf16.mxu1 %v6218_v12  ;;  %v5160_v25 = vld [vmem:[%s6271_s24 + $0x38] sm:$0xff]   ;;  %v1229_v31 = vshrl.u32 %v5945_v23, 16 }
  0x1b   : > { %296 = vst [vmem:[#allocation3 + $0x68] sm:$0xf] %v6127_v2  ;;  %297 = vst [vmem:[#allocation3 + $0x6c] sm:$0xf] %v6127_v2  ;;  %5191 = vmatpush3.bf16.msra.mxu0 %v5931_v11  ;;  %v6282_v26 = vld [vmem:[%s7500_s3 + $0xb8] sm:$0xff]   ;;  %v5040_v27 = vunpack.c.l.bf16 %v5160_v25  ;;  %v5041_v28 = vunpack.c.h.bf16 %v5160_v25  ;;  %v1231_v32 = vshll.u32 %v5945_v23, 16 }
  0x1c   : > { %298 = vst [vmem:[#allocation3 + $0x70] sm:$0xf] %v6127_v2  ;;  %299 = vst [vmem:[#allocation3 + $0x74] sm:$0xf] %v6127_v2  ;;  %5192 = vmatprep.subr.bf16.mxu0 %v5933_v13  ;;  %v6287_v29 = vld [vmem:[%s7498_s1] ss:$0 sm:$0xff] }
  0x1d   : > { %300 = vst [vmem:[#allocation3 + $0x78] sm:$0xf] %v6127_v2  ;;  %301 = vst [vmem:[#allocation3 + $0x7c] sm:$0xf] %v6127_v2  ;;  %5747 = vmatpush3.bf16.msra.mxu1 %v6218_v12  ;;  %v5943_v30 = vld [vmem:[%s7500_s3 + $0x38] sm:$0xff]   ;;  %v1236_v33 = vshll.u32 %v5946_v24, 16  ;;  %v409_v35 = vmul.f32 %v5040_v27, %v6287_v29  ;;  %v410_v36 = vmul.f32 %v5041_v28, %v6287_v29 }
  0x1e   : > { %302 = vst [vmem:[#allocation3 + $0x80] sm:$0xf] %v6127_v2  ;;  %303 = vst [vmem:[#allocation3 + $0x84] sm:$0xf] %v6127_v2  ;;  %5740 = vmatprep.subr.bf16.mxu1 %v6230_v14  ;;  %v6295_v34 = vld [vmem:[%s7499_s2] ss:$0 sm:$0xff] }
  0x1f   : > { %304 = vst [vmem:[#allocation3 + $0x88] sm:$0xf] %v6127_v2  ;;  %305 = vst [vmem:[#allocation3 + $0x8c] sm:$0xf] %v6127_v2  ;;  %5193 = vmatpush3.bf16.msra.mxu0 %v5934_v15  ;;  %v1233_v37 = vrot.slane %v1231_v32, 1  ;;  %v1238_v38 = vrot.slane %v1236_v33, 1  ;;  %v448_v39 = vadd.f32 %v6295_v34, %v409_v35  ;;  %v449_v40 = vadd.f32 %v6295_v34, %v410_v36 }
  0x20   : > { %306 = vst [vmem:[#allocation3 + $0x90] sm:$0xf] %v6127_v2  ;;  %307 = vst [vmem:[#allocation3 + $0x94] sm:$0xf] %v6127_v2  ;;  %5194 = vmatprep.subr.bf16.mxu0 %v5936_v16  ;;  %vm1227_vm0 = vsmask.f32 7424 }
  0x21   : > { %308 = vst [vmem:[#allocation3 + $0x98] sm:$0xf] %v6127_v2  ;;  %309 = vst [vmem:[#allocation3 + $0x9c] sm:$0xf] %v6127_v2  ;;  %5748 = vmatpush3.bf16.msra.mxu1 %v6230_v14  ;;  %v5949_v41 = vld [vmem:[%s7500_s3 + $0x100] sm:$0xff]   ;;  %v1234_v43 = vor.u32 %v1233_v37, %v1229_v31  ;;  %vm925_vm2 = vcmask 1040384  }
  0x22   : > { %310 = vst [vmem:[#allocation3 + $0xa0] sm:$0xf] %v6127_v2  ;;  %311 = vst [vmem:[#allocation3 + $0xa4] sm:$0xf] %v6127_v2  ;;  %5741 = vmatprep.subr.bf16.mxu1 %v6247_v17  ;;  %v5161_v42 = vld [vmem:[%s6271_s24 + $0x40] sm:$0xff]   ;;  %v480_v46 = vmax.f32 %v448_v39, 0.0 }
  0x23   : > { %312 = vst [vmem:[#allocation3 + $0xa8] sm:$0xf] %v6127_v2  ;;  %313 = vst [vmem:[#allocation3 + $0xac] sm:$0xf] %v6127_v2  ;;  %5195 = vmatpush3.bf16.msra.mxu0 %v5937_v18  ;;  %v5044_v44 = vunpack.c.l.bf16 %v5161_v42  ;;  %v5045_v45 = vunpack.c.h.bf16 %v5161_v42  ;;  %v481_v47 = vmax.f32 %v449_v40, 0.0  ;;  %v1239_v48 = vsel %vm1227_vm0, %v1234_v43, %v1238_v38  ;;  %v5011_v51 = vld [vmem:[%s6271_s24] sm:$0xff]  }
  0x24   : > { %314 = vst [vmem:[#allocation3 + $0xb0] sm:$0xf] %v6127_v2  ;;  %315 = vst [vmem:[#allocation3 + $0xb4] sm:$0xf] %v6127_v2  ;;  %5196 = vmatprep.subr.bf16.mxu0 %v5939_v19  ;;  %vm594_vm3 = vsmask.f32 256  ;;  %1725 = vmatprep.mubr.bf16.mxu0 %v1239_v48  ;;  %v4960_v52 = vpack.c.bf16 %v480_v46, %v480_v46  ;;  %v5012_v54 = vunpack.c.l.bf16 %v5011_v51  ;;  %v5013_v55 = vunpack.c.h.bf16 %v5011_v51 }
  0x25   : > { %316 = vst [vmem:[#allocation3 + $0xb8] sm:$0xf] %v6127_v2  ;;  %317 = vst [vmem:[#allocation3 + $0xbc] sm:$0xf] %v6127_v2  ;;  %5749 = vmatpush3.bf16.msra.mxu1 %v6247_v17  ;;  %v411_v49 = vmul.f32 %v5044_v44, %v6287_v29  ;;  %v412_v50 = vmul.f32 %v5045_v45, %v6287_v29  ;;  %v4961_v53 = vpack.c.bf16 %v481_v47, %v481_v47  ;;  %vm595_vm4 = vsmask.f32 4368 }
  0x26   : > { %318 = vst [vmem:[#allocation3 + $0xc0] sm:$0xf] %v6127_v2  ;;  %319 = vst [vmem:[#allocation3 + $0xc4] sm:$0xf] %v6127_v2  ;;  %5742 = vmatprep.subr.bf16.mxu1 %v6264_v21  ;;  %vm919_vm5 = vsmask.f32 7938  ;;  %v396_v4 = vmul.f32 %v5013_v55, %v6287_v29 }
  0x27   : > { %320 = vst [vmem:[#allocation3 + $0xc8] sm:$0xf] %v6127_v2  ;;  %321 = vst [vmem:[#allocation3 + $0xcc] sm:$0xf] %v6127_v2  ;;  %5197 = vmatpush3.bf16.msra.mxu0 %v5940_v20  ;;  %v450_v56 = vadd.f32 %v6295_v34, %v411_v49  ;;  %v451_v57 = vadd.f32 %v6295_v34, %v412_v50  ;;  %v5162_v58 = vld [vmem:[%s6271_s24 + $0x48] sm:$0xff]   ;;  %v717_v59 = vshrl.u32 %v4960_v52, 16 }
  0x28   : > { %322 = vst [vmem:[#allocation3 + $0xd0] sm:$0xf] %v6127_v2  ;;  %323 = vst [vmem:[#allocation3 + $0xd4] sm:$0xf] %v6127_v2  ;;  %5198 = vmatprep.subr.bf16.mxu0 %v5942_v22  ;;  %v720_v60 = vshll.u32 %v4960_v52, 16  ;;  %v725_v61 = vshrl.u32 %v4961_v53, 16  ;;  %v395_v2 = vmul.f32 %v5012_v54, %v6287_v29  ;;  %v5048_v11 = vunpack.c.l.bf16 %v5162_v58 }
  0x29   : > { %5750 = vmatpush3.bf16.msra.mxu1 %v6264_v21  ;;  %v728_v62 = vshll.u32 %v4961_v53, 16  ;;  %vm6319_vm6 = vmand %vm925_vm2, %vm594_vm3  ;;  %v482_v0 = vmax.f32 %v450_v56, 0.0  ;;  %v483_v1 = vmax.f32 %v451_v57, 0.0  ;;  %v972_v8 = vld [vmem:[#allocation3 + $0x60] sm:$0xf]  ;;  %v5049_v13 = vunpack.c.h.bf16 %v5162_v58  ;;  %v5163_v27 = vld [vmem:[%s6271_s24 + $0x50] sm:$0xff]  }
  0x2a   : > { %5743 = vmatprep.subr.bf16.mxu1 %v6282_v26  ;;  %vm6328_vm7 = vmor %vm594_vm3, %vm595_vm4  ;;  %v727_v7 = vrot.slane %v725_v61, 7  ;;  %v976_v10 = vld [vmem:[#allocation3 + $0x68] sm:$0x1]  ;;  %v434_v19 = vadd.f32 %v6295_v34, %v395_v2  ;;  %v435_v20 = vadd.f32 %v6295_v34, %v396_v4  ;;  %v413_v40 = vmul.f32 %v5048_v11, %v6287_v29  ;;  %v983_v42 = vld [vmem:[#allocation3 + $0x74] sm:$0x1] }
  0x2b   : > { %5199 = vmatpush3.bf16.msra.mxu0 %v5943_v30  ;;  %vm6334_vm8 = vmand %vm918_vm1, %vm919_vm5  ;;  %v4962_v16 = vpack.c.bf16 %v482_v0, %v482_v0  ;;  %v4963_v18 = vpack.c.bf16 %v483_v1, %v483_v1  ;;  %vm1436_vm9 = vcmask 1046528   ;;  %v414_v44 = vmul.f32 %v5049_v13, %v6287_v29  ;;  %v6355_v55 = vld [vmem:[%s6271_s24 + $0x8] sm:$0xff]  }
  0x2c   : > { %5592 = vmatprep.subr.bf16.mxu0 %v6180_v3  ;;  %v730_v24 = vor.u32 %v728_v62, %v727_v7  ;;  %v732_v25 = vrot.slane %v727_v7, 4  ;;  %v466_v37 = vmax.f32 %v434_v19, 0.0  ;;  %v467_v39 = vmax.f32 %v435_v20, 0.0  ;;  %v921_v58 = vld [vmem:[#allocation3 + $0xc] sm:$0xf] }
  0x2d   : > { %5751 = vmatpush3.bf16.msra.mxu1 %v6282_v26  ;;  %v734_v28 = vshrl.u32 %v4962_v16, 16  ;;  %v737_v30 = vshll.u32 %v4962_v16, 16  ;;  %v742_v31 = vshrl.u32 %v4963_v18, 16  ;;  %v745_v32 = vshll.u32 %v4963_v18, 16 }
  0x2e   : > { %5320 = vmatprep.subr.bf16.mxu1 %v5949_v41  ;;  %1726 = vmatmul.mubr.bf16.vlgmr.msra.gmra.mrb[0].mxu0 %v5945_v23  ;;  %v977_v36 = vsel %vm6319_vm6, %v732_v25, %v976_v10  ;;  %v979_v41 = vld [vmem:[#allocation3 + $0x6c] sm:$0xf]  ;;  %v4946_v43 = vpack.c.bf16 %v466_v37, %v466_v37  ;;  %v5052_v45 = vunpack.c.l.bf16 %v5163_v27  ;;  %v5053_v46 = vunpack.c.h.bf16 %v5163_v27 }
  0x2f   : > { %5593 = vmatpush3.bf16.msra.mxu0 %v6180_v3  ;;  %v719_v3 = vrot.slane %v717_v59, 7  ;;  %978 = vst [vmem:[#allocation3 + $0x68] sm:$0x1] %v977_v36  ;;  %v744_v38 = vrot.slane %v742_v31, 7  ;;  %v4947_v51 = vpack.c.bf16 %v467_v39, %v467_v39  ;;  %v452_v54 = vadd.f32 %v6295_v34, %v413_v40 }
  0x30   : > { %5594 = vmatprep.subr.bf16.mxu0 %v6193_v6  ;;  %v598_v52 = vshrl.u32 %v4946_v43, 16  ;;  %v601_v53 = vshll.u32 %v4946_v43, 16  ;;  %v453_v59 = vadd.f32 %v6295_v34, %v414_v44  ;;  %v415_v4 = vmul.f32 %v5052_v45, %v6287_v29 }
  0x31   : > { %v722_v22 = vor.u32 %v720_v60, %v719_v3  ;;  %v723_v23 = vrot.slane %v719_v3, 4  ;;  %v747_v49 = vor.u32 %v745_v32, %v744_v38  ;;  %v749_v50 = vrot.slane %v744_v38, 4  ;;  %v6365_v60 = vld [vmem:[%s6271_s24 + $0x58] sm:$0xff]  }
  0x32   : > { %v600_v61 = vrot.slane %v598_v52, 7  ;;  %v606_v62 = vshrl.u32 %v4947_v51, 16  ;;  %v609_v0 = vshll.u32 %v4947_v51, 16  ;;  %v484_v1 = vmax.f32 %v452_v54, 0.0 }
  0x33   : > { %5595 = vmatpush3.bf16.msra.mxu0 %v6193_v6  ;;  %v731_v33 = vsel %vm6328_vm7, %v723_v23, %v730_v24  ;;  %v973_v35 = vsel %vm6334_vm8, %v722_v22, %v972_v8  ;;  %v736_v6 = vrot.slane %v734_v28, 7  ;;  %v984_v57 = vsel %vm6319_vm6, %v749_v50, %v983_v42  ;;  %v927_v24 = vld [vmem:[#allocation3 + $0x14] sm:$0x1] }
  0x34   : > { %5596 = vmatprep.subr.bf16.mxu0 %v6205_v9  ;;  %974 = vst [vmem:[#allocation3 + $0x60] sm:$0xf] %v973_v35  ;;  %975 = vst [vmem:[#allocation3 + $0x64] sm:$0xf] %v731_v33  ;;  %v485_v2 = vmax.f32 %v453_v59, 0.0  ;;  %v416_v3 = vmul.f32 %v5053_v46, %v6287_v29  ;;  %v5016_v7 = vunpack.c.l.bf16 %v6355_v55  ;;  %v603_v8 = vor.u32 %v601_v53, %v600_v61 }
  0x35   : > { %v739_v47 = vor.u32 %v737_v30, %v736_v6  ;;  %v740_v48 = vrot.slane %v736_v6, 4  ;;  %985 = vst [vmem:[#allocation3 + $0x74] sm:$0x1] %v984_v57  ;;  %v4964_v10 = vpack.c.bf16 %v484_v1, %v484_v1  ;;  %v5017_v11 = vunpack.c.h.bf16 %v6355_v55  ;;  %v986_v6 = vld [vmem:[#allocation3 + $0x78] sm:$0xf]  ;;  %v5952_v55 = vld [vmem:[%s7500_s3 + $0xc0] sm:$0xff]  }
  0x36   : > { %v5056_v13 = vunpack.c.l.bf16 %v6365_v60  ;;  %v5948_v18 = vld [vmem:[#allocation3 + $0x68] ss:$0 sps:$4 sm:$0xff]   ;;  %v604_v19 = vrot.slane %v600_v61, 4  ;;  %v608_v20 = vrot.slane %v606_v62, 7  ;;  %v454_v22 = vadd.f32 %v6295_v34, %v415_v4  ;;  %v6400_v62 = vld [vmem:[%s6271_s24 + $0x60] sm:$0xff]  }
  0x37   : > { %5597 = vmatpush3.bf16.msra.mxu0 %v6205_v9  ;;  %v748_v56 = vsel %vm6328_vm7, %v740_v48, %v747_v49  ;;  %v980_v9 = vsel %vm6334_vm8, %v739_v47, %v979_v41  ;;  %v922_v23 = vsel %vm6334_vm8, %v603_v8, %v921_v58  ;;  %v751_v25 = vshrl.u32 %v4964_v10, 16  ;;  %v990_v48 = vld [vmem:[#allocation3 + $0x80] sm:$0x1]  ;;  %v5956_v1 = vld [vmem:[%s7500_s3 + $0xc8] sm:$0xff]  }
  0x38   : > { %5598 = vmatprep.subr.bf16.mxu0 %v6218_v12  ;;  %981 = vst [vmem:[#allocation3 + $0x6c] sm:$0xf] %v980_v9  ;;  %982 = vst [vmem:[#allocation3 + $0x70] sm:$0xf] %v748_v56  ;;  %v754_v27 = vshll.u32 %v4964_v10, 16  ;;  %v455_v28 = vadd.f32 %v6295_v34, %v416_v3  ;;  %v1462_v31 = vrot.slane %v5948_v18, 1  ;;  %v611_v32 = vor.u32 %v609_v0, %v608_v20 }
  0x39   : > { %v613_v33 = vrot.slane %v608_v20, 4  ;;  %923 = vst [vmem:[#allocation3 + $0xc] sm:$0xf] %v922_v23  ;;  %v753_v35 = vrot.slane %v751_v25, 7  ;;  %v486_v38 = vmax.f32 %v454_v22, 0.0  ;;  %v397_v41 = vmul.f32 %v5016_v7, %v6287_v29  ;;  %v5959_v18 = vld [vmem:[%s7500_s3 + $0x110] sm:$0xff]  }
  0x3a   : > { %v612_v40 = vsel %vm6328_vm7, %v604_v19, %v611_v32  ;;  %v487_v47 = vmax.f32 %v455_v28, 0.0  ;;  %v398_v50 = vmul.f32 %v5017_v11, %v6287_v29  ;;  %v5057_v52 = vunpack.c.h.bf16 %v6365_v60  ;;  %v993_v3 = vld [vmem:[#allocation3 + $0x84] sm:$0xf] }
  0x3b   : > { %5599 = vmatpush3.bf16.msra.mxu0 %v6218_v12  ;;  %v5947_v16 = vld [vmem:[#allocation3 + $0x60] sm:$0xff]   ;;  %v4965_v12 = vpack.c.bf16 %v485_v2, %v485_v2  ;;  %924 = vst [vmem:[#allocation3 + $0x10] sm:$0xf] %v612_v40  ;;  %v756_v44 = vor.u32 %v754_v27, %v753_v35  ;;  %v757_v45 = vrot.slane %v753_v35, 4  ;;  %v4966_v49 = vpack.c.bf16 %v486_v38, %v486_v38  ;;  %v5962_v40 = vld [vmem:[%s7500_s3 + $0xd0] sm:$0xff]  }
  0x3c   : > { %5600 = vmatprep.subr.bf16.mxu0 %v6230_v14  ;;  %v1461_v30 = vrot.slane %v5947_v16, 1  ;;  %v5951_v43 = vld [vmem:[#allocation3 + $0x74] ss:$0 sps:$4 sm:$0xff]   ;;  %v436_v51 = vadd.f32 %v6295_v34, %v397_v41  ;;  %v4967_v58 = vpack.c.bf16 %v487_v47, %v487_v47  ;;  %v437_v7 = vadd.f32 %v6295_v34, %v398_v50  ;;  %v934_v50 = vld [vmem:[#allocation3 + $0x20] sm:$0x1] }
  0x3d   : > { %v759_v36 = vshrl.u32 %v4965_v12, 16  ;;  %v762_v37 = vshll.u32 %v4965_v12, 16  ;;  %v1465_v54 = vrot.slane %v5951_v43, 1  ;;  %v987_v57 = vsel %vm6334_vm8, %v756_v44, %v986_v6 }
  0x3e   : > { %v1463_v39 = vsel %vm1436_vm9, %v1461_v30, %v1462_v31  ;;  %v768_v59 = vshrl.u32 %v4966_v49, 16  ;;  %v771_v61 = vshll.u32 %v4966_v49, 16  ;;  %988 = vst [vmem:[#allocation3 + $0x78] sm:$0xf] %v987_v57  ;;  %v776_v10 = vshrl.u32 %v4967_v58, 16 }
  0x3f   : > { %5601 = vmatpush3.bf16.msra.mxu0 %v6230_v14  ;;  %v928_v14 = vsel %vm6319_vm6, %v613_v33, %v927_v24  ;;  %5624 = vmatprep.mubr.bf16.mxu1 %v1463_v39  ;;  %v5950_v42 = vld [vmem:[#allocation3 + $0x6c] sm:$0xff]   ;;  %v761_v46 = vrot.slane %v759_v36, 7  ;;  %v779_v11 = vshll.u32 %v4967_v58, 16  ;;  %v468_v16 = vmax.f32 %v436_v51, 0.0  ;;  %v5966_v51 = vld [vmem:[%s7500_s3 + $0xd8] sm:$0xff]  }
  0x40   : > { %5602 = vmatprep.subr.bf16.mxu0 %v6247_v17  ;;  %929 = vst [vmem:[#allocation3 + $0x14] sm:$0x1] %v928_v14  ;;  %v1464_v53 = vrot.slane %v5950_v42, 1  ;;  %v770_v8 = vrot.slane %v768_v59, 7  ;;  %v469_v19 = vmax.f32 %v437_v7, 0.0  ;;  %v417_v20 = vmul.f32 %v5056_v13, %v6287_v29 }
  0x41   : > { %v764_v56 = vor.u32 %v762_v37, %v761_v46  ;;  %v766_v9 = vrot.slane %v761_v46, 4  ;;  %v5060_v12 = vunpack.c.l.bf16 %v6400_v62  ;;  %v4948_v25 = vpack.c.bf16 %v468_v16, %v468_v16  ;;  %v997_v36 = vld [vmem:[#allocation3 + $0x8c] sm:$0x1] }
  0x42   : > { %v1466_v0 = vsel %vm1436_vm9, %v1464_v53, %v1465_v54  ;;  %v5954_v22 = vld [vmem:[#allocation3 + $0xc] sm:$0xff]   ;;  %v773_v23 = vor.u32 %v771_v61, %v770_v8  ;;  %v774_v24 = vrot.slane %v770_v8, 4  ;;  %v5061_v27 = vunpack.c.h.bf16 %v6400_v62 }
  0x43   : > { %5603 = vmatpush3.bf16.msra.mxu0 %v6247_v17  ;;  %v5953_v17 = vld [vmem:[%s7500_s3 + $0x108] sm:$0xff]   ;;  %v765_v2 = vsel %vm6328_vm7, %v757_v45, %v764_v56  ;;  %v991_v4 = vsel %vm6319_vm6, %v766_v9, %v990_v48  ;;  %5625 = vmatmul.mubr.bf16.vlgmr.msra.gmra.mrb[0].mxu1 %v1466_v0  ;;  %v778_v30 = vrot.slane %v776_v10, 7  ;;  %v4949_v31 = vpack.c.bf16 %v469_v19, %v469_v19  ;;  %v930_v45 = vld [vmem:[#allocation3 + $0x18] sm:$0xf]  ;;  %v5155_v62 = vld [vmem:[%s6271_s24 + $0x10] sm:$0xff]  }
  0x44   : > { %5604 = vmatprep.subr.bf16.mxu0 %v6264_v21  ;;  %989 = vst [vmem:[#allocation3 + $0x7c] sm:$0xf] %v765_v2  ;;  %992 = vst [vmem:[#allocation3 + $0x80] sm:$0x1] %v991_v4  ;;  %5321 = vmatpush3.bf16.msra.mxu1 %v5952_v55  ;;  %v456_v32 = vadd.f32 %v6295_v34, %v417_v20  ;;  %v1241_v60 = vshrl.u32 %v5954_v22, 16  ;;  %v1243_v13 = vshll.u32 %v5954_v22, 16 }
  0x45   : > { %5322 = vmatprep.subr.bf16.mxu1 %v5953_v17  ;;  %v994_v35 = vsel %vm6334_vm8, %v773_v23, %v993_v3  ;;  %v615_v37 = vshrl.u32 %v4948_v25, 16  ;;  %v781_v38 = vor.u32 %v779_v11, %v778_v30  ;;  %v783_v39 = vrot.slane %v778_v30, 4  ;;  %v5969_v17 = vld [vmem:[%s7500_s3 + $0x120] sm:$0xff]   ;;  %v6451_v11 = vld [vmem:[%s6271_s24 + $0x68] sm:$0xff]  }
  0x46   : > { %995 = vst [vmem:[#allocation3 + $0x84] sm:$0xf] %v994_v35  ;;  %v618_v14 = vshll.u32 %v4948_v25, 16  ;;  %v1245_v41 = vrot.slane %v1243_v13, 1  ;;  %v623_v43 = vshrl.u32 %v4949_v31, 16  ;;  %v626_v44 = vshll.u32 %v4949_v31, 16 }
  0x47   : > { %5605 = vmatpush3.bf16.msra.mxu0 %v6264_v21  ;;  %v418_v21 = vmul.f32 %v5057_v52, %v6287_v29  ;;  %v5955_v28 = vld [vmem:[#allocation3 + $0x14] ss:$0 sps:$4 sm:$0xff]   ;;  %v617_v42 = vrot.slane %v615_v37, 7  ;;  %v782_v48 = vsel %vm6328_vm7, %v774_v24, %v781_v38  ;;  %v998_v49 = vsel %vm6319_vm6, %v783_v39, %v997_v36  ;;  %v5972_v25 = vld [vmem:[%s7500_s3 + $0xe0] sm:$0xff]   ;;  %v5973_v30 = vld [vmem:[%s7500_s3 + $0x128] sm:$0xff]  }
  0x48   : > { %5606 = vmatprep.subr.bf16.mxu0 %v6282_v26  ;;  %v1248_v6 = vshll.u32 %v5955_v28, 16  ;;  %5323 = vmatpush3.bf16.msra.mxu1 %v5956_v1  ;;  %v419_v52 = vmul.f32 %v5060_v12, %v6287_v29  ;;  %v1246_v53 = vor.u32 %v1245_v41, %v1241_v60  ;;  %996 = vst [vmem:[#allocation3 + $0x88] sm:$0xf] %v782_v48  ;;  %999 = vst [vmem:[#allocation3 + $0x8c] sm:$0x1] %v998_v49  ;;  %v5976_v49 = vld [vmem:[%s7500_s3 + $0xe8] sm:$0xff]  }
  0x49   : > { %v457_v33 = vadd.f32 %v6295_v34, %v418_v21  ;;  %5324 = vmatprep.subr.bf16.mxu1 %v5959_v18  ;;  %v620_v55 = vor.u32 %v618_v14, %v617_v42  ;;  %v621_v56 = vrot.slane %v617_v42, 4  ;;  %v625_v9 = vrot.slane %v623_v43, 7  ;;  %v6460_v21 = vld [vmem:[%s6271_s24 + $0x70] sm:$0xff]   ;;  %v1004_v43 = vld [vmem:[#allocation3 + $0x98] sm:$0x1] }
  0x4a   : > { %v1250_v46 = vrot.slane %v1248_v6, 1  ;;  %v488_v58 = vmax.f32 %v456_v32, 0.0  ;;  %v420_v61 = vmul.f32 %v5061_v27, %v6287_v29  ;;  %v458_v10 = vadd.f32 %v6295_v34, %v419_v52  ;;  %v1000_v38 = vld [vmem:[#allocation3 + $0x90] sm:$0xf] }
  0x4b   : > { %5607 = vmatpush3.bf16.msra.mxu0 %v6282_v26  ;;  %v5963_v26 = vld [vmem:[%s7500_s3 + $0x118] sm:$0xff]   ;;  %v5958_v54 = vld [vmem:[#allocation3 + $0x80] ss:$0 sps:$4 sm:$0xff]   ;;  %v489_v59 = vmax.f32 %v457_v33, 0.0  ;;  %v628_v2 = vor.u32 %v626_v44, %v625_v9  ;;  %v630_v4 = vrot.slane %v625_v9, 4  ;;  %v931_v3 = vsel %vm6334_vm8, %v620_v55, %v930_v45  ;;  %v5979_v55 = vld [vmem:[%s7500_s3 + $0x130] sm:$0xff]  }
  0x4c   : > { %v5957_v47 = vld [vmem:[#allocation3 + $0x78] sm:$0xff]   ;;  %5325 = vmatpush3.bf16.msra.mxu1 %v5962_v40  ;;  %v1251_v0 = vsel %vm1227_vm0, %v1246_v53, %v1250_v46  ;;  %v1468_v1 = vrot.slane %v5958_v54, 1  ;;  %v4968_v7 = vpack.c.bf16 %v488_v58, %v488_v58  ;;  %932 = vst [vmem:[#allocation3 + $0x18] sm:$0xf] %v931_v3  ;;  %v459_v20 = vadd.f32 %v6295_v34, %v420_v61 }
  0x4d   : > { %v1467_v57 = vrot.slane %v5957_v47, 1  ;;  %5326 = vmatprep.subr.bf16.mxu1 %v5963_v26  ;;  %1733 = vmatprep.mubr.bf16.mxu0 %v1251_v0  ;;  %v4969_v8 = vpack.c.bf16 %v489_v59, %v489_v59  ;;  %v629_v18 = vsel %vm6328_vm7, %v621_v56, %v628_v2  ;;  %v935_v19 = vsel %vm6319_vm6, %v630_v4, %v934_v50  ;;  %v1007_v54 = vld [vmem:[#allocation3 + $0x9c] sm:$0xf]  ;;  %v1011_v59 = vld [vmem:[#allocation3 + $0xa4] sm:$0x1] }
  0x4e   : > { %1734 = vmatmul.mubr.bf16.gmra.mrb[4].mxu0 %v5954_v22  ;;  %933 = vst [vmem:[#allocation3 + $0x1c] sm:$0xf] %v629_v18  ;;  %936 = vst [vmem:[#allocation3 + $0x20] sm:$0x1] %v935_v19  ;;  %v785_v12 = vshrl.u32 %v4968_v7, 16  ;;  %v788_v23 = vshll.u32 %v4968_v7, 16  ;;  %v5020_v31 = vunpack.c.l.bf16 %v5155_v62  ;;  %v5021_v32 = vunpack.c.h.bf16 %v5155_v62 }
  0x4f   : > { %v1469_v16 = vsel %vm1436_vm9, %v1467_v57, %v1468_v1  ;;  %v793_v22 = vshrl.u32 %v4969_v8, 16  ;;  %v796_v24 = vshll.u32 %v4969_v8, 16  ;;  %v490_v27 = vmax.f32 %v458_v10, 0.0  ;;  %v5960_v33 = vld [vmem:[#allocation3 + $0x84] sm:$0xff]   ;;  %v5961_v37 = vld [vmem:[#allocation3 + $0x8c] ss:$0 sps:$4 sm:$0xff]  }
  0x50   : > { %5628 = vmatprep.mubr.bf16.mxu1 %v1469_v16  ;;  %5327 = vmatpush3.bf16.msra.mxu1 %v5966_v51  ;;  %v491_v28 = vmax.f32 %v459_v20, 0.0  ;;  %v787_v60 = vrot.slane %v785_v12, 7  ;;  %v5064_v13 = vunpack.c.l.bf16 %v6451_v11  ;;  %v5065_v35 = vunpack.c.h.bf16 %v6451_v11  ;;  %v5982_v10 = vld [vmem:[%s7500_s3 + $0xf0] sm:$0xff]   ;;  %v5983_v20 = vld [vmem:[%s7500_s3 + $0x138] sm:$0xff]  }
  0x51   : > { %5328 = vmatprep.subr.bf16.mxu1 %v5969_v17  ;;  %v5068_v36 = vunpack.c.l.bf16 %v6460_v21  ;;  %v795_v6 = vrot.slane %v793_v22, 7  ;;  %v4970_v39 = vpack.c.bf16 %v490_v27, %v490_v27  ;;  %v399_v26 = vmul.f32 %v5020_v31, %v6287_v29 }
  0x52   : > { %v4971_v40 = vpack.c.bf16 %v491_v28, %v491_v28  ;;  %v1470_v14 = vrot.slane %v5960_v33, 1  ;;  %v790_v41 = vor.u32 %v788_v23, %v787_v60  ;;  %v791_v42 = vrot.slane %v787_v60, 4  ;;  %v6511_v33 = vld [vmem:[%s7500_s3 + $0x140] sm:$0xff]  }
  0x53   : > { %v400_v44 = vmul.f32 %v5021_v32, %v6287_v29  ;;  %v1471_v45 = vrot.slane %v5961_v37, 1  ;;  %v798_v46 = vor.u32 %v796_v24, %v795_v6  ;;  %v800_v47 = vrot.slane %v795_v6, 4  ;;  %v5986_v32 = vld [vmem:[%s7500_s3 + $0xf8] sm:$0xff]  }
  0x54   : > { %5329 = vmatpush3.bf16.msra.mxu1 %v5972_v25  ;;  %v802_v48 = vshrl.u32 %v4970_v39, 16  ;;  %v1001_v50 = vsel %vm6334_vm8, %v790_v41, %v1000_v38  ;;  %v805_v51 = vshll.u32 %v4970_v39, 16  ;;  %v810_v52 = vshrl.u32 %v4971_v40, 16  ;;  %v6499_v25 = vld [vmem:[%s6271_s24 + $0x18] sm:$0xff]  }
  0x55   : > { %5330 = vmatprep.subr.bf16.mxu1 %v5973_v30  ;;  %v813_v53 = vshll.u32 %v4971_v40, 16  ;;  %v1472_v56 = vsel %vm1436_vm9, %v1470_v14, %v1471_v45  ;;  %v5964_v9 = vld [vmem:[#allocation3 + $0x18] sm:$0xff]   ;;  %v799_v17 = vsel %vm6328_vm7, %v791_v42, %v798_v46  ;;  %1002 = vst [vmem:[#allocation3 + $0x90] sm:$0xf] %v1001_v50  ;;  %v1005_v57 = vsel %vm6319_vm6, %v800_v47, %v1004_v43  ;;  %v5965_v61 = vld [vmem:[#allocation3 + $0x20] ss:$0 sps:$4 sm:$0xff]  }
  0x56   : > { %v804_v58 = vrot.slane %v802_v48, 7  ;;  %5629 = vmatmul.mubr.bf16.gmra.mrb[4].mxu1 %v1472_v56  ;;  %1003 = vst [vmem:[#allocation3 + $0x94] sm:$0xf] %v799_v17  ;;  %1006 = vst [vmem:[#allocation3 + $0x98] sm:$0x1] %v1005_v57  ;;  %v812_v62 = vrot.slane %v810_v52, 7  ;;  %v438_v0 = vadd.f32 %v6295_v34, %v399_v26  ;;  %v439_v1 = vadd.f32 %v6295_v34, %v400_v44 }
  0x57   : > { %v421_v2 = vmul.f32 %v5064_v13, %v6287_v29  ;;  %v1253_v4 = vshrl.u32 %v5964_v9, 16  ;;  %v1255_v3 = vshll.u32 %v5964_v9, 16  ;;  %v1260_v11 = vshll.u32 %v5965_v61, 16  ;;  %v937_v42 = vld [vmem:[#allocation3 + $0x24] sm:$0xf] }
  0x58   : > { %v807_v7 = vor.u32 %v805_v51, %v804_v58  ;;  %v808_v8 = vrot.slane %v804_v58, 4  ;;  %5331 = vmatpush3.bf16.msra.mxu1 %v5976_v49  ;;  %v815_v16 = vor.u32 %v813_v53, %v812_v62  ;;  %v817_v18 = vrot.slane %v812_v62, 4 }
  0x59   : > { %v470_v19 = vmax.f32 %v438_v0, 0.0  ;;  %5332 = vmatprep.subr.bf16.mxu1 %v5979_v55  ;;  %v1257_v12 = vrot.slane %v1255_v3, 1  ;;  %v471_v22 = vmax.f32 %v439_v1, 0.0  ;;  %v422_v24 = vmul.f32 %v5065_v35, %v6287_v29  ;;  %v941_v55 = vld [vmem:[#allocation3 + $0x2c] sm:$0x1] }
  0x5a   : > { %v1008_v23 = vsel %vm6334_vm8, %v807_v7, %v1007_v54  ;;  %v1262_v27 = vrot.slane %v1260_v11, 1  ;;  %v816_v28 = vsel %vm6328_vm7, %v808_v8, %v815_v16  ;;  %v1012_v30 = vsel %vm6319_vm6, %v817_v18, %v1011_v59 }
  0x5b   : > { %1009 = vst [vmem:[#allocation3 + $0x9c] sm:$0xf] %v1008_v23  ;;  %v4950_v31 = vpack.c.bf16 %v470_v19, %v470_v19  ;;  %v1258_v60 = vor.u32 %v1257_v12, %v1253_v4  ;;  %1010 = vst [vmem:[#allocation3 + $0xa0] sm:$0xf] %v816_v28  ;;  %v4951_v13 = vpack.c.bf16 %v471_v22, %v471_v22  ;;  %v5069_v39 = vunpack.c.h.bf16 %v6460_v21  ;;  %v1018_v19 = vld [vmem:[#allocation3 + $0xb0] sm:$0x1] }
  0x5c   : > { %1013 = vst [vmem:[#allocation3 + $0xa4] sm:$0x1] %v1012_v30  ;;  %v460_v35 = vadd.f32 %v6295_v34, %v421_v2  ;;  %v461_v37 = vadd.f32 %v6295_v34, %v422_v24  ;;  %5333 = vmatpush3.bf16.msra.mxu1 %v5982_v10  ;;  %v423_v40 = vmul.f32 %v5068_v36, %v6287_v29  ;;  %v5024_v43 = vunpack.c.l.bf16 %v6499_v25  ;;  %v1014_v10 = vld [vmem:[#allocation3 + $0xa8] sm:$0xf] }
  0x5d   : > { %v632_v6 = vshrl.u32 %v4950_v31, 16  ;;  %v635_v38 = vshll.u32 %v4950_v31, 16  ;;  %5334 = vmatprep.subr.bf16.mxu1 %v5983_v20  ;;  %v1263_v26 = vsel %vm1227_vm0, %v1258_v60, %v1262_v27  ;;  %v6520_v14 = vld [vmem:[#allocation3 + $0x90] sm:$0xff]   ;;  %v640_v41 = vshrl.u32 %v4951_v13, 16  ;;  %v5968_v45 = vld [vmem:[#allocation3 + $0x98] ss:$0 sps:$4 sm:$0xff]  }
  0x5e   : > { %v5025_v44 = vunpack.c.h.bf16 %v6499_v25  ;;  %1741 = vmatprep.mubr.bf16.mxu0 %v1263_v26  ;;  %v643_v47 = vshll.u32 %v4951_v13, 16  ;;  %v492_v48 = vmax.f32 %v460_v35, 0.0  ;;  %v493_v49 = vmax.f32 %v461_v37, 0.0  ;;  %v6543_v35 = vld [vmem:[#allocation3 + $0xc] sm:$0xff]  }
  0x5f   : > { %v634_v46 = vrot.slane %v632_v6, 7  ;;  %1742 = vmatmul.mubr.bf16.gmra.mrb[8].mxu0 %v5964_v9  ;;  %v1473_v21 = vrot.slane %v6520_v14, 1  ;;  %v642_v36 = vrot.slane %v640_v41, 7  ;;  %v424_v50 = vmul.f32 %v5069_v39, %v6287_v29  ;;  %v5157_v39 = vld [vmem:[%s6271_s24 + $0x20] sm:$0xff]  }
  0x60   : > { %v462_v51 = vadd.f32 %v6295_v34, %v423_v40  ;;  %5335 = vmatpush3.bf16.msra.mxu1 %v5986_v32  ;;  %v1474_v52 = vrot.slane %v5968_v45, 1  ;;  %v4972_v56 = vpack.c.bf16 %v492_v48, %v492_v48  ;;  %v4973_v58 = vpack.c.bf16 %v493_v49, %v493_v49  ;;  %v6555_v40 = vld [vmem:[%s6271_s24 + $0x28] sm:$0xff]  }
  0x61   : > { %v637_v53 = vor.u32 %v635_v38, %v634_v46  ;;  %v638_v54 = vrot.slane %v634_v46, 4  ;;  %5640 = vmatprep.subr.bf16.mxu1 %v6511_v33  ;;  %v645_v17 = vor.u32 %v643_v47, %v642_v36  ;;  %v647_v57 = vrot.slane %v642_v36, 4  ;;  %v6550_v38 = vld [vmem:[%s7499_s2] ss:$0 sm:$0xff]  ;;  %v1025_v46 = vld [vmem:[#allocation3 + $0xbc] sm:$0x1] }
  0x62   : > { %v463_v9 = vadd.f32 %v6295_v34, %v424_v50  ;;  %v1475_v59 = vsel %vm1436_vm9, %v1473_v21, %v1474_v52  ;;  %v6530_v61 = vld [vmem:[#allocation3 + $0x9c] sm:$0xff]   ;;  %v819_v0 = vshrl.u32 %v4972_v56, 16  ;;  %v401_v1 = vmul.f32 %v5024_v43, %v6287_v29 }
  0x63   : > { %v938_v62 = vsel %vm6334_vm8, %v637_v53, %v937_v42  ;;  %5632 = vmatprep.mubr.bf16.mxu1 %v1475_v59  ;;  %v5971_v2 = vld [vmem:[#allocation3 + $0xa4] ss:$0 sps:$4 sm:$0xff]   ;;  %v646_v4 = vsel %vm6328_vm7, %v638_v54, %v645_v17  ;;  %v942_v3 = vsel %vm6319_vm6, %v647_v57, %v941_v55  ;;  %v822_v7 = vshll.u32 %v4972_v56, 16  ;;  %v5988_v57 = vld [vmem:[#allocation3 + $0x14] ss:$0 sps:$4 sm:$0xff]  }
  0x64   : > { %939 = vst [vmem:[#allocation3 + $0x24] sm:$0xf] %v938_v62  ;;  %v827_v8 = vshrl.u32 %v4973_v58, 16  ;;  %v1476_v11 = vrot.slane %v6530_v61, 1  ;;  %940 = vst [vmem:[#allocation3 + $0x28] sm:$0xf] %v646_v4  ;;  %v402_v24 = vmul.f32 %v5025_v44, %v6287_v29  ;;  %v440_v30 = vadd.f32 %v6295_v34, %v401_v1 }
  0x65   : > { %943 = vst [vmem:[#allocation3 + $0x2c] sm:$0x1] %v942_v3  ;;  %v821_v16 = vrot.slane %v819_v0, 7  ;;  %v830_v18 = vshll.u32 %v4973_v58, 16  ;;  %v494_v20 = vmax.f32 %v462_v51, 0.0  ;;  %v1477_v12 = vrot.slane %v5971_v2, 1 }
  0x66   : > { %v829_v23 = vrot.slane %v827_v8, 7  ;;  %v495_v22 = vmax.f32 %v463_v9, 0.0  ;;  %v441_v34 = vadd.f32 %v6550_v38, %v402_v24  ;;  %v1021_v44 = vld [vmem:[#allocation3 + $0xb4] sm:$0xf]  ;;  %v472_v47 = vmax.f32 %v440_v30, 0.0  ;;  %v6023_v0 = vld [vmem:[%s7500_s3 + $0x1c0] sm:$0xff]  }
  0x67   : > { %v824_v25 = vor.u32 %v822_v7, %v821_v16  ;;  %v825_v27 = vrot.slane %v821_v16, 4  ;;  %v4974_v28 = vpack.c.bf16 %v494_v20, %v494_v20  ;;  %v1478_v31 = vsel %vm1436_vm9, %v1476_v11, %v1477_v12  ;;  %v944_v16 = vld [vmem:[#allocation3 + $0x30] sm:$0xf]  ;;  %5456 = vmatprep.subr.bf16.mxu0 %v6023_v0  ;;  %v948_v12 = vld [vmem:[#allocation3 + $0x38] sm:$0x1] }
  0x68   : > { %v832_v32 = vor.u32 %v830_v18, %v829_v23  ;;  %v834_v60 = vrot.slane %v829_v23, 4  ;;  %v4975_v13 = vpack.c.bf16 %v495_v22, %v495_v22  ;;  %5633 = vmatmul.mubr.bf16.gmra.mrb[8].mxu1 %v1478_v31  ;;  %v473_v48 = vmax.f32 %v441_v34, 0.0  ;;  %v6587_v34 = vld [vmem:[%s6271_s24 + $0x30] sm:$0xff]   ;;  %v6026_v63 = vld [vmem:[#allocation3 + $0xa4] ss:$0 sps:$4 sm:$0xff]  }
  0x69   : > { %v1015_v37 = vsel %vm6334_vm8, %v824_v25, %v1014_v10  ;;  %v836_v6 = vshrl.u32 %v4974_v28, 16  ;;  %v839_v29 = vshll.u32 %v4974_v28, 16  ;;  %v2240_v49 = vshrl.u32 %v6543_v35, 16 }
  0x6a   : > { %v833_v26 = vsel %vm6328_vm7, %v825_v27, %v832_v32  ;;  %1016 = vst [vmem:[#allocation3 + $0xa8] sm:$0xf] %v1015_v37  ;;  %v1019_v41 = vsel %vm6319_vm6, %v834_v60, %v1018_v19  ;;  %v844_v42 = vshrl.u32 %v4975_v13, 16  ;;  %v847_v43 = vshll.u32 %v4975_v13, 16  ;;  %v6578_v27 = vld [vmem:[%s7498_s1] ss:$0 sm:$0xff] }
  0x6b   : > { %1017 = vst [vmem:[#allocation3 + $0xac] sm:$0xf] %v833_v26  ;;  %1020 = vst [vmem:[#allocation3 + $0xb0] sm:$0x1] %v1019_v41  ;;  %v838_v45 = vrot.slane %v836_v6, 7  ;;  %v5974_v21 = vld [vmem:[#allocation3 + $0x24] sm:$0xff]   ;;  %v5028_v50 = vunpack.c.l.bf16 %v5157_v39  ;;  %v5029_v51 = vunpack.c.h.bf16 %v5157_v39  ;;  %v5032_v52 = vunpack.c.l.bf16 %v6555_v40 }
  0x6c   : > { %v846_v36 = vrot.slane %v844_v42, 7  ;;  %v5975_v53 = vld [vmem:[#allocation3 + $0x2c] ss:$0 sps:$4 sm:$0xff]   ;;  %v4952_v56 = vpack.c.bf16 %v472_v47, %v472_v47  ;;  %v4953_v17 = vpack.c.bf16 %v473_v48, %v473_v48  ;;  %v1265_v58 = vshrl.u32 %v5974_v21, 16  ;;  %v6584_v6 = vld [vmem:[#allocation3 + $0x18] sm:$0xff]  }
  0x6d   : > { %v841_v54 = vor.u32 %v839_v29, %v838_v45  ;;  %v842_v55 = vrot.slane %v838_v45, 4  ;;  %v1267_v9 = vshll.u32 %v5974_v21, 16  ;;  %v1272_v1 = vshll.u32 %v5975_v53, 16  ;;  %v5993_v29 = vld [vmem:[#allocation3 + $0x20] ss:$0 sps:$4 sm:$0xff]  }
  0x6e   : > { %v849_v59 = vor.u32 %v847_v43, %v846_v36  ;;  %v851_v62 = vrot.slane %v846_v36, 4  ;;  %v649_v4 = vshrl.u32 %v4952_v56, 16  ;;  %v652_v3 = vshll.u32 %v4952_v56, 16  ;;  %v6616_v0 = vld [vmem:[#allocation3 + $0x2c] ss:$0 sps:$4 sm:$0xff]  }
  0x6f   : > { %v1022_v2 = vsel %vm6334_vm8, %v841_v54, %v1021_v44  ;;  %v1269_v7 = vrot.slane %v1267_v9, 1  ;;  %v657_v11 = vshrl.u32 %v4953_v17, 16  ;;  %v1274_v18 = vrot.slane %v1272_v1, 1 }
  0x70   : > { %v850_v8 = vsel %vm6328_vm7, %v842_v55, %v849_v59  ;;  %1023 = vst [vmem:[#allocation3 + $0xb4] sm:$0xf] %v1022_v2  ;;  %v1026_v10 = vsel %vm6319_vm6, %v851_v62, %v1025_v46  ;;  %v651_v19 = vrot.slane %v649_v4, 7  ;;  %v660_v20 = vshll.u32 %v4953_v17, 16 }
  0x71   : > { %1024 = vst [vmem:[#allocation3 + $0xb8] sm:$0xf] %v850_v8  ;;  %1027 = vst [vmem:[#allocation3 + $0xbc] sm:$0x1] %v1026_v10  ;;  %v2242_v23 = vshll.u32 %v6543_v35, 16  ;;  %v1270_v22 = vor.u32 %v1269_v7, %v1265_v58  ;;  %v659_v25 = vrot.slane %v657_v11, 7  ;;  %v403_v28 = vmul.f32 %v6578_v27, %v5028_v50 }
  0x72   : > { %v6573_v24 = vld [vmem:[#allocation3 + $0xa8] sm:$0xff]   ;;  %v404_v30 = vmul.f32 %v6578_v27, %v5029_v51  ;;  %v6582_v31 = vld [vmem:[#allocation3 + $0xb0] ss:$0 sps:$4 sm:$0xff]   ;;  %v654_v32 = vor.u32 %v652_v3, %v651_v19  ;;  %v655_v60 = vrot.slane %v651_v19, 4  ;;  %v2247_v37 = vshll.u32 %v5988_v57, 16 }
  0x73   : > { %v2244_v13 = vrot.slane %v2242_v23, 1  ;;  %v1275_v39 = vsel %vm1227_vm0, %v1270_v22, %v1274_v18  ;;  %v1479_v26 = vrot.slane %v6573_v24, 1  ;;  %v662_v41 = vor.u32 %v660_v20, %v659_v25  ;;  %v6600_v50 = vld [vmem:[#allocation3 + $0x24] sm:$0xff]   ;;  %v951_v22 = vld [vmem:[#allocation3 + $0x3c] sm:$0xf] }
  0x74   : > { %v664_v42 = vrot.slane %v659_v25, 4  ;;  %1749 = vmatprep.mubr.bf16.mxu0 %v1275_v39  ;;  %v1480_v43 = vrot.slane %v6582_v31, 1  ;;  %v945_v44 = vsel %vm6334_vm8, %v654_v32, %v944_v16  ;;  %v2249_v45 = vrot.slane %v2247_v37, 1  ;;  %v955_v32 = vld [vmem:[#allocation3 + $0x44] sm:$0x1] }
  0x75   : > { %1750 = vmatmul.mubr.bf16.gmra.mrb[12].mxu0 %v5974_v21  ;;  %v663_v46 = vsel %vm6328_vm7, %v655_v60, %v662_v41  ;;  %946 = vst [vmem:[#allocation3 + $0x30] sm:$0xf] %v945_v44  ;;  %v442_v48 = vadd.f32 %v6550_v38, %v403_v28  ;;  %v443_v36 = vadd.f32 %v6550_v38, %v404_v30  ;;  %v2252_v53 = vshrl.u32 %v6584_v6, 16 }
  0x76   : > { %v949_v47 = vsel %vm6319_vm6, %v664_v42, %v948_v12  ;;  %v1481_v51 = vsel %vm1436_vm9, %v1479_v26, %v1480_v43  ;;  %947 = vst [vmem:[#allocation3 + $0x34] sm:$0xf] %v663_v46  ;;  %v2245_v21 = vor.u32 %v2244_v13, %v2240_v49  ;;  %v2254_v54 = vshll.u32 %v6584_v6, 16 }
  0x77   : > { %950 = vst [vmem:[#allocation3 + $0x38] sm:$0x1] %v949_v47  ;;  %5636 = vmatprep.mubr.bf16.mxu1 %v1481_v51  ;;  %v474_v56 = vmax.f32 %v442_v48, 0.0  ;;  %v5033_v17 = vunpack.c.h.bf16 %v6555_v40  ;;  %v405_v57 = vmul.f32 %v6578_v27, %v5032_v52  ;;  %v5036_v58 = vunpack.c.l.bf16 %v6587_v34 }
  0x78   : > { %v6607_v55 = vld [vmem:[#allocation3 + $0xb4] sm:$0xff]   ;;  %v6614_v9 = vld [vmem:[#allocation3 + $0xbc] ss:$0 sps:$4 sm:$0xff]   ;;  %v475_v59 = vmax.f32 %v443_v36, 0.0  ;;  %v2256_v49 = vrot.slane %v2254_v54, 1  ;;  %v2259_v62 = vshll.u32 %v5993_v29, 16  ;;  %v2250_v7 = vsel %vm1227_vm0, %v2245_v21, %v2249_v45 }
  0x79   : > { %v2264_v1 = vshrl.u32 %v6600_v50, 16  ;;  %v1482_v2 = vrot.slane %v6607_v55, 1  ;;  %v4954_v4 = vpack.c.bf16 %v474_v56, %v474_v56  ;;  %v406_v3 = vmul.f32 %v6578_v27, %v5033_v17 }
  0x7a   : > { %v444_v40 = vadd.f32 %v6550_v38, %v405_v57  ;;  %v1483_v52 = vrot.slane %v6614_v9, 1  ;;  %v4955_v8 = vpack.c.bf16 %v475_v59, %v475_v59  ;;  %v2261_v10 = vrot.slane %v2259_v62, 1  ;;  %v958_v59 = vld [vmem:[#allocation3 + $0x48] sm:$0xf] }
  0x7b   : > { %v666_v11 = vshrl.u32 %v4954_v4, 16  ;;  %v669_v16 = vshll.u32 %v4954_v4, 16  ;;  %v445_v18 = vadd.f32 %v6550_v38, %v406_v3  ;;  %v2257_v25 = vor.u32 %v2256_v49, %v2252_v53 }
  0x7c   : > { %v476_v19 = vmax.f32 %v444_v40, 0.0  ;;  %v1484_v20 = vsel %vm1436_vm9, %v1482_v2, %v1483_v52  ;;  %v674_v12 = vshrl.u32 %v4955_v8, 16  ;;  %v677_v23 = vshll.u32 %v4955_v8, 16  ;;  %v962_v2 = vld [vmem:[#allocation3 + $0x50] sm:$0x1]  ;;  %v5998_v8 = vld [vmem:[%s7500_s3 + $0x148] sm:$0xff]  }
  0x7d   : > { %5637 = vmatmul.mubr.bf16.gmra.mrb[12].mxu1 %v1484_v20  ;;  %v6626_v28 = vld [vmem:[#allocation3 + $0x30] sm:$0xff]   ;;  %v668_v30 = vrot.slane %v666_v11, 7  ;;  %v5037_v13 = vunpack.c.h.bf16 %v6587_v34  ;;  %v407_v37 = vmul.f32 %v6578_v27, %v5036_v58  ;;  %v477_v26 = vmax.f32 %v445_v18, 0.0 }
  0x7e   : > { %v4956_v60 = vpack.c.bf16 %v476_v19, %v476_v19  ;;  %v6630_v29 = vld [vmem:[#allocation3 + $0x38] ss:$0 sps:$4 sm:$0xff]   ;;  %2736 = vmatprep.mubr.bf16.mxu1 %v2250_v7  ;;  %v676_v39 = vrot.slane %v674_v12, 7  ;;  %v2266_v41 = vshll.u32 %v6600_v50, 16  ;;  %v2271_v42 = vshll.u32 %v6616_v0, 16  ;;  %v6643_v3 = vld [vmem:[#allocation3 + $0x30] sm:$0xff]  }
  0x7f   : > { %v1277_v43 = vshrl.u32 %v6626_v28, 16  ;;  %v1279_v44 = vshll.u32 %v6626_v28, 16  ;;  %v671_v45 = vor.u32 %v669_v16, %v668_v30  ;;  %v672_v46 = vrot.slane %v668_v30, 4  ;;  %v6645_v40 = vld [vmem:[#allocation3 + $0x38] ss:$0 sps:$4 sm:$0xff]   ;;  %v6005_v12 = vld [vmem:[%s7500_s3 + $0x150] sm:$0xff]  }
  0x80   : > { %v1284_v47 = vshll.u32 %v6630_v29, 16  ;;  %v679_v34 = vor.u32 %v677_v23, %v676_v39  ;;  %v681_v48 = vrot.slane %v676_v39, 4  ;;  %v4957_v36 = vpack.c.bf16 %v477_v26, %v477_v26 }
  0x81   : > { %v1281_v51 = vrot.slane %v1279_v44, 1  ;;  %v952_v21 = vsel %vm6334_vm8, %v671_v45, %v951_v22  ;;  %v683_v53 = vshrl.u32 %v4956_v60, 16  ;;  %v686_v54 = vshll.u32 %v4956_v60, 16 }
  0x82   : > { %v1286_v56 = vrot.slane %v1284_v47, 1  ;;  %v680_v17 = vsel %vm6328_vm7, %v672_v46, %v679_v34  ;;  %953 = vst [vmem:[#allocation3 + $0x3c] sm:$0xf] %v952_v21  ;;  %v956_v57 = vsel %vm6319_vm6, %v681_v48, %v955_v32  ;;  %v691_v58 = vshrl.u32 %v4957_v36, 16  ;;  %v965_v34 = vld [vmem:[#allocation3 + $0x54] sm:$0xf] }
  0x83   : > { %v1282_v49 = vor.u32 %v1281_v51, %v1277_v43  ;;  %954 = vst [vmem:[#allocation3 + $0x40] sm:$0xf] %v680_v17  ;;  %957 = vst [vmem:[#allocation3 + $0x44] sm:$0x1] %v956_v57  ;;  %v685_v62 = vrot.slane %v683_v53, 7  ;;  %v694_v0 = vshll.u32 %v4957_v36, 16  ;;  %v2262_v52 = vsel %vm1227_vm0, %v2257_v25, %v2261_v10 }
  0x84   : > { %v2268_v4 = vrot.slane %v2266_v41, 1  ;;  %v693_v7 = vrot.slane %v691_v58, 7  ;;  %v408_v11 = vmul.f32 %v6578_v27, %v5037_v13  ;;  %v446_v16 = vadd.f32 %v6550_v38, %v407_v37  ;;  %v6010_v51 = vld [vmem:[%s7500_s3 + $0x158] sm:$0xff]  }
  0x85   : > { %v1287_v18 = vsel %vm1227_vm0, %v1282_v49, %v1286_v56  ;;  %2737 = vmatmul.mubr.bf16.vlgmr.msra.gmra.mrb[16].mxu1 %v6543_v35  ;;  %v688_v19 = vor.u32 %v686_v54, %v685_v62  ;;  %v689_v20 = vrot.slane %v685_v62, 4  ;;  %v2273_v32 = vrot.slane %v2271_v42, 1 }
  0x86   : > { %1757 = vmatprep.mubr.bf16.mxu0 %v1287_v18  ;;  %5641 = vmatpush3.bf16.msra.mxu1 %v6511_v33  ;;  %v696_v10 = vor.u32 %v694_v0, %v693_v7  ;;  %v698_v23 = vrot.slane %v693_v7, 4  ;;  %v447_v22 = vadd.f32 %v6550_v38, %v408_v11  ;;  %v478_v25 = vmax.f32 %v446_v16, 0.0 }
  0x87   : > { %1758 = vmatmul.mubr.bf16.gmra.mrb[16].mxu0 %v6626_v28  ;;  %2744 = vmatprep.mubr.bf16.mxu1 %v2262_v52  ;;  %v959_v35 = vsel %vm6334_vm8, %v688_v19, %v958_v59  ;;  %v2269_v30 = vor.u32 %v2268_v4, %v2264_v1  ;;  %v2278_v60 = vshll.u32 %v6643_v3, 16  ;;  %v2276_v26 = vshrl.u32 %v6643_v3, 16  ;;  %v6015_v4 = vld [vmem:[%s7500_s3 + $0x160] sm:$0xff]  }
  0x88   : > { %v697_v33 = vsel %vm6328_vm7, %v689_v20, %v696_v10  ;;  %960 = vst [vmem:[#allocation3 + $0x48] sm:$0xf] %v959_v35  ;;  %v963_v13 = vsel %vm6319_vm6, %v698_v23, %v962_v2  ;;  %5642 = vmatprep.subr.bf16.mxu1 %v5998_v8  ;;  %v479_v37 = vmax.f32 %v447_v22, 0.0  ;;  %v4958_v39 = vpack.c.bf16 %v478_v25, %v478_v25  ;;  %v969_v2 = vld [vmem:[#allocation3 + $0x5c] sm:$0x1]  ;;  %v6020_v23 = vld [vmem:[%s7500_s3 + $0x168] sm:$0xff]  }
  0x89   : > { %961 = vst [vmem:[#allocation3 + $0x4c] sm:$0xf] %v697_v33  ;;  %964 = vst [vmem:[#allocation3 + $0x50] sm:$0x1] %v963_v13  ;;  %v2280_v41 = vrot.slane %v2278_v60, 1  ;;  %v2283_v1 = vshll.u32 %v6645_v40, 16  ;;  %v2274_v46 = vsel %vm1227_vm0, %v2269_v30, %v2273_v32 }
  0x8a   : > { %v6672_v42 = vld [vmem:[#allocation3 + $0x3c] sm:$0xff]   ;;  %5643 = vmatpush3.bf16.msra.mxu1 %v5998_v8  ;;  %v4959_v43 = vpack.c.bf16 %v479_v37, %v479_v37  ;;  %v700_v44 = vshrl.u32 %v4958_v39, 16  ;;  %v6674_v45 = vld [vmem:[#allocation3 + $0x44] ss:$0 sps:$4 sm:$0xff]   ;;  %v703_v47 = vshll.u32 %v4958_v39, 16 }
  0x8b   : > { %v2285_v48 = vrot.slane %v2283_v1, 1  ;;  %v6677_v36 = vld [vmem:[#allocation3 + $0x3c] sm:$0xff]   ;;  %5644 = vmatprep.subr.bf16.mxu1 %v6005_v12  ;;  %v1289_v21 = vshrl.u32 %v6672_v42, 16  ;;  %v1291_v53 = vshll.u32 %v6672_v42, 16  ;;  %v1296_v17 = vshll.u32 %v6674_v45, 16 }
  0x8c   : > { %v702_v54 = vrot.slane %v700_v44, 7  ;;  %v708_v56 = vshrl.u32 %v4959_v43, 16  ;;  %v711_v57 = vshll.u32 %v4959_v43, 16  ;;  %v2281_v58 = vor.u32 %v2280_v41, %v2276_v26  ;;  %v6689_v7 = vld [vmem:[#allocation3 + $0x44] ss:$0 sps:$4 sm:$0xff]  }
  0x8d   : > { %2745 = vmatmul.mubr.bf16.gmra.mrb[20].mxu1 %v6584_v6  ;;  %v1293_v59 = vrot.slane %v1291_v53, 1  ;;  %v1298_v52 = vrot.slane %v1296_v17, 1  ;;  %v2290_v8 = vshll.u32 %v6677_v36, 16  ;;  %v2288_v10 = vshrl.u32 %v6677_v36, 16  ;;  %v6716_v41 = vld [vmem:[#allocation3 + $0x60] sm:$0xff]  }
  0x8e   : > { %2752 = vmatprep.mubr.bf16.mxu1 %v2274_v46  ;;  %v705_v49 = vor.u32 %v703_v47, %v702_v54  ;;  %v706_v62 = vrot.slane %v702_v54, 4  ;;  %v710_v0 = vrot.slane %v708_v56, 7  ;;  %5645 = vmatpush3.bf16.msra.mxu1 %v6005_v12  ;;  %v2286_v12 = vsel %vm1227_vm0, %v2281_v58, %v2285_v48  ;;  %v6027_v48 = vld [vmem:[%s7500_s3 + $0x170] sm:$0xff]   ;;  %v6092_v53 = vld [vmem:[#allocation3 + $0x68] ss:$0 sps:$4 sm:$0xff]  }
  0x8f   : > { %5646 = vmatprep.subr.bf16.mxu1 %v6010_v51  ;;  %v1294_v6 = vor.u32 %v1293_v59, %v1289_v21  ;;  %v2292_v33 = vrot.slane %v2290_v8, 1  ;;  %v2295_v13 = vshll.u32 %v6689_v7, 16  ;;  %v1327_v1 = vshll.u32 %v6716_v41, 16 }
  0x90   : > { %v6692_v11 = vld [vmem:[#allocation3 + $0x48] sm:$0xff]   ;;  %v713_v16 = vor.u32 %v711_v57, %v710_v0  ;;  %v715_v18 = vrot.slane %v710_v0, 4  ;;  %v966_v19 = vsel %vm6334_vm8, %v705_v49, %v965_v34  ;;  %v6696_v20 = vld [vmem:[#allocation3 + $0x50] ss:$0 sps:$4 sm:$0xff]   ;;  %v1332_v54 = vshll.u32 %v6092_v53, 16 }
  0x91   : > { %967 = vst [vmem:[#allocation3 + $0x54] sm:$0xf] %v966_v19  ;;  %v1299_v22 = vsel %vm1227_vm0, %v1294_v6, %v1298_v52  ;;  %v1301_v25 = vshrl.u32 %v6692_v11, 16  ;;  %v1303_v35 = vshll.u32 %v6692_v11, 16  ;;  %v1308_v32 = vshll.u32 %v6696_v20, 16  ;;  %v6712_v37 = vld [vmem:[#allocation3 + $0x48] sm:$0xff]  }
  0x92   : > { %v714_v30 = vsel %vm6328_vm7, %v706_v62, %v713_v16  ;;  %5647 = vmatpush3.bf16.msra.mxu1 %v6010_v51  ;;  %1765 = vmatprep.mubr.bf16.mxu0 %v1299_v22  ;;  %v970_v60 = vsel %vm6319_vm6, %v715_v18, %v969_v2  ;;  %v6719_v43 = vld [vmem:[#allocation3 + $0x50] ss:$0 sps:$4 sm:$0xff]   ;;  %v2302_v46 = vshll.u32 %v6712_v37, 16  ;;  %v2293_v47 = vor.u32 %v2292_v33, %v2288_v10 }
  0x93   : > { %968 = vst [vmem:[#allocation3 + $0x58] sm:$0xf] %v714_v30  ;;  %5648 = vmatprep.subr.bf16.mxu1 %v6015_v4  ;;  %1766 = vmatmul.mubr.bf16.gmra.mrb[20].mxu0 %v6672_v42  ;;  %v1305_v39 = vrot.slane %v1303_v35, 1  ;;  %971 = vst [vmem:[#allocation3 + $0x5c] sm:$0x1] %v970_v60  ;;  %v1310_v26 = vrot.slane %v1308_v32, 1 }
  0x94   : > { %v2297_v34 = vrot.slane %v2295_v13, 1  ;;  %v1325_v51 = vshrl.u32 %v6716_v41, 16  ;;  %v1329_v21 = vrot.slane %v1327_v1, 1  ;;  %v2300_v56 = vshrl.u32 %v6712_v37, 16  ;;  %v6741_v16 = vld [vmem:[#allocation3 + $0x6c] sm:$0xff]   ;;  %v6040_v30 = vld [vmem:[%s7500_s3 + $0x178] sm:$0xff]  }
  0x95   : > { %2753 = vmatmul.mubr.bf16.gmra.mrb[24].mxu1 %v6600_v50  ;;  %v1306_v44 = vor.u32 %v1305_v39, %v1301_v25  ;;  %v2307_v17 = vshll.u32 %v6719_v43, 16  ;;  %v2304_v58 = vrot.slane %v2302_v46, 1  ;;  %v1334_v6 = vrot.slane %v1332_v54, 1  ;;  %v6094_v13 = vld [vmem:[#allocation3 + $0x74] ss:$0 sps:$4 sm:$0xff]  }
  0x96   : > { %2760 = vmatprep.mubr.bf16.mxu1 %v2286_v12  ;;  %5649 = vmatpush3.bf16.msra.mxu1 %v6015_v4  ;;  %v2298_v49 = vsel %vm1227_vm0, %v2293_v47, %v2297_v34  ;;  %v1330_v52 = vor.u32 %v1329_v21, %v1325_v51  ;;  %v1339_v18 = vshll.u32 %v6741_v16, 16  ;;  %v1337_v35 = vshrl.u32 %v6741_v16, 16  ;;  %v6756_v47 = vld [vmem:[#allocation3 + $0x60] sm:$0xff]   ;;  %v6763_v21 = vld [vmem:[#allocation3 + $0x68] ss:$0 sps:$4 sm:$0xff]  }
  0x97   : > { %5650 = vmatprep.subr.bf16.mxu1 %v6020_v23  ;;  %v1311_v50 = vsel %vm1227_vm0, %v1306_v44, %v1310_v26  ;;  %v2309_v19 = vrot.slane %v2307_v17, 1  ;;  %v2305_v10 = vor.u32 %v2304_v58, %v2300_v56  ;;  %v1344_v39 = vshll.u32 %v6094_v13, 16 }
  0x98   : > { %1773 = vmatprep.mubr.bf16.mxu0 %v1311_v50  ;;  %v1335_v60 = vsel %vm1227_vm0, %v1330_v52, %v1334_v6  ;;  %v1341_v33 = vrot.slane %v1339_v18, 1  ;;  %v6760_v50 = vld [vmem:[#allocation3 + $0x78] sm:$0xff]   ;;  %v2326_v56 = vshll.u32 %v6756_v47, 16  ;;  %v2324_v52 = vshrl.u32 %v6756_v47, 16  ;;  %v6771_v18 = vld [vmem:[#allocation3 + $0x6c] sm:$0xff]  }
  0x99   : > { %v2310_v26 = vsel %vm1227_vm0, %v2305_v10, %v2309_v19  ;;  %v1351_v51 = vshll.u32 %v6760_v50, 16  ;;  %v1349_v58 = vshrl.u32 %v6760_v50, 16  ;;  %v2331_v6 = vshll.u32 %v6763_v21, 16  ;;  %v6774_v19 = vld [vmem:[#allocation3 + $0x84] sm:$0xff]  }
  0x9a   : > { %v6729_v57 = vld [vmem:[#allocation3 + $0x54] sm:$0xff]   ;;  %5651 = vmatpush3.bf16.msra.mxu1 %v6020_v23  ;;  %v6731_v59 = vld [vmem:[#allocation3 + $0x5c] ss:$0 sps:$4 sm:$0xff]   ;;  %v1342_v34 = vor.u32 %v1341_v33, %v1337_v35  ;;  %v2468_v5 = vrot.slane %v6756_v47, 1 }
  0x9b   : > { %5652 = vmatprep.subr.bf16.mxu1 %v6027_v48  ;;  %1774 = vmatmul.mubr.bf16.gmra.mrb[24].mxu0 %v6692_v11  ;;  %v1313_v62 = vshrl.u32 %v6729_v57, 16  ;;  %v1315_v0 = vshll.u32 %v6729_v57, 16  ;;  %v6737_v2 = vld [vmem:[#allocation3 + $0x54] sm:$0xff]   ;;  %v1320_v4 = vshll.u32 %v6731_v59, 16  ;;  %v6744_v23 = vld [vmem:[#allocation3 + $0x5c] ss:$0 sps:$4 sm:$0xff]  }
  0x9c   : > { %v2314_v22 = vshll.u32 %v6737_v2, 16  ;;  %v2312_v1 = vshrl.u32 %v6737_v2, 16  ;;  %v2319_v46 = vshll.u32 %v6744_v23, 16  ;;  %v2333_v35 = vrot.slane %v2331_v6, 1 }
  0x9d   : > { %2761 = vmatmul.mubr.bf16.gmra.mrb[28].mxu1 %v6643_v3  ;;  %v1317_v8 = vrot.slane %v1315_v0, 1  ;;  %v1322_v12 = vrot.slane %v1320_v4, 1 }
  0x9e   : > { %2768 = vmatprep.mubr.bf16.mxu1 %v2298_v49  ;;  %5653 = vmatpush3.bf16.msra.mxu1 %v6027_v48  ;;  %v2316_v44 = vrot.slane %v2314_v22, 1  ;;  %v1346_v48 = vrot.slane %v1344_v39, 1  ;;  %v2321_v54 = vrot.slane %v2319_v46, 1  ;;  %v1353_v49 = vrot.slane %v1351_v51, 1  ;;  %v6785_v39 = vld [vmem:[%s7500_s3 + $0x200] sm:$0xff]  }
  0x9f   : > { %v1318_v25 = vor.u32 %v1317_v8, %v1313_v62  ;;  %5654 = vmatprep.subr.bf16.mxu1 %v6040_v30  ;;  %v6096_v62 = vld [vmem:[#allocation3 + $0x80] ss:$0 sps:$4 sm:$0xff]   ;;  %v2328_v8 = vrot.slane %v2326_v56, 1  ;;  %v6797_v56 = vld [vmem:[#allocation3 + $0x90] sm:$0xff]  }
  0xa0   : > { %v2317_v53 = vor.u32 %v2316_v44, %v2312_v1  ;;  %v1347_v17 = vsel %vm1227_vm0, %v1342_v34, %v1346_v48  ;;  %v1356_v0 = vshll.u32 %v6096_v62, 16  ;;  %v1354_v10 = vor.u32 %v1353_v49, %v1349_v58  ;;  %v6789_v44 = vld [vmem:[#allocation3 + $0x78] sm:$0xff]   ;;  %v6801_v62 = vld [vmem:[#allocation3 + $0x80] ss:$0 sps:$4 sm:$0xff]  }
  0xa1   : > { %v1323_v32 = vsel %vm1227_vm0, %v1318_v25, %v1322_v12  ;;  %v1363_v12 = vshll.u32 %v6774_v19, 16  ;;  %v2329_v25 = vor.u32 %v2328_v8, %v2324_v52  ;;  %v1375_v1 = vshll.u32 %v6520_v14, 16  ;;  %v6100_v58 = vld [vmem:[#allocation3 + $0x98] ss:$0 sps:$4 sm:$0xff]  }
  0xa2   : > { %1781 = vmatprep.mubr.bf16.mxu0 %v1323_v32  ;;  %5655 = vmatpush3.bf16.msra.mxu1 %v6040_v30  ;;  %v2322_v4 = vsel %vm1227_vm0, %v2317_v53, %v2321_v54  ;;  %v1358_v22 = vrot.slane %v1356_v0, 1  ;;  %v6778_v30 = vld [vmem:[#allocation3 + $0x74] ss:$0 sps:$4 sm:$0xff]   ;;  %v2338_v32 = vshll.u32 %v6771_v18, 16  ;;  %v2336_v34 = vshrl.u32 %v6771_v18, 16 }
  0xa3   : > { %1782 = vmatmul.mubr.bf16.gmra.mrb[28].mxu0 %v6729_v57  ;;  %v1365_v33 = vrot.slane %v1363_v12, 1  ;;  %v2334_v46 = vsel %vm1227_vm0, %v2329_v25, %v2333_v35  ;;  %v2343_v51 = vshll.u32 %v6778_v30, 16  ;;  %5688 = vmatprep.subr.bf16.mxu1 %v6785_v39  ;;  %v1373_v14 = vshrl.u32 %v6797_v56, 16  ;;  %v5168_v25 = vld [vmem:[%s6271_s24 + $0x78] sm:$0xff]  }
  0xa4   : > { %1789 = vmatprep.mubr.bf16.mxu0 %v1335_v60  ;;  %v1361_v60 = vshrl.u32 %v6774_v19, 16  ;;  %v2340_v48 = vrot.slane %v2338_v32, 1  ;;  %v1380_v49 = vshll.u32 %v6100_v58, 16  ;;  %v2350_v0 = vshll.u32 %v6789_v44, 16  ;;  %v6814_v32 = vld [vmem:[#allocation3 + $0x84] sm:$0xff]  }
  0xa5   : > { %2769 = vmatmul.mubr.bf16.gmra.mrb[32].mxu1 %v6677_v36  ;;  %v1377_v52 = vrot.slane %v1375_v1, 1  ;;  %v2345_v6 = vrot.slane %v2343_v51, 1  ;;  %v1453_v12 = vrot.slane %v6674_v45, 1  ;;  %v2348_v35 = vshrl.u32 %v6789_v44, 16 }
  0xa6   : > { %2776 = vmatprep.mubr.bf16.mxu1 %v2310_v26  ;;  %v1359_v26 = vsel %vm1227_vm0, %v1354_v10, %v1358_v22  ;;  %v1366_v53 = vor.u32 %v1365_v33, %v1361_v60  ;;  %v2341_v8 = vor.u32 %v2340_v48, %v2336_v34  ;;  %v1456_v60 = vrot.slane %v6696_v20, 1  ;;  %v6829_v34 = vld [vmem:[#allocation3 + $0x9c] sm:$0xff]   ;;  %v6102_v48 = vld [vmem:[#allocation3 + $0xa4] ss:$0 sps:$4 sm:$0xff]  }
  0xa7   : > { %v2352_v45 = vrot.slane %v2350_v0, 1  ;;  %v2355_v33 = vshll.u32 %v6801_v62, 16  ;;  %v5072_v1 = vunpack.c.l.bf16 %v5168_v25  ;;  %v1392_v51 = vshll.u32 %v6102_v48, 16  ;;  %v6838_v0 = vld [vmem:[#allocation3 + $0x8c] ss:$0 sps:$4 sm:$0xff]  }
  0xa9   : > { %v2357_v58 = vrot.slane %v2355_v33, 1  ;;  %v2457_v33 = vrot.slane %v6645_v40, 1 }
  0xab   : > { %1790 = vmatmul.mubr.bf16.gmra.mrb[32].mxu0 %v6716_v41  ;;  %v6098_v41 = vld [vmem:[#allocation3 + $0x8c] ss:$0 sps:$4 sm:$0xff]  }
  0xac   : > { %1797 = vmatprep.mubr.bf16.mxu0 %v1347_v17  ;;  %v1368_v13 = vshll.u32 %v6098_v41, 16  ;;  %v1449_v17 = vrot.slane %v6626_v28, 1  ;;  %v1387_v28 = vshll.u32 %v6530_v61, 16  ;;  %v1458_v61 = vrot.slane %v6729_v57, 1 }
  0xad   : > { %2777 = vmatmul.mubr.bf16.gmra.mrb[36].mxu1 %v6712_v37  ;;  %v1459_v41 = vrot.slane %v6731_v59, 1  ;;  %v1378_v59 = vor.u32 %v1377_v52, %v1373_v14 }
  0xae   : > { %2784 = vmatprep.mubr.bf16.mxu1 %v2322_v4  ;;  %v1370_v54 = vrot.slane %v1368_v13, 1  ;;  %v1452_v4 = vrot.slane %v6672_v42, 1  ;;  %v1455_v42 = vrot.slane %v6692_v11, 1  ;;  %v2346_v13 = vsel %vm1227_vm0, %v2341_v8, %v2345_v6 }
  0xaf   : > { %v1385_v11 = vshrl.u32 %v6829_v34, 16  ;;  %v1389_v20 = vrot.slane %v1387_v28, 1  ;;  %v6833_v57 = vsel %vm1436_vm9, %v1458_v61, %v1459_v41  ;;  %v2360_v28 = vshrl.u32 %v6814_v32, 16 }
  0xb0   : > { %v1371_v10 = vsel %vm1227_vm0, %v1366_v53, %v1370_v54  ;;  %v1382_v53 = vrot.slane %v1380_v49, 1  ;;  %v425_v54 = vmul.f32 %v6578_v27, %v5072_v1  ;;  %v1397_v49 = vshrl.u32 %v6573_v24, 16  ;;  %v6856_v1 = vld [vmem:[#allocation3 + $0x98] ss:$0 sps:$4 sm:$0xff]  }
  0xb1   : > { %v1390_v6 = vor.u32 %v1389_v20, %v1385_v11  ;;  %v1399_v41 = vshll.u32 %v6573_v24, 16 }
  0xb2   : > { %v1383_v14 = vsel %vm1227_vm0, %v1378_v59, %v1382_v53  ;;  %v1032_v59 = vld [vmem:[#allocation3 + $0xc8] sm:$0x1] }
  0xb3   : > { %1798 = vmatmul.mubr.bf16.gmra.mrb[36].mxu0 %v6741_v16  ;;  %v1450_v16 = vrot.slane %v6630_v29, 1  ;;  %v6817_v29 = vsel %vm1436_vm9, %v1452_v4, %v1453_v12  ;;  %v464_v4 = vadd.f32 %v6550_v38, %v425_v54  ;;  %v1394_v12 = vrot.slane %v1392_v51, 1  ;;  %v1028_v51 = vld [vmem:[#allocation3 + $0xc0] sm:$0xf] }
  0xb4   : > { %1805 = vmatprep.mubr.bf16.mxu0 %v1359_v26  ;;  %v6826_v26 = vsel %vm1436_vm9, %v1455_v42, %v1456_v60  ;;  %v6848_v42 = vld [vmem:[#allocation3 + $0x90] sm:$0xff]   ;;  %v2459_v54 = vrot.slane %v6677_v36, 1 }
  0xb5   : > { %2785 = vmatmul.mubr.bf16.gmra.mrb[40].mxu1 %v6737_v2  ;;  %v6810_v22 = vsel %vm1436_vm9, %v1449_v17, %v1450_v16  ;;  %v2362_v16 = vshll.u32 %v6814_v32, 16  ;;  %v496_v52 = vmax.f32 %v464_v4, 0.0  ;;  %v1395_v61 = vsel %vm1227_vm0, %v1390_v6, %v1394_v12 }
  0xb6   : > { %2792 = vmatprep.mubr.bf16.mxu1 %v2334_v46  ;;  %v5073_v46 = vunpack.c.h.bf16 %v5168_v25  ;;  %v2463_v4 = vrot.slane %v6719_v43, 1 }
  0xb7   : > { %v2364_v25 = vrot.slane %v2362_v16, 1  ;;  %v4976_v60 = vpack.c.bf16 %v496_v52, %v496_v52  ;;  %v2462_v16 = vrot.slane %v6712_v37, 1 }
  0xb8   : > { %v426_v17 = vmul.f32 %v6578_v27, %v5073_v46 }
  0xb9   : > { %v853_v46 = vshrl.u32 %v4976_v60, 16  ;;  %v856_v11 = vshll.u32 %v4976_v60, 16  ;;  %v2465_v60 = vrot.slane %v6737_v2, 1  ;;  %v2471_v2 = vrot.slane %v6771_v18, 1 }
  0xba   : > { %v465_v8 = vadd.f32 %v6550_v38, %v426_v17  ;;  %v2456_v38 = vrot.slane %v6643_v3, 1  ;;  %v2365_v3 = vor.u32 %v2364_v25, %v2360_v28  ;;  %v2460_v17 = vrot.slane %v6689_v7, 1 }
  0xbb   : > { %1806 = vmatmul.mubr.bf16.gmra.mrb[40].mxu0 %v6760_v50  ;;  %v2353_v50 = vor.u32 %v2352_v45, %v2348_v35  ;;  %v2367_v35 = vshll.u32 %v6838_v0, 16  ;;  %v6875_v7 = vsel %vm1436_vm9, %v2462_v16, %v2463_v4  ;;  %v6929_v4 = vld [vmem:[#allocation3 + $0xb4] sm:$0xff]  }
  0xbc   : > { %1813 = vmatprep.mubr.bf16.mxu0 %v1371_v10  ;;  %v497_v10 = vmax.f32 %v465_v8, 0.0  ;;  %v6861_v24 = vsel %vm1436_vm9, %v2456_v38, %v2457_v33  ;;  %v6872_v36 = vsel %vm1436_vm9, %v2459_v54, %v2460_v17  ;;  %v2469_v33 = vrot.slane %v6763_v21, 1 }
  0xbd   : > { %2793 = vmatmul.mubr.bf16.gmra.mrb[44].mxu1 %v6756_v47  ;;  %v2358_v27 = vsel %vm1227_vm0, %v2353_v50, %v2357_v58  ;;  %v2369_v40 = vrot.slane %v2367_v35, 1  ;;  %v1401_v50 = vrot.slane %v1399_v41, 1  ;;  %v2372_v58 = vshrl.u32 %v6848_v42, 16 }
  0xbe   : > { %2800 = vmatprep.mubr.bf16.mxu1 %v2346_v13  ;;  %v4977_v45 = vpack.c.bf16 %v497_v10, %v497_v10  ;;  %v1404_v13 = vshll.u32 %v6582_v31, 16  ;;  %v855_v31 = vrot.slane %v853_v46, 7  ;;  %v2379_v10 = vshll.u32 %v6856_v1, 16 }
  0xbf   : > { %v2370_v28 = vsel %vm1227_vm0, %v2365_v3, %v2369_v40  ;;  %v1411_v35 = vshll.u32 %v6607_v55, 16  ;;  %v1402_v15 = vor.u32 %v1401_v50, %v1397_v49  ;;  %v2472_v49 = vrot.slane %v6778_v30, 1 }
  0xc0   : > { %v861_v20 = vshrl.u32 %v4977_v45, 16  ;;  %v864_v48 = vshll.u32 %v4977_v45, 16  ;;  %v858_v8 = vor.u32 %v856_v11, %v855_v31  ;;  %v859_v6 = vrot.slane %v855_v31, 4  ;;  %v6033_v31 = vld [vmem:[#allocation3 + $0xb0] ss:$0 sps:$4 sm:$0xff]  }
  0xc1   : > { %v2466_v45 = vrot.slane %v6744_v23, 1  ;;  %v1406_v38 = vrot.slane %v1404_v13, 1  ;;  %v2381_v47 = vrot.slane %v2379_v10, 1  ;;  %v1413_v13 = vrot.slane %v1411_v35, 1 }
  0xc2   : > { %v863_v53 = vrot.slane %v861_v20, 7  ;;  %v1029_v43 = vsel %vm6334_vm8, %v858_v8, %v1028_v51  ;;  %v1416_v21 = vshll.u32 %v6614_v9, 16  ;;  %v2474_v11 = vrot.slane %v6789_v44, 1  ;;  %v6039_v8 = vld [vmem:[#allocation3 + $0xbc] ss:$0 sps:$4 sm:$0xff]  }
  0xc3   : > { %1814 = vmatmul.mubr.bf16.gmra.mrb[44].mxu0 %v6774_v19  ;;  %v2374_v19 = vshll.u32 %v6848_v42, 16  ;;  %1030 = vst [vmem:[#allocation3 + $0xc0] sm:$0xf] %v1029_v43  ;;  %v6894_v46 = vsel %vm1436_vm9, %v2465_v60, %v2466_v45  ;;  %v1407_v20 = vsel %vm1227_vm0, %v1402_v15, %v1406_v38  ;;  %v2391_v3 = vshll.u32 %v6026_v63, 16 }
  0xc4   : > { %1821 = vmatprep.mubr.bf16.mxu0 %v1383_v14  ;;  %v866_v12 = vor.u32 %v864_v48, %v863_v53  ;;  %v868_v14 = vrot.slane %v863_v53, 4  ;;  %v2477_v9 = vrot.slane %v6814_v32, 1  ;;  %v2481_v53 = vrot.slane %v6856_v1, 1 }
  0xc5   : > { %2801 = vmatmul.mubr.bf16.gmra.mrb[48].mxu1 %v6771_v18  ;;  %v2376_v52 = vrot.slane %v2374_v19, 1  ;;  %v6907_v18 = vsel %vm1436_vm9, %v2471_v2, %v2472_v49  ;;  %v6909_v19 = vld [vmem:[#allocation3 + $0xa8] sm:$0xff]   ;;  %v1418_v17 = vrot.slane %v1416_v21, 1  ;;  %v2489_v60 = vrot.slane %v6929_v4, 1 }
  0xc6   : > { %2808 = vmatprep.mubr.bf16.mxu1 %v2358_v27  ;;  %v6869_v27 = vld [vmem:[#allocation3 + $0x9c] sm:$0xff]   ;;  %v867_v37 = vsel %vm6328_vm7, %v859_v6, %v866_v12  ;;  %v1033_v25 = vsel %vm6319_vm6, %v868_v14, %v1032_v59  ;;  %v2480_v59 = vrot.slane %v6848_v42, 1  ;;  %v2484_v6 = vrot.slane %v6026_v63, 1 }
  0xc7   : > { %1031 = vst [vmem:[#allocation3 + $0xc4] sm:$0xf] %v867_v37  ;;  %1034 = vst [vmem:[#allocation3 + $0xc8] sm:$0x1] %v1033_v25  ;;  %v2386_v41 = vshll.u32 %v6869_v27, 16  ;;  %v2377_v23 = vor.u32 %v2376_v52, %v2372_v58  ;;  %v2384_v48 = vshrl.u32 %v6869_v27, 16 }
  0xc8   : > { %v2393_v58 = vrot.slane %v2391_v3, 1  ;;  %v2483_v16 = vrot.slane %v6869_v27, 1  ;;  %v2403_v12 = vshll.u32 %v6033_v31, 16  ;;  %v2486_v1 = vrot.slane %v6909_v19, 1  ;;  %v6107_v3 = vld [vmem:[#allocation3 + $0xc] sm:$0xff]  }
  0xc9   : > { %v2388_v40 = vrot.slane %v2386_v41, 1  ;;  %v2487_v14 = vrot.slane %v6033_v31, 1  ;;  %v2490_v45 = vrot.slane %v6039_v8, 1  ;;  %v6105_v41 = vld [vmem:[#allocation3 + $0x8] ss:$0 sps:$4 sm:$0xff]  }
  0xca   : > { %v6937_v37 = vsel %vm1436_vm9, %v2483_v16, %v2484_v6  ;;  %v1438_v2 = vrot.slane %v6105_v41, 1  ;;  %v6110_v31 = vld [vmem:[#allocation3 + $0x20] ss:$0 sps:$4 sm:$0xff]   ;;  %v6028_v16 = vld [vmem:[%s7500_s3 + $0x1c8] sm:$0xff]  }
  0xcb   : > { %1822 = vmatmul.mubr.bf16.gmra.mrb[48].mxu0 %v6797_v56  ;;  %v1409_v56 = vshrl.u32 %v6607_v55, 16  ;;  %v2475_v55 = vrot.slane %v6801_v62, 1  ;;  %v2382_v62 = vsel %vm1227_vm0, %v2377_v23, %v2381_v47  ;;  %v2389_v50 = vor.u32 %v2388_v40, %v2384_v48  ;;  %v6036_v41 = vld [vmem:[%s7500_s3 + $0x1e0] sm:$0xff]  }
  0xcc   : > { %1829 = vmatprep.mubr.bf16.mxu0 %v1395_v61  ;;  %v6898_v61 = vsel %vm1436_vm9, %v2468_v5, %v2469_v33  ;;  %v6941_v35 = vsel %vm1436_vm9, %v2486_v1, %v2487_v14  ;;  %v6103_v5 = vld [vmem:[#allocation3 + $0xa8] sm:$0xff]   ;;  %v6947_v38 = vsel %vm1436_vm9, %v2489_v60, %v2490_v45  ;;  %v6104_v33 = vld [vmem:[#allocation3] sm:$0xff]   ;;  %v2405_v47 = vrot.slane %v2403_v12, 1  ;;  %v6030_v60 = vld [vmem:[%s7500_s3 + $0x1d0] sm:$0xff]  }
  0xcd   : > { %2809 = vmatmul.mubr.bf16.gmra.mrb[52].mxu1 %v6789_v44  ;;  %v6912_v30 = vsel %vm1436_vm9, %v2474_v11, %v2475_v55  ;;  %v2478_v44 = vrot.slane %v6838_v0, 1  ;;  %v1414_v54 = vor.u32 %v1413_v13, %v1409_v56  ;;  %v2398_v0 = vshll.u32 %v6909_v19, 16  ;;  %v6106_v11 = vld [vmem:[#allocation3 + $0xb4] sm:$0xff]   ;;  %v6029_v1 = vld [vmem:[%s7500_s3 + $0x188] sm:$0xff]  }
  0xce   : > { %2816 = vmatprep.mubr.bf16.mxu1 %v2370_v28  ;;  %v6934_v28 = vld [vmem:[#allocation3 + $0xc0] sm:$0xff]   ;;  %v2394_v43 = vsel %vm1227_vm0, %v2389_v50, %v2393_v58  ;;  %v6046_v25 = vld [vmem:[#allocation3 + $0xc8] ss:$0 sps:$4 sm:$0xff]   ;;  %v1437_v56 = vrot.slane %v6104_v33, 1  ;;  %v2410_v13 = vshll.u32 %v6929_v4, 16  ;;  %v2408_v55 = vshrl.u32 %v6929_v4, 16 }
  0xcf   : > { %v6919_v51 = vsel %vm1436_vm9, %v2477_v9, %v2478_v44  ;;  %v1419_v52 = vsel %vm1227_vm0, %v1414_v54, %v1418_v17  ;;  %v2400_v10 = vrot.slane %v2398_v0, 1  ;;  %v2492_v15 = vrot.slane %v6934_v28, 1  ;;  %v6108_v9 = vld [vmem:[#allocation3 + $0x14] ss:$0 sps:$4 sm:$0xff]   ;;  %v6024_v58 = vld [vmem:[%s7500_s3 + $0x180] sm:$0xff]   ;;  %v6982_v33 = vld [vmem:[#allocation3 + $0x18] sm:$0xff]  }
  0xd0   : > { %v2493_v63 = vrot.slane %v6046_v25, 1  ;;  %v1439_v21 = vsel %vm1436_vm9, %v1437_v56, %v1438_v2  ;;  %v2415_v48 = vshll.u32 %v6039_v8, 16  ;;  %v1440_v40 = vrot.slane %v6107_v3, 1  ;;  %v6111_v14 = vld [vmem:[#allocation3 + $0x24] sm:$0xff]   ;;  %v6035_v56 = vld [vmem:[%s7500_s3 + $0x198] sm:$0xff]  }
  0xd1   : > { %v1441_v44 = vrot.slane %v6108_v9, 1  ;;  %v2422_v0 = vshll.u32 %v6934_v28, 16  ;;  %v2420_v6 = vshrl.u32 %v6934_v28, 16  ;;  %v2427_v12 = vshll.u32 %v6046_v25, 16  ;;  %v6993_v2 = vld [vmem:[#allocation3 + $0x20] ss:$0 sps:$4 sm:$0xff]  }
  0xd2   : > { %v6950_v49 = vsel %vm1436_vm9, %v2492_v15, %v2493_v63  ;;  %v2417_v17 = vrot.slane %v2415_v48, 1  ;;  %v6031_v15 = vld [vmem:[%s7500_s3 + $0x190] sm:$0xff]   ;;  %v6034_v63 = vld [vmem:[%s7500_s3 + $0x1d8] sm:$0xff]   ;;  %v7004_v48 = vld [vmem:[#allocation3 + $0x24] sm:$0xff]  }
  0xd3   : > { %1830 = vmatmul.mubr.bf16.gmra.mrb[52].mxu0 %v6829_v34  ;;  %v6926_v34 = vsel %vm1436_vm9, %v2480_v59, %v2481_v53  ;;  %v1444_v53 = vrot.slane %v6110_v31, 1  ;;  %v1442_v50 = vsel %vm1436_vm9, %v1440_v40, %v1441_v44  ;;  %v2429_v25 = vrot.slane %v2427_v12, 1 }
  0xd4   : > { %1837 = vmatprep.mubr.bf16.mxu0 %v1407_v20  ;;  %v2412_v20 = vrot.slane %v2410_v13, 1 }
  0xd5   : > { %2817 = vmatmul.mubr.bf16.gmra.mrb[56].mxu1 %v6814_v32  ;;  %v2396_v32 = vshrl.u32 %v6909_v19, 16 }
  0xd6   : > { %2824 = vmatprep.mubr.bf16.mxu1 %v2382_v62  ;;  %v6109_v62 = vld [vmem:[#allocation3 + $0x18] sm:$0xff]   ;;  %v2413_v54 = vor.u32 %v2412_v20, %v2408_v55  ;;  %v3323_v20 = vshll.u32 %v6993_v2, 16 }
  0xd7   : > { %v2401_v23 = vor.u32 %v2400_v10, %v2396_v32  ;;  %v1443_v59 = vrot.slane %v6109_v62, 1  ;;  %v2424_v32 = vrot.slane %v2422_v0, 1  ;;  %v6112_v10 = vld [vmem:[#allocation3 + $0x2c] ss:$0 sps:$4 sm:$0xff]   ;;  %v3330_v0 = vshll.u32 %v7004_v48, 16 }
  0xd8   : > { %v2418_v8 = vsel %vm1227_vm0, %v2413_v54, %v2417_v17  ;;  %v3325_v54 = vrot.slane %v3323_v20, 1  ;;  %v7018_v17 = vld [vmem:[#allocation3 + $0x2c] ss:$0 sps:$4 sm:$0xff]   ;;  %v6063_v20 = vld [vmem:[%s7500_s3 + $0x220] sm:$0xff]  }
  0xd9   : > { %v2425_v45 = vor.u32 %v2424_v32, %v2420_v6  ;;  %v6118_v32 = vld [vmem:[#allocation3 + $0x2c] ss:$0 sps:$4 sm:$0xff]  }
  0xda   : > { %v2454_v12 = vrot.slane %v6118_v32, 1 }
  0xdb   : > { %1838 = vmatmul.mubr.bf16.gmra.mrb[56].mxu0 %v6103_v5 }
  0xdc   : > { %1845 = vmatprep.mubr.bf16.mxu0 %v1419_v52  ;;  %v1446_v52 = vrot.slane %v6111_v14, 1 }
  0xdd   : > { %2825 = vmatmul.mubr.bf16.gmra.mrb[60].mxu1 %v6848_v42  ;;  %v2406_v42 = vsel %vm1227_vm0, %v2401_v23, %v2405_v47  ;;  %v3318_v23 = vshll.u32 %v6982_v33, 16  ;;  %v6113_v47 = vld [vmem:[#allocation3 + $0xc] sm:$0xff]  }
  0xde   : > { %2832 = vmatprep.mubr.bf16.mxu1 %v2394_v43  ;;  %v1447_v43 = vrot.slane %v6112_v10, 1  ;;  %v2447_v13 = vrot.slane %v6113_v47, 1  ;;  %v3332_v10 = vrot.slane %v3330_v0, 1 }
  0xdf   : > { %v3320_v55 = vrot.slane %v3318_v23, 1 }
  0xe0   : > { %v1448_v5 = vsel %vm1436_vm9, %v1446_v52, %v1447_v43  ;;  %v3328_v52 = vshrl.u32 %v7004_v48, 16  ;;  %v3335_v43 = vshll.u32 %v7018_v17, 16 }
  0xe3   : > { %1846 = vmatmul.mubr.bf16.gmra.mrb[60].mxu0 %v6106_v11  ;;  %v6041_v11 = vld [vmem:[%s7500_s3 + $0x1e8] sm:$0xff]  }
  0xe4   : > { %5608 = vmatprep.mubr.bf16.mxu0 %v1439_v21  ;;  %v6114_v21 = vld [vmem:[#allocation3 + $0x14] ss:$0 sps:$4 sm:$0xff]  }
  0xe5   : > { %2833 = vmatmul.mubr.bf16.gmra.mrb[64].mxu1 %v6869_v27  ;;  %v1445_v27 = vsel %vm1436_vm9, %v1443_v59, %v1444_v53  ;;  %v6042_v59 = vld [vmem:[%s7500_s3 + $0x1a8] sm:$0xff]   ;;  %v6043_v53 = vld [vmem:[%s7500_s3 + $0x1f0] sm:$0xff]  }
  0xe6   : > { %2840 = vmatprep.mubr.bf16.mxu1 %v2406_v42  ;;  %v2448_v42 = vrot.slane %v6114_v21, 1 }
  0xe8   : > { %v2449_v9 = vsel %vm1436_vm9, %v2447_v13, %v2448_v42  ;;  %v7053_v42 = vld [vmem:[#allocation3 + $0x3c] sm:$0xff]  }
  0xeb   : > { %5609 = vmatmul.mubr.bf16.vlgmr.msra.gmra.mrb[64].mxu0 %v1442_v50 }
  0xec   : > { %5457 = vmatpush3.bf16.msra.mxu0 %v6024_v58  ;;  %5612 = vmatprep.mubr.bf16.mxu0 %v1445_v27  ;;  %v6115_v58 = vld [vmem:[#allocation3 + $0x18] sm:$0xff]  }
  0xed   : > { %5458 = vmatprep.subr.bf16.mxu0 %v6028_v16  ;;  %2841 = vmatmul.mubr.bf16.gmra.mrb[68].mxu1 %v6909_v19  ;;  %v2430_v19 = vsel %vm1227_vm0, %v2425_v45, %v2429_v25  ;;  %v2450_v16 = vrot.slane %v6115_v58, 1 }
  0xee   : > { %2848 = vmatprep.mubr.bf16.mxu1 %v2418_v8  ;;  %v6117_v8 = vld [vmem:[#allocation3 + $0x24] sm:$0xff]  }
  0xef   : > { %v2453_v6 = vrot.slane %v6117_v8, 1 }
  0xf0   : > { %5459 = vmatpush3.bf16.msra.mxu0 %v6029_v1  ;;  %v6047_v1 = vld [vmem:[%s7500_s3 + $0x1f8] sm:$0xff]  }
  0xf1   : > { %5460 = vmatprep.subr.bf16.mxu0 %v6030_v60  ;;  %v7032_v60 = vld [vmem:[#allocation3 + $0x30] sm:$0xff]   ;;  %v2455_v25 = vsel %vm1436_vm9, %v2453_v6, %v2454_v12  ;;  %v7094_v6 = vld [vmem:[#allocation3 + $0x5c] ss:$0 sps:$4 sm:$0xff]  }
  0xf2   : > { %v3340_v47 = vshrl.u32 %v7032_v60, 16 }
  0xf3   : > { %5613 = vmatmul.mubr.bf16.gmra.mrb[68].mxu0 %v1448_v5  ;;  %v6054_v5 = vld [vmem:[%s7500_s3 + $0x208] sm:$0xff]  }
  0xf4   : > { %5461 = vmatpush3.bf16.msra.mxu0 %v6031_v15  ;;  %5616 = vmatprep.mubr.bf16.mxu0 %v6810_v22  ;;  %v6037_v22 = vld [vmem:[%s7500_s3 + $0x1a0] sm:$0xff]   ;;  %v6048_v15 = vld [vmem:[%s7500_s3 + $0x1b8] sm:$0xff]  }
  0xf5   : > { %5462 = vmatprep.subr.bf16.mxu0 %v6034_v63  ;;  %2849 = vmatmul.mubr.bf16.gmra.mrb[72].mxu1 %v6929_v4  ;;  %v3316_v4 = vshrl.u32 %v6982_v33, 16  ;;  %v3333_v63 = vor.u32 %v3332_v10, %v3328_v52  ;;  %v3383_v10 = vshll.u32 %v7094_v6, 16 }
  0xf6   : > { %2856 = vmatprep.mubr.bf16.mxu1 %v2430_v19  ;;  %v3337_v19 = vrot.slane %v3335_v43, 1 }
  0xf8   : > { %5463 = vmatpush3.bf16.msra.mxu0 %v6035_v56  ;;  %v7043_v56 = vld [vmem:[#allocation3 + $0x38] ss:$0 sps:$4 sm:$0xff]   ;;  %v3338_v23 = vsel %vm1227_vm0, %v3333_v63, %v3337_v19  ;;  %v7109_v63 = vld [vmem:[#allocation3 + $0x68] ss:$0 sps:$4 sm:$0xff]  }
  0xf9   : > { %5464 = vmatprep.subr.bf16.mxu0 %v6036_v41  ;;  %v6057_v41 = vld [vmem:[%s7500_s3 + $0x210] sm:$0xff]   ;;  %v3347_v21 = vshll.u32 %v7043_v56, 16 }
  0xfb   : > { %5617 = vmatmul.mubr.bf16.gmra.mrb[72].mxu0 %v6817_v29  ;;  %v3321_v29 = vor.u32 %v3320_v55, %v3316_v4  ;;  %v7060_v4 = vld [vmem:[#allocation3 + $0x44] ss:$0 sps:$4 sm:$0xff]   ;;  %v3354_v55 = vshll.u32 %v7053_v42, 16 }
  0xfc   : > { %5465 = vmatpush3.bf16.msra.mxu0 %v6037_v22  ;;  %5620 = vmatprep.mubr.bf16.mxu0 %v6826_v26  ;;  %v6116_v26 = vld [vmem:[#allocation3 + $0x20] ss:$0 sps:$4 sm:$0xff]  }
  0xfd   : > { %5466 = vmatprep.subr.bf16.mxu0 %v6041_v11  ;;  %2857 = vmatmul.mubr.bf16.gmra.mrb[76].mxu1 %v6934_v28  ;;  %v2451_v27 = vrot.slane %v6116_v26, 1  ;;  %v6044_v28 = vld [vmem:[%s7500_s3 + $0x1b0] sm:$0xff]   ;;  %v3326_v14 = vsel %vm1227_vm0, %v3321_v29, %v3325_v54  ;;  %v3349_v11 = vrot.slane %v3347_v21, 1 }
  0xfe   : > { %5656 = vmatprep.mubr.bf16.mxu1 %v2449_v9  ;;  %v3356_v9 = vrot.slane %v3354_v55, 1  ;;  %v6069_v54 = vld [vmem:[%s7500_s3 + $0x230] sm:$0xff]  }
  0xff   : > { %v2452_v45 = vsel %vm1436_vm9, %v2450_v16, %v2451_v27  ;;  %v7087_v26 = vld [vmem:[#allocation3 + $0x54] sm:$0xff]  }
 0x100   : > { %5467 = vmatpush3.bf16.msra.mxu0 %v6042_v59  ;;  %v3378_v32 = vshll.u32 %v7087_v26, 16 }
 0x101   : > { %v5200_v3 = vpop.f32.mrb[0].mxu0  ;;  %5468 = vmatprep.subr.bf16.mxu0 %v6043_v53  ;;  %v7077_v53 = vld [vmem:[#allocation3 + $0x50] ss:$0 sps:$4 sm:$0xff]  }
 0x102   : > { %v5201_v40 = vpop.f32.mrb[1].mxu0  ;;  %v3380_v52 = vrot.slane %v3378_v32, 1  ;;  %v7149_v32 = vld [vmem:[#allocation3 + $0x8c] ss:$0 sps:$4 sm:$0xff]  }
 0x103   : > { %v7008_v44 = vadd.f32 %v5201_v40, %v5200_v3  ;;  %v5203_v62 = vpop.f32.mrb[2].mxu0  ;;  %5621 = vmatmul.mubr.bf16.gmra.mrb[76].mxu0 %v6833_v57  ;;  %v3342_v57 = vshll.u32 %v7032_v60, 16  ;;  %v3352_v40 = vshrl.u32 %v7053_v42, 16 }
 0x104   : > { %v5204_v31 = vpop.f32.mrb[3].mxu0  ;;  %5469 = vmatpush3.bf16.msra.mxu0 %v6044_v28  ;;  %3812 = vmatprep.mubr.bf16.mxu0 %v3326_v14  ;;  %v3376_v28 = vshrl.u32 %v7087_v26, 16 }
 0x105   : > { %v7021_v50 = vadd.f32 %v5204_v31, %v5203_v62  ;;  %5470 = vmatprep.subr.bf16.mxu0 %v6047_v1  ;;  %5657 = vmatmul.mubr.bf16.vlgmr.msra.gmra.mrb[80].mxu1 %v2452_v45  ;;  %v3344_v13 = vrot.slane %v3342_v57, 1  ;;  %v7070_v62 = vld [vmem:[#allocation3 + $0x48] sm:$0xff]   ;;  %v3357_v59 = vor.u32 %v3356_v9, %v3352_v40 }
 0x106   : > { %5689 = vmatpush3.bf16.msra.mxu1 %v6785_v39  ;;  %5660 = vmatprep.mubr.bf16.mxu1 %v2455_v25  ;;  %v6060_v39 = vld [vmem:[%s7500_s3 + $0x218] sm:$0xff]   ;;  %v3366_v29 = vshll.u32 %v7070_v62, 16  ;;  %v3364_v58 = vshrl.u32 %v7070_v62, 16 }
 0x107   : > { %5690 = vmatprep.subr.bf16.mxu1 %v6054_v5  ;;  %v3345_v22 = vor.u32 %v3344_v13, %v3340_v47  ;;  %v3395_v47 = vshll.u32 %v7109_v63, 16  ;;  %v7116_v13 = vld [vmem:[#allocation3 + $0x6c] sm:$0xff]  }
 0x108   : > { %5471 = vmatpush3.bf16.msra.mxu0 %v6048_v15  ;;  %v3368_v16 = vrot.slane %v3366_v29, 1  ;;  %v3385_v15 = vrot.slane %v3383_v10, 1 }
 0x109   : > { %v3350_v3 = vsel %vm1227_vm0, %v3345_v22, %v3349_v11  ;;  %v3397_v21 = vrot.slane %v3395_v47, 1  ;;  %v3400_v11 = vshrl.u32 %v7116_v13, 16  ;;  %v3536_v47 = vrot.slane %v7077_v53, 1 }
 0x10a   : > { %5691 = vmatpush3.bf16.msra.mxu1 %v6054_v5  ;;  %v3369_v27 = vor.u32 %v3368_v16, %v3364_v58  ;;  %v3381_v5 = vor.u32 %v3380_v52, %v3376_v28  ;;  %v3524_v58 = vrot.slane %v6993_v2, 1  ;;  %v3527_v28 = vrot.slane %v7018_v17, 1 }
 0x10b   : > { %3813 = vmatmul.mubr.bf16.vlgmr.msra.gmra.mrb[80].mxu0 %v6982_v33  ;;  %5692 = vmatprep.subr.bf16.mxu1 %v6057_v41 }
 0x10c   : > { %3820 = vmatprep.mubr.bf16.mxu0 %v3338_v23  ;;  %v3386_v57 = vsel %vm1227_vm0, %v3381_v5, %v3385_v15 }
 0x10d   : > { %5661 = vmatmul.mubr.bf16.gmra.mrb[84].mxu1 %v6861_v24  ;;  %v3359_v24 = vshll.u32 %v7060_v4, 16 }
 0x10e   : > { %5664 = vmatprep.mubr.bf16.mxu1 %v6872_v36  ;;  %5693 = vmatpush3.bf16.msra.mxu1 %v6057_v41  ;;  %v6066_v36 = vld [vmem:[%s7500_s3 + $0x228] sm:$0xff]  }
 0x10f   : > { %5694 = vmatprep.subr.bf16.mxu1 %v6060_v39  ;;  %v3361_v31 = vrot.slane %v3359_v24, 1 }
 0x111   : > { %v3362_v0 = vsel %vm1227_vm0, %v3357_v59, %v3361_v31  ;;  %v7133_v31 = vld [vmem:[#allocation3 + $0x80] ss:$0 sps:$4 sm:$0xff]  }
 0x112   : > { %5695 = vmatpush3.bf16.msra.mxu1 %v6060_v39  ;;  %v7120_v39 = vld [vmem:[#allocation3 + $0x74] ss:$0 sps:$4 sm:$0xff]  }
 0x113   : > { %3821 = vmatmul.mubr.bf16.gmra.mrb[84].mxu0 %v7004_v48  ;;  %5696 = vmatprep.subr.bf16.mxu1 %v6063_v20 }
 0x114   : > { %3828 = vmatprep.mubr.bf16.mxu0 %v3350_v3  ;;  %v7127_v3 = vld [vmem:[#allocation3 + $0x78] sm:$0xff]  }
 0x115   : > { %5665 = vmatmul.mubr.bf16.gmra.mrb[88].mxu1 %v6875_v7  ;;  %v3371_v7 = vshll.u32 %v7077_v53, 16  ;;  %v3414_v29 = vshll.u32 %v7127_v3, 16 }
 0x116   : > { %5668 = vmatprep.mubr.bf16.mxu1 %v6894_v46  ;;  %5697 = vmatpush3.bf16.msra.mxu1 %v6063_v20  ;;  %v6072_v46 = vld [vmem:[%s7500_s3 + $0x238] sm:$0xff]   ;;  %v3407_v20 = vshll.u32 %v7120_v39, 16 }
 0x117   : > { %5698 = vmatprep.subr.bf16.mxu1 %v6066_v36  ;;  %v3373_v8 = vrot.slane %v3371_v7, 1  ;;  %v3412_v7 = vshrl.u32 %v7127_v3, 16 }
 0x118   : > { %v3409_v59 = vrot.slane %v3407_v20, 1 }
 0x119   : > { %v3374_v14 = vsel %vm1227_vm0, %v3369_v27, %v3373_v8  ;;  %v7144_v27 = vld [vmem:[#allocation3 + $0x84] sm:$0xff]  }
 0x11a   : > { %5699 = vmatpush3.bf16.msra.mxu1 %v6066_v36  ;;  %v3426_v2 = vshll.u32 %v7144_v27, 16  ;;  %v3424_v10 = vshrl.u32 %v7144_v27, 16 }
 0x11b   : > { %3829 = vmatmul.mubr.bf16.gmra.mrb[88].mxu0 %v7032_v60  ;;  %5700 = vmatprep.subr.bf16.mxu1 %v6069_v54 }
 0x11c   : > { %3836 = vmatprep.mubr.bf16.mxu0 %v3362_v0  ;;  %v3523_v0 = vrot.slane %v6982_v33, 1 }
 0x11d   : > { %5669 = vmatmul.mubr.bf16.gmra.mrb[92].mxu1 %v6898_v61  ;;  %v7101_v61 = vld [vmem:[#allocation3 + $0x60] sm:$0xff]  }
 0x11e   : > { %5672 = vmatprep.mubr.bf16.mxu1 %v6907_v18  ;;  %5701 = vmatpush3.bf16.msra.mxu1 %v6069_v54  ;;  %v3390_v19 = vshll.u32 %v7101_v61, 16  ;;  %v3388_v41 = vshrl.u32 %v7101_v61, 16  ;;  %v3525_v8 = vsel %vm1436_vm9, %v3523_v0, %v3524_v58  ;;  %v3541_v0 = vrot.slane %v7101_v61, 1 }
 0x11f   : > { %5702 = vmatprep.subr.bf16.mxu1 %v6072_v46  ;;  %v3542_v58 = vrot.slane %v7109_v63, 1  ;;  %v7198_v63 = vld [vmem:[#allocation3 + $0xb0] ss:$0 sps:$4 sm:$0xff]  }
 0x120   : > { %v3392_v23 = vrot.slane %v3390_v19, 1  ;;  %v3532_v19 = vrot.slane %v7053_v42, 1 }
 0x121   : > { %v5206_v12 = vpop.f32.mrb[4].mxu0 }
 0x122   : > { %v5207_v1 = vpop.f32.mrb[5].mxu0  ;;  %5703 = vmatpush3.bf16.msra.mxu1 %v6072_v46  ;;  %v3416_v46 = vrot.slane %v3414_v29, 1  ;;  %v3539_v29 = vrot.slane %v7094_v6, 1 }
 0x123   : > { %v7103_v43 = vadd.f32 %v5207_v1, %v5206_v12  ;;  %v5209_v45 = vpop.f32.mrb[6].mxu0  ;;  %3837 = vmatmul.mubr.bf16.gmra.mrb[92].mxu0 %v7053_v42  ;;  %v3526_v12 = vrot.slane %v7004_v48, 1  ;;  %v3529_v1 = vrot.slane %v7032_v60, 1 }
 0x124   : > { %v5210_v25 = vpop.f32.mrb[7].mxu0  ;;  %3844 = vmatprep.mubr.bf16.mxu0 %v3374_v14  ;;  %v3530_v14 = vrot.slane %v7043_v56, 1  ;;  %v7164_v56 = vld [vmem:[#allocation3 + $0x98] ss:$0 sps:$4 sm:$0xff]  }
 0x125   : > { %v7106_v18 = vadd.f32 %v5210_v25, %v5209_v45  ;;  %5673 = vmatmul.mubr.bf16.gmra.mrb[0].mxu1 %v6912_v30  ;;  %v3393_v30 = vor.u32 %v3392_v23, %v3388_v41  ;;  %v3431_v45 = vshll.u32 %v7149_v32, 16  ;;  %v7159_v25 = vld [vmem:[#allocation3 + $0x90] sm:$0xff]   ;;  %v3528_v5 = vsel %vm1436_vm9, %v3526_v12, %v3527_v28 }
 0x126   : > { %5676 = vmatprep.mubr.bf16.mxu1 %v6919_v51  ;;  %v3402_v51 = vshll.u32 %v7116_v13, 16  ;;  %v3531_v48 = vsel %vm1436_vm9, %v3529_v1, %v3530_v14  ;;  %v3438_v15 = vshll.u32 %v7159_v25, 16  ;;  %v3535_v23 = vrot.slane %v7070_v62, 1 }
 0x127   : > { %v3398_v22 = vsel %vm1227_vm0, %v3393_v30, %v3397_v21  ;;  %v3433_v60 = vrot.slane %v3431_v45, 1  ;;  %v3436_v21 = vshrl.u32 %v7159_v25, 16  ;;  %v3443_v20 = vshll.u32 %v7164_v56, 16 }
 0x128   : > { %v3404_v55 = vrot.slane %v3402_v51, 1  ;;  %v3537_v53 = vsel %vm1436_vm9, %v3535_v23, %v3536_v47  ;;  %v3545_v12 = vrot.slane %v7120_v39, 1  ;;  %v3547_v1 = vrot.slane %v7127_v3, 1 }
 0x129   : > { %v3548_v14 = vrot.slane %v7133_v31, 1 }
 0x12b   : > { %3845 = vmatmul.mubr.bf16.gmra.mrb[96].mxu0 %v7070_v62 }
 0x12c   : > { %3852 = vmatprep.mubr.bf16.mxu0 %v3386_v57  ;;  %v3533_v57 = vrot.slane %v7060_v4, 1 }
 0x12d   : > { %5677 = vmatmul.mubr.bf16.gmra.mrb[4].mxu1 %v6926_v34 }
 0x12e   : > { %5680 = vmatprep.mubr.bf16.mxu1 %v6937_v37  ;;  %v3405_v37 = vor.u32 %v3404_v55, %v3400_v11  ;;  %v3440_v55 = vrot.slane %v3438_v15, 1  ;;  %v3534_v42 = vsel %vm1436_vm9, %v3532_v19, %v3533_v57 }
 0x130   : > { %v3410_v16 = vsel %vm1227_vm0, %v3405_v37, %v3409_v59  ;;  %v3538_v59 = vrot.slane %v7087_v26, 1 }
 0x132   : > { %v5212_v40 = vpop.f32.mrb[8].mxu0 }
 0x133   : > { %v5213_v9 = vpop.f32.mrb[9].mxu0  ;;  %3853 = vmatmul.mubr.bf16.gmra.mrb[100].mxu0 %v7087_v26  ;;  %v3543_v26 = vsel %vm1436_vm9, %v3541_v0, %v3542_v58 }
 0x134   : > { %v7130_v34 = vadd.f32 %v5213_v9, %v5212_v40  ;;  %v5215_v24 = vpop.f32.mrb[10].mxu0  ;;  %3860 = vmatprep.mubr.bf16.mxu0 %v3398_v22  ;;  %v7176_v40 = vld [vmem:[#allocation3 + $0x9c] sm:$0xff]   ;;  %v3441_v9 = vor.u32 %v3440_v55, %v3436_v21  ;;  %v3550_v55 = vrot.slane %v7144_v27, 1 }
 0x135   : > { %v5216_v36 = vpop.f32.mrb[11].mxu0  ;;  %5681 = vmatmul.mubr.bf16.gmra.mrb[8].mxu1 %v6941_v35  ;;  %v3419_v35 = vshll.u32 %v7133_v31, 16  ;;  %v3450_v37 = vshll.u32 %v7176_v40, 16 }
 0x136   : > { %v7136_v54 = vadd.f32 %v5216_v36, %v5215_v24  ;;  %5684 = vmatprep.mubr.bf16.mxu1 %v6947_v38  ;;  %v3417_v38 = vor.u32 %v3416_v46, %v3412_v7  ;;  %v3445_v24 = vrot.slane %v3443_v20, 1  ;;  %v7183_v36 = vld [vmem:[#allocation3 + $0xa4] ss:$0 sps:$4 sm:$0xff]   ;;  %v3448_v7 = vshrl.u32 %v7176_v40, 16 }
 0x137   : > { %v3421_v33 = vrot.slane %v3419_v35, 1  ;;  %v3452_v46 = vrot.slane %v3450_v37, 1  ;;  %v3455_v35 = vshll.u32 %v7183_v36, 16  ;;  %v3551_v20 = vrot.slane %v7149_v32, 1  ;;  %v7229_v37 = vld [vmem:[#allocation3 + $0xc0] sm:$0xff]  }
 0x139   : > { %v3422_v52 = vsel %vm1227_vm0, %v3417_v38, %v3421_v33  ;;  %v3540_v38 = vsel %vm1436_vm9, %v3538_v59, %v3539_v29  ;;  %v3453_v6 = vor.u32 %v3452_v46, %v3448_v7  ;;  %v3552_v32 = vsel %vm1436_vm9, %v3550_v55, %v3551_v20  ;;  %v6086_v7 = vld [vmem:[#allocation3 + $0xc8] ss:$0 sps:$4 sm:$0xff]  }
 0x13a   : > { %v3486_v46 = vshll.u32 %v7229_v37, 16 }
 0x13b   : > { %3861 = vmatmul.mubr.bf16.gmra.mrb[104].mxu0 %v7101_v61  ;;  %v3457_v61 = vrot.slane %v3455_v35, 1 }
 0x13c   : > { %3868 = vmatprep.mubr.bf16.mxu0 %v3410_v16  ;;  %v3446_v16 = vsel %vm1227_vm0, %v3441_v9, %v3445_v24 }
 0x13d   : > { %5685 = vmatmul.mubr.bf16.gmra.mrb[12].mxu1 %v6950_v49  ;;  %v3428_v49 = vrot.slane %v3426_v2, 1  ;;  %v3544_v2 = vrot.slane %v7116_v13, 1 }
 0x13e   : > { %5704 = vmatprep.mubr.bf16.mxu1 %v3525_v8  ;;  %v7193_v8 = vld [vmem:[#allocation3 + $0xa8] sm:$0xff]  }
 0x13f   : > { %v3429_v17 = vor.u32 %v3428_v49, %v3424_v10  ;;  %v3462_v33 = vshll.u32 %v7193_v8, 16  ;;  %v3460_v10 = vshrl.u32 %v7193_v8, 16 }
 0x141   : > { %v3434_v51 = vsel %vm1227_vm0, %v3429_v17, %v3433_v60  ;;  %v3464_v17 = vrot.slane %v3462_v33, 1  ;;  %v3467_v60 = vshll.u32 %v7198_v63, 16 }
 0x143   : > { %3869 = vmatmul.mubr.bf16.gmra.mrb[108].mxu0 %v7116_v13  ;;  %v7210_v13 = vld [vmem:[#allocation3 + $0xb4] sm:$0xff]   ;;  %v3469_v21 = vrot.slane %v3467_v60, 1  ;;  %v7251_v60 = vld [vmem:[#allocation3 + $0xcc] sm:$0xff]  }
 0x144   : > { %3876 = vmatprep.mubr.bf16.mxu0 %v3422_v52  ;;  %v3472_v24 = vshrl.u32 %v7210_v13, 16  ;;  %v3562_v55 = vrot.slane %v7210_v13, 1 }
 0x145   : > { %5705 = vmatmul.mubr.bf16.vlgmr.msra.gmra.mrb[80].mxu1 %v3528_v5  ;;  %v3458_v5 = vsel %vm1227_vm0, %v3453_v6, %v3457_v61  ;;  %v3556_v6 = vrot.slane %v7176_v40, 1  ;;  %v3557_v61 = vrot.slane %v7183_v36, 1 }
 0x146   : > { %5708 = vmatprep.mubr.bf16.mxu1 %v3531_v48 }
 0x148   : > { %v5218_v41 = vpop.f32.mrb[12].mxu0 }
 0x149   : > { %v5219_v30 = vpop.f32.mrb[13].mxu0 }
 0x14a   : > { %v7173_v22 = vadd.f32 %v5219_v30, %v5218_v41  ;;  %v5221_v11 = vpop.f32.mrb[14].mxu0  ;;  %v3549_v41 = vsel %vm1436_vm9, %v3547_v1, %v3548_v14  ;;  %v3465_v30 = vor.u32 %v3464_v17, %v3460_v10  ;;  %v3484_v10 = vshrl.u32 %v7229_v37, 16 }
 0x14b   : > { %v5222_v4 = vpop.f32.mrb[15].mxu0  ;;  %3877 = vmatmul.mubr.bf16.gmra.mrb[112].mxu0 %v7127_v3  ;;  %v3546_v3 = vsel %vm1436_vm9, %v3544_v2, %v3545_v12  ;;  %v3559_v12 = vrot.slane %v7193_v8, 1 }
 0x14c   : > { %v7180_v62 = vadd.f32 %v5222_v4, %v5221_v11  ;;  %3884 = vmatprep.mubr.bf16.mxu0 %v3434_v51  ;;  %v7221_v51 = vld [vmem:[#allocation3 + $0xbc] ss:$0 sps:$4 sm:$0xff]   ;;  %v3474_v11 = vshll.u32 %v7210_v13, 16  ;;  %v3553_v4 = vrot.slane %v7159_v25, 1  ;;  %v3470_v29 = vsel %vm1227_vm0, %v3465_v30, %v3469_v21  ;;  %v6088_v30 = vld [vmem:[#allocation3 + $0xd4] ss:$0 sps:$4 sm:$0xff]  }
 0x14d   : > { %5709 = vmatmul.mubr.bf16.gmra.mrb[84].mxu1 %v3534_v42  ;;  %v3498_v21 = vshll.u32 %v7251_v60, 16  ;;  %v3563_v20 = vrot.slane %v7221_v51, 1 }
 0x14e   : > { %5712 = vmatprep.mubr.bf16.mxu1 %v3537_v53  ;;  %v3554_v53 = vrot.slane %v7164_v56, 1  ;;  %v3476_v58 = vrot.slane %v3474_v11, 1 }
 0x150   : > { %v3555_v56 = vsel %vm1436_vm9, %v3553_v4, %v3554_v53  ;;  %v3477_v35 = vor.u32 %v3476_v58, %v3472_v24  ;;  %v3566_v53 = vrot.slane %v6086_v7, 1 }
 0x153   : > { %3885 = vmatmul.mubr.bf16.gmra.mrb[116].mxu0 %v7144_v27  ;;  %v3479_v27 = vshll.u32 %v7221_v51, 16 }
 0x154   : > { %3892 = vmatprep.mubr.bf16.mxu0 %v3446_v16 }
 0x155   : > { %5713 = vmatmul.mubr.bf16.gmra.mrb[88].mxu1 %v3540_v38  ;;  %v3481_v38 = vrot.slane %v3479_v27, 1 }
 0x156   : > { %5716 = vmatprep.mubr.bf16.mxu1 %v3543_v26 }
 0x158   : > { %v5336_v28 = vpop.f32.mrb[16].mxu1 }
 0x159   : > { %v5337_v52 = vpop.f32.mrb[17].mxu1 }
 0x15a   : > { %v5224_v49 = vpop.f32.mrb[16].mxu0  ;;  %v7206_v45 = vadd.f32 %v5337_v52, %v5336_v28  ;;  %v5339_v48 = vpop.f32.mrb[18].mxu1  ;;  %v3560_v28 = vrot.slane %v7198_v63, 1  ;;  %v3558_v63 = vsel %vm1436_vm9, %v3556_v6, %v3557_v61 }
 0x15b   : > { %v5225_v39 = vpop.f32.mrb[17].mxu0  ;;  %v5340_v15 = vpop.f32.mrb[19].mxu1  ;;  %3893 = vmatmul.mubr.bf16.gmra.mrb[120].mxu0 %v7159_v25 }
 0x15c   : > { %v7214_v31 = vadd.f32 %v5225_v39, %v5224_v49  ;;  %v5227_v19 = vpop.f32.mrb[18].mxu0  ;;  %v7216_v57 = vadd.f32 %v5340_v15, %v5339_v48  ;;  %3900 = vmatprep.mubr.bf16.mxu0 %v3458_v5  ;;  %v3488_v49 = vrot.slane %v3486_v46, 1  ;;  %v3491_v5 = vshll.u32 %v6086_v7, 16 }
 0x15d   : > { %v5228_v23 = vpop.f32.mrb[19].mxu0  ;;  %5717 = vmatmul.mubr.bf16.gmra.mrb[92].mxu1 %v3546_v3  ;;  %v3503_v46 = vshll.u32 %v6088_v30, 16 }
 0x15e   : > { %v7219_v47 = vadd.f32 %v5228_v23, %v5227_v19  ;;  %5720 = vmatprep.mubr.bf16.mxu1 %v3549_v41  ;;  %v3561_v19 = vsel %vm1436_vm9, %v3559_v12, %v3560_v28  ;;  %v3489_v41 = vor.u32 %v3488_v49, %v3484_v10  ;;  %v3493_v23 = vrot.slane %v3491_v5, 1 }
 0x15f   : > { %v3505_v61 = vrot.slane %v3503_v46, 1  ;;  %v3569_v12 = vrot.slane %v6088_v30, 1 }
 0x160   : > { %v5342_v42 = vpop.f32.mrb[20].mxu1 }
 0x161   : > { %v5343_v9 = vpop.f32.mrb[21].mxu1 }
 0x162   : > { %v7231_v59 = vadd.f32 %v5343_v9, %v5342_v42  ;;  %v5345_v0 = vpop.f32.mrb[22].mxu1 }
 0x163   : > { %v5346_v16 = vpop.f32.mrb[23].mxu1  ;;  %3901 = vmatmul.mubr.bf16.gmra.mrb[124].mxu0 %v7176_v40  ;;  %v3482_v40 = vsel %vm1227_vm0, %v3477_v35, %v3481_v38  ;;  %v3564_v38 = vsel %vm1436_vm9, %v3562_v55, %v3563_v20 }
 0x164   : > { %v7237_v25 = vadd.f32 %v5346_v16, %v5345_v0  ;;  %3908 = vmatprep.mubr.bf16.mxu0 %v3470_v29  ;;  %v3494_v0 = vsel %vm1227_vm0, %v3489_v41, %v3493_v23 }
 0x165   : > { %5721 = vmatmul.mubr.bf16.gmra.mrb[0].mxu1 %v3552_v32  ;;  %v3496_v32 = vshrl.u32 %v7251_v60, 16 }
 0x166   : > { %v5230_v26 = vpop.f32.mrb[20].mxu0  ;;  %5724 = vmatprep.mubr.bf16.mxu1 %v3555_v56  ;;  %v3500_v56 = vrot.slane %v3498_v21, 1 }
 0x167   : > { %v5231_v33 = vpop.f32.mrb[21].mxu0 }
 0x168   : > { %v5348_v2 = vpop.f32.mrb[24].mxu1  ;;  %v7245_v1 = vadd.f32 %v5231_v33, %v5230_v26  ;;  %v5233_v14 = vpop.f32.mrb[22].mxu0  ;;  %v3501_v6 = vor.u32 %v3500_v56, %v3496_v32 }
 0x169   : > { %v5349_v52 = vpop.f32.mrb[25].mxu1  ;;  %v5234_v48 = vpop.f32.mrb[23].mxu0 }
 0x16a   : > { %v7248_v17 = vadd.f32 %v5349_v52, %v5348_v2  ;;  %v5351_v36 = vpop.f32.mrb[26].mxu1  ;;  %v7253_v39 = vadd.f32 %v5234_v48, %v5233_v14  ;;  %v3568_v2 = vrot.slane %v7251_v60, 1  ;;  %v3506_v48 = vsel %vm1227_vm0, %v3501_v6, %v3505_v61 }
 0x16b   : > { %v5352_v15 = vpop.f32.mrb[27].mxu1  ;;  %3909 = vmatmul.mubr.bf16.gmra.mrb[128].mxu0 %v7193_v8  ;;  %v3565_v8 = vrot.slane %v7229_v37, 1 }
 0x16c   : > { %v7257_v3 = vadd.f32 %v5352_v15, %v5351_v36  ;;  %3916 = vmatprep.mubr.bf16.mxu0 %v3482_v40 }
 0x16d   : > { %5725 = vmatmul.mubr.bf16.gmra.mrb[4].mxu1 %v3558_v63  ;;  %v3567_v26 = vsel %vm1436_vm9, %v3565_v8, %v3566_v53  ;;  %v3570_v63 = vsel %vm1436_vm9, %v3568_v2, %v3569_v12 }
 0x16e   : > { %v5236_v11 = vpop.f32.mrb[24].mxu0  ;;  %5728 = vmatprep.mubr.bf16.mxu1 %v3561_v19 }
 0x16f   : > { %v5237_v42 = vpop.f32.mrb[25].mxu0 }
 0x170   : > { %v5354_v4 = vpop.f32.mrb[28].mxu1  ;;  %v7264_v9 = vadd.f32 %v5237_v42, %v5236_v11  ;;  %v5239_v24 = vpop.f32.mrb[26].mxu0 }
 0x171   : > { %v5355_v29 = vpop.f32.mrb[29].mxu1  ;;  %v5240_v58 = vpop.f32.mrb[27].mxu0 }
 0x172   : > { %v7267_v27 = vadd.f32 %v5355_v29, %v5354_v4  ;;  %v5357_v16 = vpop.f32.mrb[30].mxu1  ;;  %v7270_v51 = vadd.f32 %v5240_v58, %v5239_v24 }
 0x173   : > { %v5358_v35 = vpop.f32.mrb[31].mxu1  ;;  %3917 = vmatmul.mubr.bf16.gmra.mrb[132].mxu0 %v7210_v13 }
 0x174   : > { %v7274_v7 = vadd.f32 %v5358_v35, %v5357_v16  ;;  %3924 = vmatprep.mubr.bf16.mxu0 %v3494_v0 }
 0x175   : > { %5729 = vmatmul.mubr.bf16.gmra.mrb[8].mxu1 %v3564_v38 }
 0x176   : > { %v5242_v33 = vpop.f32.mrb[28].mxu0  ;;  %5732 = vmatprep.mubr.bf16.mxu1 %v3567_v26 }
 0x177   : > { %v5243_v28 = vpop.f32.mrb[29].mxu0 }
 0x178   : > { %v5360_v14 = vpop.f32.mrb[32].mxu1  ;;  %v7278_v52 = vadd.f32 %v5243_v28, %v5242_v33  ;;  %v5245_v10 = vpop.f32.mrb[30].mxu0 }
 0x179   : > { %v5361_v49 = vpop.f32.mrb[33].mxu1  ;;  %v5246_v13 = vpop.f32.mrb[31].mxu0 }
 0x17a   : > { %v7280_v5 = vadd.f32 %v5361_v49, %v5360_v14  ;;  %v5363_v40 = vpop.f32.mrb[34].mxu1  ;;  %v7283_v36 = vadd.f32 %v5246_v13, %v5245_v10 }
 0x17b   : > { %v5364_v15 = vpop.f32.mrb[35].mxu1  ;;  %3925 = vmatmul.mubr.bf16.gmra.mrb[136].mxu0 %v7229_v37 }
 0x17c   : > { %v7287_v19 = vadd.f32 %v5364_v15, %v5363_v40  ;;  %3932 = vmatprep.mubr.bf16.mxu0 %v3506_v48 }
 0x17d   : > { %5733 = vmatmul.mubr.bf16.gmra.mrb[12].mxu1 %v3570_v63 }
 0x17e   : > { %v5248_v41 = vpop.f32.mrb[32].mxu0 }
 0x17f   : > { %v5249_v23 = vpop.f32.mrb[33].mxu0 }
 0x180   : > { %v5366_v30 = vpop.f32.mrb[36].mxu1  ;;  %v5250_v21 = vadd.f32 %v5249_v23, %v5248_v41  ;;  %v5251_v11 = vpop.f32.mrb[34].mxu0 }
 0x181   : > { %v5367_v55 = vpop.f32.mrb[37].mxu1  ;;  %v5252_v20 = vpop.f32.mrb[35].mxu0 }
 0x182   : > { %v7289_v42 = vadd.f32 %v5367_v55, %v5366_v30  ;;  %v5369_v4 = vpop.f32.mrb[38].mxu1  ;;  %v5253_v8 = vadd.f32 %v5252_v20, %v5251_v11 }
 0x183   : > { %v5370_v53 = vpop.f32.mrb[39].mxu1  ;;  %3933 = vmatmul.mubr.bf16.gmra.mrb[140].mxu0 %v7251_v60 }
 0x184   : > { %v7292_v24 = vadd.f32 %v5370_v53, %v5369_v4 }
 0x186   : > { %v5254_v37 = vpop.f32.mrb[36].mxu0 }
 0x187   : > { %v5255_v29 = vpop.f32.mrb[37].mxu0 }
 0x188   : > { %v5372_v0 = vpop.f32.mrb[40].mxu1  ;;  %v5256_v58 = vadd.f32 %v5255_v29, %v5254_v37  ;;  %v5257_v16 = vpop.f32.mrb[38].mxu0 }
 0x189   : > { %v5373_v32 = vpop.f32.mrb[41].mxu1  ;;  %v5258_v56 = vpop.f32.mrb[39].mxu0 }
 0x18a   : > { %v7294_v46 = vadd.f32 %v5373_v32, %v5372_v0  ;;  %v5375_v35 = vpop.f32.mrb[42].mxu1  ;;  %v5259_v38 = vadd.f32 %v5258_v56, %v5257_v16 }
 0x18b   : > { %v5376_v26 = vpop.f32.mrb[43].mxu1 }
 0x18c   : > { %v7296_v6 = vadd.f32 %v5376_v26, %v5375_v35 }
 0x18e   : > { %v5260_v61 = vpop.f32.mrb[40].mxu0 }
 0x18f   : > { %v5261_v33 = vpop.f32.mrb[41].mxu0 }
 0x190   : > { %v5378_v2 = vpop.f32.mrb[44].mxu1  ;;  %v5262_v60 = vadd.f32 %v5261_v33, %v5260_v61  ;;  %v5263_v12 = vpop.f32.mrb[42].mxu0 }
 0x191   : > { %v5379_v28 = vpop.f32.mrb[45].mxu1  ;;  %v5264_v14 = vpop.f32.mrb[43].mxu0 }
 0x192   : > { %v7298_v10 = vadd.f32 %v5379_v28, %v5378_v2  ;;  %v5381_v49 = vpop.f32.mrb[46].mxu1  ;;  %v5265_v13 = vadd.f32 %v5264_v14, %v5263_v12 }
 0x193   : > { %v5382_v48 = vpop.f32.mrb[47].mxu1 }
 0x194   : > { %v7300_v40 = vadd.f32 %v5382_v48, %v5381_v49 }
 0x196   : > { %v5266_v15 = vpop.f32.mrb[44].mxu0 }
 0x197   : > { %v5267_v63 = vpop.f32.mrb[45].mxu0 }
 0x198   : > { %v5384_v41 = vpop.f32.mrb[48].mxu1  ;;  %v5268_v23 = vadd.f32 %v5267_v63, %v5266_v15  ;;  %v5269_v30 = vpop.f32.mrb[46].mxu0 }
 0x199   : > { %v5385_v11 = vpop.f32.mrb[49].mxu1  ;;  %v5270_v55 = vpop.f32.mrb[47].mxu0 }
 0x19a   : > { %v5386_v20 = vadd.f32 %v5385_v11, %v5384_v41  ;;  %v5387_v4 = vpop.f32.mrb[50].mxu1  ;;  %v5271_v53 = vadd.f32 %v5270_v55, %v5269_v30 }
 0x19b   : > { %v5388_v37 = vpop.f32.mrb[51].mxu1 }
 0x19c   : > { %v7302_v29 = vadd.f32 %v5386_v20, %v5250_v21  ;;  %v5389_v0 = vadd.f32 %v5388_v37, %v5387_v4 }
 0x19e   : > { %v7304_v16 = vadd.f32 %v5389_v0, %v5253_v8  ;;  %v5272_v32 = vpop.f32.mrb[48].mxu0 }
 0x19f   : > { %v5273_v56 = vpop.f32.mrb[49].mxu0 }
 0x1a0   : > { %v5390_v35 = vpop.f32.mrb[52].mxu1  ;;  %v5274_v26 = vadd.f32 %v5273_v56, %v5272_v32  ;;  %v5275_v61 = vpop.f32.mrb[50].mxu0 }
 0x1a1   : > { %v5391_v33 = vpop.f32.mrb[53].mxu1  ;;  %v5276_v2 = vpop.f32.mrb[51].mxu0 }
 0x1a2   : > { %v5392_v12 = vadd.f32 %v5391_v33, %v5390_v35  ;;  %v5393_v28 = vpop.f32.mrb[54].mxu1  ;;  %v5277_v14 = vadd.f32 %v5276_v2, %v5275_v61 }
 0x1a3   : > { %v5394_v49 = vpop.f32.mrb[55].mxu1 }
 0x1a4   : > { %v7306_v48 = vadd.f32 %v5392_v12, %v5256_v58  ;;  %v5395_v15 = vadd.f32 %v5394_v49, %v5393_v28 }
 0x1a6   : > { %v7308_v63 = vadd.f32 %v5395_v15, %v5259_v38  ;;  %v5278_v21 = vpop.f32.mrb[52].mxu0 }
 0x1a7   : > { %v5279_v41 = vpop.f32.mrb[53].mxu0 }
 0x1a8   : > { %7510 = vst [vmem:[#allocation4_spill] sm:$0xff] %v7308_v63  ;;  %v5396_v8 = vpop.f32.mrb[56].mxu1  ;;  %v5280_v30 = vadd.f32 %v5279_v41, %v5278_v21  ;;  %v5281_v11 = vpop.f32.mrb[54].mxu0 }
 0x1a9   : > { %v5397_v55 = vpop.f32.mrb[57].mxu1  ;;  %v5282_v20 = vpop.f32.mrb[55].mxu0 }
 0x1aa   : > { %v5398_v4 = vadd.f32 %v5397_v55, %v5396_v8  ;;  %v5399_v37 = vpop.f32.mrb[58].mxu1  ;;  %v5283_v0 = vadd.f32 %v5282_v20, %v5281_v11 }
 0x1ab   : > { %v5400_v32 = vpop.f32.mrb[59].mxu1 }
 0x1ac   : > { %v7310_v56 = vadd.f32 %v5398_v4, %v5262_v60  ;;  %v5401_v35 = vadd.f32 %v5400_v32, %v5399_v37 }
 0x1ae   : > { %v7312_v61 = vadd.f32 %v5401_v35, %v5265_v13  ;;  %v5284_v58 = vpop.f32.mrb[56].mxu0 }
 0x1af   : > { %v5285_v33 = vpop.f32.mrb[57].mxu0 }
 0x1b0   : > { %7511 = vst [vmem:[#allocation5_spill] sm:$0xff] %v7312_v61  ;;  %v5402_v38 = vpop.f32.mrb[60].mxu1  ;;  %v5286_v2 = vadd.f32 %v5285_v33, %v5284_v58  ;;  %v5287_v12 = vpop.f32.mrb[58].mxu0 }
 0x1b1   : > { %v5403_v28 = vpop.f32.mrb[61].mxu1  ;;  %v5288_v49 = vpop.f32.mrb[59].mxu0 }
 0x1b2   : > { %v5404_v15 = vadd.f32 %v5403_v28, %v5402_v38  ;;  %v5405_v21 = vpop.f32.mrb[62].mxu1  ;;  %v5289_v41 = vadd.f32 %v5288_v49, %v5287_v12 }
 0x1b3   : > { %v5406_v63 = vpop.f32.mrb[63].mxu1 }
 0x1b4   : > { %v7314_v8 = vadd.f32 %v5404_v15, %v5268_v23  ;;  %v5407_v11 = vadd.f32 %v5406_v63, %v5405_v21 }
 0x1b6   : > { %v7316_v55 = vadd.f32 %v5407_v11, %v5271_v53  ;;  %v5290_v60 = vpop.f32.mrb[60].mxu0 }
 0x1b7   : > { %v5291_v20 = vpop.f32.mrb[61].mxu0 }
 0x1b8   : > { %v5408_v13 = vpop.f32.mrb[64].mxu1  ;;  %v7318_v4 = vadd.f32 %v5291_v20, %v5290_v60  ;;  %v5293_v37 = vpop.f32.mrb[62].mxu0 }
 0x1b9   : > { %v5409_v32 = vpop.f32.mrb[65].mxu1  ;;  %v5294_v35 = vpop.f32.mrb[63].mxu0 }
 0x1ba   : > { %v5410_v58 = vadd.f32 %v5409_v32, %v5408_v13  ;;  %v5411_v33 = vpop.f32.mrb[66].mxu1  ;;  %v7320_v61 = vadd.f32 %v5294_v35, %v5293_v37 }
 0x1bb   : > { %v5412_v38 = vpop.f32.mrb[67].mxu1 }
 0x1bc   : > { %v7322_v12 = vadd.f32 %v5410_v58, %v5274_v26  ;;  %v5413_v23 = vadd.f32 %v5412_v38, %v5411_v33 }
 0x1be   : > { %v7324_v28 = vadd.f32 %v5413_v23, %v5277_v14  ;;  %v5610_v53 = vpop.f32.mrb[64].mxu0 }
 0x1bf   : > { %v1897_v63 = vadd.f32 %v5610_v53, %v7103_v43  ;;  %v1888_v49 = vpop.f32.mrb[65].mxu0 }
 0x1c0   : > { %v1889_v15 = vadd.f32 %v7008_v44, %v1888_v49  ;;  %v5611_v21 = vpop.f32.mrb[66].mxu0  ;;  %v5414_v11 = vpop.f32.mrb[68].mxu1 }
 0x1c1   : > { %v7329_v60 = vadd.f32 %v7231_v59, %v1897_v63  ;;  %v1900_v20 = vadd.f32 %v5611_v21, %v7106_v18  ;;  %v1891_v13 = vpop.f32.mrb[67].mxu0  ;;  %v5415_v37 = vpop.f32.mrb[69].mxu1 }
 0x1c2   : > { %v7333_v26 = vadd.f32 %v7206_v45, %v1889_v15  ;;  %v1892_v14 = vadd.f32 %v7021_v50, %v1891_v13  ;;  %v5416_v32 = vadd.f32 %v5415_v37, %v5414_v11  ;;  %v5417_v35 = vpop.f32.mrb[70].mxu1 }
 0x1c3   : > { %v7337_v43 = vadd.f32 %v7237_v25, %v1900_v20  ;;  %v5418_v44 = vpop.f32.mrb[71].mxu1 }
 0x1c4   : > { %v7340_v58 = vadd.f32 %v7216_v57, %v1892_v14  ;;  %v7342_v59 = vadd.f32 %v5416_v32, %v5280_v30  ;;  %v5419_v33 = vadd.f32 %v5418_v44, %v5417_v35 }
 0x1c6   : > { %v5614_v18 = vpop.f32.mrb[68].mxu0  ;;  %v7344_v38 = vadd.f32 %v5419_v33, %v5283_v0 }
 0x1c7   : > { %v1913_v45 = vadd.f32 %v5614_v18, %v7173_v22  ;;  %v1904_v23 = vpop.f32.mrb[69].mxu0 }
 0x1c8   : > { %v1905_v50 = vadd.f32 %v7130_v34, %v1904_v23  ;;  %v5615_v53 = vpop.f32.mrb[70].mxu0  ;;  %v5420_v63 = vpop.f32.mrb[72].mxu1 }
 0x1c9   : > { %v7349_v25 = vadd.f32 %v7267_v27, %v1913_v45  ;;  %v1916_v49 = vadd.f32 %v5615_v53, %v7180_v62  ;;  %v1907_v57 = vpop.f32.mrb[71].mxu0  ;;  %v5421_v15 = vpop.f32.mrb[73].mxu1 }
 0x1ca   : > { %v7353_v30 = vadd.f32 %v7248_v17, %v1905_v50  ;;  %v1908_v0 = vadd.f32 %v7136_v54, %v1907_v57  ;;  %v5422_v21 = vadd.f32 %v5421_v15, %v5420_v63  ;;  %v5423_v11 = vpop.f32.mrb[74].mxu1 }
 0x1cb   : > { %v7357_v22 = vadd.f32 %v7274_v7, %v1916_v49  ;;  %v5424_v34 = vpop.f32.mrb[75].mxu1 }
 0x1cc   : > { %v5781_v20 = vadd.f32 %v7257_v3, %v1908_v0  ;;  %v7360_v13 = vadd.f32 %v5422_v21, %v5286_v2  ;;  %v5425_v27 = vadd.f32 %v5424_v34, %v5423_v11 }
 0x1ce   : > { %v5618_v37 = vpop.f32.mrb[72].mxu0  ;;  %v7362_v62 = vadd.f32 %v5425_v27, %v5289_v41 }
 0x1cf   : > { %v1929_v14 = vadd.f32 %v5618_v37, %v7245_v1  ;;  %v1920_v17 = vpop.f32.mrb[73].mxu0 }
 0x1d0   : > { %v1921_v32 = vadd.f32 %v7214_v31, %v1920_v17  ;;  %v5619_v54 = vpop.f32.mrb[74].mxu0  ;;  %v5426_v35 = vpop.f32.mrb[76].mxu1 }
 0x1d1   : > { %v7367_v44 = vadd.f32 %v7289_v42, %v1929_v14  ;;  %v1932_v7 = vadd.f32 %v5619_v54, %v7253_v39  ;;  %v1923_v33 = vpop.f32.mrb[75].mxu0  ;;  %v5427_v3 = vpop.f32.mrb[77].mxu1 }
 0x1d2   : > { %v5789_v2 = vadd.f32 %v7280_v5, %v1921_v32  ;;  %v1924_v18 = vadd.f32 %v7219_v47, %v1923_v33  ;;  %v5428_v41 = vadd.f32 %v5427_v3, %v5426_v35  ;;  %v5429_v45 = vpop.f32.mrb[78].mxu1 }
 0x1d3   : > { %v7373_v1 = vadd.f32 %v7292_v24, %v1932_v7  ;;  %v5430_v23 = vpop.f32.mrb[79].mxu1 }
 0x1d4   : > { %v5797_v31 = vadd.f32 %v7287_v19, %v1924_v18  ;;  %v7377_v50 = vadd.f32 %v5428_v41, %v7318_v4  ;;  %v5431_v42 = vadd.f32 %v5430_v23, %v5429_v45 }
 0x1d6   : > { %v5622_v53 = vpop.f32.mrb[76].mxu0  ;;  %v7380_v39 = vadd.f32 %v5431_v42, %v7320_v61 }
 0x1d7   : > { %v1945_v5 = vadd.f32 %v5622_v53, %v7278_v52  ;;  %v1936_v63 = vpop.f32.mrb[77].mxu0 }
 0x1d8   : > { %v1937_v47 = vadd.f32 %v7264_v9, %v1936_v63  ;;  %v5623_v49 = vpop.f32.mrb[78].mxu0 }
 0x1d9   : > { %v7385_v24 = vadd.f32 %v7298_v10, %v1945_v5  ;;  %v1948_v57 = vadd.f32 %v5623_v49, %v7283_v36  ;;  %v1939_v19 = vpop.f32.mrb[79].mxu0 }
 0x1da   : > { %v5805_v4 = vadd.f32 %v7294_v46, %v1937_v47  ;;  %v1940_v15 = vadd.f32 %v7270_v51, %v1939_v19 }
 0x1db   : > { %v7391_v0 = vadd.f32 %v7300_v40, %v1948_v57 }
 0x1dc   : > { %v5813_v61 = vadd.f32 %v7296_v6, %v1940_v15 }
 0x1de   : > { %v5472_v52 = vpop.f32.mrb[80].mxu0 }
 0x1df   : > { %v5473_v21 = vpop.f32.mrb[81].mxu0 }
 0x1e0   : > { %v5474_v11 = vadd.f32 %v5473_v21, %v5472_v52  ;;  %v5475_v9 = vpop.f32.mrb[82].mxu0 }
 0x1e1   : > { %v5476_v34 = vpop.f32.mrb[83].mxu0 }
 0x1e2   : > { %v5477_v27 = vadd.f32 %v5476_v34, %v5475_v9  ;;  %v5758_v10 = vadd.f32 %v7333_v26, %v5474_v11 }
 0x1e4   : > { %v7396_v36 = vadd.f32 %v7340_v58, %v5477_v27 }
 0x1e6   : > { %v5478_v37 = vpop.f32.mrb[84].mxu0 }
 0x1e7   : > { %v5479_v46 = vpop.f32.mrb[85].mxu0 }
 0x1e8   : > { %v5480_v14 = vadd.f32 %v5479_v46, %v5478_v37  ;;  %v5481_v51 = vpop.f32.mrb[86].mxu0 }
 0x1e9   : > { %v5482_v17 = vpop.f32.mrb[87].mxu0 }
 0x1ea   : > { %v5483_v40 = vadd.f32 %v5482_v17, %v5481_v51  ;;  %v5754_v32 = vadd.f32 %v7329_v60, %v5480_v14 }
 0x1ec   : > { %v5762_v6 = vadd.f32 %v7337_v43, %v5483_v40 }
 0x1ee   : > { %v5484_v54 = vpop.f32.mrb[88].mxu0 }
 0x1ef   : > { %v5485_v35 = vpop.f32.mrb[89].mxu0 }
 0x1f0   : > { %v5486_v7 = vadd.f32 %v5485_v35, %v5484_v54  ;;  %v5487_v33 = vpop.f32.mrb[90].mxu0 }
 0x1f1   : > { %v5488_v3 = vpop.f32.mrb[91].mxu0 }
 0x1f2   : > { %v5489_v18 = vadd.f32 %v5488_v3, %v5487_v33  ;;  %v7401_v26 = vadd.f32 %v7353_v30, %v5486_v7 }
 0x1f4   : > { %v7403_v58 = vadd.f32 %v5781_v20, %v5489_v18 }
 0x1f6   : > { %v5490_v41 = vpop.f32.mrb[92].mxu0 }
 0x1f7   : > { %v5491_v45 = vpop.f32.mrb[93].mxu0 }
 0x1f8   : > { %v5492_v23 = vadd.f32 %v5491_v45, %v5490_v41  ;;  %v5493_v42 = vpop.f32.mrb[94].mxu0 }
 0x1f9   : > { %v5494_v53 = vpop.f32.mrb[95].mxu0 }
 0x1fa   : > { %v5495_v5 = vadd.f32 %v5494_v53, %v5493_v42  ;;  %v5770_v60 = vadd.f32 %v7349_v25, %v5492_v23 }
 0x1fc   : > { %v7407_v43 = vadd.f32 %v7357_v22, %v5495_v5 }
 0x1fe   : > { %v5496_v63 = vpop.f32.mrb[96].mxu0 }
 0x1ff   : > { %v5497_v47 = vpop.f32.mrb[97].mxu0 }
 0x200   : > { %v5498_v49 = vadd.f32 %v5497_v47, %v5496_v63  ;;  %v5499_v57 = vpop.f32.mrb[98].mxu0 }
 0x201   : > { %v5500_v19 = vpop.f32.mrb[99].mxu0 }
 0x202   : > { %v5501_v30 = vadd.f32 %v5500_v19, %v5499_v57  ;;  %v7409_v15 = vadd.f32 %v5789_v2, %v5498_v49 }
 0x204   : > { %v7411_v20 = vadd.f32 %v5797_v31, %v5501_v30 }
 0x206   : > { %v5502_v52 = vpop.f32.mrb[100].mxu0 }
 0x207   : > { %v5503_v21 = vpop.f32.mrb[101].mxu0 }
 0x208   : > { %v5504_v11 = vadd.f32 %v5503_v21, %v5502_v52  ;;  %v5505_v9 = vpop.f32.mrb[102].mxu0 }
 0x209   : > { %v5506_v34 = vpop.f32.mrb[103].mxu0 }
 0x20a   : > { %v5507_v27 = vadd.f32 %v5506_v34, %v5505_v9  ;;  %v7414_v25 = vadd.f32 %v7367_v44, %v5504_v11 }
 0x20c   : > { %v7417_v22 = vadd.f32 %v7373_v1, %v5507_v27 }
 0x20e   : > { %v5508_v37 = vpop.f32.mrb[104].mxu0 }
 0x20f   : > { %v5509_v46 = vpop.f32.mrb[105].mxu0 }
 0x210   : > { %v5510_v14 = vadd.f32 %v5509_v46, %v5508_v37  ;;  %v5511_v51 = vpop.f32.mrb[106].mxu0 }
 0x211   : > { %v5512_v2 = vpop.f32.mrb[107].mxu0 }
 0x212   : > { %v5513_v17 = vadd.f32 %v5512_v2, %v5511_v51  ;;  %v7419_v31 = vadd.f32 %v5805_v4, %v5510_v14 }
 0x214   : > { %v7421_v40 = vadd.f32 %v5813_v61, %v5513_v17 }
 0x216   : > { %v5514_v54 = vpop.f32.mrb[108].mxu0 }
 0x217   : > { %v5515_v35 = vpop.f32.mrb[109].mxu0 }
 0x218   : > { %v5516_v7 = vadd.f32 %v5515_v35, %v5514_v54  ;;  %v5517_v33 = vpop.f32.mrb[110].mxu0  ;;  %v5706_v44 = vpop.f32.mrb[80].mxu1 }
 0x219   : > { %v5518_v3 = vpop.f32.mrb[111].mxu0  ;;  %v5755_v18 = vadd.f32 %v5754_v32, %v5706_v44  ;;  %v3975_v1 = vpop.f32.mrb[81].mxu1 }
 0x21a   : > { %v5519_v41 = vadd.f32 %v5518_v3, %v5517_v33  ;;  %v5759_v45 = vadd.f32 %v5758_v10, %v3975_v1  ;;  %v5707_v23 = vpop.f32.mrb[82].mxu1  ;;  %v7424_v42 = vadd.f32 %v7385_v24, %v5516_v7 }
 0x21b   : > { %v5763_v53 = vadd.f32 %v5762_v6, %v5707_v23  ;;  %v3978_v4 = vpop.f32.mrb[83].mxu1  ;;  %v4430_v30 = vmul.f32 %v5755_v18, %v5755_v18 }
 0x21c   : > { %v5767_v61 = vadd.f32 %v7396_v36, %v3978_v4  ;;  %v7435_v32 = vadd.f32 %v7391_v0, %v5519_v41  ;;  %v4428_v63 = vmul.f32 %v5759_v45, %v5759_v45 }
 0x21d   : > { %v5082_v10 = vpack.c.bf16 %v5763_v53, %v5755_v18  ;;  %v4431_v36 = vmul.f32 %v5763_v53, %v5763_v53 }
 0x21e   : > { %v5520_v5 = vpop.f32.mrb[112].mxu0  ;;  %v5077_v24 = vpack.c.bf16 %v5767_v61, %v5759_v45  ;;  %v4390_v47 = vadd.f32 %v5767_v61, %v5759_v45  ;;  %v4429_v6 = vmul.f32 %v5767_v61, %v5767_v61 }
 0x21f   : > { %v5521_v49 = vpop.f32.mrb[113].mxu0  ;;  %5169 = vst [vmem:[%s7431_s10 + $0x8] sm:$0xff] %v5082_v10  }
 0x220   : > { %v5522_v57 = vadd.f32 %v5521_v49, %v5520_v5  ;;  %v5523_v19 = vpop.f32.mrb[114].mxu0  ;;  %5078 = vst [vmem:[%s7431_s10] sm:$0xff] %v5077_v24   ;;  %v4391_v52 = vadd.f32 %v5755_v18, %v4390_v47  ;;  %v4460_v21 = vadd.f32 %v4429_v6, %v4428_v63  ;;  %v5710_v11 = vpop.f32.mrb[84].mxu1 }
 0x221   : > { %v5524_v9 = vpop.f32.mrb[115].mxu0  ;;  %v5771_v34 = vadd.f32 %v5770_v60, %v5710_v11  ;;  %v3991_v0 = vpop.f32.mrb[85].mxu1 }
 0x222   : > { %v5525_v27 = vadd.f32 %v5524_v9, %v5523_v19  ;;  %v4461_v37 = vadd.f32 %v4460_v21, %v4430_v30  ;;  %v5775_v46 = vadd.f32 %v7401_v26, %v3991_v0  ;;  %v4392_v14 = vadd.f32 %v5763_v53, %v4391_v52  ;;  %v5711_v51 = vpop.f32.mrb[86].mxu1 }
 0x223   : > { %v5779_v2 = vadd.f32 %v7407_v43, %v5711_v51  ;;  %v3994_v17 = vpop.f32.mrb[87].mxu1  ;;  %v7442_v54 = vadd.f32 %v7302_v29, %v5522_v57  ;;  %v4434_v53 = vmul.f32 %v5771_v34, %v5771_v34 }
 0x224   : > { %v4393_v35 = vadd.f32 %v5775_v46, %v4392_v14  ;;  %v4432_v7 = vmul.f32 %v5775_v46, %v5775_v46  ;;  %v4462_v33 = vadd.f32 %v4461_v37, %v4431_v36  ;;  %v5783_v60 = vadd.f32 %v7403_v58, %v3994_v17 }
 0x225   : > { %v5092_v44 = vpack.c.bf16 %v5779_v2, %v5771_v34  ;;  %v7446_v3 = vadd.f32 %v7304_v16, %v5525_v27  ;;  %v4435_v58 = vmul.f32 %v5779_v2, %v5779_v2 }
 0x226   : > { %v5526_v26 = vpop.f32.mrb[116].mxu0  ;;  %v4463_v18 = vadd.f32 %v4462_v33, %v4432_v7  ;;  %v5087_v1 = vpack.c.bf16 %v5783_v60, %v5775_v46  ;;  %v4394_v41 = vadd.f32 %v5783_v60, %v4393_v35  ;;  %v4433_v45 = vmul.f32 %v5783_v60, %v5783_v60 }
 0x227   : > { %v5527_v43 = vpop.f32.mrb[117].mxu0  ;;  %5171 = vst [vmem:[%s7431_s10 + $0x18] sm:$0xff] %v5092_v44  }
 0x228   : > { %v5528_v23 = vadd.f32 %v5527_v43, %v5526_v26  ;;  %v5529_v29 = vpop.f32.mrb[118].mxu0  ;;  %5170 = vst [vmem:[%s7431_s10 + $0x10] sm:$0xff] %v5087_v1   ;;  %v4395_v4 = vadd.f32 %v5771_v34, %v4394_v41  ;;  %v4464_v61 = vadd.f32 %v4463_v18, %v4433_v45  ;;  %v5714_v10 = vpop.f32.mrb[88].mxu1  ;;  %v7512_v34 = vld [vmem:[#allocation4_spill] sm:$0xff] }
 0x229   : > { %v5530_v5 = vpop.f32.mrb[119].mxu0  ;;  %v5787_v63 = vadd.f32 %v7414_v25, %v5714_v10  ;;  %v4007_v16 = vpop.f32.mrb[89].mxu1 }
 0x22a   : > { %v5531_v24 = vadd.f32 %v5530_v5, %v5529_v29  ;;  %v4465_v47 = vadd.f32 %v4464_v61, %v4434_v53  ;;  %v5791_v6 = vadd.f32 %v7409_v15, %v4007_v16  ;;  %v4396_v49 = vadd.f32 %v5779_v2, %v4395_v4  ;;  %v5715_v57 = vpop.f32.mrb[90].mxu1  ;;  %v7513_v5 = vld [vmem:[#allocation5_spill] sm:$0xff] }
 0x22b   : > { %v5795_v19 = vadd.f32 %v7417_v22, %v5715_v57  ;;  %v4010_v30 = vpop.f32.mrb[91].mxu1  ;;  %v5817_v52 = vadd.f32 %v7306_v48, %v5528_v23  ;;  %v4438_v17 = vmul.f32 %v5787_v63, %v5787_v63 }
 0x22c   : > { %v4397_v21 = vadd.f32 %v5791_v6, %v4396_v49  ;;  %v4436_v11 = vmul.f32 %v5791_v6, %v5791_v6  ;;  %v4466_v9 = vadd.f32 %v4465_v47, %v4435_v58  ;;  %v5799_v36 = vadd.f32 %v7411_v20, %v4010_v30 }
 0x22d   : > { %v5102_v25 = vpack.c.bf16 %v5795_v19, %v5787_v63  ;;  %v5823_v0 = vadd.f32 %v7512_v34, %v5531_v24  ;;  %v4439_v60 = vmul.f32 %v5795_v19, %v5795_v19 }
 0x22e   : > { %v5532_v27 = vpop.f32.mrb[120].mxu0  ;;  %v4467_v37 = vadd.f32 %v4466_v9, %v4436_v11  ;;  %v5097_v15 = vpack.c.bf16 %v5799_v36, %v5791_v6  ;;  %v4398_v46 = vadd.f32 %v5799_v36, %v4397_v21  ;;  %v4437_v14 = vmul.f32 %v5799_v36, %v5799_v36 }
 0x22f   : > { %v5533_v51 = vpop.f32.mrb[121].mxu0  ;;  %5173 = vst [vmem:[%s7431_s10 + $0x28] sm:$0xff] %v5102_v25  }
 0x230   : > { %v5534_v22 = vadd.f32 %v5533_v51, %v5532_v27  ;;  %v5535_v2 = vpop.f32.mrb[122].mxu0  ;;  %5172 = vst [vmem:[%s7431_s10 + $0x20] sm:$0xff] %v5097_v15   ;;  %v4399_v48 = vadd.f32 %v5787_v63, %v4398_v46  ;;  %v4468_v35 = vadd.f32 %v4467_v37, %v4437_v14  ;;  %v5718_v7 = vpop.f32.mrb[92].mxu1 }
 0x231   : > { %v5536_v33 = vpop.f32.mrb[123].mxu0  ;;  %v5803_v20 = vadd.f32 %v7424_v42, %v5718_v7  ;;  %v4023_v44 = vpop.f32.mrb[93].mxu1 }
 0x232   : > { %v5537_v26 = vadd.f32 %v5536_v33, %v5535_v2  ;;  %v4469_v18 = vadd.f32 %v4468_v35, %v4438_v17  ;;  %v5807_v1 = vadd.f32 %v7419_v31, %v4023_v44  ;;  %v4400_v41 = vadd.f32 %v5795_v19, %v4399_v48  ;;  %v5719_v45 = vpop.f32.mrb[94].mxu1 }
 0x233   : > { %v5811_v43 = vadd.f32 %v7435_v32, %v5719_v45  ;;  %v4026_v23 = vpop.f32.mrb[95].mxu1  ;;  %v5832_v29 = vadd.f32 %v7310_v56, %v5534_v22  ;;  %v4442_v57 = vmul.f32 %v5803_v20, %v5803_v20 }
 0x234   : > { %v4401_v53 = vadd.f32 %v5807_v1, %v4400_v41  ;;  %v4440_v4 = vmul.f32 %v5807_v1, %v5807_v1  ;;  %v4470_v61 = vadd.f32 %v4469_v18, %v4439_v60  ;;  %v5815_v10 = vadd.f32 %v7421_v40, %v4026_v23 }
 0x235   : > { %v5112_v42 = vpack.c.bf16 %v5811_v43, %v5803_v20  ;;  %v5838_v58 = vadd.f32 %v7513_v5, %v5537_v26  ;;  %v4443_v11 = vmul.f32 %v5811_v43, %v5811_v43 }
 0x236   : > { %v5538_v63 = vpop.f32.mrb[124].mxu0  ;;  %v4471_v16 = vadd.f32 %v4470_v61, %v4440_v4  ;;  %v5107_v31 = vpack.c.bf16 %v5815_v10, %v5807_v1  ;;  %v4402_v24 = vadd.f32 %v5815_v10, %v4401_v53  ;;  %v4441_v47 = vmul.f32 %v5815_v10, %v5815_v10 }
 0x237   : > { %v5539_v6 = vpop.f32.mrb[125].mxu0  ;;  %5175 = vst [vmem:[%s7431_s10 + $0x38] sm:$0xff] %v5112_v42  }
 0x238   : > { %v5540_v32 = vadd.f32 %v5539_v6, %v5538_v63  ;;  %v5541_v49 = vpop.f32.mrb[126].mxu0  ;;  %5174 = vst [vmem:[%s7431_s10 + $0x30] sm:$0xff] %v5107_v31   ;;  %v4403_v56 = vadd.f32 %v5803_v20, %v4402_v24  ;;  %v4472_v19 = vadd.f32 %v4471_v16, %v4441_v47  ;;  %v5722_v30 = vpop.f32.mrb[0].mxu1 }
 0x239   : > { %v5542_v21 = vpop.f32.mrb[127].mxu0  ;;  %v5818_v40 = vadd.f32 %v5817_v52, %v5722_v30  ;;  %v4039_v9 = vpop.f32.mrb[1].mxu1 }
 0x23a   : > { %v5543_v36 = vadd.f32 %v5542_v21, %v5541_v49  ;;  %v4473_v25 = vadd.f32 %v4472_v19, %v4442_v57  ;;  %v5821_v34 = vadd.f32 %v7442_v54, %v4039_v9  ;;  %v4404_v27 = vadd.f32 %v5811_v43, %v4403_v56  ;;  %v5723_v37 = vpop.f32.mrb[2].mxu1 }
 0x23b   : > { %v5824_v15 = vadd.f32 %v5823_v0, %v5723_v37  ;;  %v4042_v46 = vpop.f32.mrb[3].mxu1  ;;  %v5829_v14 = vadd.f32 %v7314_v8, %v5540_v32  ;;  %v4446_v26 = vmul.f32 %v5818_v40, %v5818_v40 }
 0x23c   : > { %v4405_v51 = vadd.f32 %v5821_v34, %v4404_v27  ;;  %v4444_v22 = vmul.f32 %v5821_v34, %v5821_v34  ;;  %v4474_v2 = vadd.f32 %v4473_v25, %v4443_v11  ;;  %v5827_v17 = vadd.f32 %v7446_v3, %v4042_v46 }
 0x23d   : > { %v5122_v48 = vpack.c.bf16 %v5824_v15, %v5818_v40  ;;  %v5835_v52 = vadd.f32 %v7316_v55, %v5543_v36  ;;  %v4447_v45 = vmul.f32 %v5824_v15, %v5824_v15 }
 0x23e   : > { %v5544_v35 = vpop.f32.mrb[128].mxu0  ;;  %v4475_v7 = vadd.f32 %v4474_v2, %v4444_v22  ;;  %v5117_v33 = vpack.c.bf16 %v5827_v17, %v5821_v34  ;;  %v4406_v54 = vadd.f32 %v5827_v17, %v4405_v51  ;;  %v4445_v60 = vmul.f32 %v5827_v17, %v5827_v17 }
 0x23f   : > { %v5545_v20 = vpop.f32.mrb[129].mxu0  ;;  %5177 = vst [vmem:[%s7431_s10 + $0x48] sm:$0xff] %v5122_v48  }
 0x240   : > { %v5546_v0 = vadd.f32 %v5545_v20, %v5544_v35  ;;  %v5547_v44 = vpop.f32.mrb[130].mxu0  ;;  %5176 = vst [vmem:[%s7431_s10 + $0x40] sm:$0xff] %v5117_v33   ;;  %v4407_v8 = vadd.f32 %v5818_v40, %v4406_v54  ;;  %v4476_v18 = vadd.f32 %v4475_v7, %v4445_v60  ;;  %v5726_v1 = vpop.f32.mrb[4].mxu1 }
 0x241   : > { %v5548_v41 = vpop.f32.mrb[131].mxu0  ;;  %v5830_v3 = vadd.f32 %v5829_v14, %v5726_v1  ;;  %v4055_v43 = vpop.f32.mrb[5].mxu1 }
 0x242   : > { %v5549_v23 = vadd.f32 %v5548_v41, %v5547_v44  ;;  %v4477_v55 = vadd.f32 %v4476_v18, %v4446_v26  ;;  %v5833_v53 = vadd.f32 %v5832_v29, %v4055_v43  ;;  %v4408_v4 = vadd.f32 %v5824_v15, %v4407_v8  ;;  %v5727_v61 = vpop.f32.mrb[6].mxu1 }
 0x243   : > { %v5836_v10 = vadd.f32 %v5835_v52, %v5727_v61  ;;  %v4058_v42 = vpop.f32.mrb[7].mxu1  ;;  %v5844_v5 = vadd.f32 %v7322_v12, %v5546_v0  ;;  %v4450_v11 = vmul.f32 %v5830_v3, %v5830_v3 }
 0x244   : > { %v4409_v63 = vadd.f32 %v5833_v53, %v4408_v4  ;;  %v4448_v16 = vmul.f32 %v5833_v53, %v5833_v53  ;;  %v4478_v31 = vadd.f32 %v4477_v55, %v4447_v45  ;;  %v5839_v24 = vadd.f32 %v5838_v58, %v4058_v42 }
 0x245   : > { %v5132_v47 = vpack.c.bf16 %v5836_v10, %v5830_v3  ;;  %v5850_v6 = vadd.f32 %v7324_v28, %v5549_v23  ;;  %v4451_v25 = vmul.f32 %v5836_v10, %v5836_v10 }
 0x246   : > { %v5550_v32 = vpop.f32.mrb[132].mxu0  ;;  %v4479_v49 = vadd.f32 %v4478_v31, %v4448_v16  ;;  %v5127_v57 = vpack.c.bf16 %v5839_v24, %v5833_v53  ;;  %v4410_v56 = vadd.f32 %v5839_v24, %v4409_v63  ;;  %v4449_v29 = vmul.f32 %v5839_v24, %v5839_v24 }
 0x247   : > { %v5551_v19 = vpop.f32.mrb[133].mxu0  ;;  %5179 = vst [vmem:[%s7431_s10 + $0x58] sm:$0xff] %v5132_v47  }
 0x248   : > { %v5552_v30 = vadd.f32 %v5551_v19, %v5550_v32  ;;  %v5553_v21 = vpop.f32.mrb[134].mxu0  ;;  %5178 = vst [vmem:[%s7431_s10 + $0x50] sm:$0xff] %v5127_v57   ;;  %v4411_v12 = vadd.f32 %v5830_v3, %v4410_v56  ;;  %v4480_v40 = vadd.f32 %v4479_v49, %v4449_v29  ;;  %v5730_v9 = vpop.f32.mrb[8].mxu1 }
 0x249   : > { %v5554_v36 = vpop.f32.mrb[135].mxu0  ;;  %v4071_v58 = vpop.f32.mrb[9].mxu1 }
 0x24a   : > { %v5555_v34 = vadd.f32 %v5554_v36, %v5553_v21  ;;  %v4481_v27 = vadd.f32 %v4480_v40, %v4450_v11  ;;  %v5841_v28 = vadd.f32 %v7342_v59, %v5552_v30  ;;  %v5845_v37 = vadd.f32 %v5844_v5, %v4071_v58  ;;  %v5731_v15 = vpop.f32.mrb[10].mxu1 }
 0x24b   : > { %v4412_v46 = vadd.f32 %v5836_v10, %v4411_v12  ;;  %v4074_v14 = vpop.f32.mrb[11].mxu1 }
 0x24c   : > { %v5842_v51 = vadd.f32 %v5841_v28, %v5730_v9  ;;  %v4452_v22 = vmul.f32 %v5845_v37, %v5845_v37  ;;  %v4482_v2 = vadd.f32 %v4481_v27, %v4451_v25  ;;  %v5847_v17 = vadd.f32 %v7344_v38, %v5555_v34 }
 0x24d   : > { %v4413_v48 = vadd.f32 %v5845_v37, %v4412_v46  ;;  %v5851_v52 = vadd.f32 %v5850_v6, %v4074_v14 }
 0x24e   : > { %v5556_v35 = vpop.f32.mrb[136].mxu0  ;;  %v4483_v7 = vadd.f32 %v4482_v2, %v4452_v22  ;;  %v5848_v33 = vadd.f32 %v5847_v17, %v5731_v15  ;;  %v4454_v1 = vmul.f32 %v5842_v51, %v5842_v51 }
 0x24f   : > { %v5557_v54 = vpop.f32.mrb[137].mxu0  ;;  %v5137_v60 = vpack.c.bf16 %v5851_v52, %v5845_v37  ;;  %v4414_v20 = vadd.f32 %v5851_v52, %v4413_v48  ;;  %v4453_v59 = vmul.f32 %v5851_v52, %v5851_v52 }
 0x250   : > { %v5558_v0 = vadd.f32 %v5557_v54, %v5556_v35  ;;  %v5559_v44 = vpop.f32.mrb[138].mxu0  ;;  %v5142_v26 = vpack.c.bf16 %v5848_v33, %v5842_v51  ;;  %v5734_v8 = vpop.f32.mrb[12].mxu1  ;;  %v4455_v55 = vmul.f32 %v5848_v33, %v5848_v33 }
 0x251   : > { %v5560_v18 = vpop.f32.mrb[139].mxu0  ;;  %5180 = vst [vmem:[%s7431_s10 + $0x60] sm:$0xff] %v5137_v60   ;;  %v4415_v41 = vadd.f32 %v5842_v51, %v4414_v20  ;;  %v4484_v38 = vadd.f32 %v4483_v7, %v4453_v59  ;;  %v4087_v45 = vpop.f32.mrb[13].mxu1 }
 0x252   : > { %v5561_v3 = vadd.f32 %v5560_v18, %v5559_v44  ;;  %5181 = vst [vmem:[%s7431_s10 + $0x68] sm:$0xff] %v5142_v26   ;;  %v5856_v43 = vadd.f32 %v7360_v13, %v5558_v0  ;;  %v5735_v23 = vpop.f32.mrb[14].mxu1 }
 0x253   : > { %v4485_v53 = vadd.f32 %v4484_v38, %v4454_v1  ;;  %v4416_v4 = vadd.f32 %v5848_v33, %v4415_v41  ;;  %v4090_v61 = vpop.f32.mrb[15].mxu1 }
 0x254   : > { %v5857_v10 = vadd.f32 %v5856_v43, %v4087_v45  ;;  %v5862_v42 = vadd.f32 %v7362_v62, %v5561_v3 }
 0x255   : > { %v4486_v5 = vadd.f32 %v4485_v53, %v4455_v55 }
 0x256   : > { %v5562_v63 = vpop.f32.mrb[140].mxu0  ;;  %v4417_v16 = vadd.f32 %v5857_v10, %v4416_v4  ;;  %v4456_v31 = vmul.f32 %v5857_v10, %v5857_v10  ;;  %v5863_v24 = vadd.f32 %v5862_v42, %v4090_v61 }
 0x257   : > { %v5563_v47 = vpop.f32.mrb[141].mxu0 }
 0x258   : > { %v5564_v6 = vadd.f32 %v5563_v47, %v5562_v63  ;;  %v5565_v32 = vpop.f32.mrb[142].mxu0  ;;  %v4487_v49 = vadd.f32 %v4486_v5, %v4456_v31  ;;  %v5147_v57 = vpack.c.bf16 %v5863_v24, %v5857_v10  ;;  %v4418_v13 = vadd.f32 %v5863_v24, %v4417_v16 }
 0x259   : > { %v5566_v56 = vpop.f32.mrb[143].mxu0  ;;  %v4457_v29 = vmul.f32 %v5863_v24, %v5863_v24 }
 0x25a   : > { %v5567_v19 = vadd.f32 %v5566_v56, %v5565_v32  ;;  %v5853_v30 = vadd.f32 %v7377_v50, %v5564_v6  ;;  %5182 = vst [vmem:[%s7431_s10 + $0x70] sm:$0xff] %v5147_v57  }
 0x25b   : > { %v4488_v62 = vadd.f32 %v4487_v49, %v4457_v29 }
 0x25c   : > { %v5854_v21 = vadd.f32 %v5853_v30, %v5734_v8  ;;  %v5859_v11 = vadd.f32 %v7380_v39, %v5567_v19 }
 0x25e   : > { %v4458_v12 = vmul.f32 %v5854_v21, %v5854_v21  ;;  %v5860_v40 = vadd.f32 %v5859_v11, %v5735_v23  ;;  %v4419_v9 = vadd.f32 %v5854_v21, %v4418_v13 }
 0x260   : > { %v5152_v36 = vpack.c.bf16 %v5860_v40, %v5854_v21  ;;  %v4459_v25 = vmul.f32 %v5860_v40, %v5860_v40  ;;  %v4420_v58 = vadd.f32 %v5860_v40, %v4419_v9  ;;  %v4489_v34 = vadd.f32 %v4488_v62, %v4458_v12 }
 0x262   : > { %5183 = vst [vmem:[%s7431_s10 + $0x78] sm:$0xff] %v5152_v36   ;;  %v4421_v27 = vrot.slane %v4420_v58, 4  ;;  %v4490_v28 = vadd.f32 %v4489_v34, %v4459_v25 }
 0x264   : > { %v4422_v37 = vadd.f32 %v4421_v27, %v4420_v58  ;;  %v4491_v15 = vrot.slane %v4490_v28, 4 }
 0x266   : > { %v4423_v50 = vrot.slane %v4422_v37, 2  ;;  %v4492_v46 = vadd.f32 %v4491_v15, %v4490_v28 }
 0x268   : > { %v4424_v14 = vadd.f32 %v4423_v50, %v4422_v37  ;;  %v4493_v51 = vrot.slane %v4492_v46, 2 }
 0x26a   : > { %v4425_v22 = vrot.slane %v4424_v14, 1  ;;  %v4494_v39 = vadd.f32 %v4493_v51, %v4492_v46 }
 0x26c   : > { %v4426_v2 = vadd.f32 %v4425_v22, %v4424_v14  ;;  %v4495_v17 = vrot.slane %v4494_v39, 1 }
 0x26e   : > { %4427 = vst [vmem:[%s265_s12] sm:$0x1] %v4426_v2  ;;  %v4496_v48 = vadd.f32 %v4495_v17, %v4494_v39 }
 0x270   : > { %4497 = vst [vmem:[%s268_s16] sm:$0x1] %v4496_v48 }
 0x271 PF: > { %s17_s21 = sadd.s32 1, %s6125_s21  }
 0x272   : > { %p14_p4 = scmp.ge.s32.totalorder %s17_s21, 4  }
 0x274   :  { %16 = sbr.rel (!%p14_p4) target bundleno = 1 (0x1), region = 94 }

</bundles_post_ra>
